<compile_context>
chip_gen: v7x
topology: tpu7x:2x2x1
jax: 0.10.0
libtpu: 0.0.40
codegen_flags: <defaults>
</compile_context>

<pallas_src>
import jax
import jax.numpy as jnp
from jax.experimental import pallas as pl
from jax.experimental.pallas import tpu as pltpu


# ---------------------------------------------------------------------------
# In-kernel building blocks (operate on VMEM-resident values).
# Activation layout: (C, P) with P = H*W, p = h*W + w  (lane-dense).
# ---------------------------------------------------------------------------
def _conv3x3(a, wts, bias, masks, w_dim):
    """3x3 'same' conv as 9 accumulating MXU dots on lane-rolled activations.

    a:     (Cin, P)       f32
    wts:   (9, Cout, Cin) f32, tap t = kh*3 + kw
    bias:  (Cout, 1)      f32
    masks: (9, 1, P)      f32, 1.0 where the tap reads in-bounds
    """
    cout = wts.shape[1]
    p = a.shape[1]
    acc = jnp.zeros((cout, p), jnp.float32)
    for kh in range(3):
        for kw in range(3):
            t = kh * 3 + kw
            off = (kh - 1) * w_dim + (kw - 1)
            if off == 0:
                shifted = a
            else:
                # rolled[q] = a[q + off]; out-of-bounds taps are masked to 0,
                # reproducing torch's zero padding exactly.
                shifted = pltpu.roll(a, (-off) % p, axis=1) * masks[t]
            acc = acc + jnp.dot(wts[t], shifted,
                                preferred_element_type=jnp.float32)
    return acc + bias


def _maxpool2x2(a, w_dim, sel):
    """2x2/stride-2 max pool: two lane rolls + max, then a selection matmul."""
    p = a.shape[1]
    m = jnp.maximum(a, pltpu.roll(a, (-1) % p, axis=1))        # max over w, w+1
    m = jnp.maximum(m, pltpu.roll(m, (-w_dim) % p, axis=1))    # max over h, h+1
    # sel is a 0/1 matrix picking the (even h, even w) columns -> pooled grid.
    return jnp.dot(m, sel, preferred_element_type=jnp.float32)


# ---------------------------------------------------------------------------
# Kernel 1: fused conv1 -> conv2 -> pool1 -> conv3 -> conv4 -> pool2
# ---------------------------------------------------------------------------
def _features_kernel(x_ref, w1_ref, w2_ref, w3_ref, w4_ref,
                     b1_ref, b2_ref, b3_ref, b4_ref,
                     ma_ref, mb_ref, s1_ref, s2_ref, o_ref):
    x = x_ref[0]                                   # (8, 1024): 3 real + 5 pad
    ma = ma_ref[...]                               # (9, 1, 1024)
    mb = mb_ref[...]                               # (9, 1, 256)

    a = _conv3x3(x, w1_ref[...], b1_ref[...], ma, 32)     # (16, 1024)
    a = _conv3x3(a, w2_ref[...], b2_ref[...], ma, 32)     # (16, 1024)
    a = _maxpool2x2(a, 32, s1_ref[...])                   # (16, 256)
    a = _conv3x3(a, w3_ref[...], b3_ref[...], mb, 16)     # (32, 256)
    a = _conv3x3(a, w4_ref[...], b4_ref[...], mb, 16)     # (32, 256)
    a = _maxpool2x2(a, 16, s2_ref[...])                   # (32, 64) = [c, h*8+w]
    o_ref[0] = a


def _full_spec(shape):
    nd = len(shape)
    return pl.BlockSpec(shape, lambda *args, _nd=nd: (0,) * _nd)


def seriesnet_features(x8, prep):
    """x8: (B, 8, 1024) f32 (channel-padded input) -> (B, 32, 64) f32."""
    b_sz = x8.shape[0]
    in_arrays = (x8, prep["w1"], prep["w2"], prep["w3"], prep["w4"],
                 prep["b1"], prep["b2"], prep["b3"], prep["b4"],
                 prep["mask_a"], prep["mask_b"], prep["sel1"], prep["sel2"])
    in_specs = [pl.BlockSpec((1, 8, 1024), lambda b: (b, 0, 0))]
    in_specs += [_full_spec(a.shape) for a in in_arrays[1:]]
    return pl.pallas_call(
        _features_kernel,
        out_shape=jax.ShapeDtypeStruct((b_sz, 32, 64), jnp.float32),
        grid=(b_sz,),
        in_specs=in_specs,
        out_specs=pl.BlockSpec((1, 32, 64), lambda b: (b, 0, 0)),
        compiler_params=pltpu.CompilerParams(
            dimension_semantics=("parallel",)),
    )(*in_arrays)


# ---------------------------------------------------------------------------
# Kernel 2: flatten(torch order) -> fc1 -> out
# ---------------------------------------------------------------------------
def _head_kernel(x_ref, w1_ref, b1_ref, w2_ref, b2_ref, o_ref):
    h = jnp.dot(x_ref[...], w1_ref[...],
                preferred_element_type=jnp.float32) + b1_ref[...]
    o_ref[...] = jnp.dot(h, w2_ref[...],
                         preferred_element_type=jnp.float32) + b2_ref[...]


def seriesnet_head(xf, prep):
    b_sz = xf.shape[0]
    in_arrays = (xf, prep["fc1_wT"], prep["fc1_b"],
                 prep["out_wT"], prep["out_b"])
    return pl.pallas_call(
        _head_kernel,
        out_shape=jax.ShapeDtypeStruct((b_sz, 10), jnp.float32),
        grid=(1,),
        in_specs=[_full_spec(a.shape) for a in in_arrays],
        out_specs=_full_spec((b_sz, 10)),
        compiler_params=pltpu.CompilerParams(
            dimension_semantics=("arbitrary",)),
    )(*in_arrays)


# ---------------------------------------------------------------------------
# One-time parameter / constant preparation (hoisted out of the forward pass)
# ---------------------------------------------------------------------------
def _conv_masks(h_dim, w_dim):
    p = h_dim * w_dim
    hh = jnp.arange(p) // w_dim
    ww = jnp.arange(p) % w_dim
    rows = []
    for kh in range(3):
        for kw in range(3):
            dh, dw = kh - 1, kw - 1
            ok = ((hh + dh >= 0) & (hh + dh < h_dim) &
                  (ww + dw >= 0) & (ww + dw < w_dim))
            rows.append(ok.astype(jnp.float32))
    return jnp.stack(rows, axis=0).reshape(9, 1, p)


def _pool_select(h_dim, w_dim):
    ho, wo = h_dim // 2, w_dim // 2
    cols = jnp.arange(ho * wo)
    rows = 2 * (cols // wo) * w_dim + 2 * (cols % wo)
    sel = jnp.zeros((h_dim * w_dim, ho * wo), jnp.float32)
    return sel.at[rows, cols].set(1.0)


def _conv_taps(w, cin_pad=None):
    cout, cin = w.shape[0], w.shape[1]
    taps = jnp.transpose(w, (2, 3, 0, 1)).reshape(9, cout, cin)
    if cin_pad is not None and cin_pad > cin:
        taps = jnp.pad(taps, ((0, 0), (0, 0), (0, cin_pad - cin)))
    return taps


def prepare_params(params):
    return {
        "w1": _conv_taps(params["w1"], cin_pad=8),     # (9, 16, 8)
        "w2": _conv_taps(params["w2"]),                # (9, 16, 16)
        "w3": _conv_taps(params["w3"]),                # (9, 32, 16)
        "w4": _conv_taps(params["w4"]),                # (9, 32, 32)
        "b1": params["b1"].reshape(-1, 1),
        "b2": params["b2"].reshape(-1, 1),
        "b3": params["b3"].reshape(-1, 1),
        "b4": params["b4"].reshape(-1, 1),
        "mask_a": _conv_masks(32, 32),                 # (9, 1, 1024)
        "mask_b": _conv_masks(16, 16),                 # (9, 1, 256)
        "sel1": _pool_select(32, 32),                  # (1024, 256)
        "sel2": _pool_select(16, 16),                  # (256, 64)
        "fc1_wT": params["fc1_w"].T,                   # (2048, 64)
        "fc1_b": params["fc1_b"].reshape(1, -1),       # (1, 64)
        "out_wT": params["out_w"].T,                   # (64, 10)
        "out_b": params["out_b"].reshape(1, -1),       # (1, 10)
    }


# ---------------------------------------------------------------------------
# SeriesNet forward
# ---------------------------------------------------------------------------
def series_net_forward(x, prep):
    b_sz = x.shape[0]
    # (B, 3, 32, 32) -> (B, 8, 1024): free reshape + tiny zero channel-pad so
    # conv1's contraction dim is sublane-aligned (K=8 instead of 3).
    x8 = jnp.pad(x.reshape(b_sz, 3, 32 * 32), ((0, 0), (0, 5), (0, 0)))
    feats = seriesnet_features(x8, prep)           # (B, 32, 64) = [b, c, h*8+w]
    # torch nn.Flatten on NCHW: feature index = c*64 + h*8 + w, which is
    # exactly this contiguous reshape (8 KB, no transpose, no extra copy).
    xf = feats.reshape(b_sz, 32 * 64)              # (B, 2048)
    return seriesnet_head(xf, prep)                # (B, 10)


def init_params(key):
    ks = jax.random.split(key, 12)
    scale = 0.05

    def norm(k, shape):
        return scale * jax.random.normal(k, shape, dtype=jnp.float32)

    return {
        "w1": norm(ks[0], (16, 3, 3, 3)),   "b1": norm(ks[1], (16,)),
        "w2": norm(ks[2], (16, 16, 3, 3)),  "b2": norm(ks[3], (16,)),
        "w3": norm(ks[4], (32, 16, 3, 3)),  "b3": norm(ks[5], (32,)),
        "w4": norm(ks[6], (32, 32, 3, 3)),  "b4": norm(ks[7], (32,)),
        "fc1_w": norm(ks[8], (64, 2048)),   "fc1_b": norm(ks[9], (64,)),
        "out_w": norm(ks[10], (10, 64)),    "out_b": norm(ks[11], (10,)),
    }


if __name__ == "__main__":
    key = jax.random.PRNGKey(0)
    k_param, k_x = jax.random.split(key)
    params = init_params(k_param)
    prep = prepare_params(params)          # one-time weight/constant prep
    # fc1 expects 2048 = 32 * 8 * 8 features, which implies 3x32x32 inputs.
    x = jax.random.normal(k_x, (2, 3, 32, 32), dtype=jnp.float32)
    fwd = jax.jit(series_net_forward)
    out = jax.block_until_ready(fwd(x, prep))
    assert out.shape == (2, 10)
    print("KERNEL_OK")
</pallas_src>

<mosaic_0001>
module attributes {stable_mosaic.version = 11 : i64} {
  func.func @_features_kernel(%arg0: i32, %arg1: memref<1x8x1024xf32, #tpu.memory_space<vmem>>, %arg2: memref<9x16x8xf32, #tpu.memory_space<vmem>>, %arg3: memref<9x16x16xf32, #tpu.memory_space<vmem>>, %arg4: memref<9x32x16xf32, #tpu.memory_space<vmem>>, %arg5: memref<9x32x32xf32, #tpu.memory_space<vmem>>, %arg6: memref<16x1xf32, #tpu.memory_space<vmem>>, %arg7: memref<16x1xf32, #tpu.memory_space<vmem>>, %arg8: memref<32x1xf32, #tpu.memory_space<vmem>>, %arg9: memref<32x1xf32, #tpu.memory_space<vmem>>, %arg10: memref<9x1x1024xf32, #tpu.memory_space<vmem>>, %arg11: memref<9x1x256xf32, #tpu.memory_space<vmem>>, %arg12: memref<1024x256xf32, #tpu.memory_space<vmem>>, %arg13: memref<256x64xf32, #tpu.memory_space<vmem>>, %arg14: memref<1x32x64xf32, #tpu.memory_space<vmem>>) attributes {dimension_semantics = [#tpu.dimension_semantics<parallel>], iteration_bounds = array<i64: 2>, scalar_prefetch = 0 : i64, scratch_operands = 0 : i64, tpu.core_type = #tpu.core_type<tc>, window_params = [{transform_indices = @transform_0, window_bounds = array<i64: 1, 8, 1024>}, {pipeline_mode = #tpu.pipeline_mode<synchronous>, transform_indices = @transform_1, window_bounds = array<i64: 9, 16, 8>}, {pipeline_mode = #tpu.pipeline_mode<synchronous>, transform_indices = @transform_2, window_bounds = array<i64: 9, 16, 16>}, {pipeline_mode = #tpu.pipeline_mode<synchronous>, transform_indices = @transform_3, window_bounds = array<i64: 9, 32, 16>}, {pipeline_mode = #tpu.pipeline_mode<synchronous>, transform_indices = @transform_4, window_bounds = array<i64: 9, 32, 32>}, {pipeline_mode = #tpu.pipeline_mode<synchronous>, transform_indices = @transform_5, window_bounds = array<i64: 16, 1>}, {pipeline_mode = #tpu.pipeline_mode<synchronous>, transform_indices = @transform_6, window_bounds = array<i64: 16, 1>}, {pipeline_mode = #tpu.pipeline_mode<synchronous>, transform_indices = @transform_7, window_bounds = array<i64: 32, 1>}, {pipeline_mode = #tpu.pipeline_mode<synchronous>, transform_indices = @transform_8, window_bounds = array<i64: 32, 1>}, {pipeline_mode = #tpu.pipeline_mode<synchronous>, transform_indices = @transform_9, window_bounds = array<i64: 9, 1, 1024>}, {pipeline_mode = #tpu.pipeline_mode<synchronous>, transform_indices = @transform_10, window_bounds = array<i64: 9, 1, 256>}, {pipeline_mode = #tpu.pipeline_mode<synchronous>, transform_indices = @transform_11, window_bounds = array<i64: 1024, 256>}, {pipeline_mode = #tpu.pipeline_mode<synchronous>, transform_indices = @transform_12, window_bounds = array<i64: 256, 64>}, {transform_indices = @transform_13, window_bounds = array<i64: 1, 32, 64>}]} {
    %c0 = arith.constant 0 : index
    %c0_0 = arith.constant 0 : index
    %c0_1 = arith.constant 0 : index
    %0 = vector.load %arg1[%c0, %c0_0, %c0_1] : memref<1x8x1024xf32, #tpu.memory_space<vmem>>, vector<1x8x1024xf32>
    %1 = vector.shape_cast %0 : vector<1x8x1024xf32> to vector<8x1024xf32>
    %c0_2 = arith.constant 0 : index
    %c0_3 = arith.constant 0 : index
    %c0_4 = arith.constant 0 : index
    %2 = vector.load %arg10[%c0_2, %c0_3, %c0_4] : memref<9x1x1024xf32, #tpu.memory_space<vmem>>, vector<9x1x1024xf32>
    %c0_5 = arith.constant 0 : index
    %c0_6 = arith.constant 0 : index
    %c0_7 = arith.constant 0 : index
    %3 = vector.load %arg11[%c0_5, %c0_6, %c0_7] : memref<9x1x256xf32, #tpu.memory_space<vmem>>, vector<9x1x256xf32>
    %c0_8 = arith.constant 0 : index
    %c0_9 = arith.constant 0 : index
    %c0_10 = arith.constant 0 : index
    %4 = vector.load %arg2[%c0_8, %c0_9, %c0_10] : memref<9x16x8xf32, #tpu.memory_space<vmem>>, vector<9x16x8xf32>
    %c0_11 = arith.constant 0 : index
    %c0_12 = arith.constant 0 : index
    %5 = vector.load %arg6[%c0_11, %c0_12] : memref<16x1xf32, #tpu.memory_space<vmem>>, vector<16x1xf32>
    %cst = arith.constant 0.000000e+00 : f32
    %6 = vector.broadcast %cst : f32 to vector<16x1024xf32>
    %c33_i32 = arith.constant 33 : i32
    %7 = tpu.dynamic_rotate %1 by %c33_i32 dim 1 : vector<8x1024xf32>, i32 -> vector<8x1024xf32>
    %8 = vector.extract_strided_slice %2 {offsets = [0, 0, 0], sizes = [1, 1, 1024], strides = [1, 1, 1]} : vector<9x1x1024xf32> to vector<1x1x1024xf32>
    %9 = vector.shape_cast %8 : vector<1x1x1024xf32> to vector<1x1024xf32>
    %10 = vector.broadcast %9 : vector<1x1024xf32> to vector<8x1024xf32>
    %11 = arith.mulf %7, %10 : vector<8x1024xf32>
    %12 = vector.extract_strided_slice %4 {offsets = [0, 0, 0], sizes = [1, 16, 8], strides = [1, 1, 1]} : vector<9x16x8xf32> to vector<1x16x8xf32>
    %13 = vector.shape_cast %12 : vector<1x16x8xf32> to vector<16x8xf32>
    %cst_13 = arith.constant dense<0.000000e+00> : vector<16x1024xf32>
    %14 = tpu.matmul %13, %11, %cst_13 {dimension_numbers = #tpu.dot_dimension_numbers<[1], [0], [0], [1], [0, 0, 1, 1], [], []>} : vector<16x8xf32>, vector<8x1024xf32>, vector<16x1024xf32> -> vector<16x1024xf32>
    %15 = arith.addf %6, %14 : vector<16x1024xf32>
    %c32_i32 = arith.constant 32 : i32
    %16 = tpu.dynamic_rotate %1 by %c32_i32 dim 1 : vector<8x1024xf32>, i32 -> vector<8x1024xf32>
    %17 = vector.extract_strided_slice %2 {offsets = [1, 0, 0], sizes = [1, 1, 1024], strides = [1, 1, 1]} : vector<9x1x1024xf32> to vector<1x1x1024xf32>
    %18 = vector.shape_cast %17 : vector<1x1x1024xf32> to vector<1x1024xf32>
    %19 = vector.broadcast %18 : vector<1x1024xf32> to vector<8x1024xf32>
    %20 = arith.mulf %16, %19 : vector<8x1024xf32>
    %21 = vector.extract_strided_slice %4 {offsets = [1, 0, 0], sizes = [1, 16, 8], strides = [1, 1, 1]} : vector<9x16x8xf32> to vector<1x16x8xf32>
    %22 = vector.shape_cast %21 : vector<1x16x8xf32> to vector<16x8xf32>
    %cst_14 = arith.constant dense<0.000000e+00> : vector<16x1024xf32>
    %23 = tpu.matmul %22, %20, %cst_14 {dimension_numbers = #tpu.dot_dimension_numbers<[1], [0], [0], [1], [0, 0, 1, 1], [], []>} : vector<16x8xf32>, vector<8x1024xf32>, vector<16x1024xf32> -> vector<16x1024xf32>
    %24 = arith.addf %15, %23 : vector<16x1024xf32>
    %c31_i32 = arith.constant 31 : i32
    %25 = tpu.dynamic_rotate %1 by %c31_i32 dim 1 : vector<8x1024xf32>, i32 -> vector<8x1024xf32>
    %26 = vector.extract_strided_slice %2 {offsets = [2, 0, 0], sizes = [1, 1, 1024], strides = [1, 1, 1]} : vector<9x1x1024xf32> to vector<1x1x1024xf32>
    %27 = vector.shape_cast %26 : vector<1x1x1024xf32> to vector<1x1024xf32>
    %28 = vector.broadcast %27 : vector<1x1024xf32> to vector<8x1024xf32>
    %29 = arith.mulf %25, %28 : vector<8x1024xf32>
    %30 = vector.extract_strided_slice %4 {offsets = [2, 0, 0], sizes = [1, 16, 8], strides = [1, 1, 1]} : vector<9x16x8xf32> to vector<1x16x8xf32>
    %31 = vector.shape_cast %30 : vector<1x16x8xf32> to vector<16x8xf32>
    %cst_15 = arith.constant dense<0.000000e+00> : vector<16x1024xf32>
    %32 = tpu.matmul %31, %29, %cst_15 {dimension_numbers = #tpu.dot_dimension_numbers<[1], [0], [0], [1], [0, 0, 1, 1], [], []>} : vector<16x8xf32>, vector<8x1024xf32>, vector<16x1024xf32> -> vector<16x1024xf32>
    %33 = arith.addf %24, %32 : vector<16x1024xf32>
    %c1_i32 = arith.constant 1 : i32
    %34 = tpu.dynamic_rotate %1 by %c1_i32 dim 1 : vector<8x1024xf32>, i32 -> vector<8x1024xf32>
    %35 = vector.extract_strided_slice %2 {offsets = [3, 0, 0], sizes = [1, 1, 1024], strides = [1, 1, 1]} : vector<9x1x1024xf32> to vector<1x1x1024xf32>
    %36 = vector.shape_cast %35 : vector<1x1x1024xf32> to vector<1x1024xf32>
    %37 = vector.broadcast %36 : vector<1x1024xf32> to vector<8x1024xf32>
    %38 = arith.mulf %34, %37 : vector<8x1024xf32>
    %39 = vector.extract_strided_slice %4 {offsets = [3, 0, 0], sizes = [1, 16, 8], strides = [1, 1, 1]} : vector<9x16x8xf32> to vector<1x16x8xf32>
    %40 = vector.shape_cast %39 : vector<1x16x8xf32> to vector<16x8xf32>
    %cst_16 = arith.constant dense<0.000000e+00> : vector<16x1024xf32>
    %41 = tpu.matmul %40, %38, %cst_16 {dimension_numbers = #tpu.dot_dimension_numbers<[1], [0], [0], [1], [0, 0, 1, 1], [], []>} : vector<16x8xf32>, vector<8x1024xf32>, vector<16x1024xf32> -> vector<16x1024xf32>
    %42 = arith.addf %33, %41 : vector<16x1024xf32>
    %43 = vector.extract_strided_slice %4 {offsets = [4, 0, 0], sizes = [1, 16, 8], strides = [1, 1, 1]} : vector<9x16x8xf32> to vector<1x16x8xf32>
    %44 = vector.shape_cast %43 : vector<1x16x8xf32> to vector<16x8xf32>
    %cst_17 = arith.constant dense<0.000000e+00> : vector<16x1024xf32>
    %45 = tpu.matmul %44, %1, %cst_17 {dimension_numbers = #tpu.dot_dimension_numbers<[1], [0], [0], [1], [0, 0, 1, 1], [], []>} : vector<16x8xf32>, vector<8x1024xf32>, vector<16x1024xf32> -> vector<16x1024xf32>
    %46 = arith.addf %42, %45 : vector<16x1024xf32>
    %c1023_i32 = arith.constant 1023 : i32
    %47 = tpu.dynamic_rotate %1 by %c1023_i32 dim 1 : vector<8x1024xf32>, i32 -> vector<8x1024xf32>
    %48 = vector.extract_strided_slice %2 {offsets = [5, 0, 0], sizes = [1, 1, 1024], strides = [1, 1, 1]} : vector<9x1x1024xf32> to vector<1x1x1024xf32>
    %49 = vector.shape_cast %48 : vector<1x1x1024xf32> to vector<1x1024xf32>
    %50 = vector.broadcast %49 : vector<1x1024xf32> to vector<8x1024xf32>
    %51 = arith.mulf %47, %50 : vector<8x1024xf32>
    %52 = vector.extract_strided_slice %4 {offsets = [5, 0, 0], sizes = [1, 16, 8], strides = [1, 1, 1]} : vector<9x16x8xf32> to vector<1x16x8xf32>
    %53 = vector.shape_cast %52 : vector<1x16x8xf32> to vector<16x8xf32>
    %cst_18 = arith.constant dense<0.000000e+00> : vector<16x1024xf32>
    %54 = tpu.matmul %53, %51, %cst_18 {dimension_numbers = #tpu.dot_dimension_numbers<[1], [0], [0], [1], [0, 0, 1, 1], [], []>} : vector<16x8xf32>, vector<8x1024xf32>, vector<16x1024xf32> -> vector<16x1024xf32>
    %55 = arith.addf %46, %54 : vector<16x1024xf32>
    %c993_i32 = arith.constant 993 : i32
    %56 = tpu.dynamic_rotate %1 by %c993_i32 dim 1 : vector<8x1024xf32>, i32 -> vector<8x1024xf32>
    %57 = vector.extract_strided_slice %2 {offsets = [6, 0, 0], sizes = [1, 1, 1024], strides = [1, 1, 1]} : vector<9x1x1024xf32> to vector<1x1x1024xf32>
    %58 = vector.shape_cast %57 : vector<1x1x1024xf32> to vector<1x1024xf32>
    %59 = vector.broadcast %58 : vector<1x1024xf32> to vector<8x1024xf32>
    %60 = arith.mulf %56, %59 : vector<8x1024xf32>
    %61 = vector.extract_strided_slice %4 {offsets = [6, 0, 0], sizes = [1, 16, 8], strides = [1, 1, 1]} : vector<9x16x8xf32> to vector<1x16x8xf32>
    %62 = vector.shape_cast %61 : vector<1x16x8xf32> to vector<16x8xf32>
    %cst_19 = arith.constant dense<0.000000e+00> : vector<16x1024xf32>
    %63 = tpu.matmul %62, %60, %cst_19 {dimension_numbers = #tpu.dot_dimension_numbers<[1], [0], [0], [1], [0, 0, 1, 1], [], []>} : vector<16x8xf32>, vector<8x1024xf32>, vector<16x1024xf32> -> vector<16x1024xf32>
    %64 = arith.addf %55, %63 : vector<16x1024xf32>
    %c992_i32 = arith.constant 992 : i32
    %65 = tpu.dynamic_rotate %1 by %c992_i32 dim 1 : vector<8x1024xf32>, i32 -> vector<8x1024xf32>
    %66 = vector.extract_strided_slice %2 {offsets = [7, 0, 0], sizes = [1, 1, 1024], strides = [1, 1, 1]} : vector<9x1x1024xf32> to vector<1x1x1024xf32>
    %67 = vector.shape_cast %66 : vector<1x1x1024xf32> to vector<1x1024xf32>
    %68 = vector.broadcast %67 : vector<1x1024xf32> to vector<8x1024xf32>
    %69 = arith.mulf %65, %68 : vector<8x1024xf32>
    %70 = vector.extract_strided_slice %4 {offsets = [7, 0, 0], sizes = [1, 16, 8], strides = [1, 1, 1]} : vector<9x16x8xf32> to vector<1x16x8xf32>
    %71 = vector.shape_cast %70 : vector<1x16x8xf32> to vector<16x8xf32>
    %cst_20 = arith.constant dense<0.000000e+00> : vector<16x1024xf32>
    %72 = tpu.matmul %71, %69, %cst_20 {dimension_numbers = #tpu.dot_dimension_numbers<[1], [0], [0], [1], [0, 0, 1, 1], [], []>} : vector<16x8xf32>, vector<8x1024xf32>, vector<16x1024xf32> -> vector<16x1024xf32>
    %73 = arith.addf %64, %72 : vector<16x1024xf32>
    %c991_i32 = arith.constant 991 : i32
    %74 = tpu.dynamic_rotate %1 by %c991_i32 dim 1 : vector<8x1024xf32>, i32 -> vector<8x1024xf32>
    %75 = vector.extract_strided_slice %2 {offsets = [8, 0, 0], sizes = [1, 1, 1024], strides = [1, 1, 1]} : vector<9x1x1024xf32> to vector<1x1x1024xf32>
    %76 = vector.shape_cast %75 : vector<1x1x1024xf32> to vector<1x1024xf32>
    %77 = vector.broadcast %76 : vector<1x1024xf32> to vector<8x1024xf32>
    %78 = arith.mulf %74, %77 : vector<8x1024xf32>
    %79 = vector.extract_strided_slice %4 {offsets = [8, 0, 0], sizes = [1, 16, 8], strides = [1, 1, 1]} : vector<9x16x8xf32> to vector<1x16x8xf32>
    %80 = vector.shape_cast %79 : vector<1x16x8xf32> to vector<16x8xf32>
    %cst_21 = arith.constant dense<0.000000e+00> : vector<16x1024xf32>
    %81 = tpu.matmul %80, %78, %cst_21 {dimension_numbers = #tpu.dot_dimension_numbers<[1], [0], [0], [1], [0, 0, 1, 1], [], []>} : vector<16x8xf32>, vector<8x1024xf32>, vector<16x1024xf32> -> vector<16x1024xf32>
    %82 = arith.addf %73, %81 : vector<16x1024xf32>
    %83 = vector.broadcast %5 : vector<16x1xf32> to vector<16x1024xf32>
    %84 = arith.addf %82, %83 : vector<16x1024xf32>
    %c0_22 = arith.constant 0 : index
    %c0_23 = arith.constant 0 : index
    %c0_24 = arith.constant 0 : index
    %85 = vector.load %arg3[%c0_22, %c0_23, %c0_24] : memref<9x16x16xf32, #tpu.memory_space<vmem>>, vector<9x16x16xf32>
    %c0_25 = arith.constant 0 : index
    %c0_26 = arith.constant 0 : index
    %86 = vector.load %arg7[%c0_25, %c0_26] : memref<16x1xf32, #tpu.memory_space<vmem>>, vector<16x1xf32>
    %cst_27 = arith.constant 0.000000e+00 : f32
    %87 = vector.broadcast %cst_27 : f32 to vector<16x1024xf32>
    %c33_i32_28 = arith.constant 33 : i32
    %88 = tpu.dynamic_rotate %84 by %c33_i32_28 dim 1 : vector<16x1024xf32>, i32 -> vector<16x1024xf32>
    %89 = vector.extract_strided_slice %2 {offsets = [0, 0, 0], sizes = [1, 1, 1024], strides = [1, 1, 1]} : vector<9x1x1024xf32> to vector<1x1x1024xf32>
    %90 = vector.shape_cast %89 : vector<1x1x1024xf32> to vector<1x1024xf32>
    %91 = vector.broadcast %90 : vector<1x1024xf32> to vector<16x1024xf32>
    %92 = arith.mulf %88, %91 : vector<16x1024xf32>
    %93 = vector.extract_strided_slice %85 {offsets = [0, 0, 0], sizes = [1, 16, 16], strides = [1, 1, 1]} : vector<9x16x16xf32> to vector<1x16x16xf32>
    %94 = vector.shape_cast %93 : vector<1x16x16xf32> to vector<16x16xf32>
    %cst_29 = arith.constant dense<0.000000e+00> : vector<16x1024xf32>
    %95 = tpu.matmul %94, %92, %cst_29 {dimension_numbers = #tpu.dot_dimension_numbers<[1], [0], [0], [1], [0, 0, 1, 1], [], []>} : vector<16x16xf32>, vector<16x1024xf32>, vector<16x1024xf32> -> vector<16x1024xf32>
    %96 = arith.addf %87, %95 : vector<16x1024xf32>
    %c32_i32_30 = arith.constant 32 : i32
    %97 = tpu.dynamic_rotate %84 by %c32_i32_30 dim 1 : vector<16x1024xf32>, i32 -> vector<16x1024xf32>
    %98 = vector.extract_strided_slice %2 {offsets = [1, 0, 0], sizes = [1, 1, 1024], strides = [1, 1, 1]} : vector<9x1x1024xf32> to vector<1x1x1024xf32>
    %99 = vector.shape_cast %98 : vector<1x1x1024xf32> to vector<1x1024xf32>
    %100 = vector.broadcast %99 : vector<1x1024xf32> to vector<16x1024xf32>
    %101 = arith.mulf %97, %100 : vector<16x1024xf32>
    %102 = vector.extract_strided_slice %85 {offsets = [1, 0, 0], sizes = [1, 16, 16], strides = [1, 1, 1]} : vector<9x16x16xf32> to vector<1x16x16xf32>
    %103 = vector.shape_cast %102 : vector<1x16x16xf32> to vector<16x16xf32>
    %cst_31 = arith.constant dense<0.000000e+00> : vector<16x1024xf32>
    %104 = tpu.matmul %103, %101, %cst_31 {dimension_numbers = #tpu.dot_dimension_numbers<[1], [0], [0], [1], [0, 0, 1, 1], [], []>} : vector<16x16xf32>, vector<16x1024xf32>, vector<16x1024xf32> -> vector<16x1024xf32>
    %105 = arith.addf %96, %104 : vector<16x1024xf32>
    %c31_i32_32 = arith.constant 31 : i32
    %106 = tpu.dynamic_rotate %84 by %c31_i32_32 dim 1 : vector<16x1024xf32>, i32 -> vector<16x1024xf32>
    %107 = vector.extract_strided_slice %2 {offsets = [2, 0, 0], sizes = [1, 1, 1024], strides = [1, 1, 1]} : vector<9x1x1024xf32> to vector<1x1x1024xf32>
    %108 = vector.shape_cast %107 : vector<1x1x1024xf32> to vector<1x1024xf32>
    %109 = vector.broadcast %108 : vector<1x1024xf32> to vector<16x1024xf32>
    %110 = arith.mulf %106, %109 : vector<16x1024xf32>
    %111 = vector.extract_strided_slice %85 {offsets = [2, 0, 0], sizes = [1, 16, 16], strides = [1, 1, 1]} : vector<9x16x16xf32> to vector<1x16x16xf32>
    %112 = vector.shape_cast %111 : vector<1x16x16xf32> to vector<16x16xf32>
    %cst_33 = arith.constant dense<0.000000e+00> : vector<16x1024xf32>
    %113 = tpu.matmul %112, %110, %cst_33 {dimension_numbers = #tpu.dot_dimension_numbers<[1], [0], [0], [1], [0, 0, 1, 1], [], []>} : vector<16x16xf32>, vector<16x1024xf32>, vector<16x1024xf32> -> vector<16x1024xf32>
    %114 = arith.addf %105, %113 : vector<16x1024xf32>
    %c1_i32_34 = arith.constant 1 : i32
    %115 = tpu.dynamic_rotate %84 by %c1_i32_34 dim 1 : vector<16x1024xf32>, i32 -> vector<16x1024xf32>
    %116 = vector.extract_strided_slice %2 {offsets = [3, 0, 0], sizes = [1, 1, 1024], strides = [1, 1, 1]} : vector<9x1x1024xf32> to vector<1x1x1024xf32>
    %117 = vector.shape_cast %116 : vector<1x1x1024xf32> to vector<1x1024xf32>
    %118 = vector.broadcast %117 : vector<1x1024xf32> to vector<16x1024xf32>
    %119 = arith.mulf %115, %118 : vector<16x1024xf32>
    %120 = vector.extract_strided_slice %85 {offsets = [3, 0, 0], sizes = [1, 16, 16], strides = [1, 1, 1]} : vector<9x16x16xf32> to vector<1x16x16xf32>
    %121 = vector.shape_cast %120 : vector<1x16x16xf32> to vector<16x16xf32>
    %cst_35 = arith.constant dense<0.000000e+00> : vector<16x1024xf32>
    %122 = tpu.matmul %121, %119, %cst_35 {dimension_numbers = #tpu.dot_dimension_numbers<[1], [0], [0], [1], [0, 0, 1, 1], [], []>} : vector<16x16xf32>, vector<16x1024xf32>, vector<16x1024xf32> -> vector<16x1024xf32>
    %123 = arith.addf %114, %122 : vector<16x1024xf32>
    %124 = vector.extract_strided_slice %85 {offsets = [4, 0, 0], sizes = [1, 16, 16], strides = [1, 1, 1]} : vector<9x16x16xf32> to vector<1x16x16xf32>
    %125 = vector.shape_cast %124 : vector<1x16x16xf32> to vector<16x16xf32>
    %cst_36 = arith.constant dense<0.000000e+00> : vector<16x1024xf32>
    %126 = tpu.matmul %125, %84, %cst_36 {dimension_numbers = #tpu.dot_dimension_numbers<[1], [0], [0], [1], [0, 0, 1, 1], [], []>} : vector<16x16xf32>, vector<16x1024xf32>, vector<16x1024xf32> -> vector<16x1024xf32>
    %127 = arith.addf %123, %126 : vector<16x1024xf32>
    %c1023_i32_37 = arith.constant 1023 : i32
    %128 = tpu.dynamic_rotate %84 by %c1023_i32_37 dim 1 : vector<16x1024xf32>, i32 -> vector<16x1024xf32>
    %129 = vector.extract_strided_slice %2 {offsets = [5, 0, 0], sizes = [1, 1, 1024], strides = [1, 1, 1]} : vector<9x1x1024xf32> to vector<1x1x1024xf32>
    %130 = vector.shape_cast %129 : vector<1x1x1024xf32> to vector<1x1024xf32>
    %131 = vector.broadcast %130 : vector<1x1024xf32> to vector<16x1024xf32>
    %132 = arith.mulf %128, %131 : vector<16x1024xf32>
    %133 = vector.extract_strided_slice %85 {offsets = [5, 0, 0], sizes = [1, 16, 16], strides = [1, 1, 1]} : vector<9x16x16xf32> to vector<1x16x16xf32>
    %134 = vector.shape_cast %133 : vector<1x16x16xf32> to vector<16x16xf32>
    %cst_38 = arith.constant dense<0.000000e+00> : vector<16x1024xf32>
    %135 = tpu.matmul %134, %132, %cst_38 {dimension_numbers = #tpu.dot_dimension_numbers<[1], [0], [0], [1], [0, 0, 1, 1], [], []>} : vector<16x16xf32>, vector<16x1024xf32>, vector<16x1024xf32> -> vector<16x1024xf32>
    %136 = arith.addf %127, %135 : vector<16x1024xf32>
    %c993_i32_39 = arith.constant 993 : i32
    %137 = tpu.dynamic_rotate %84 by %c993_i32_39 dim 1 : vector<16x1024xf32>, i32 -> vector<16x1024xf32>
    %138 = vector.extract_strided_slice %2 {offsets = [6, 0, 0], sizes = [1, 1, 1024], strides = [1, 1, 1]} : vector<9x1x1024xf32> to vector<1x1x1024xf32>
    %139 = vector.shape_cast %138 : vector<1x1x1024xf32> to vector<1x1024xf32>
    %140 = vector.broadcast %139 : vector<1x1024xf32> to vector<16x1024xf32>
    %141 = arith.mulf %137, %140 : vector<16x1024xf32>
    %142 = vector.extract_strided_slice %85 {offsets = [6, 0, 0], sizes = [1, 16, 16], strides = [1, 1, 1]} : vector<9x16x16xf32> to vector<1x16x16xf32>
    %143 = vector.shape_cast %142 : vector<1x16x16xf32> to vector<16x16xf32>
    %cst_40 = arith.constant dense<0.000000e+00> : vector<16x1024xf32>
    %144 = tpu.matmul %143, %141, %cst_40 {dimension_numbers = #tpu.dot_dimension_numbers<[1], [0], [0], [1], [0, 0, 1, 1], [], []>} : vector<16x16xf32>, vector<16x1024xf32>, vector<16x1024xf32> -> vector<16x1024xf32>
    %145 = arith.addf %136, %144 : vector<16x1024xf32>
    %c992_i32_41 = arith.constant 992 : i32
    %146 = tpu.dynamic_rotate %84 by %c992_i32_41 dim 1 : vector<16x1024xf32>, i32 -> vector<16x1024xf32>
    %147 = vector.extract_strided_slice %2 {offsets = [7, 0, 0], sizes = [1, 1, 1024], strides = [1, 1, 1]} : vector<9x1x1024xf32> to vector<1x1x1024xf32>
    %148 = vector.shape_cast %147 : vector<1x1x1024xf32> to vector<1x1024xf32>
    %149 = vector.broadcast %148 : vector<1x1024xf32> to vector<16x1024xf32>
    %150 = arith.mulf %146, %149 : vector<16x1024xf32>
    %151 = vector.extract_strided_slice %85 {offsets = [7, 0, 0], sizes = [1, 16, 16], strides = [1, 1, 1]} : vector<9x16x16xf32> to vector<1x16x16xf32>
    %152 = vector.shape_cast %151 : vector<1x16x16xf32> to vector<16x16xf32>
    %cst_42 = arith.constant dense<0.000000e+00> : vector<16x1024xf32>
    %153 = tpu.matmul %152, %150, %cst_42 {dimension_numbers = #tpu.dot_dimension_numbers<[1], [0], [0], [1], [0, 0, 1, 1], [], []>} : vector<16x16xf32>, vector<16x1024xf32>, vector<16x1024xf32> -> vector<16x1024xf32>
    %154 = arith.addf %145, %153 : vector<16x1024xf32>
    %c991_i32_43 = arith.constant 991 : i32
    %155 = tpu.dynamic_rotate %84 by %c991_i32_43 dim 1 : vector<16x1024xf32>, i32 -> vector<16x1024xf32>
    %156 = vector.extract_strided_slice %2 {offsets = [8, 0, 0], sizes = [1, 1, 1024], strides = [1, 1, 1]} : vector<9x1x1024xf32> to vector<1x1x1024xf32>
    %157 = vector.shape_cast %156 : vector<1x1x1024xf32> to vector<1x1024xf32>
    %158 = vector.broadcast %157 : vector<1x1024xf32> to vector<16x1024xf32>
    %159 = arith.mulf %155, %158 : vector<16x1024xf32>
    %160 = vector.extract_strided_slice %85 {offsets = [8, 0, 0], sizes = [1, 16, 16], strides = [1, 1, 1]} : vector<9x16x16xf32> to vector<1x16x16xf32>
    %161 = vector.shape_cast %160 : vector<1x16x16xf32> to vector<16x16xf32>
    %cst_44 = arith.constant dense<0.000000e+00> : vector<16x1024xf32>
    %162 = tpu.matmul %161, %159, %cst_44 {dimension_numbers = #tpu.dot_dimension_numbers<[1], [0], [0], [1], [0, 0, 1, 1], [], []>} : vector<16x16xf32>, vector<16x1024xf32>, vector<16x1024xf32> -> vector<16x1024xf32>
    %163 = arith.addf %154, %162 : vector<16x1024xf32>
    %164 = vector.broadcast %86 : vector<16x1xf32> to vector<16x1024xf32>
    %165 = arith.addf %163, %164 : vector<16x1024xf32>
    %c0_45 = arith.constant 0 : index
    %c0_46 = arith.constant 0 : index
    %166 = vector.load %arg12[%c0_45, %c0_46] : memref<1024x256xf32, #tpu.memory_space<vmem>>, vector<1024x256xf32>
    %c1023_i32_47 = arith.constant 1023 : i32
    %167 = tpu.dynamic_rotate %165 by %c1023_i32_47 dim 1 : vector<16x1024xf32>, i32 -> vector<16x1024xf32>
    %168 = arith.maximumf %165, %167 : vector<16x1024xf32>
    %c992_i32_48 = arith.constant 992 : i32
    %169 = tpu.dynamic_rotate %168 by %c992_i32_48 dim 1 : vector<16x1024xf32>, i32 -> vector<16x1024xf32>
    %170 = arith.maximumf %168, %169 : vector<16x1024xf32>
    %cst_49 = arith.constant dense<0.000000e+00> : vector<16x256xf32>
    %171 = tpu.matmul %170, %166, %cst_49 {dimension_numbers = #tpu.dot_dimension_numbers<[1], [0], [0], [1], [0, 0, 1, 1], [], []>} : vector<16x1024xf32>, vector<1024x256xf32>, vector<16x256xf32> -> vector<16x256xf32>
    %c0_50 = arith.constant 0 : index
    %c0_51 = arith.constant 0 : index
    %c0_52 = arith.constant 0 : index
    %172 = vector.load %arg4[%c0_50, %c0_51, %c0_52] : memref<9x32x16xf32, #tpu.memory_space<vmem>>, vector<9x32x16xf32>
    %c0_53 = arith.constant 0 : index
    %c0_54 = arith.constant 0 : index
    %173 = vector.load %arg8[%c0_53, %c0_54] : memref<32x1xf32, #tpu.memory_space<vmem>>, vector<32x1xf32>
    %cst_55 = arith.constant 0.000000e+00 : f32
    %174 = vector.broadcast %cst_55 : f32 to vector<32x256xf32>
    %c17_i32 = arith.constant 17 : i32
    %175 = tpu.dynamic_rotate %171 by %c17_i32 dim 1 : vector<16x256xf32>, i32 -> vector<16x256xf32>
    %176 = vector.extract_strided_slice %3 {offsets = [0, 0, 0], sizes = [1, 1, 256], strides = [1, 1, 1]} : vector<9x1x256xf32> to vector<1x1x256xf32>
    %177 = vector.shape_cast %176 : vector<1x1x256xf32> to vector<1x256xf32>
    %178 = vector.broadcast %177 : vector<1x256xf32> to vector<16x256xf32>
    %179 = arith.mulf %175, %178 : vector<16x256xf32>
    %180 = vector.extract_strided_slice %172 {offsets = [0, 0, 0], sizes = [1, 32, 16], strides = [1, 1, 1]} : vector<9x32x16xf32> to vector<1x32x16xf32>
    %181 = vector.shape_cast %180 : vector<1x32x16xf32> to vector<32x16xf32>
    %cst_56 = arith.constant dense<0.000000e+00> : vector<32x256xf32>
    %182 = tpu.matmul %181, %179, %cst_56 {dimension_numbers = #tpu.dot_dimension_numbers<[1], [0], [0], [1], [0, 0, 1, 1], [], []>} : vector<32x16xf32>, vector<16x256xf32>, vector<32x256xf32> -> vector<32x256xf32>
    %183 = arith.addf %174, %182 : vector<32x256xf32>
    %c16_i32 = arith.constant 16 : i32
    %184 = tpu.dynamic_rotate %171 by %c16_i32 dim 1 : vector<16x256xf32>, i32 -> vector<16x256xf32>
    %185 = vector.extract_strided_slice %3 {offsets = [1, 0, 0], sizes = [1, 1, 256], strides = [1, 1, 1]} : vector<9x1x256xf32> to vector<1x1x256xf32>
    %186 = vector.shape_cast %185 : vector<1x1x256xf32> to vector<1x256xf32>
    %187 = vector.broadcast %186 : vector<1x256xf32> to vector<16x256xf32>
    %188 = arith.mulf %184, %187 : vector<16x256xf32>
    %189 = vector.extract_strided_slice %172 {offsets = [1, 0, 0], sizes = [1, 32, 16], strides = [1, 1, 1]} : vector<9x32x16xf32> to vector<1x32x16xf32>
    %190 = vector.shape_cast %189 : vector<1x32x16xf32> to vector<32x16xf32>
    %cst_57 = arith.constant dense<0.000000e+00> : vector<32x256xf32>
    %191 = tpu.matmul %190, %188, %cst_57 {dimension_numbers = #tpu.dot_dimension_numbers<[1], [0], [0], [1], [0, 0, 1, 1], [], []>} : vector<32x16xf32>, vector<16x256xf32>, vector<32x256xf32> -> vector<32x256xf32>
    %192 = arith.addf %183, %191 : vector<32x256xf32>
    %c15_i32 = arith.constant 15 : i32
    %193 = tpu.dynamic_rotate %171 by %c15_i32 dim 1 : vector<16x256xf32>, i32 -> vector<16x256xf32>
    %194 = vector.extract_strided_slice %3 {offsets = [2, 0, 0], sizes = [1, 1, 256], strides = [1, 1, 1]} : vector<9x1x256xf32> to vector<1x1x256xf32>
    %195 = vector.shape_cast %194 : vector<1x1x256xf32> to vector<1x256xf32>
    %196 = vector.broadcast %195 : vector<1x256xf32> to vector<16x256xf32>
    %197 = arith.mulf %193, %196 : vector<16x256xf32>
    %198 = vector.extract_strided_slice %172 {offsets = [2, 0, 0], sizes = [1, 32, 16], strides = [1, 1, 1]} : vector<9x32x16xf32> to vector<1x32x16xf32>
    %199 = vector.shape_cast %198 : vector<1x32x16xf32> to vector<32x16xf32>
    %cst_58 = arith.constant dense<0.000000e+00> : vector<32x256xf32>
    %200 = tpu.matmul %199, %197, %cst_58 {dimension_numbers = #tpu.dot_dimension_numbers<[1], [0], [0], [1], [0, 0, 1, 1], [], []>} : vector<32x16xf32>, vector<16x256xf32>, vector<32x256xf32> -> vector<32x256xf32>
    %201 = arith.addf %192, %200 : vector<32x256xf32>
    %c1_i32_59 = arith.constant 1 : i32
    %202 = tpu.dynamic_rotate %171 by %c1_i32_59 dim 1 : vector<16x256xf32>, i32 -> vector<16x256xf32>
    %203 = vector.extract_strided_slice %3 {offsets = [3, 0, 0], sizes = [1, 1, 256], strides = [1, 1, 1]} : vector<9x1x256xf32> to vector<1x1x256xf32>
    %204 = vector.shape_cast %203 : vector<1x1x256xf32> to vector<1x256xf32>
    %205 = vector.broadcast %204 : vector<1x256xf32> to vector<16x256xf32>
    %206 = arith.mulf %202, %205 : vector<16x256xf32>
    %207 = vector.extract_strided_slice %172 {offsets = [3, 0, 0], sizes = [1, 32, 16], strides = [1, 1, 1]} : vector<9x32x16xf32> to vector<1x32x16xf32>
    %208 = vector.shape_cast %207 : vector<1x32x16xf32> to vector<32x16xf32>
    %cst_60 = arith.constant dense<0.000000e+00> : vector<32x256xf32>
    %209 = tpu.matmul %208, %206, %cst_60 {dimension_numbers = #tpu.dot_dimension_numbers<[1], [0], [0], [1], [0, 0, 1, 1], [], []>} : vector<32x16xf32>, vector<16x256xf32>, vector<32x256xf32> -> vector<32x256xf32>
    %210 = arith.addf %201, %209 : vector<32x256xf32>
    %211 = vector.extract_strided_slice %172 {offsets = [4, 0, 0], sizes = [1, 32, 16], strides = [1, 1, 1]} : vector<9x32x16xf32> to vector<1x32x16xf32>
    %212 = vector.shape_cast %211 : vector<1x32x16xf32> to vector<32x16xf32>
    %cst_61 = arith.constant dense<0.000000e+00> : vector<32x256xf32>
    %213 = tpu.matmul %212, %171, %cst_61 {dimension_numbers = #tpu.dot_dimension_numbers<[1], [0], [0], [1], [0, 0, 1, 1], [], []>} : vector<32x16xf32>, vector<16x256xf32>, vector<32x256xf32> -> vector<32x256xf32>
    %214 = arith.addf %210, %213 : vector<32x256xf32>
    %c255_i32 = arith.constant 255 : i32
    %215 = tpu.dynamic_rotate %171 by %c255_i32 dim 1 : vector<16x256xf32>, i32 -> vector<16x256xf32>
    %216 = vector.extract_strided_slice %3 {offsets = [5, 0, 0], sizes = [1, 1, 256], strides = [1, 1, 1]} : vector<9x1x256xf32> to vector<1x1x256xf32>
    %217 = vector.shape_cast %216 : vector<1x1x256xf32> to vector<1x256xf32>
    %218 = vector.broadcast %217 : vector<1x256xf32> to vector<16x256xf32>
    %219 = arith.mulf %215, %218 : vector<16x256xf32>
    %220 = vector.extract_strided_slice %172 {offsets = [5, 0, 0], sizes = [1, 32, 16], strides = [1, 1, 1]} : vector<9x32x16xf32> to vector<1x32x16xf32>
    %221 = vector.shape_cast %220 : vector<1x32x16xf32> to vector<32x16xf32>
    %cst_62 = arith.constant dense<0.000000e+00> : vector<32x256xf32>
    %222 = tpu.matmul %221, %219, %cst_62 {dimension_numbers = #tpu.dot_dimension_numbers<[1], [0], [0], [1], [0, 0, 1, 1], [], []>} : vector<32x16xf32>, vector<16x256xf32>, vector<32x256xf32> -> vector<32x256xf32>
    %223 = arith.addf %214, %222 : vector<32x256xf32>
    %c241_i32 = arith.constant 241 : i32
    %224 = tpu.dynamic_rotate %171 by %c241_i32 dim 1 : vector<16x256xf32>, i32 -> vector<16x256xf32>
    %225 = vector.extract_strided_slice %3 {offsets = [6, 0, 0], sizes = [1, 1, 256], strides = [1, 1, 1]} : vector<9x1x256xf32> to vector<1x1x256xf32>
    %226 = vector.shape_cast %225 : vector<1x1x256xf32> to vector<1x256xf32>
    %227 = vector.broadcast %226 : vector<1x256xf32> to vector<16x256xf32>
    %228 = arith.mulf %224, %227 : vector<16x256xf32>
    %229 = vector.extract_strided_slice %172 {offsets = [6, 0, 0], sizes = [1, 32, 16], strides = [1, 1, 1]} : vector<9x32x16xf32> to vector<1x32x16xf32>
    %230 = vector.shape_cast %229 : vector<1x32x16xf32> to vector<32x16xf32>
    %cst_63 = arith.constant dense<0.000000e+00> : vector<32x256xf32>
    %231 = tpu.matmul %230, %228, %cst_63 {dimension_numbers = #tpu.dot_dimension_numbers<[1], [0], [0], [1], [0, 0, 1, 1], [], []>} : vector<32x16xf32>, vector<16x256xf32>, vector<32x256xf32> -> vector<32x256xf32>
    %232 = arith.addf %223, %231 : vector<32x256xf32>
    %c240_i32 = arith.constant 240 : i32
    %233 = tpu.dynamic_rotate %171 by %c240_i32 dim 1 : vector<16x256xf32>, i32 -> vector<16x256xf32>
    %234 = vector.extract_strided_slice %3 {offsets = [7, 0, 0], sizes = [1, 1, 256], strides = [1, 1, 1]} : vector<9x1x256xf32> to vector<1x1x256xf32>
    %235 = vector.shape_cast %234 : vector<1x1x256xf32> to vector<1x256xf32>
    %236 = vector.broadcast %235 : vector<1x256xf32> to vector<16x256xf32>
    %237 = arith.mulf %233, %236 : vector<16x256xf32>
    %238 = vector.extract_strided_slice %172 {offsets = [7, 0, 0], sizes = [1, 32, 16], strides = [1, 1, 1]} : vector<9x32x16xf32> to vector<1x32x16xf32>
    %239 = vector.shape_cast %238 : vector<1x32x16xf32> to vector<32x16xf32>
    %cst_64 = arith.constant dense<0.000000e+00> : vector<32x256xf32>
    %240 = tpu.matmul %239, %237, %cst_64 {dimension_numbers = #tpu.dot_dimension_numbers<[1], [0], [0], [1], [0, 0, 1, 1], [], []>} : vector<32x16xf32>, vector<16x256xf32>, vector<32x256xf32> -> vector<32x256xf32>
    %241 = arith.addf %232, %240 : vector<32x256xf32>
    %c239_i32 = arith.constant 239 : i32
    %242 = tpu.dynamic_rotate %171 by %c239_i32 dim 1 : vector<16x256xf32>, i32 -> vector<16x256xf32>
    %243 = vector.extract_strided_slice %3 {offsets = [8, 0, 0], sizes = [1, 1, 256], strides = [1, 1, 1]} : vector<9x1x256xf32> to vector<1x1x256xf32>
    %244 = vector.shape_cast %243 : vector<1x1x256xf32> to vector<1x256xf32>
    %245 = vector.broadcast %244 : vector<1x256xf32> to vector<16x256xf32>
    %246 = arith.mulf %242, %245 : vector<16x256xf32>
    %247 = vector.extract_strided_slice %172 {offsets = [8, 0, 0], sizes = [1, 32, 16], strides = [1, 1, 1]} : vector<9x32x16xf32> to vector<1x32x16xf32>
    %248 = vector.shape_cast %247 : vector<1x32x16xf32> to vector<32x16xf32>
    %cst_65 = arith.constant dense<0.000000e+00> : vector<32x256xf32>
    %249 = tpu.matmul %248, %246, %cst_65 {dimension_numbers = #tpu.dot_dimension_numbers<[1], [0], [0], [1], [0, 0, 1, 1], [], []>} : vector<32x16xf32>, vector<16x256xf32>, vector<32x256xf32> -> vector<32x256xf32>
    %250 = arith.addf %241, %249 : vector<32x256xf32>
    %251 = vector.broadcast %173 : vector<32x1xf32> to vector<32x256xf32>
    %252 = arith.addf %250, %251 : vector<32x256xf32>
    %c0_66 = arith.constant 0 : index
    %c0_67 = arith.constant 0 : index
    %c0_68 = arith.constant 0 : index
    %253 = vector.load %arg5[%c0_66, %c0_67, %c0_68] : memref<9x32x32xf32, #tpu.memory_space<vmem>>, vector<9x32x32xf32>
    %c0_69 = arith.constant 0 : index
    %c0_70 = arith.constant 0 : index
    %254 = vector.load %arg9[%c0_69, %c0_70] : memref<32x1xf32, #tpu.memory_space<vmem>>, vector<32x1xf32>
    %cst_71 = arith.constant 0.000000e+00 : f32
    %255 = vector.broadcast %cst_71 : f32 to vector<32x256xf32>
    %c17_i32_72 = arith.constant 17 : i32
    %256 = tpu.dynamic_rotate %252 by %c17_i32_72 dim 1 : vector<32x256xf32>, i32 -> vector<32x256xf32>
    %257 = vector.extract_strided_slice %3 {offsets = [0, 0, 0], sizes = [1, 1, 256], strides = [1, 1, 1]} : vector<9x1x256xf32> to vector<1x1x256xf32>
    %258 = vector.shape_cast %257 : vector<1x1x256xf32> to vector<1x256xf32>
    %259 = vector.broadcast %258 : vector<1x256xf32> to vector<32x256xf32>
    %260 = arith.mulf %256, %259 : vector<32x256xf32>
    %261 = vector.extract_strided_slice %253 {offsets = [0, 0, 0], sizes = [1, 32, 32], strides = [1, 1, 1]} : vector<9x32x32xf32> to vector<1x32x32xf32>
    %262 = vector.shape_cast %261 : vector<1x32x32xf32> to vector<32x32xf32>
    %cst_73 = arith.constant dense<0.000000e+00> : vector<32x256xf32>
    %263 = tpu.matmul %262, %260, %cst_73 {dimension_numbers = #tpu.dot_dimension_numbers<[1], [0], [0], [1], [0, 0, 1, 1], [], []>} : vector<32x32xf32>, vector<32x256xf32>, vector<32x256xf32> -> vector<32x256xf32>
    %264 = arith.addf %255, %263 : vector<32x256xf32>
    %c16_i32_74 = arith.constant 16 : i32
    %265 = tpu.dynamic_rotate %252 by %c16_i32_74 dim 1 : vector<32x256xf32>, i32 -> vector<32x256xf32>
    %266 = vector.extract_strided_slice %3 {offsets = [1, 0, 0], sizes = [1, 1, 256], strides = [1, 1, 1]} : vector<9x1x256xf32> to vector<1x1x256xf32>
    %267 = vector.shape_cast %266 : vector<1x1x256xf32> to vector<1x256xf32>
    %268 = vector.broadcast %267 : vector<1x256xf32> to vector<32x256xf32>
    %269 = arith.mulf %265, %268 : vector<32x256xf32>
    %270 = vector.extract_strided_slice %253 {offsets = [1, 0, 0], sizes = [1, 32, 32], strides = [1, 1, 1]} : vector<9x32x32xf32> to vector<1x32x32xf32>
    %271 = vector.shape_cast %270 : vector<1x32x32xf32> to vector<32x32xf32>
    %cst_75 = arith.constant dense<0.000000e+00> : vector<32x256xf32>
    %272 = tpu.matmul %271, %269, %cst_75 {dimension_numbers = #tpu.dot_dimension_numbers<[1], [0], [0], [1], [0, 0, 1, 1], [], []>} : vector<32x32xf32>, vector<32x256xf32>, vector<32x256xf32> -> vector<32x256xf32>
    %273 = arith.addf %264, %272 : vector<32x256xf32>
    %c15_i32_76 = arith.constant 15 : i32
    %274 = tpu.dynamic_rotate %252 by %c15_i32_76 dim 1 : vector<32x256xf32>, i32 -> vector<32x256xf32>
    %275 = vector.extract_strided_slice %3 {offsets = [2, 0, 0], sizes = [1, 1, 256], strides = [1, 1, 1]} : vector<9x1x256xf32> to vector<1x1x256xf32>
    %276 = vector.shape_cast %275 : vector<1x1x256xf32> to vector<1x256xf32>
    %277 = vector.broadcast %276 : vector<1x256xf32> to vector<32x256xf32>
    %278 = arith.mulf %274, %277 : vector<32x256xf32>
    %279 = vector.extract_strided_slice %253 {offsets = [2, 0, 0], sizes = [1, 32, 32], strides = [1, 1, 1]} : vector<9x32x32xf32> to vector<1x32x32xf32>
    %280 = vector.shape_cast %279 : vector<1x32x32xf32> to vector<32x32xf32>
    %cst_77 = arith.constant dense<0.000000e+00> : vector<32x256xf32>
    %281 = tpu.matmul %280, %278, %cst_77 {dimension_numbers = #tpu.dot_dimension_numbers<[1], [0], [0], [1], [0, 0, 1, 1], [], []>} : vector<32x32xf32>, vector<32x256xf32>, vector<32x256xf32> -> vector<32x256xf32>
    %282 = arith.addf %273, %281 : vector<32x256xf32>
    %c1_i32_78 = arith.constant 1 : i32
    %283 = tpu.dynamic_rotate %252 by %c1_i32_78 dim 1 : vector<32x256xf32>, i32 -> vector<32x256xf32>
    %284 = vector.extract_strided_slice %3 {offsets = [3, 0, 0], sizes = [1, 1, 256], strides = [1, 1, 1]} : vector<9x1x256xf32> to vector<1x1x256xf32>
    %285 = vector.shape_cast %284 : vector<1x1x256xf32> to vector<1x256xf32>
    %286 = vector.broadcast %285 : vector<1x256xf32> to vector<32x256xf32>
    %287 = arith.mulf %283, %286 : vector<32x256xf32>
    %288 = vector.extract_strided_slice %253 {offsets = [3, 0, 0], sizes = [1, 32, 32], strides = [1, 1, 1]} : vector<9x32x32xf32> to vector<1x32x32xf32>
    %289 = vector.shape_cast %288 : vector<1x32x32xf32> to vector<32x32xf32>
    %cst_79 = arith.constant dense<0.000000e+00> : vector<32x256xf32>
    %290 = tpu.matmul %289, %287, %cst_79 {dimension_numbers = #tpu.dot_dimension_numbers<[1], [0], [0], [1], [0, 0, 1, 1], [], []>} : vector<32x32xf32>, vector<32x256xf32>, vector<32x256xf32> -> vector<32x256xf32>
    %291 = arith.addf %282, %290 : vector<32x256xf32>
    %292 = vector.extract_strided_slice %253 {offsets = [4, 0, 0], sizes = [1, 32, 32], strides = [1, 1, 1]} : vector<9x32x32xf32> to vector<1x32x32xf32>
    %293 = vector.shape_cast %292 : vector<1x32x32xf32> to vector<32x32xf32>
    %cst_80 = arith.constant dense<0.000000e+00> : vector<32x256xf32>
    %294 = tpu.matmul %293, %252, %cst_80 {dimension_numbers = #tpu.dot_dimension_numbers<[1], [0], [0], [1], [0, 0, 1, 1], [], []>} : vector<32x32xf32>, vector<32x256xf32>, vector<32x256xf32> -> vector<32x256xf32>
    %295 = arith.addf %291, %294 : vector<32x256xf32>
    %c255_i32_81 = arith.constant 255 : i32
    %296 = tpu.dynamic_rotate %252 by %c255_i32_81 dim 1 : vector<32x256xf32>, i32 -> vector<32x256xf32>
    %297 = vector.extract_strided_slice %3 {offsets = [5, 0, 0], sizes = [1, 1, 256], strides = [1, 1, 1]} : vector<9x1x256xf32> to vector<1x1x256xf32>
    %298 = vector.shape_cast %297 : vector<1x1x256xf32> to vector<1x256xf32>
    %299 = vector.broadcast %298 : vector<1x256xf32> to vector<32x256xf32>
    %300 = arith.mulf %296, %299 : vector<32x256xf32>
    %301 = vector.extract_strided_slice %253 {offsets = [5, 0, 0], sizes = [1, 32, 32], strides = [1, 1, 1]} : vector<9x32x32xf32> to vector<1x32x32xf32>
    %302 = vector.shape_cast %301 : vector<1x32x32xf32> to vector<32x32xf32>
    %cst_82 = arith.constant dense<0.000000e+00> : vector<32x256xf32>
    %303 = tpu.matmul %302, %300, %cst_82 {dimension_numbers = #tpu.dot_dimension_numbers<[1], [0], [0], [1], [0, 0, 1, 1], [], []>} : vector<32x32xf32>, vector<32x256xf32>, vector<32x256xf32> -> vector<32x256xf32>
    %304 = arith.addf %295, %303 : vector<32x256xf32>
    %c241_i32_83 = arith.constant 241 : i32
    %305 = tpu.dynamic_rotate %252 by %c241_i32_83 dim 1 : vector<32x256xf32>, i32 -> vector<32x256xf32>
    %306 = vector.extract_strided_slice %3 {offsets = [6, 0, 0], sizes = [1, 1, 256], strides = [1, 1, 1]} : vector<9x1x256xf32> to vector<1x1x256xf32>
    %307 = vector.shape_cast %306 : vector<1x1x256xf32> to vector<1x256xf32>
    %308 = vector.broadcast %307 : vector<1x256xf32> to vector<32x256xf32>
    %309 = arith.mulf %305, %308 : vector<32x256xf32>
    %310 = vector.extract_strided_slice %253 {offsets = [6, 0, 0], sizes = [1, 32, 32], strides = [1, 1, 1]} : vector<9x32x32xf32> to vector<1x32x32xf32>
    %311 = vector.shape_cast %310 : vector<1x32x32xf32> to vector<32x32xf32>
    %cst_84 = arith.constant dense<0.000000e+00> : vector<32x256xf32>
    %312 = tpu.matmul %311, %309, %cst_84 {dimension_numbers = #tpu.dot_dimension_numbers<[1], [0], [0], [1], [0, 0, 1, 1], [], []>} : vector<32x32xf32>, vector<32x256xf32>, vector<32x256xf32> -> vector<32x256xf32>
    %313 = arith.addf %304, %312 : vector<32x256xf32>
    %c240_i32_85 = arith.constant 240 : i32
    %314 = tpu.dynamic_rotate %252 by %c240_i32_85 dim 1 : vector<32x256xf32>, i32 -> vector<32x256xf32>
    %315 = vector.extract_strided_slice %3 {offsets = [7, 0, 0], sizes = [1, 1, 256], strides = [1, 1, 1]} : vector<9x1x256xf32> to vector<1x1x256xf32>
    %316 = vector.shape_cast %315 : vector<1x1x256xf32> to vector<1x256xf32>
    %317 = vector.broadcast %316 : vector<1x256xf32> to vector<32x256xf32>
    %318 = arith.mulf %314, %317 : vector<32x256xf32>
    %319 = vector.extract_strided_slice %253 {offsets = [7, 0, 0], sizes = [1, 32, 32], strides = [1, 1, 1]} : vector<9x32x32xf32> to vector<1x32x32xf32>
    %320 = vector.shape_cast %319 : vector<1x32x32xf32> to vector<32x32xf32>
    %cst_86 = arith.constant dense<0.000000e+00> : vector<32x256xf32>
    %321 = tpu.matmul %320, %318, %cst_86 {dimension_numbers = #tpu.dot_dimension_numbers<[1], [0], [0], [1], [0, 0, 1, 1], [], []>} : vector<32x32xf32>, vector<32x256xf32>, vector<32x256xf32> -> vector<32x256xf32>
    %322 = arith.addf %313, %321 : vector<32x256xf32>
    %c239_i32_87 = arith.constant 239 : i32
    %323 = tpu.dynamic_rotate %252 by %c239_i32_87 dim 1 : vector<32x256xf32>, i32 -> vector<32x256xf32>
    %324 = vector.extract_strided_slice %3 {offsets = [8, 0, 0], sizes = [1, 1, 256], strides = [1, 1, 1]} : vector<9x1x256xf32> to vector<1x1x256xf32>
    %325 = vector.shape_cast %324 : vector<1x1x256xf32> to vector<1x256xf32>
    %326 = vector.broadcast %325 : vector<1x256xf32> to vector<32x256xf32>
    %327 = arith.mulf %323, %326 : vector<32x256xf32>
    %328 = vector.extract_strided_slice %253 {offsets = [8, 0, 0], sizes = [1, 32, 32], strides = [1, 1, 1]} : vector<9x32x32xf32> to vector<1x32x32xf32>
    %329 = vector.shape_cast %328 : vector<1x32x32xf32> to vector<32x32xf32>
    %cst_88 = arith.constant dense<0.000000e+00> : vector<32x256xf32>
    %330 = tpu.matmul %329, %327, %cst_88 {dimension_numbers = #tpu.dot_dimension_numbers<[1], [0], [0], [1], [0, 0, 1, 1], [], []>} : vector<32x32xf32>, vector<32x256xf32>, vector<32x256xf32> -> vector<32x256xf32>
    %331 = arith.addf %322, %330 : vector<32x256xf32>
    %332 = vector.broadcast %254 : vector<32x1xf32> to vector<32x256xf32>
    %333 = arith.addf %331, %332 : vector<32x256xf32>
    %c0_89 = arith.constant 0 : index
    %c0_90 = arith.constant 0 : index
    %334 = vector.load %arg13[%c0_89, %c0_90] : memref<256x64xf32, #tpu.memory_space<vmem>>, vector<256x64xf32>
    %c255_i32_91 = arith.constant 255 : i32
    %335 = tpu.dynamic_rotate %333 by %c255_i32_91 dim 1 : vector<32x256xf32>, i32 -> vector<32x256xf32>
    %336 = arith.maximumf %333, %335 : vector<32x256xf32>
    %c240_i32_92 = arith.constant 240 : i32
    %337 = tpu.dynamic_rotate %336 by %c240_i32_92 dim 1 : vector<32x256xf32>, i32 -> vector<32x256xf32>
    %338 = arith.maximumf %336, %337 : vector<32x256xf32>
    %cst_93 = arith.constant dense<0.000000e+00> : vector<32x64xf32>
    %339 = tpu.matmul %338, %334, %cst_93 {dimension_numbers = #tpu.dot_dimension_numbers<[1], [0], [0], [1], [0, 0, 1, 1], [], []>} : vector<32x256xf32>, vector<256x64xf32>, vector<32x64xf32> -> vector<32x64xf32>
    %c0_94 = arith.constant 0 : index
    %c0_95 = arith.constant 0 : index
    %c0_96 = arith.constant 0 : index
    %340 = vector.load %arg14[%c0_94, %c0_95, %c0_96] : memref<1x32x64xf32, #tpu.memory_space<vmem>>, vector<1x32x64xf32>
    %341 = vector.shape_cast %340 : vector<1x32x64xf32> to vector<32x64xf32>
    %342 = vector.shape_cast %339 : vector<32x64xf32> to vector<1x32x64xf32>
    tpu.vector_store %arg14[%c0_94, %c0_95, %c0_96], %342 {strides = array<i32>} : memref<1x32x64xf32, #tpu.memory_space<vmem>>, vector<1x32x64xf32>,
    return
  }
  func.func @transform_0(%arg0: i32) -> (i32, i32, i32) {
    %c0_i32 = arith.constant 0 : i32
    %c0_i32_0 = arith.constant 0 : i32
    %c0_i32_1 = arith.constant 0 : i32
    return %arg0, %c0_i32, %c0_i32_0 : i32, i32, i32
  }
  func.func @transform_1(%arg0: i32) -> (i32, i32, i32) {
    %c0_i32 = arith.constant 0 : i32
    %c0_i32_0 = arith.constant 0 : i32
    %c0_i32_1 = arith.constant 0 : i32
    %c0_i32_2 = arith.constant 0 : i32
    return %c0_i32, %c0_i32_0, %c0_i32_1 : i32, i32, i32
  }
  func.func @transform_2(%arg0: i32) -> (i32, i32, i32) {
    %c0_i32 = arith.constant 0 : i32
    %c0_i32_0 = arith.constant 0 : i32
    %c0_i32_1 = arith.constant 0 : i32
    %c0_i32_2 = arith.constant 0 : i32
    return %c0_i32, %c0_i32_0, %c0_i32_1 : i32, i32, i32
  }
  func.func @transform_3(%arg0: i32) -> (i32, i32, i32) {
    %c0_i32 = arith.constant 0 : i32
    %c0_i32_0 = arith.constant 0 : i32
    %c0_i32_1 = arith.constant 0 : i32
    %c0_i32_2 = arith.constant 0 : i32
    return %c0_i32, %c0_i32_0, %c0_i32_1 : i32, i32, i32
  }
  func.func @transform_4(%arg0: i32) -> (i32, i32, i32) {
    %c0_i32 = arith.constant 0 : i32
    %c0_i32_0 = arith.constant 0 : i32
    %c0_i32_1 = arith.constant 0 : i32
    %c0_i32_2 = arith.constant 0 : i32
    return %c0_i32, %c0_i32_0, %c0_i32_1 : i32, i32, i32
  }
  func.func @transform_5(%arg0: i32) -> (i32, i32) {
    %c0_i32 = arith.constant 0 : i32
    %c0_i32_0 = arith.constant 0 : i32
    %c0_i32_1 = arith.constant 0 : i32
    return %c0_i32, %c0_i32_0 : i32, i32
  }
  func.func @transform_6(%arg0: i32) -> (i32, i32) {
    %c0_i32 = arith.constant 0 : i32
    %c0_i32_0 = arith.constant 0 : i32
    %c0_i32_1 = arith.constant 0 : i32
    return %c0_i32, %c0_i32_0 : i32, i32
  }
  func.func @transform_7(%arg0: i32) -> (i32, i32) {
    %c0_i32 = arith.constant 0 : i32
    %c0_i32_0 = arith.constant 0 : i32
    %c0_i32_1 = arith.constant 0 : i32
    return %c0_i32, %c0_i32_0 : i32, i32
  }
  func.func @transform_8(%arg0: i32) -> (i32, i32) {
    %c0_i32 = arith.constant 0 : i32
    %c0_i32_0 = arith.constant 0 : i32
    %c0_i32_1 = arith.constant 0 : i32
    return %c0_i32, %c0_i32_0 : i32, i32
  }
  func.func @transform_9(%arg0: i32) -> (i32, i32, i32) {
    %c0_i32 = arith.constant 0 : i32
    %c0_i32_0 = arith.constant 0 : i32
    %c0_i32_1 = arith.constant 0 : i32
    %c0_i32_2 = arith.constant 0 : i32
    return %c0_i32, %c0_i32_0, %c0_i32_1 : i32, i32, i32
  }
  func.func @transform_10(%arg0: i32) -> (i32, i32, i32) {
    %c0_i32 = arith.constant 0 : i32
    %c0_i32_0 = arith.constant 0 : i32
    %c0_i32_1 = arith.constant 0 : i32
    %c0_i32_2 = arith.constant 0 : i32
    return %c0_i32, %c0_i32_0, %c0_i32_1 : i32, i32, i32
  }
  func.func @transform_11(%arg0: i32) -> (i32, i32) {
    %c0_i32 = arith.constant 0 : i32
    %c0_i32_0 = arith.constant 0 : i32
    %c0_i32_1 = arith.constant 0 : i32
    return %c0_i32, %c0_i32_0 : i32, i32
  }
  func.func @transform_12(%arg0: i32) -> (i32, i32) {
    %c0_i32 = arith.constant 0 : i32
    %c0_i32_0 = arith.constant 0 : i32
    %c0_i32_1 = arith.constant 0 : i32
    return %c0_i32, %c0_i32_0 : i32, i32
  }
  func.func @transform_13(%arg0: i32) -> (i32, i32, i32) {
    %c0_i32 = arith.constant 0 : i32
    %c0_i32_0 = arith.constant 0 : i32
    %c0_i32_1 = arith.constant 0 : i32
    return %arg0, %c0_i32, %c0_i32_0 : i32, i32, i32
  }
}

module attributes {stable_mosaic.version = 11 : i64} {
  func.func @_head_kernel(%arg0: i32, %arg1: memref<2x2048xf32, #tpu.memory_space<vmem>>, %arg2: memref<2048x64xf32, #tpu.memory_space<vmem>>, %arg3: memref<1x64xf32, #tpu.memory_space<vmem>>, %arg4: memref<64x10xf32, #tpu.memory_space<vmem>>, %arg5: memref<1x10xf32, #tpu.memory_space<vmem>>, %arg6: memref<2x10xf32, #tpu.memory_space<vmem>>) attributes {dimension_semantics = [#tpu.dimension_semantics<arbitrary>], iteration_bounds = array<i64: 1>, scalar_prefetch = 0 : i64, scratch_operands = 0 : i64, tpu.core_type = #tpu.core_type<tc>, window_params = [{pipeline_mode = #tpu.pipeline_mode<synchronous>, transform_indices = @transform_0, window_bounds = array<i64: 2, 2048>}, {pipeline_mode = #tpu.pipeline_mode<synchronous>, transform_indices = @transform_1, window_bounds = array<i64: 2048, 64>}, {pipeline_mode = #tpu.pipeline_mode<synchronous>, transform_indices = @transform_2, window_bounds = array<i64: 1, 64>}, {pipeline_mode = #tpu.pipeline_mode<synchronous>, transform_indices = @transform_3, window_bounds = array<i64: 64, 10>}, {pipeline_mode = #tpu.pipeline_mode<synchronous>, transform_indices = @transform_4, window_bounds = array<i64: 1, 10>}, {pipeline_mode = #tpu.pipeline_mode<synchronous>, transform_indices = @transform_5, window_bounds = array<i64: 2, 10>}]} {
    %c0 = arith.constant 0 : index
    %c0_0 = arith.constant 0 : index
    %0 = vector.load %arg1[%c0, %c0_0] : memref<2x2048xf32, #tpu.memory_space<vmem>>, vector<2x2048xf32>
    %c0_1 = arith.constant 0 : index
    %c0_2 = arith.constant 0 : index
    %1 = vector.load %arg2[%c0_1, %c0_2] : memref<2048x64xf32, #tpu.memory_space<vmem>>, vector<2048x64xf32>
    %cst = arith.constant dense<0.000000e+00> : vector<2x64xf32>
    %2 = tpu.matmul %0, %1, %cst {dimension_numbers = #tpu.dot_dimension_numbers<[1], [0], [0], [1], [0, 0, 1, 1], [], []>} : vector<2x2048xf32>, vector<2048x64xf32>, vector<2x64xf32> -> vector<2x64xf32>
    %c0_3 = arith.constant 0 : index
    %c0_4 = arith.constant 0 : index
    %3 = vector.load %arg3[%c0_3, %c0_4] : memref<1x64xf32, #tpu.memory_space<vmem>>, vector<1x64xf32>
    %4 = vector.broadcast %3 : vector<1x64xf32> to vector<2x64xf32>
    %5 = arith.addf %2, %4 : vector<2x64xf32>
    %c0_5 = arith.constant 0 : index
    %c0_6 = arith.constant 0 : index
    %6 = vector.load %arg4[%c0_5, %c0_6] : memref<64x10xf32, #tpu.memory_space<vmem>>, vector<64x10xf32>
    %cst_7 = arith.constant dense<0.000000e+00> : vector<2x10xf32>
    %7 = tpu.matmul %5, %6, %cst_7 {dimension_numbers = #tpu.dot_dimension_numbers<[1], [0], [0], [1], [0, 0, 1, 1], [], []>} : vector<2x64xf32>, vector<64x10xf32>, vector<2x10xf32> -> vector<2x10xf32>
    %c0_8 = arith.constant 0 : index
    %c0_9 = arith.constant 0 : index
    %8 = vector.load %arg5[%c0_8, %c0_9] : memref<1x10xf32, #tpu.memory_space<vmem>>, vector<1x10xf32>
    %9 = vector.broadcast %8 : vector<1x10xf32> to vector<2x10xf32>
    %10 = arith.addf %7, %9 : vector<2x10xf32>
    %c0_10 = arith.constant 0 : index
    %c0_11 = arith.constant 0 : index
    %11 = vector.load %arg6[%c0_10, %c0_11] : memref<2x10xf32, #tpu.memory_space<vmem>>, vector<2x10xf32>
    tpu.vector_store %arg6[%c0_10, %c0_11], %10 {strides = array<i32>} : memref<2x10xf32, #tpu.memory_space<vmem>>, vector<2x10xf32>,
    return
  }
  func.func @transform_0(%arg0: i32) -> (i32, i32) {
    %c0_i32 = arith.constant 0 : i32
    %c0_i32_0 = arith.constant 0 : i32
    %c0_i32_1 = arith.constant 0 : i32
    return %c0_i32, %c0_i32_0 : i32, i32
  }
  func.func @transform_1(%arg0: i32) -> (i32, i32) {
    %c0_i32 = arith.constant 0 : i32
    %c0_i32_0 = arith.constant 0 : i32
    %c0_i32_1 = arith.constant 0 : i32
    return %c0_i32, %c0_i32_0 : i32, i32
  }
  func.func @transform_2(%arg0: i32) -> (i32, i32) {
    %c0_i32 = arith.constant 0 : i32
    %c0_i32_0 = arith.constant 0 : i32
    %c0_i32_1 = arith.constant 0 : i32
    return %c0_i32, %c0_i32_0 : i32, i32
  }
  func.func @transform_3(%arg0: i32) -> (i32, i32) {
    %c0_i32 = arith.constant 0 : i32
    %c0_i32_0 = arith.constant 0 : i32
    %c0_i32_1 = arith.constant 0 : i32
    return %c0_i32, %c0_i32_0 : i32, i32
  }
  func.func @transform_4(%arg0: i32) -> (i32, i32) {
    %c0_i32 = arith.constant 0 : i32
    %c0_i32_0 = arith.constant 0 : i32
    %c0_i32_1 = arith.constant 0 : i32
    return %c0_i32, %c0_i32_0 : i32, i32
  }
  func.func @transform_5(%arg0: i32) -> (i32, i32) {
    %c0_i32 = arith.constant 0 : i32
    %c0_i32_0 = arith.constant 0 : i32
    %c0_i32_1 = arith.constant 0 : i32
    return %c0_i32, %c0_i32_0 : i32, i32
  }
}

</mosaic_0001>

<bundles_post_ra>
// kernel: series_net_forward.3
= control target key start
LH: loop header
LB: loop body
LE: loop exit
PB: predicated region body
PF: predicated region fallthrough
CT: control target
= control target key end

     0   :  { %v1653_v47 = vmov 1983009808   ;;  %v296_v49 = vlaneseq  ;;  %s2550_s0 = inlined_call_operand.vmem [shape: f32[2,2048], index: 0, kind: input, shape index: {}]   ;;  %s2551_s1 = inlined_call_operand.vmem [shape: f32[2048,64], index: 1, kind: input, shape index: {}]   ;;  %s2552_s2 = inlined_call_operand.vmem [shape: f32[1,64], index: 2, kind: input, shape index: {}]   ;;  %s2553_s3 = inlined_call_operand.vmem [shape: f32[64,10], index: 3, kind: input, shape index: {}]   ;;  %s2554_s4 = inlined_call_operand.vmem [shape: f32[1,10], index: 4, kind: input, shape index: {}]   ;;  %s2555_s5 = inlined_call_operand.hbm [shape: f32[2,10], index: 5, kind: output, shape index: {}]  }
   0x1   :  { %v41_v0 = vld [vmem:[%s2551_s1 + $0x80] sm:$0xff]  ;;  %v42_v1 = vld [vmem:[%s2551_s1 + $0x88] sm:$0xff]  ;;  %v43_v11 = vld [vmem:[%s2551_s1 + $0x90] sm:$0xff]  ;;  %v294_v48 = vunpack.c.l.s4 %v1653_v47 }
   0x2   :  { %v25_v2 = vld [vmem:[%s2551_s1] sm:$0xff]  ;;  %v1352_v3 = vpack.c.bf16 %v42_v1, %v41_v0  ;;  %v26_v4 = vld [vmem:[%s2551_s1 + $0x8] sm:$0xff]  ;;  %v44_v13 = vld [vmem:[%s2551_s1 + $0x98] sm:$0xff]  ;;  %v297_v0 = vshrl.u32 %v296_v49, 7 }
   0x3   :  { %v73_v5 = vld [vmem:[%s2551_s1 + $0x180] sm:$0xff]  ;;  %v74_v6 = vld [vmem:[%s2551_s1 + $0x188] sm:$0xff]  ;;  %v1354_v7 = vpack.c.bf16 %v26_v4, %v25_v2  ;;  %v27_v14 = vld [vmem:[%s2551_s1 + $0x10] sm:$0xff]  ;;  %v1356_v16 = vpack.c.bf16 %v44_v13, %v43_v11  ;;  %v295_v63 = vunpack.c.0.s8 %v294_v48 }
   0x4   :  { %v1384_v8 = vpack.c.bf16 %v74_v6, %v73_v5  ;;  %v57_v9 = vld [vmem:[%s2551_s1 + $0x100] sm:$0xff]  ;;  %v58_v10 = vld [vmem:[%s2551_s1 + $0x108] sm:$0xff]  ;;  %1353 = vmatprep.subr.bf16.mxu0 %v1352_v3  ;;  %v28_v15 = vld [vmem:[%s2551_s1 + $0x18] sm:$0xff] }
   0x5   :  { %v1386_v12 = vpack.c.bf16 %v58_v10, %v57_v9  ;;  %1355 = vmatpush3.bf16.msra.mxu0 %v1354_v7  ;;  %v1358_v17 = vpack.c.bf16 %v28_v15, %v27_v14  ;;  %v75_v18 = vld [vmem:[%s2551_s1 + $0x190] sm:$0xff]  ;;  %v76_v19 = vld [vmem:[%s2551_s1 + $0x198] sm:$0xff]  ;;  %v45_v23 = vld [vmem:[%s2551_s1 + $0xa0] sm:$0xff]  ;;  %v1838_v13 = vsub.s32 %v295_v63, %v297_v0 }
   0x6   :  { %1385 = vmatprep.subr.bf16.mxu1 %v1384_v8  ;;  %v59_v20 = vld [vmem:[%s2551_s1 + $0x110] sm:$0xff]  ;;  %v1388_v21 = vpack.c.bf16 %v76_v19, %v75_v18  ;;  %v60_v22 = vld [vmem:[%s2551_s1 + $0x118] sm:$0xff]  ;;  %v46_v24 = vld [vmem:[%s2551_s1 + $0xa8] sm:$0xff]  ;;  %1357 = vmatprep.subr.bf16.mxu0 %v1356_v16 }
   0x7   :  { %1387 = vmatpush3.bf16.msra.mxu1 %v1386_v12  ;;  %v1390_v25 = vpack.c.bf16 %v60_v22, %v59_v20  ;;  %v1360_v26 = vpack.c.bf16 %v46_v24, %v45_v23  ;;  %v29_v27 = vld [vmem:[%s2551_s1 + $0x20] sm:$0xff]  ;;  %v30_v28 = vld [vmem:[%s2551_s1 + $0x28] sm:$0xff]  ;;  %v47_v35 = vld [vmem:[%s2551_s1 + $0xb0] sm:$0xff] }
   0x8   :  { %v77_v29 = vld [vmem:[%s2551_s1 + $0x1a0] sm:$0xff]  ;;  %1389 = vmatprep.subr.bf16.mxu1 %v1388_v21  ;;  %v78_v30 = vld [vmem:[%s2551_s1 + $0x1a8] sm:$0xff]  ;;  %v1362_v33 = vpack.c.bf16 %v30_v28, %v29_v27  ;;  %v48_v36 = vld [vmem:[%s2551_s1 + $0xb8] sm:$0xff] }
   0x9   :  { %v61_v31 = vld [vmem:[%s2551_s1 + $0x120] sm:$0xff]  ;;  %v62_v32 = vld [vmem:[%s2551_s1 + $0x128] sm:$0xff]  ;;  %1359 = vmatpush3.bf16.msra.mxu0 %v1358_v17  ;;  %v1392_v34 = vpack.c.bf16 %v78_v30, %v77_v29  ;;  %v31_v37 = vld [vmem:[%s2551_s1 + $0x30] sm:$0xff]  ;;  %v1364_v39 = vpack.c.bf16 %v48_v36, %v47_v35 }
   0xa   :  { %1361 = vmatprep.subr.bf16.mxu0 %v1360_v26  ;;  %v1394_v38 = vpack.c.bf16 %v62_v32, %v61_v31  ;;  %v32_v40 = vld [vmem:[%s2551_s1 + $0x38] sm:$0xff]  ;;  %v79_v41 = vld [vmem:[%s2551_s1 + $0x1b0] sm:$0xff]  ;;  %v49_v46 = vld [vmem:[%s2551_s1 + $0xc0] sm:$0xff] }
   0xb   :  { %1391 = vmatpush3.bf16.msra.mxu1 %v1390_v25  ;;  %v80_v42 = vld [vmem:[%s2551_s1 + $0x1b8] sm:$0xff]  ;;  %v63_v44 = vld [vmem:[%s2551_s1 + $0x130] sm:$0xff]  ;;  %v50_v50 = vld [vmem:[%s2551_s1 + $0xc8] sm:$0xff]  ;;  %v1366_v51 = vpack.c.bf16 %v32_v40, %v31_v37 }
   0xc   :  { %1393 = vmatprep.subr.bf16.mxu1 %v1392_v34  ;;  %v1396_v43 = vpack.c.bf16 %v80_v42, %v79_v41  ;;  %v64_v45 = vld [vmem:[%s2551_s1 + $0x138] sm:$0xff]  ;;  %v81_v52 = vld [vmem:[%s2551_s1 + $0x1c0] sm:$0xff]  ;;  %v82_v53 = vld [vmem:[%s2551_s1 + $0x1c8] sm:$0xff]  ;;  %v1368_v55 = vpack.c.bf16 %v50_v50, %v49_v46 }
   0xd   :  { %1363 = vmatpush3.bf16.msra.mxu0 %v1362_v33  ;;  %v1398_v54 = vpack.c.bf16 %v64_v45, %v63_v44  ;;  %v33_v56 = vld [vmem:[%s2551_s1 + $0x40] sm:$0xff]  ;;  %v34_v57 = vld [vmem:[%s2551_s1 + $0x48] sm:$0xff]  ;;  %v1400_v59 = vpack.c.bf16 %v82_v53, %v81_v52  ;;  %v51_v61 = vld [vmem:[%s2551_s1 + $0xd0] sm:$0xff] }
   0xe   :  { %1365 = vmatprep.subr.bf16.mxu0 %v1364_v39  ;;  %v65_v58 = vld [vmem:[%s2551_s1 + $0x140] sm:$0xff]  ;;  %v66_v60 = vld [vmem:[%s2551_s1 + $0x148] sm:$0xff]  ;;  %v52_v62 = vld [vmem:[%s2551_s1 + $0xd8] sm:$0xff]  ;;  %v1370_v3 = vpack.c.bf16 %v34_v57, %v33_v56 }
   0xf   :  { %1395 = vmatpush3.bf16.msra.mxu1 %v1394_v38  ;;  %v83_v1 = vld [vmem:[%s2551_s1 + $0x1d0] sm:$0xff]  ;;  %v84_v2 = vld [vmem:[%s2551_s1 + $0x1d8] sm:$0xff]  ;;  %v1402_v4 = vpack.c.bf16 %v66_v60, %v65_v58  ;;  %v1372_v5 = vpack.c.bf16 %v52_v62, %v51_v61  ;;  %v53_v11 = vld [vmem:[%s2551_s1 + $0xe0] sm:$0xff] }
  0x10   :  { %1397 = vmatprep.subr.bf16.mxu1 %v1396_v43  ;;  %v35_v6 = vld [vmem:[%s2551_s1 + $0x50] sm:$0xff]  ;;  %v36_v7 = vld [vmem:[%s2551_s1 + $0x58] sm:$0xff]  ;;  %v1404_v9 = vpack.c.bf16 %v84_v2, %v83_v1  ;;  %v54_v12 = vld [vmem:[%s2551_s1 + $0xe8] sm:$0xff] }
  0x11   :  { %1367 = vmatpush3.bf16.msra.mxu0 %v1366_v51  ;;  %v67_v8 = vld [vmem:[%s2551_s1 + $0x150] sm:$0xff]  ;;  %v68_v10 = vld [vmem:[%s2551_s1 + $0x158] sm:$0xff]  ;;  %v85_v14 = vld [vmem:[%s2551_s1 + $0x1e0] sm:$0xff]  ;;  %v1374_v16 = vpack.c.bf16 %v36_v7, %v35_v6  ;;  %v1376_v19 = vpack.c.bf16 %v54_v12, %v53_v11 }
  0x12   :  { %1369 = vmatprep.subr.bf16.mxu0 %v1368_v55  ;;  %v86_v15 = vld [vmem:[%s2551_s1 + $0x1e8] sm:$0xff]  ;;  %v37_v17 = vld [vmem:[%s2551_s1 + $0x60] sm:$0xff]  ;;  %v1406_v18 = vpack.c.bf16 %v68_v10, %v67_v8  ;;  %v55_v25 = vld [vmem:[%s2551_s1 + $0xf0] sm:$0xff] }
  0x13   :  { %1399 = vmatpush3.bf16.msra.mxu1 %v1398_v54  ;;  %v38_v20 = vld [vmem:[%s2551_s1 + $0x68] sm:$0xff]  ;;  %v69_v21 = vld [vmem:[%s2551_s1 + $0x160] sm:$0xff]  ;;  %v1408_v23 = vpack.c.bf16 %v86_v15, %v85_v14  ;;  %v56_v26 = vld [vmem:[%s2551_s1 + $0xf8] sm:$0xff] }
  0x14   :  { %1401 = vmatprep.subr.bf16.mxu1 %v1400_v59  ;;  %v21_v22 = vld [vmem:[%s2550_s0] sm:$0xff]  ;;  %v70_v24 = vld [vmem:[%s2551_s1 + $0x168] sm:$0xff]  ;;  %v87_v29 = vld [vmem:[%s2551_s1 + $0x1f0] sm:$0xff]  ;;  %v1378_v31 = vpack.c.bf16 %v38_v20, %v37_v17  ;;  %v1380_v35 = vpack.c.bf16 %v56_v26, %v55_v25 }
  0x15   :  { %1371 = vmatpush3.bf16.msra.mxu0 %v1370_v3  ;;  %v299_v27 = vrot.slane %v21_v22, %v1838_v13  ;;  %v292_v28 = vcombine.high %v21_v22, %v21_v22  ;;  %v88_v30 = vld [vmem:[%s2551_s1 + $0x1f8] sm:$0xff]  ;;  %v1410_v34 = vpack.c.bf16 %v70_v24, %v69_v21  ;;  %v39_v36 = vld [vmem:[%s2551_s1 + $0x70] sm:$0xff]  ;;  %v105_v41 = vld [vmem:[%s2551_s1 + $0x280] sm:$0xff] }
  0x16   :  { %1373 = vmatprep.subr.bf16.mxu0 %v1372_v5  ;;  %v40_v37 = vld [vmem:[%s2551_s1 + $0x78] sm:$0xff]  ;;  %v71_v38 = vld [vmem:[%s2551_s1 + $0x170] sm:$0xff]  ;;  %v1412_v39 = vpack.c.bf16 %v88_v30, %v87_v29  ;;  %v106_v42 = vld [vmem:[%s2551_s1 + $0x288] sm:$0xff] }
  0x17   :  { %1403 = vmatpush3.bf16.msra.mxu1 %v1402_v4  ;;  %v307_v32 = vcombine.high %v299_v27, %v299_v27  ;;  %v306_v33 = vrot.slane %v292_v28, %v1838_v13  ;;  %v72_v40 = vld [vmem:[%s2551_s1 + $0x178] sm:$0xff]  ;;  %v137_v44 = vld [vmem:[%s2551_s1 + $0x380] sm:$0xff]  ;;  %v138_v45 = vld [vmem:[%s2551_s1 + $0x388] sm:$0xff]  ;;  %v1382_v46 = vpack.c.bf16 %v40_v37, %v39_v36  ;;  %v1416_v48 = vpack.c.bf16 %v106_v42, %v105_v41 }
  0x18   :  { %1405 = vmatprep.subr.bf16.mxu1 %v1404_v9  ;;  %v1414_v47 = vpack.c.bf16 %v72_v40, %v71_v38  ;;  %v89_v49 = vld [vmem:[%s2551_s1 + $0x200] sm:$0xff]  ;;  %v90_v50 = vld [vmem:[%s2551_s1 + $0x208] sm:$0xff]  ;;  %v1448_v52 = vpack.c.bf16 %v138_v45, %v137_v44  ;;  %v107_v54 = vld [vmem:[%s2551_s1 + $0x290] sm:$0xff] }
  0x19   :  { %1375 = vmatpush3.bf16.msra.mxu0 %v1374_v16  ;;  %440 = vmatprep.mubr.f32.mxu0 %v307_v32  ;;  %v308_v43 = vcombine.high %v306_v33, %v306_v33  ;;  %v121_v51 = vld [vmem:[%s2551_s1 + $0x300] sm:$0xff]  ;;  %v122_v53 = vld [vmem:[%s2551_s1 + $0x308] sm:$0xff]  ;;  %v108_v55 = vld [vmem:[%s2551_s1 + $0x298] sm:$0xff]  ;;  %v1418_v58 = vpack.c.bf16 %v90_v50, %v89_v49 }
  0x1a   :  { %1377 = vmatprep.subr.bf16.mxu0 %v1376_v19  ;;  %v139_v56 = vld [vmem:[%s2551_s1 + $0x390] sm:$0xff]  ;;  %v140_v57 = vld [vmem:[%s2551_s1 + $0x398] sm:$0xff]  ;;  %v1450_v59 = vpack.c.bf16 %v122_v53, %v121_v51  ;;  %v1420_v60 = vpack.c.bf16 %v108_v55, %v107_v54  ;;  %v109_v2 = vld [vmem:[%s2551_s1 + $0x2a0] sm:$0xff] }
  0x1b   :  { %1407 = vmatpush3.bf16.msra.mxu1 %v1406_v18  ;;  %510 = vmatprep.mubr.f32.mxu1 %v308_v43  ;;  %v91_v61 = vld [vmem:[%s2551_s1 + $0x210] sm:$0xff]  ;;  %v92_v62 = vld [vmem:[%s2551_s1 + $0x218] sm:$0xff]  ;;  %v1452_v0 = vpack.c.bf16 %v140_v57, %v139_v56  ;;  %v110_v3 = vld [vmem:[%s2551_s1 + $0x2a8] sm:$0xff] }
  0x1c   :  { %1409 = vmatprep.subr.bf16.mxu1 %v1408_v23  ;;  %v123_v63 = vld [vmem:[%s2551_s1 + $0x310] sm:$0xff]  ;;  %v124_v1 = vld [vmem:[%s2551_s1 + $0x318] sm:$0xff]  ;;  %v141_v4 = vld [vmem:[%s2551_s1 + $0x3a0] sm:$0xff]  ;;  %v1422_v6 = vpack.c.bf16 %v92_v62, %v91_v61  ;;  %v1424_v8 = vpack.c.bf16 %v110_v3, %v109_v2 }
  0x1d   :  { %1379 = vmatpush3.bf16.msra.mxu0 %v1378_v31  ;;  %v142_v5 = vld [vmem:[%s2551_s1 + $0x3a8] sm:$0xff]  ;;  %v1454_v7 = vpack.c.bf16 %v124_v1, %v123_v63  ;;  %v93_v9 = vld [vmem:[%s2551_s1 + $0x220] sm:$0xff]  ;;  %v111_v15 = vld [vmem:[%s2551_s1 + $0x2b0] sm:$0xff] }
  0x1e   :  { %1381 = vmatprep.subr.bf16.mxu0 %v1380_v35  ;;  %v94_v10 = vld [vmem:[%s2551_s1 + $0x228] sm:$0xff]  ;;  %v125_v11 = vld [vmem:[%s2551_s1 + $0x320] sm:$0xff]  ;;  %v1456_v12 = vpack.c.bf16 %v142_v5, %v141_v4  ;;  %v112_v16 = vld [vmem:[%s2551_s1 + $0x2b8] sm:$0xff] }
  0x1f   :  { %1411 = vmatpush3.bf16.msra.mxu1 %v1410_v34  ;;  %v126_v14 = vld [vmem:[%s2551_s1 + $0x328] sm:$0xff]  ;;  %v143_v17 = vld [vmem:[%s2551_s1 + $0x3b0] sm:$0xff]  ;;  %v144_v18 = vld [vmem:[%s2551_s1 + $0x3b8] sm:$0xff]  ;;  %v1426_v19 = vpack.c.bf16 %v94_v10, %v93_v9  ;;  %v1428_v21 = vpack.c.bf16 %v112_v16, %v111_v15 }
  0x20   :  { %1413 = vmatprep.subr.bf16.mxu1 %v1412_v39  ;;  %v1458_v20 = vpack.c.bf16 %v126_v14, %v125_v11  ;;  %v95_v22 = vld [vmem:[%s2551_s1 + $0x230] sm:$0xff]  ;;  %v96_v23 = vld [vmem:[%s2551_s1 + $0x238] sm:$0xff]  ;;  %v1460_v25 = vpack.c.bf16 %v144_v18, %v143_v17  ;;  %v114_v28 = vld [vmem:[%s2551_s1 + $0x2c8] sm:$0xff] }
  0x21   :  { %1383 = vmatpush3.bf16.msra.mxu0 %v1382_v46  ;;  %v127_v24 = vld [vmem:[%s2551_s1 + $0x330] sm:$0xff]  ;;  %v128_v26 = vld [vmem:[%s2551_s1 + $0x338] sm:$0xff]  ;;  %v145_v29 = vld [vmem:[%s2551_s1 + $0x3c0] sm:$0xff]  ;;  %v1430_v32 = vpack.c.bf16 %v96_v23, %v95_v22 }
  0x22   :  { %1417 = vmatprep.subr.bf16.mxu0 %v1416_v48  ;;  %v146_v30 = vld [vmem:[%s2551_s1 + $0x3c8] sm:$0xff]  ;;  %v1462_v35 = vpack.c.bf16 %v128_v26, %v127_v24  ;;  %v97_v37 = vld [vmem:[%s2551_s1 + $0x240] sm:$0xff]  ;;  %v115_v42 = vld [vmem:[%s2551_s1 + $0x2d0] sm:$0xff] }
  0x23   :  { %1415 = vmatpush3.bf16.msra.mxu1 %v1414_v47  ;;  %v22_v31 = vld [vmem:[%s2550_s0 + $0x8] sm:$0xff]  ;;  %v129_v39 = vld [vmem:[%s2551_s1 + $0x340] sm:$0xff]  ;;  %v1464_v40 = vpack.c.bf16 %v146_v30, %v145_v29  ;;  %v116_v43 = vld [vmem:[%s2551_s1 + $0x2d8] sm:$0xff] }
  0x24   :  { %1449 = vmatprep.subr.bf16.mxu1 %v1448_v52  ;;  %441 = vmatmul.mubr.f32.vlgmr.msra.gmra.mrb[0].mxu0 %v299_v27  ;;  %v113_v27 = vld [vmem:[%s2551_s1 + $0x2c0] sm:$0xff]  ;;  %v309_v34 = vcombine.high %v22_v31, %v22_v31  ;;  %v98_v38 = vld [vmem:[%s2551_s1 + $0x248] sm:$0xff]  ;;  %v147_v46 = vld [vmem:[%s2551_s1 + $0x3d0] sm:$0xff]  ;;  %v1436_v51 = vpack.c.bf16 %v116_v43, %v115_v42 }
  0x25   :  { %1419 = vmatpush3.bf16.msra.mxu0 %v1418_v58  ;;  %v1432_v36 = vpack.c.bf16 %v114_v28, %v113_v27  ;;  %v130_v41 = vld [vmem:[%s2551_s1 + $0x348] sm:$0xff]  ;;  %v148_v47 = vld [vmem:[%s2551_s1 + $0x3d8] sm:$0xff]  ;;  %v1434_v48 = vpack.c.bf16 %v98_v38, %v97_v37  ;;  %v99_v52 = vld [vmem:[%s2551_s1 + $0x250] sm:$0xff] }
  0x26   :  { %511 = vmatmul.mubr.f32.vlgmr.msra.gmra.mrb[0].mxu1 %v306_v33  ;;  %1421 = vmatprep.subr.bf16.mxu0 %v1420_v60  ;;  %v1999_v33 = vrot.slane %v22_v31, %v1838_v13  ;;  %v2022_v45 = vrot.slane %v309_v34, %v1838_v13  ;;  %v1466_v50 = vpack.c.bf16 %v130_v41, %v129_v39  ;;  %v100_v53 = vld [vmem:[%s2551_s1 + $0x258] sm:$0xff]  ;;  %v131_v54 = vld [vmem:[%s2551_s1 + $0x350] sm:$0xff]  ;;  %v117_v57 = vld [vmem:[%s2551_s1 + $0x2e0] sm:$0xff] }
  0x27   :  { %1451 = vmatpush3.bf16.msra.mxu1 %v1450_v59  ;;  %v1468_v55 = vpack.c.bf16 %v148_v47, %v147_v46  ;;  %v132_v56 = vld [vmem:[%s2551_s1 + $0x358] sm:$0xff]  ;;  %v118_v58 = vld [vmem:[%s2551_s1 + $0x2e8] sm:$0xff]  ;;  %v149_v59 = vld [vmem:[%s2551_s1 + $0x3e0] sm:$0xff]  ;;  %v1438_v61 = vpack.c.bf16 %v100_v53, %v99_v52 }
  0x28   :  { %1453 = vmatprep.subr.bf16.mxu1 %v1452_v0  ;;  %v324_v44 = vcombine.high %v1999_v33, %v1999_v33  ;;  %v325_v49 = vcombine.high %v2022_v45, %v2022_v45  ;;  %v150_v60 = vld [vmem:[%s2551_s1 + $0x3e8] sm:$0xff]  ;;  %v1470_v62 = vpack.c.bf16 %v132_v56, %v131_v54  ;;  %v1440_v63 = vpack.c.bf16 %v118_v58, %v117_v57  ;;  %v101_v0 = vld [vmem:[%s2551_s1 + $0x260] sm:$0xff]  ;;  %v119_v5 = vld [vmem:[%s2551_s1 + $0x2f0] sm:$0xff] }
  0x29   :  { %1423 = vmatpush3.bf16.msra.mxu0 %v1422_v6  ;;  %v102_v1 = vld [vmem:[%s2551_s1 + $0x268] sm:$0xff]  ;;  %v133_v2 = vld [vmem:[%s2551_s1 + $0x360] sm:$0xff]  ;;  %v1472_v3 = vpack.c.bf16 %v150_v60, %v149_v59  ;;  %v120_v6 = vld [vmem:[%s2551_s1 + $0x2f8] sm:$0xff] }
  0x2a   :  { %1425 = vmatprep.subr.bf16.mxu0 %v1424_v8  ;;  %580 = vmatprep.mubr.f32.mxu0 %v324_v44  ;;  %v134_v4 = vld [vmem:[%s2551_s1 + $0x368] sm:$0xff]  ;;  %v152_v8 = vld [vmem:[%s2551_s1 + $0x3f8] sm:$0xff]  ;;  %v1442_v9 = vpack.c.bf16 %v102_v1, %v101_v0  ;;  %v1444_v11 = vpack.c.bf16 %v120_v6, %v119_v5  ;;  %v135_v15 = vld [vmem:[%s2551_s1 + $0x370] sm:$0xff] }
  0x2b   :  { %1455 = vmatpush3.bf16.msra.mxu1 %v1454_v7  ;;  %650 = vmatprep.mubr.f32.mxu1 %v325_v49  ;;  %v151_v7 = vld [vmem:[%s2551_s1 + $0x3f0] sm:$0xff]  ;;  %v1474_v10 = vpack.c.bf16 %v134_v4, %v133_v2  ;;  %v104_v14 = vld [vmem:[%s2551_s1 + $0x278] sm:$0xff]  ;;  %v169_v18 = vld [vmem:[%s2551_s1 + $0x480] sm:$0xff] }
  0x2c   :  { %1457 = vmatprep.subr.bf16.mxu1 %v1456_v12  ;;  %v103_v12 = vld [vmem:[%s2551_s1 + $0x270] sm:$0xff]  ;;  %v1476_v16 = vpack.c.bf16 %v152_v8, %v151_v7  ;;  %v136_v17 = vld [vmem:[%s2551_s1 + $0x378] sm:$0xff]  ;;  %v153_v23 = vld [vmem:[%s2551_s1 + $0x400] sm:$0xff] }
  0x2d   :  { %1427 = vmatpush3.bf16.msra.mxu0 %v1426_v19  ;;  %v170_v19 = vld [vmem:[%s2551_s1 + $0x488] sm:$0xff]  ;;  %v1446_v22 = vpack.c.bf16 %v104_v14, %v103_v12  ;;  %v1478_v24 = vpack.c.bf16 %v136_v17, %v135_v15  ;;  %v185_v27 = vld [vmem:[%s2551_s1 + $0x500] sm:$0xff]  ;;  %v171_v30 = vld [vmem:[%s2551_s1 + $0x490] sm:$0xff] }
  0x2e   :  { %1429 = vmatprep.subr.bf16.mxu0 %v1428_v21  ;;  %v202_v21 = vld [vmem:[%s2551_s1 + $0x588] sm:$0xff]  ;;  %v172_v31 = vld [vmem:[%s2551_s1 + $0x498] sm:$0xff]  ;;  %v23_v37 = vld [vmem:[%s2550_s0 + $0x10] sm:$0xff] }
  0x2f   :  { %1459 = vmatpush3.bf16.msra.mxu1 %v1458_v20  ;;  %v201_v20 = vld [vmem:[%s2551_s1 + $0x580] sm:$0xff]  ;;  %v154_v26 = vld [vmem:[%s2551_s1 + $0x408] sm:$0xff]  ;;  %v204_v34 = vld [vmem:[%s2551_s1 + $0x598] sm:$0xff]  ;;  %v1484_v38 = vpack.c.bf16 %v172_v31, %v171_v30  ;;  %v2141_v42 = vrot.slane %v23_v37, %v1838_v13  ;;  %v326_v43 = vcombine.high %v23_v37, %v23_v37 }
  0x30   :  { %1461 = vmatprep.subr.bf16.mxu1 %v1460_v25  ;;  %v1480_v25 = vpack.c.bf16 %v170_v19, %v169_v18  ;;  %v186_v28 = vld [vmem:[%s2551_s1 + $0x508] sm:$0xff]  ;;  %v1512_v29 = vpack.c.bf16 %v202_v21, %v201_v20  ;;  %v155_v39 = vld [vmem:[%s2551_s1 + $0x410] sm:$0xff]  ;;  %v188_v46 = vld [vmem:[%s2551_s1 + $0x518] sm:$0xff] }
  0x31   :  { %1431 = vmatpush3.bf16.msra.mxu0 %v1430_v32  ;;  %v203_v32 = vld [vmem:[%s2551_s1 + $0x590] sm:$0xff]  ;;  %v173_v47 = vld [vmem:[%s2551_s1 + $0x4a0] sm:$0xff]  ;;  %v2162_v52 = vrot.slane %v326_v43, %v1838_v13  ;;  %v158_v56 = vld [vmem:[%s2551_s1 + $0x428] sm:$0xff] }
  0x32   :  { %1433 = vmatprep.subr.bf16.mxu0 %v1432_v36  ;;  %v1514_v36 = vpack.c.bf16 %v186_v28, %v185_v27  ;;  %v187_v41 = vld [vmem:[%s2551_s1 + $0x510] sm:$0xff]  ;;  %v1516_v44 = vpack.c.bf16 %v204_v34, %v203_v32  ;;  %v205_v49 = vld [vmem:[%s2551_s1 + $0x5a0] sm:$0xff]  ;;  %v190_v59 = vld [vmem:[%s2551_s1 + $0x528] sm:$0xff] }
  0x33   :  { %1463 = vmatpush3.bf16.msra.mxu1 %v1462_v35  ;;  %v1482_v35 = vpack.c.bf16 %v154_v26, %v153_v23  ;;  %v189_v57 = vld [vmem:[%s2551_s1 + $0x520] sm:$0xff]  ;;  %v175_v60 = vld [vmem:[%s2551_s1 + $0x4b0] sm:$0xff]  ;;  %v160_v4 = vld [vmem:[%s2551_s1 + $0x438] sm:$0xff] }
  0x34   :  { %1465 = vmatprep.subr.bf16.mxu1 %v1464_v40  ;;  %v156_v40 = vld [vmem:[%s2551_s1 + $0x418] sm:$0xff]  ;;  %v1522_v1 = vpack.c.bf16 %v190_v59, %v189_v57  ;;  %v191_v5 = vld [vmem:[%s2551_s1 + $0x530] sm:$0xff]  ;;  %v177_v8 = vld [vmem:[%s2551_s1 + $0x4c0] sm:$0xff] }
  0x35   :  { %1435 = vmatpush3.bf16.msra.mxu0 %v1434_v48  ;;  %v174_v48 = vld [vmem:[%s2551_s1 + $0x4a8] sm:$0xff]  ;;  %v1486_v53 = vpack.c.bf16 %v156_v40, %v155_v39  ;;  %v192_v7 = vld [vmem:[%s2551_s1 + $0x538] sm:$0xff]  ;;  %v193_v18 = vld [vmem:[%s2551_s1 + $0x540] sm:$0xff] }
  0x36   :  { %1437 = vmatprep.subr.bf16.mxu0 %v1436_v51  ;;  %v341_v51 = vcombine.high %v2141_v42, %v2141_v42  ;;  %v1488_v54 = vpack.c.bf16 %v174_v48, %v173_v47  ;;  %v1526_v14 = vpack.c.bf16 %v192_v7, %v191_v5  ;;  %v162_v17 = vld [vmem:[%s2551_s1 + $0x448] sm:$0xff]  ;;  %v179_v21 = vld [vmem:[%s2551_s1 + $0x4d0] sm:$0xff]  ;;  %v196_v32 = vld [vmem:[%s2551_s1 + $0x558] sm:$0xff] }
  0x37   :  { %1467 = vmatpush3.bf16.msra.mxu1 %v1466_v50  ;;  %v206_v50 = vld [vmem:[%s2551_s1 + $0x5a8] sm:$0xff]  ;;  %v211_v23 = vld [vmem:[%s2551_s1 + $0x5d0] sm:$0xff]  ;;  %v181_v34 = vld [vmem:[%s2551_s1 + $0x4e0] sm:$0xff] }
  0x38   :  { %1469 = vmatprep.subr.bf16.mxu1 %v1468_v55  ;;  %v157_v55 = vld [vmem:[%s2551_s1 + $0x420] sm:$0xff]  ;;  %v1520_v58 = vpack.c.bf16 %v206_v50, %v205_v49  ;;  %v194_v20 = vld [vmem:[%s2551_s1 + $0x548] sm:$0xff]  ;;  %v163_v28 = vld [vmem:[%s2551_s1 + $0x450] sm:$0xff] }
  0x39   :  { %1439 = vmatpush3.bf16.msra.mxu0 %v1438_v61  ;;  %v176_v61 = vld [vmem:[%s2551_s1 + $0x4b8] sm:$0xff]  ;;  %v1490_v0 = vpack.c.bf16 %v158_v56, %v157_v55  ;;  %v1530_v26 = vpack.c.bf16 %v194_v20, %v193_v18  ;;  %v195_v30 = vld [vmem:[%s2551_s1 + $0x550] sm:$0xff]  ;;  %v214_v37 = vld [vmem:[%s2551_s1 + $0x5e8] sm:$0xff] }
  0x3a   :  { %1441 = vmatprep.subr.bf16.mxu0 %v1440_v63  ;;  %v208_v63 = vld [vmem:[%s2551_s1 + $0x5b8] sm:$0xff]  ;;  %v1492_v2 = vpack.c.bf16 %v176_v61, %v175_v60  ;;  %v165_v39 = vld [vmem:[%s2551_s1 + $0x460] sm:$0xff]  ;;  %v1534_v40 = vpack.c.bf16 %v196_v32, %v195_v30  ;;  %v166_v43 = vld [vmem:[%s2551_s1 + $0x468] sm:$0xff] }
  0x3b   :  { %1471 = vmatpush3.bf16.msra.mxu1 %v1470_v62  ;;  %v207_v62 = vld [vmem:[%s2551_s1 + $0x5b0] sm:$0xff]  ;;  %v184_v49 = vld [vmem:[%s2551_s1 + $0x4f8] sm:$0xff] }
  0x3c   :  { %1473 = vmatprep.subr.bf16.mxu1 %v1472_v3  ;;  %v159_v3 = vld [vmem:[%s2551_s1 + $0x430] sm:$0xff]  ;;  %v1524_v6 = vpack.c.bf16 %v208_v63, %v207_v62 }
  0x3d   :  { %1443 = vmatpush3.bf16.msra.mxu0 %v1442_v9  ;;  %v178_v9 = vld [vmem:[%s2551_s1 + $0x4c8] sm:$0xff]  ;;  %v1494_v12 = vpack.c.bf16 %v160_v4, %v159_v3  ;;  %v183_v48 = vld [vmem:[%s2551_s1 + $0x4f0] sm:$0xff] }
  0x3e   :  { %1445 = vmatprep.subr.bf16.mxu0 %v1444_v11  ;;  %v210_v11 = vld [vmem:[%s2551_s1 + $0x5c8] sm:$0xff]  ;;  %v1496_v15 = vpack.c.bf16 %v178_v9, %v177_v8 }
  0x3f   :  { %1475 = vmatpush3.bf16.msra.mxu1 %v1474_v10  ;;  %v209_v10 = vld [vmem:[%s2551_s1 + $0x5c0] sm:$0xff] }
  0x40   :  { %1477 = vmatprep.subr.bf16.mxu1 %v1476_v16  ;;  %v161_v16 = vld [vmem:[%s2551_s1 + $0x440] sm:$0xff]  ;;  %v1528_v19 = vpack.c.bf16 %v210_v11, %v209_v10 }
  0x41   :  { %1447 = vmatpush3.bf16.msra.mxu0 %v1446_v22  ;;  %v180_v22 = vld [vmem:[%s2551_s1 + $0x4d8] sm:$0xff] }
  0x42   :  { %1481 = vmatprep.subr.bf16.mxu0 %v1480_v25  ;;  %v1498_v25 = vpack.c.bf16 %v162_v17, %v161_v16  ;;  %v1500_v27 = vpack.c.bf16 %v180_v22, %v179_v21 }
  0x43   :  { %1479 = vmatpush3.bf16.msra.mxu1 %v1478_v24  ;;  %v212_v24 = vld [vmem:[%s2551_s1 + $0x5d8] sm:$0xff] }
  0x44   :  { %1513 = vmatprep.subr.bf16.mxu1 %v1512_v29  ;;  %581 = vmatmul.mubr.f32.vlgmr.msra.gmra.mrb[2].mxu0 %v1999_v33  ;;  %v1518_v33 = vpack.c.bf16 %v188_v46, %v187_v41  ;;  %v164_v29 = vld [vmem:[%s2551_s1 + $0x458] sm:$0xff]  ;;  %v1532_v31 = vpack.c.bf16 %v212_v24, %v211_v23  ;;  %v198_v46 = vld [vmem:[%s2551_s1 + $0x568] sm:$0xff] }
  0x45   :  { %1483 = vmatpush3.bf16.msra.mxu0 %v1482_v35  ;;  %720 = vmatprep.mubr.f32.mxu0 %v341_v51  ;;  %v182_v35 = vld [vmem:[%s2551_s1 + $0x4e8] sm:$0xff] }
  0x46   :  { %651 = vmatmul.mubr.f32.vlgmr.msra.gmra.mrb[2].mxu1 %v2022_v45  ;;  %1485 = vmatprep.subr.bf16.mxu0 %v1484_v38  ;;  %v342_v45 = vcombine.high %v2162_v52, %v2162_v52  ;;  %v1502_v38 = vpack.c.bf16 %v164_v29, %v163_v28  ;;  %v1504_v41 = vpack.c.bf16 %v182_v35, %v181_v34 }
  0x47   :  { %1515 = vmatpush3.bf16.msra.mxu1 %v1514_v36  ;;  %v213_v36 = vld [vmem:[%s2551_s1 + $0x5e0] sm:$0xff] }
  0x48   :  { %1517 = vmatprep.subr.bf16.mxu1 %v1516_v44  ;;  %790 = vmatprep.mubr.f32.mxu1 %v342_v45  ;;  %v197_v44 = vld [vmem:[%s2551_s1 + $0x560] sm:$0xff]  ;;  %v1536_v47 = vpack.c.bf16 %v214_v37, %v213_v36 }
  0x49   :  { %1487 = vmatpush3.bf16.msra.mxu0 %v1486_v53 }
  0x4a   :  { %1489 = vmatprep.subr.bf16.mxu0 %v1488_v54 }
  0x4b   :  { %1519 = vmatpush3.bf16.msra.mxu1 %v1518_v33 }
  0x4c   :  { %1521 = vmatprep.subr.bf16.mxu1 %v1520_v58 }
  0x4d   :  { %1491 = vmatpush3.bf16.msra.mxu0 %v1490_v0 }
  0x4e   :  { %1493 = vmatprep.subr.bf16.mxu0 %v1492_v2 }
  0x4f   :  { %1523 = vmatpush3.bf16.msra.mxu1 %v1522_v1 }
  0x50   :  { %1525 = vmatprep.subr.bf16.mxu1 %v1524_v6 }
  0x51   :  { %1495 = vmatpush3.bf16.msra.mxu0 %v1494_v12 }
  0x52   :  { %1497 = vmatprep.subr.bf16.mxu0 %v1496_v15 }
  0x53   :  { %1527 = vmatpush3.bf16.msra.mxu1 %v1526_v14 }
  0x54   :  { %1529 = vmatprep.subr.bf16.mxu1 %v1528_v19 }
  0x55   :  { %1499 = vmatpush3.bf16.msra.mxu0 %v1498_v25 }
  0x56   :  { %1501 = vmatprep.subr.bf16.mxu0 %v1500_v27 }
  0x57   :  { %1531 = vmatpush3.bf16.msra.mxu1 %v1530_v26 }
  0x58   :  { %1533 = vmatprep.subr.bf16.mxu1 %v1532_v31 }
  0x59   :  { %10 = vsyncpa [#allocation3], 0  ;;  %v215_v50 = vld [vmem:[%s2551_s1 + $0x5f0] sm:$0xff]  ;;  %v216_v51 = vld [vmem:[%s2551_s1 + $0x5f8] sm:$0xff]  ;;  %1503 = vmatpush3.bf16.msra.mxu0 %v1502_v38  ;;  %v1506_v53 = vpack.c.bf16 %v166_v43, %v165_v39  ;;  %v1538_v54 = vpack.c.bf16 %v198_v46, %v197_v44  ;;  %v1508_v55 = vpack.c.bf16 %v184_v49, %v183_v48  ;;  %vm1655_vm0 = vmmov 0   ;;  %s1657_s24 = smov [#allocation2]  }
  0x5a   :  { %v24_v33 = vld [vmem:[%s2550_s0 + $0x18] sm:$0xff]  ;;  %1505 = vmatprep.subr.bf16.mxu0 %v1504_v41  ;;  %v167_v56 = vld [vmem:[%s2551_s1 + $0x470] sm:$0xff]  ;;  %v1540_v58 = vpack.c.bf16 %v216_v51, %v215_v50  ;;  %v233_v60 = vld [vmem:[%s2551_s1 + $0x680] sm:$0xff]  ;;  %vm951_vm1 = vcmask 523264   ;;  %s1033_s25 = sshll.u32 %s1657_s24, 4  ;;  %vm1025_vm2 = vcmask 74752   ;;  %s1034_s25 = int_to_ptr.vmem [resolvable:$true] %s1033_s25 }
  0x5b   :  { %1535 = vmatpush3.bf16.msra.mxu1 %v1534_v40  ;;  %v168_v57 = vld [vmem:[%s2551_s1 + $0x478] sm:$0xff]  ;;  %v199_v45 = vld [vmem:[%s2551_s1 + $0x570] sm:$0xff]  ;;  %v234_v61 = vld [vmem:[%s2551_s1 + $0x688] sm:$0xff]  ;;  %v343_v0 = vcombine.high %v24_v33, %v24_v33  ;;  %v2333_v11 = vrot.slane %v24_v33, %v1838_v13  ;;  %s1629_s26 = scalar_lea.vmem %s1034_s25, 32  ;;  %p1634_p1 = scmp.lt.s32.totalorder %s1034_s25, %s1034_s25 }
  0x5c   :  { %1537 = vmatprep.subr.bf16.mxu1 %v1536_v47  ;;  %v200_v59 = vld [vmem:[%s2551_s1 + $0x578] sm:$0xff]  ;;  %v265_v62 = vld [vmem:[%s2551_s1 + $0x780] sm:$0xff]  ;;  %v266_v63 = vld [vmem:[%s2551_s1 + $0x788] sm:$0xff]  ;;  %v1510_v1 = vpack.c.bf16 %v168_v57, %v167_v56  ;;  %v1544_v3 = vpack.c.bf16 %v234_v61, %v233_v60  ;;  %p1630_p0 = scmp.ne.s32.totalorder %s1034_s25, %s1629_s26  ;;  %p1635_p2 = scmp.lt.s32.totalorder %s1629_s26, %s1629_s26 }
  0x5d   :  { %1507 = vmatpush3.bf16.msra.mxu0 %v1506_v53  ;;  %v1542_v2 = vpack.c.bf16 %v200_v59, %v199_v45  ;;  %v217_v4 = vld [vmem:[%s2551_s1 + $0x600] sm:$0xff]  ;;  %v218_v5 = vld [vmem:[%s2551_s1 + $0x608] sm:$0xff]  ;;  %v1576_v7 = vpack.c.bf16 %v266_v63, %v265_v62  ;;  %v235_v9 = vld [vmem:[%s2551_s1 + $0x690] sm:$0xff]  ;;  %v2342_v15 = vrot.slane %v343_v0, %v1838_v13  ;;  %v358_v25 = vcombine.high %v2333_v11, %v2333_v11 }
  0x5e   :  { %1509 = vmatprep.subr.bf16.mxu0 %v1508_v55  ;;  %v249_v6 = vld [vmem:[%s2551_s1 + $0x700] sm:$0xff]  ;;  %v250_v8 = vld [vmem:[%s2551_s1 + $0x708] sm:$0xff]  ;;  %v236_v10 = vld [vmem:[%s2551_s1 + $0x698] sm:$0xff]  ;;  %v1546_v16 = vpack.c.bf16 %v218_v5, %v217_v4  ;;  %p1636_p3 = por %p1635_p2, %p1634_p1 }
  0x5f   :  { %1539 = vmatpush3.bf16.msra.mxu1 %v1538_v54  ;;  %v267_v12 = vld [vmem:[%s2551_s1 + $0x790] sm:$0xff]  ;;  %v268_v14 = vld [vmem:[%s2551_s1 + $0x798] sm:$0xff]  ;;  %v1578_v17 = vpack.c.bf16 %v250_v8, %v249_v6  ;;  %v1548_v18 = vpack.c.bf16 %v236_v10, %v235_v9  ;;  %v237_v23 = vld [vmem:[%s2551_s1 + $0x6a0] sm:$0xff]  ;;  %v359_v28 = vcombine.high %v2342_v15, %v2342_v15 }
  0x60   :  { %1541 = vmatprep.subr.bf16.mxu1 %v1540_v58  ;;  %v219_v19 = vld [vmem:[%s2551_s1 + $0x610] sm:$0xff]  ;;  %v220_v20 = vld [vmem:[%s2551_s1 + $0x618] sm:$0xff]  ;;  %v1580_v13 = vpack.c.bf16 %v268_v14, %v267_v12  ;;  %v238_v24 = vld [vmem:[%s2551_s1 + $0x6a8] sm:$0xff]  ;;  %p1637_p4 = pnand %p1636_p3, %p1630_p0 }
  0x61   :  { %1511 = vmatpush3.bf16.msra.mxu0 %v1510_v1  ;;  %v251_v21 = vld [vmem:[%s2551_s1 + $0x710] sm:$0xff]  ;;  %v252_v22 = vld [vmem:[%s2551_s1 + $0x718] sm:$0xff]  ;;  %v269_v26 = vld [vmem:[%s2551_s1 + $0x7a0] sm:$0xff]  ;;  %v1550_v29 = vpack.c.bf16 %v220_v20, %v219_v19  ;;  %v1552_v31 = vpack.c.bf16 %v238_v24, %v237_v23 }
  0x62   :  { %1545 = vmatprep.subr.bf16.mxu0 %v1544_v3  ;;  %v270_v27 = vld [vmem:[%s2551_s1 + $0x7a8] sm:$0xff]  ;;  %v1582_v30 = vpack.c.bf16 %v252_v22, %v251_v21  ;;  %v253_v34 = vld [vmem:[%s2551_s1 + $0x720] sm:$0xff]  ;;  %v239_v36 = vld [vmem:[%s2551_s1 + $0x6b0] sm:$0xff] }
  0x63   :  { %1543 = vmatpush3.bf16.msra.mxu1 %v1542_v2  ;;  %v222_v32 = vld [vmem:[%s2551_s1 + $0x628] sm:$0xff]  ;;  %v1584_v35 = vpack.c.bf16 %v270_v27, %v269_v26  ;;  %v240_v37 = vld [vmem:[%s2551_s1 + $0x6b8] sm:$0xff]  ;;  %v271_v38 = vld [vmem:[%s2551_s1 + $0x7b0] sm:$0xff] }
  0x64   :  { %1577 = vmatprep.subr.bf16.mxu1 %v1576_v7  ;;  %721 = vmatmul.mubr.f32.vlgmr.msra.gmra.mrb[4].mxu0 %v2141_v42  ;;  %v221_v42 = vld [vmem:[%s2551_s1 + $0x620] sm:$0xff]  ;;  %v272_v39 = vld [vmem:[%s2551_s1 + $0x7b8] sm:$0xff]  ;;  %v1556_v43 = vpack.c.bf16 %v240_v37, %v239_v36  ;;  %v223_v44 = vld [vmem:[%s2551_s1 + $0x630] sm:$0xff] }
  0x65   :  { %1547 = vmatpush3.bf16.msra.mxu0 %v1546_v16  ;;  %860 = vmatprep.mubr.f32.mxu0 %v358_v25  ;;  %v1554_v40 = vpack.c.bf16 %v222_v32, %v221_v42  ;;  %v224_v46 = vld [vmem:[%s2551_s1 + $0x638] sm:$0xff]  ;;  %v255_v47 = vld [vmem:[%s2551_s1 + $0x730] sm:$0xff]  ;;  %v1588_v48 = vpack.c.bf16 %v272_v39, %v271_v38  ;;  %v241_v50 = vld [vmem:[%s2551_s1 + $0x6c0] sm:$0xff]  ;;  %v1654_v39 = vmov 0.0|0.0  }
  0x66   :  { %791 = vmatmul.mubr.f32.vlgmr.msra.gmra.mrb[4].mxu1 %v2162_v52  ;;  %1549 = vmatprep.subr.bf16.mxu0 %v1548_v18  ;;  %v254_v52 = vld [vmem:[%s2551_s1 + $0x728] sm:$0xff]  ;;  %v256_v49 = vld [vmem:[%s2551_s1 + $0x738] sm:$0xff]  ;;  %v273_v53 = vld [vmem:[%s2551_s1 + $0x7c0] sm:$0xff]  ;;  %v1558_v54 = vpack.c.bf16 %v224_v46, %v223_v44 }
  0x67   :  { %1579 = vmatpush3.bf16.msra.mxu1 %v1578_v17  ;;  %930 = vmatprep.mubr.f32.mxu1 %v359_v28  ;;  %v1586_v41 = vpack.c.bf16 %v254_v52, %v253_v34  ;;  %v242_v51 = vld [vmem:[%s2551_s1 + $0x6c8] sm:$0xff]  ;;  %v1590_v55 = vpack.c.bf16 %v256_v49, %v255_v47  ;;  %v225_v57 = vld [vmem:[%s2551_s1 + $0x640] sm:$0xff]  ;;  %v243_v61 = vld [vmem:[%s2551_s1 + $0x6d0] sm:$0xff]  ;;  %v1656_v49 = vmov 0.0  }
  0x68   :  { %1581 = vmatprep.subr.bf16.mxu1 %v1580_v13  ;;  %v274_v33 = vld [vmem:[%s2551_s1 + $0x7c8] sm:$0xff]  ;;  %v1560_v56 = vpack.c.bf16 %v242_v51, %v241_v50  ;;  %v257_v58 = vld [vmem:[%s2551_s1 + $0x740] sm:$0xff]  ;;  %v244_v62 = vld [vmem:[%s2551_s1 + $0x6d8] sm:$0xff] }
  0x69   :  { %1551 = vmatpush3.bf16.msra.mxu0 %v1550_v29  ;;  %v226_v45 = vld [vmem:[%s2551_s1 + $0x648] sm:$0xff]  ;;  %v1592_v59 = vpack.c.bf16 %v274_v33, %v273_v53  ;;  %v275_v63 = vld [vmem:[%s2551_s1 + $0x7d0] sm:$0xff]  ;;  %v276_v0 = vld [vmem:[%s2551_s1 + $0x7d8] sm:$0xff]  ;;  %v1564_v3 = vpack.c.bf16 %v244_v62, %v243_v61 }
  0x6a   :  { %1553 = vmatprep.subr.bf16.mxu0 %v1552_v31  ;;  %v258_v60 = vld [vmem:[%s2551_s1 + $0x748] sm:$0xff]  ;;  %v1562_v1 = vpack.c.bf16 %v226_v45, %v225_v57  ;;  %v227_v4 = vld [vmem:[%s2551_s1 + $0x650] sm:$0xff]  ;;  %v228_v5 = vld [vmem:[%s2551_s1 + $0x658] sm:$0xff]  ;;  %v1596_v7 = vpack.c.bf16 %v276_v0, %v275_v63 }
  0x6b   :  { %1583 = vmatpush3.bf16.msra.mxu1 %v1582_v30  ;;  %v1594_v2 = vpack.c.bf16 %v258_v60, %v257_v58  ;;  %v259_v6 = vld [vmem:[%s2551_s1 + $0x750] sm:$0xff]  ;;  %v260_v8 = vld [vmem:[%s2551_s1 + $0x758] sm:$0xff]  ;;  %v245_v9 = vld [vmem:[%s2551_s1 + $0x6e0] sm:$0xff]  ;;  %v1566_v16 = vpack.c.bf16 %v228_v5, %v227_v4 }
  0x6c   :  { %1585 = vmatprep.subr.bf16.mxu1 %v1584_v35  ;;  %v246_v10 = vld [vmem:[%s2551_s1 + $0x6e8] sm:$0xff]  ;;  %v277_v12 = vld [vmem:[%s2551_s1 + $0x7e0] sm:$0xff]  ;;  %v1598_v17 = vpack.c.bf16 %v260_v8, %v259_v6  ;;  %v247_v23 = vld [vmem:[%s2551_s1 + $0x6f0] sm:$0xff] }
  0x6d   :  { %1555 = vmatpush3.bf16.msra.mxu0 %v1554_v40  ;;  %v278_v14 = vld [vmem:[%s2551_s1 + $0x7e8] sm:$0xff]  ;;  %v1568_v18 = vpack.c.bf16 %v246_v10, %v245_v9  ;;  %v229_v19 = vld [vmem:[%s2551_s1 + $0x660] sm:$0xff]  ;;  %v248_v24 = vld [vmem:[%s2551_s1 + $0x6f8] sm:$0xff] }
  0x6e   :  { %1557 = vmatprep.subr.bf16.mxu0 %v1556_v43  ;;  %v230_v20 = vld [vmem:[%s2551_s1 + $0x668] sm:$0xff]  ;;  %v261_v21 = vld [vmem:[%s2551_s1 + $0x760] sm:$0xff]  ;;  %v1600_v13 = vpack.c.bf16 %v278_v14, %v277_v12  ;;  %v279_v25 = vld [vmem:[%s2551_s1 + $0x7f0] sm:$0xff]  ;;  %v1572_v29 = vpack.c.bf16 %v248_v24, %v247_v23 }
  0x6f   :  { %1587 = vmatpush3.bf16.msra.mxu1 %v1586_v41  ;;  %v262_v22 = vld [vmem:[%s2551_s1 + $0x768] sm:$0xff]  ;;  %v280_v26 = vld [vmem:[%s2551_s1 + $0x7f8] sm:$0xff]  ;;  %v1570_v27 = vpack.c.bf16 %v230_v20, %v229_v19  ;;  %v231_v30 = vld [vmem:[%s2551_s1 + $0x670] sm:$0xff] }
  0x70   :  { %1589 = vmatprep.subr.bf16.mxu1 %v1588_v48  ;;  %v1602_v28 = vpack.c.bf16 %v262_v22, %v261_v21  ;;  %v232_v31 = vld [vmem:[%s2551_s1 + $0x678] sm:$0xff]  ;;  %v1604_v42 = vpack.c.bf16 %v280_v26, %v279_v25  ;;  %v263_v32 = vld [vmem:[%s2551_s1 + $0x770] sm:$0xff]  ;;  %v936_v36 = vld [vmem:[%s2553_s3] sm:$0xff] }
  0x71   :  { %1559 = vmatpush3.bf16.msra.mxu0 %v1558_v54  ;;  %v264_v34 = vld [vmem:[%s2551_s1 + $0x778] sm:$0xff]  ;;  %v1574_v35 = vpack.c.bf16 %v232_v31, %v231_v30  ;;  %v937_v37 = vld [vmem:[%s2553_s3 + $0x8] sm:$0xff]  ;;  %v938_v38 = vld [vmem:[%s2553_s3 + $0x10] sm:$0xff] }
  0x72   :  { %1561 = vmatprep.subr.bf16.mxu0 %v1560_v56  ;;  %v1606_v52 = vpack.c.bf16 %v264_v34, %v263_v32  ;;  %v1609_v40 = vpack.c.bf16 %v937_v37, %v936_v36  ;;  %v940_v41 = vld [vmem:[%s2553_s3 + $0x20] sm:$0xff]  ;;  %v941_v43 = vld [vmem:[%s2553_s3 + $0x28] sm:$0xff]  ;;  %v942_v46 = vld [vmem:[%s2553_s3 + $0x30] sm:$0xff] }
  0x73   :  { %1591 = vmatpush3.bf16.msra.mxu1 %v1590_v55  ;;  %v1615_v44 = vpack.c.bf16 %v941_v43, %v940_v41  ;;  %v943_v47 = vld [vmem:[%s2553_s3 + $0x38] sm:$0xff]  ;;  %v1041_v51 = vld [vmem:[%s2552_s2] ss:$0 sm:$0xff] }
  0x74   :  { %1593 = vmatprep.subr.bf16.mxu1 %v1592_v59  ;;  %v1618_v48 = vpack.c.bf16 %v943_v47, %v942_v46  ;;  %v1042_v21 = vld [vmem:[%s2554_s4] ss:$0 sm:$0xff] }
  0x75   :  { %1563 = vmatpush3.bf16.msra.mxu0 %v1562_v1 }
  0x76   :  { %1565 = vmatprep.subr.bf16.mxu0 %v1564_v3 }
  0x77   :  { %1595 = vmatpush3.bf16.msra.mxu1 %v1594_v2 }
  0x78   :  { %1597 = vmatprep.subr.bf16.mxu1 %v1596_v7 }
  0x79   :  { %1567 = vmatpush3.bf16.msra.mxu0 %v1566_v16 }
  0x7a   :  { %1569 = vmatprep.subr.bf16.mxu0 %v1568_v18 }
  0x7b   :  { %1599 = vmatpush3.bf16.msra.mxu1 %v1598_v17 }
  0x7c   :  { %1601 = vmatprep.subr.bf16.mxu1 %v1600_v13 }
  0x7d   :  { %1571 = vmatpush3.bf16.msra.mxu0 %v1570_v27 }
  0x7e   :  { %1573 = vmatprep.subr.bf16.mxu0 %v1572_v29 }
  0x7f   :  { %1603 = vmatpush3.bf16.msra.mxu1 %v1602_v28 }
  0x80   :  { %1605 = vmatprep.subr.bf16.mxu1 %v1604_v42 }
  0x81   :  { %1575 = vmatpush3.bf16.msra.mxu0 %v1574_v35 }
  0x82   :  { %1608 = vmatprep.subr.bf16.mxu0 %v1654_v39 }
  0x83   :  { %1607 = vmatpush3.bf16.msra.mxu1 %v1606_v52 }
  0x84   :  { %861 = vmatmul.mubr.f32.vlgmr.msra.gmra.mrb[6].mxu0 %v2333_v11  ;;  %v939_v11 = vld [vmem:[%s2553_s3 + $0x18] sm:$0xff] }
  0x85   :  { %1610 = vmatpush3.bf16.msra.mxu0 %v1609_v40  ;;  %1349 = vmatprep.mubr.msk.f32.mxu0 %vm1655_vm0, %v1656_v49 }
  0x86   :  { %931 = vmatmul.mubr.f32.vlgmr.msra.gmra.mrb[6].mxu1 %v2342_v15  ;;  %v1612_v15 = vpack.c.bf16 %v939_v11, %v938_v38  ;;  %1611 = vmatprep.subr.bf16.mxu0 %v1654_v39 }
  0x89   :  { %1613 = vmatpush3.bf16.msra.mxu0 %v1612_v15 }
  0x8a   :  { %1614 = vmatprep.subr.bf16.mxu0 %v1654_v39 }
  0x8d   :  { %1616 = vmatpush3.bf16.msra.mxu0 %v1615_v44 }
  0x8e   :  { %1617 = vmatprep.subr.bf16.mxu0 %v1654_v39 }
  0x91   :  { %1619 = vmatpush3.bf16.msra.mxu0 %v1618_v48 }
  0xf7   :  { %v1076_v50 = vpop.f32.mrb[0].mxu0 }
  0xf8   :  { %v1077_v53 = vpop.f32.mrb[1].mxu0 }
  0xf9   :  { %v1111_v33 = vpop.f32.mrb[0].mxu1  ;;  %v1078_v54 = vadd.f32 %v1077_v53, %v1076_v50 }
  0xfa   :  { %v1112_v55 = vpop.f32.mrb[1].mxu1 }
  0xfb   :  { %v1113_v56 = vadd.f32 %v1112_v55, %v1111_v33  ;;  %v443_v57 = vadd.f32 %v1078_v54, %v1041_v51 }
  0xfd   :  { %v513_v45 = vadd.f32 %v1113_v56, %v443_v57 }
 0x117   :  { %v1146_v58 = vpop.f32.mrb[2].mxu0 }
 0x118   :  { %v1147_v59 = vpop.f32.mrb[3].mxu0 }
 0x119   :  { %v1181_v60 = vpop.f32.mrb[2].mxu1  ;;  %v1148_v61 = vadd.f32 %v1147_v59, %v1146_v58 }
 0x11a   :  { %v1182_v62 = vpop.f32.mrb[3].mxu1 }
 0x11b   :  { %v1183_v63 = vadd.f32 %v1182_v62, %v1181_v60  ;;  %v583_v0 = vadd.f32 %v1148_v61, %v513_v45 }
 0x11d   :  { %v653_v1 = vadd.f32 %v1183_v63, %v583_v0 }
 0x137   :  { %v1216_v2 = vpop.f32.mrb[4].mxu0 }
 0x138   :  { %v1217_v3 = vpop.f32.mrb[5].mxu0 }
 0x139   :  { %v1251_v4 = vpop.f32.mrb[4].mxu1  ;;  %v1218_v5 = vadd.f32 %v1217_v3, %v1216_v2 }
 0x13a   :  { %v1252_v6 = vpop.f32.mrb[5].mxu1 }
 0x13b   :  { %v1253_v7 = vadd.f32 %v1252_v6, %v1251_v4  ;;  %v723_v8 = vadd.f32 %v1218_v5, %v653_v1 }
 0x13d   :  { %v793_v9 = vadd.f32 %v1253_v7, %v723_v8 }
 0x157   :  { %v1286_v10 = vpop.f32.mrb[6].mxu0 }
 0x158   :  { %v1287_v12 = vpop.f32.mrb[7].mxu0 }
 0x159   :  { %v1321_v14 = vpop.f32.mrb[6].mxu1  ;;  %v1288_v16 = vadd.f32 %v1287_v12, %v1286_v10 }
 0x15a   :  { %v1322_v17 = vpop.f32.mrb[7].mxu1 }
 0x15b   :  { %v1323_v18 = vadd.f32 %v1322_v17, %v1321_v14  ;;  %v863_v19 = vadd.f32 %v1288_v16, %v793_v9 }
 0x15d   :  { %v933_v20 = vadd.f32 %v1323_v18, %v863_v19 }
 0x15f   :  { %1350 = vmatmul.mubr.msk.f32.vlgmr.msra.gmra.mrb[8].mxu0 %vm951_vm1, %v933_v20 }
 0x232   :  { %v1021_v13 = vpop.f32.mrb[8].mxu0 }
 0x233   :  { %v1022_v22 = vadd.f32 %v1042_v21, %v1021_v13  ;;  %v1351_v23 = vpop.f32.mrb[9].mxu0 }
 0x235   :  { %1026 = vst.msk [vmem:[#allocation2] sm:$0x3] %vm1025_vm2, %v1022_v22 }
 0x236   :  { %1640 = shalt.err (!%p1637_p4)
}
 0x237   :  { %s1641_s29 = scalar_lea.hbm %s2555_s5, 32 }
 0x238   :  { %p1642_p5 = scmp.ne.s32.totalorder %s2555_s5, %s1641_s29  ;;  %p1645_p6 = scmp.lt.u32.totalorder %s1641_s29, %s2555_s5 }
 0x23a   :  { %p1647_p7 = pnand %p1645_p6, %p1642_p5 }
 0x23c   :  { %1650 = shalt.err (!%p1647_p7)
}
 0x23d   :  { %1036 = dma.vmem_to_hbm [thread:$0]  %s1034_s25, 32, %s2555_s5, [#allocation3]  }
 0x23e   :  { %1651 = dma.done.wait [#allocation3], 32  }
 0x23f   :  { %1652 = vsyncadd [#allocation3], 4294967264 }
 0x240   :  { %1040 = vsyncpa [#allocation3], 1 }

// kernel: series_net_forward.2
= control target key start
LH: loop header
LB: loop body
LE: loop exit
PB: predicated region body
PF: predicated region fallthrough
CT: control target
= control target key end

     0   :  { %18 = vsyncpa [#allocation3], 0  ;;  %s12537_s25 = smov 0   ;;  %s16333_s0 = inlined_call_operand.vmem [shape: f32[2,8,1024], index: 0, kind: input, shape index: {}]   ;;  %s16334_s1 = inlined_call_operand.vmem [shape: f32[9,16,8], index: 1, kind: input, shape index: {}]   ;;  %s16335_s2 = inlined_call_operand.vmem [shape: f32[9,16,16], index: 2, kind: input, shape index: {}]   ;;  %s16336_s3 = inlined_call_operand.vmem [shape: f32[9,32,16], index: 3, kind: input, shape index: {}]   ;;  %s16337_s4 = inlined_call_operand.vmem [shape: f32[9,32,32], index: 4, kind: input, shape index: {}]   ;;  %s16338_s5 = inlined_call_operand.vmem [shape: f32[16,1], index: 5, kind: input, shape index: {}]   ;;  %s16339_s6 = inlined_call_operand.vmem [shape: f32[16,1], index: 6, kind: input, shape index: {}]   ;;  %s16340_s7 = inlined_call_operand.vmem [shape: f32[32,1], index: 7, kind: input, shape index: {}]   ;;  %s16341_s8 = inlined_call_operand.vmem [shape: f32[32,1], index: 8, kind: input, shape index: {}]   ;;  %s16342_s9 = inlined_call_operand.vmem [shape: f32[9,1,1024], index: 9, kind: input, shape index: {}]   ;;  %s16343_s10 = inlined_call_operand.vmem [shape: f32[9,1,256], index: 10, kind: input, shape index: {}]   ;;  %s16344_s11 = inlined_call_operand.hbm [shape: f32[1024,256], index: 11, kind: input, shape index: {}]   ;;  %s16345_s12 = inlined_call_operand.vmem [shape: f32[256,64], index: 12, kind: input, shape index: {}]   ;;  %s16346_s13 = inlined_call_operand.vmem [shape: f32[2,32,64], index: 13, kind: output, shape index: {}]  }
   0x1 LB: > { %s12543_s26 = sadd.s32 4294967295, %s12446_s25   ;;  %p11048_p0 = scmp.ge.s32.totalorder %s12446_s25, 1  ;;  %s12446_s25 = sphi %s12537_s25, %s24_s25  }
   0x2   : > { %p333_p1 = scmp.lt.s32.totalorder %s12446_s25, 3  ;;  %s12448_s27 = smov [#allocation2]  }
   0x3   : > { %s375_s28 = sshll.u32 %s12448_s27, 4  ;;  %p16347_p3 = scmp.eq.s32.totalorder %s12543_s26, 0  ;;  %s376_s28 = int_to_ptr.vmem [resolvable:$true] %s375_s28 }
   0x4   : > { %p12547_p2 = pnand %p11048_p0, %p333_p1  ;;  %s12408_s16 = scalar_lea.hbm %s16344_s11, 32768 }
   0x5   : > { %p12409_p6 = scmp.ne.s32.totalorder %s16344_s11, %s12408_s16  ;;  %p12415_p10 = scmp.lt.u32.totalorder %s12408_s16, %s16344_s11 }
   0x6   : > { %s16497_s29 = scalar_select %p12547_p2, 1, 0 }
   0x7   : > { %p12263_p4 = pneg %p12547_p2 }
   0x9   : > { %p12556_p5 = pnand %p16347_p3, %p12263_p4 }
   0xb   : > { %p12410_p7 = pneg %p12556_p5 }
   0xd   : > { %p12411_p8 = pnand %p12410_p7, %p12409_p6 }
   0xf   : > { %p12412_p9 = pneg %p12411_p8 }
  0x11   : > { %p12417_p11 = pnand %p12415_p10, %p12412_p9 }
  0x13   : > { %12420 = shalt.err (!%p12417_p11)
}
  0x14   : > { %s12421_s21 = scalar_lea.vmem %s376_s28, 32768  ;;  %p12429_p1 = scmp.lt.s32.totalorder %s376_s28, %s376_s28 }
  0x15   : > { %p12422_p12 = scmp.ne.s32.totalorder %s376_s28, %s12421_s21  ;;  %p12430_p4 = scmp.lt.s32.totalorder %s12421_s21, %s12421_s21 }
  0x17   : > { %p12424_p13 = pnand %p12422_p12, %p12410_p7  ;;  %p12431_p3 = por %p12430_p4, %p12429_p1 }
  0x19   : > { %p12425_p0 = pneg %p12424_p13 }
  0x1b   : > { %p12432_p2 = pnand %p12431_p3, %p12425_p0 }
  0x1d   : > { %12435 = shalt.err (!%p12432_p2)
}
  0x1e   : > { %s12449_s22 = smov 256   ;;  %s12450_s23 = smov 16  }
  0x1f   : > { %12266 = dma.hbm_to_vmem [thread:$0]  (!%p12556_p5), %s16344_s11, 32768, %s376_s28, [#allocation3], %s12449_s22, %s12449_s22, %s12450_s23  }
  0x20   : > { %p16499_p6 = scmp.ne.s32.totalorder %s16497_s29, 0 }
  0x22   : > { %402 = sbr.rel (%p16499_p6) target bundleno = 3249 (0xcb1), region = 72 }
  0x29   : > { %p16500_p8 = scmp.eq.s32.totalorder %s12543_s26, 0 }
  0x2b   : > { %12441 = dma.done.wait (%p16500_p8), [#allocation3], 32768   ;;  %p16501_p7 = pmov %p16500_p8 }
  0x2c   : > { %p446_p2 = scmp.lt.s32.totalorder %s12543_s26, 1  ;;  %v16349_v0 = vmov 0.0   ;;  %s12452_s15 = smov 32   ;;  %v516_v9 = vlaneseq  ;;  %v465_v16 = vld [vmem:[%s16342_s9 + $0x8] sm:$0xff]  ;;  %v12775_v33 = vld [vmem:[%s16334_s1 + $0x18] sm:$0xff]  ;;  %vm650_vm1 = vcmask 64512  }
  0x2d   : > { %12443 = vsyncadd (%p16501_p7), [#allocation3], 4294934528  ;;  %727 = vmatprep.mubr.f32.mxu1 %v16349_v0  ;;  %721 = vmatprep.mubr.f32.mxu0 %v16349_v0  ;;  %s12453_s16 = smov 33   ;;  %s12454_s17 = smov 31   ;;  %v12792_v41 = vld [vmem:[%s16342_s9] sm:$0xff]  ;;  %v482_v44 = vld [vmem:[%s16334_s1 + $0x10] sm:$0xff] }
  0x2e   : > { %s16681_s26 = smov (!%p446_p2, %s12543_s26), 1  ;;  %s12455_s18 = smov 1   ;;  %v529_v10 = vshrl.u32 %v516_v9, 7  ;;  %v12720_v11 = vand.u32 127, %v516_v9  ;;  %vm4207_vm9 = vcmask 130048  }
  0x2f   : > { %s11275_s28 = sshll.u32 %s16681_s26, 6  ;;  %s12456_s19 = smov 127  }
  0x30   : > { %s450_s14 = scalar_lea.vmem %s16333_s0, %s11275_s28  ;;  %s12457_s20 = smov 97   ;;  %v12722_v12 = vsub.s32 1, %v529_v10  ;;  %v12728_v13 = vsub.s32 0, %v529_v10  ;;  %vm592_vm0 = vcmp.lt.s32.totalorder %v12720_v11, 32  ;;  %v12739_v18 = vsub.s32 3, %v529_v10 }
  0x31   : > { %v12592_v1 = vld [vmem:[%s450_s14 + $0x38] sm:$0xff]  ;;  %v12594_v2 = vld [vmem:[%s450_s14] sm:$0xff]  ;;  %v12600_v3 = vld [vmem:[%s450_s14 + $0x10] sm:$0xff]  ;;  %s12458_s21 = smov 96   ;;  %s12459_s22 = smov 95   ;;  %v12743_v19 = vsub.s32 2, %v529_v10 }
  0x32   : > { %590 = vrot.lane.b32.xlu1 %v12592_v1, %s12452_s15  ;;  %576 = vrot.lane.b32.xlu0 %v12594_v2, %s12452_s15  ;;  %v12602_v4 = vld [vmem:[%s450_s14 + $0x8] sm:$0xff]  ;;  %v12608_v5 = vld [vmem:[%s450_s14 + $0x30] sm:$0xff]  ;;  %16502 = vst [vmem:[#allocation5_spill] sm:$0xff] %v12722_v12  ;;  %16503 = vst [vmem:[#allocation6_spill] sm:$0xff] %v12728_v13  ;;  %v12735_v17 = vrot.slane %v465_v16, %v12722_v12  ;;  %v12746_v20 = vrot.slane %v465_v16, %v12728_v13  ;;  %v12750_v24 = vsub.s32 7, %v529_v10  ;;  %s12463_s24 = smov 15  }
  0x33   : > { %v12610_v6 = vld [vmem:[%s450_s14 + $0x18] sm:$0xff]  ;;  %v12616_v7 = vld [vmem:[%s450_s14 + $0x20] sm:$0xff]  ;;  %v12618_v8 = vld [vmem:[%s450_s14 + $0x28] sm:$0xff]  ;;  %v12754_v26 = vsub.s32 4, %v529_v10  ;;  %v12758_v28 = vrot.slane %v465_v16, %v12739_v18  ;;  %v12760_v29 = vsub.s32 6, %v529_v10  ;;  %v12764_v30 = vsub.s32 5, %v529_v10 }
  0x34   : > { %v12769_v31 = vrot.slane %v465_v16, %v12743_v19  ;;  %v12780_v37 = vrot.slane %v465_v16, %v12750_v24  ;;  %v12815_v50 = vrot.slane %v12792_v41, %v12739_v18  ;;  %vm518_vm2 = vcmp.lt.s32.totalorder %v12720_v11, 33  ;;  %s12464_s27 = smov 113   ;;  %s16495_s28 = smov 112  }
  0x35   : > { %v12787_v40 = vrot.slane %v465_v16, %v12754_v26  ;;  %v12798_v43 = vrot.slane %v465_v16, %v12760_v29  ;;  %v12804_v45 = vrot.slane %v465_v16, %v12764_v30  ;;  %v12838_v61 = vrot.slane %v12792_v41, %v12743_v19  ;;  %s12466_s29 = smov 111  }
  0x36   : > { %580 = vrot.lane.b32.xlu1 %v12600_v3, %s12452_s15  ;;  %578 = vrot.lane.b32.xlu0 %v12602_v4, %s12452_s15  ;;  %v12843_v62 = vrot.slane %v12792_v41, %v12722_v12  ;;  %vm1295_vm3 = vcmp.lt.s32.totalorder %v12720_v11, 31  ;;  %vm1699_vm4 = vcmp.lt.s32.totalorder %v12720_v11, 1  ;;  %vm2433_vm5 = vcmp.lt.s32.totalorder %v12720_v11, 127 }
  0x37   : > { %vm2837_vm6 = vcmp.lt.s32.totalorder %v12720_v11, 97  ;;  %vm3241_vm7 = vcmp.lt.s32.totalorder %v12720_v11, 96  ;;  %vm3645_vm8 = vcmp.lt.s32.totalorder %v12720_v11, 95  ;;  %vm8324_vm10 = vcmp.lt.s32.totalorder %v12720_v11, 16 }
  0x38   : > { %vm8296_vm11 = vcmp.lt.s32.totalorder %v12720_v11, 17  ;;  %vm8554_vm12 = vcmp.lt.s32.totalorder %v12720_v11, 15  ;;  %vm9072_vm13 = vcmp.lt.s32.totalorder %v12720_v11, 113  ;;  %vm9209_vm14 = vcmp.lt.s32.totalorder %v12720_v11, 112 }
  0x39   : > { %vm9346_vm15 = vcmp.lt.s32.totalorder %v12720_v11, 111 }
  0x3a   : > { %588 = vrot.lane.b32.xlu1 %v12608_v5, %s12452_s15  ;;  %582 = vrot.lane.b32.xlu0 %v12610_v6, %s12452_s15 }
  0x3e   : > { %584 = vrot.lane.b32.xlu1 %v12616_v7, %s12452_s15  ;;  %586 = vrot.lane.b32.xlu0 %v12618_v8, %s12452_s15 }
  0x42   : > { %506 = vrot.lane.b32.xlu1 %v12610_v6, %s12453_s16  ;;  %504 = vrot.lane.b32.xlu0 %v12600_v3, %s12453_s16 }
  0x46   : > { %500 = vrot.lane.b32.xlu1 %v12594_v2, %s12453_s16  ;;  %502 = vrot.lane.b32.xlu0 %v12602_v4, %s12453_s16 }
  0x4a   : > { %512 = vrot.lane.b32.xlu1 %v12608_v5, %s12453_s16  ;;  %514 = vrot.lane.b32.xlu0 %v12592_v1, %s12453_s16 }
  0x4e   : > { %508 = vrot.lane.b32.xlu1 %v12616_v7, %s12453_s16  ;;  %510 = vrot.lane.b32.xlu0 %v12618_v8, %s12453_s16 }
  0x52   : > { %1285 = vrot.lane.b32.xlu1 %v12610_v6, %s12454_s17  ;;  %1283 = vrot.lane.b32.xlu0 %v12600_v3, %s12454_s17 }
  0x56   : > { %1279 = vrot.lane.b32.xlu1 %v12594_v2, %s12454_s17  ;;  %1281 = vrot.lane.b32.xlu0 %v12602_v4, %s12454_s17 }
  0x5a   : > { %1291 = vrot.lane.b32.xlu1 %v12608_v5, %s12454_s17  ;;  %1293 = vrot.lane.b32.xlu0 %v12592_v1, %s12454_s17 }
  0x5e   : > { %1287 = vrot.lane.b32.xlu1 %v12616_v7, %s12454_s17  ;;  %1289 = vrot.lane.b32.xlu0 %v12618_v8, %s12454_s17 }
  0x62   : > { %1689 = vrot.lane.b32.xlu1 %v12610_v6, %s12455_s18  ;;  %1687 = vrot.lane.b32.xlu0 %v12600_v3, %s12455_s18 }
  0x66   : > { %1683 = vrot.lane.b32.xlu1 %v12594_v2, %s12455_s18  ;;  %1685 = vrot.lane.b32.xlu0 %v12602_v4, %s12455_s18 }
  0x6a   : > { %1695 = vrot.lane.b32.xlu1 %v12608_v5, %s12455_s18  ;;  %1697 = vrot.lane.b32.xlu0 %v12592_v1, %s12455_s18 }
  0x6e   : > { %1691 = vrot.lane.b32.xlu1 %v12616_v7, %s12455_s18  ;;  %1693 = vrot.lane.b32.xlu0 %v12618_v8, %s12455_s18 }
  0x72   : > { %2425 = vrot.lane.b32.xlu1 %v12616_v7, %s12456_s19  ;;  %2423 = vrot.lane.b32.xlu0 %v12610_v6, %s12456_s19 }
  0x76   : > { %2419 = vrot.lane.b32.xlu1 %v12602_v4, %s12456_s19  ;;  %2421 = vrot.lane.b32.xlu0 %v12600_v3, %s12456_s19 }
  0x7a   : > { %2431 = vrot.lane.b32.xlu1 %v12592_v1, %s12456_s19  ;;  %2417 = vrot.lane.b32.xlu0 %v12594_v2, %s12456_s19 }
  0x7e   : > { %2427 = vrot.lane.b32.xlu1 %v12618_v8, %s12456_s19  ;;  %2429 = vrot.lane.b32.xlu0 %v12608_v5, %s12456_s19 }
  0x82   : > { %2829 = vrot.lane.b32.xlu1 %v12616_v7, %s12457_s20  ;;  %2827 = vrot.lane.b32.xlu0 %v12610_v6, %s12457_s20 }
  0x86   : > { %2823 = vrot.lane.b32.xlu1 %v12602_v4, %s12457_s20  ;;  %2825 = vrot.lane.b32.xlu0 %v12600_v3, %s12457_s20 }
  0x8a   : > { %2835 = vrot.lane.b32.xlu1 %v12592_v1, %s12457_s20  ;;  %2821 = vrot.lane.b32.xlu0 %v12594_v2, %s12457_s20 }
  0x8e   : > { %2831 = vrot.lane.b32.xlu1 %v12618_v8, %s12457_s20  ;;  %2833 = vrot.lane.b32.xlu0 %v12608_v5, %s12457_s20 }
  0x92   : > { %3233 = vrot.lane.b32.xlu1 %v12616_v7, %s12458_s21  ;;  %3231 = vrot.lane.b32.xlu0 %v12610_v6, %s12458_s21 }
  0x96   : > { %3227 = vrot.lane.b32.xlu1 %v12602_v4, %s12458_s21  ;;  %3229 = vrot.lane.b32.xlu0 %v12600_v3, %s12458_s21 }
  0x9a   : > { %3239 = vrot.lane.b32.xlu1 %v12592_v1, %s12458_s21  ;;  %3225 = vrot.lane.b32.xlu0 %v12594_v2, %s12458_s21 }
  0x9e   : > { %3235 = vrot.lane.b32.xlu1 %v12618_v8, %s12458_s21  ;;  %3237 = vrot.lane.b32.xlu0 %v12608_v5, %s12458_s21 }
  0xa2   : > { %3637 = vrot.lane.b32.xlu1 %v12616_v7, %s12459_s22  ;;  %3635 = vrot.lane.b32.xlu0 %v12610_v6, %s12459_s22 }
  0xa4   : > { %v591_v14 = vpop.permute.xlu1 %590  ;;  %v577_v15 = vpop.permute.xlu0 %576 }
  0xa5   : > { %v600_v23 = vsel %vm592_vm0, %v591_v14, %v577_v15 }
  0xa6   : > { %3631 = vrot.lane.b32.xlu1 %v12602_v4, %s12459_s22  ;;  %3633 = vrot.lane.b32.xlu0 %v12600_v3, %s12459_s22  ;;  %v642_v32 = vmul.f32 %v12746_v20, %v600_v23 }
  0xa8   : > { %v581_v21 = vpop.permute.xlu1 %580  ;;  %v579_v22 = vpop.permute.xlu0 %578 }
  0xa9   : > { %v599_v25 = vsel %vm592_vm0, %v577_v15, %v579_v22  ;;  %v598_v34 = vsel %vm592_vm0, %v579_v22, %v581_v21  ;;  %v12853_v15 = vrot.slane %v12792_v41, %v12728_v13  ;;  %v12862_v22 = vrot.slane %v12792_v41, %v12750_v24 }
  0xaa   : > { %v643_v27 = vmul.f32 %v12735_v17, %v599_v25  ;;  %3643 = vrot.lane.b32.xlu1 %v12592_v1, %s12459_s22  ;;  %3629 = vrot.lane.b32.xlu0 %v12594_v2, %s12459_s22  ;;  %v644_v46 = vmul.f32 %v12769_v31, %v598_v34  ;;  %v12872_v34 = vrot.slane %v12792_v41, %v12754_v26 }
  0xab   : > { %16504 = vst [vmem:[#allocation7_spill] sm:$0xff] %v12862_v22 }
  0xac   : > { %v589_v35 = vpop.permute.xlu1 %588  ;;  %657 = vmatprep.subr.mxu0 %v643_v27  ;;  %11861 = vmatprep.subr.mxu1 %v643_v27  ;;  %v583_v36 = vpop.permute.xlu0 %582  ;;  %16505 = vst [vmem:[#allocation8_spill] sm:$0xff] %v12872_v34 }
  0xad   : > { %v593_v38 = vsel %vm592_vm0, %v589_v35, %v591_v14  ;;  %v597_v39 = vsel %vm592_vm0, %v581_v21, %v583_v36  ;;  %658 = vmatpush1.msra.mxu0 %v642_v32  ;;  %11862 = vmatpush1.msra.mxu1 %v642_v32 }
  0xae   : > { %11058 = vmatmul.mubr.msk.f32.vlgmr.msra.gmra.mrb[0].mxu1 %vm650_vm1, %v12775_v33  ;;  %v645_v42 = vmul.f32 %v12758_v28, %v597_v39  ;;  %3639 = vrot.lane.b32.xlu1 %v12618_v8, %s12459_s22  ;;  %v649_v49 = vmul.f32 %v12780_v37, %v593_v38 }
  0xaf   : > { %798 = vmatprep.mubr.f32.mxu1 %v16349_v0  ;;  %11057 = vmatmul.mubr.msk.f32.vlgmr.msra.gmra.mrb[0].mxu0 %vm650_vm1, %v482_v44 }
  0xb0   : > { %v585_v47 = vpop.permute.xlu1 %584  ;;  %734 = vmatprep.subr.mxu1 %v645_v42  ;;  %v587_v48 = vpop.permute.xlu0 %586  ;;  %875 = vmatprep.mubr.f32.mxu0 %v16349_v0  ;;  %v480_v42 = vld [vmem:[%s16334_s1] sm:$0xff] }
  0xb1   : > { %v596_v51 = vsel %vm592_vm0, %v583_v36, %v585_v47  ;;  %v594_v52 = vsel %vm592_vm0, %v587_v48, %v589_v35  ;;  %v595_v53 = vsel %vm592_vm0, %v585_v47, %v587_v48  ;;  %735 = vmatpush1.msra.mxu1 %v644_v46  ;;  %3641 = vrot.lane.b32.xlu0 %v12608_v5, %s12459_s22  ;;  %v12881_v36 = vld [vmem:[%s16342_s9 + $0x10] sm:$0xff]  ;;  %v498_v46 = vld [vmem:[%s16338_s5] sm:$0xff]  ;;  %v12460_v47 = vmov 0  }
  0xb2   : > { %v646_v54 = vmul.f32 %v12787_v40, %v596_v51  ;;  %v648_v55 = vmul.f32 %v12798_v43, %v594_v52  ;;  %11059 = vmatmul.mubr.msk.f32.vlgmr.msra.gmra.mrb[2].mxu1 %vm650_vm1, %v482_v44  ;;  %888 = vmatprep.subr.mxu1 %v649_v49  ;;  %v647_v56 = vmul.f32 %v12804_v45, %v595_v53 }
  0xb3   : > { %804 = vmatprep.mubr.f32.mxu1 %v16349_v0  ;;  %v12876_v35 = vrot.slane %v12792_v41, %v12760_v29  ;;  %12296 = vset.pattern.permute.xlu0 %v12460_v47  ;;  %v12900_v49 = vrot.slane %v12881_v36, %v12739_v18 }
  0xb4   : > { %v507_v57 = vpop.permute.xlu1 %506  ;;  %811 = vmatprep.subr.mxu0 %v647_v56  ;;  %889 = vmatpush1.msra.mxu1 %v648_v55  ;;  %v505_v58 = vpop.permute.xlu0 %504  ;;  %v481_v56 = vld [vmem:[%s16334_s1 + $0x8] sm:$0xff] }
  0xb5   : > { %v523_v59 = vsel %vm518_vm2, %v505_v58, %v507_v57  ;;  %812 = vmatpush1.msra.mxu0 %v646_v54  ;;  %16506 = vst [vmem:[#allocation9_spill] sm:$0xff] %v12876_v35  ;;  %16507 = vst [vmem:[#allocation10_spill] sm:$0xff] %v12900_v49  ;;  %4035 = vperm.xlu0 %12296, %v498_v46  }
  0xb6   : > { %11060 = vmatmul.mubr.msk.f32.gmra.mrb[4].mxu1 %vm650_vm1, %v12775_v33  ;;  %v571_v60 = vmul.f32 %v12815_v50, %v523_v59  ;;  %11061 = vmatmul.mubr.msk.f32.vlgmr.msra.gmra.mrb[2].mxu0 %vm650_vm1, %v482_v44 }
  0xb7   : > { %952 = vmatprep.mubr.f32.mxu1 %v16349_v0  ;;  %881 = vmatprep.mubr.f32.mxu0 %v16349_v0 }
  0xb8   : > { %v501_v63 = vpop.permute.xlu1 %500  ;;  %1048 = vmatprep.subr.mxu1 %v571_v60  ;;  %v503_v9 = vpop.permute.xlu0 %502  ;;  %12297 = vset.pattern.permute.xlu1 %v12460_v47 }
  0xb9   : > { %v524_v10 = vsel %vm518_vm2, %v503_v9, %v505_v58  ;;  %v525_v14 = vsel %vm518_vm2, %v501_v63, %v503_v9  ;;  %v12929_v9 = vrot.slane %v12881_v36, %v12743_v19 }
  0xba   : > { %v570_v16 = vmul.f32 %v12838_v61, %v524_v10  ;;  %11063 = vmatmul.mubr.msk.f32.vlgmr.msra.gmra.mrb[6].mxu1 %vm650_vm1, %v482_v44  ;;  %v569_v21 = vmul.f32 %v12843_v62, %v525_v14  ;;  %11062 = vmatmul.mubr.msk.f32.gmra.mrb[4].mxu0 %vm650_vm1, %v12775_v33  ;;  %v12892_v44 = vrot.slane %v12792_v41, %v12764_v30 }
  0xbb   : > { %958 = vmatprep.mubr.f32.mxu1 %v16349_v0  ;;  %1035 = vmatprep.mubr.f32.mxu0 %v16349_v0  ;;  %16508 = vst [vmem:[#allocation11_spill] sm:$0xff] %v12929_v9  ;;  %v12933_v10 = vrot.slane %v12881_v36, %v12722_v12 }
  0xbc   : > { %v513_v23 = vpop.permute.xlu1 %512  ;;  %971 = vmatprep.subr.mxu0 %v569_v21  ;;  %1049 = vmatpush1.msra.mxu1 %v570_v16  ;;  %v515_v25 = vpop.permute.xlu0 %514 }
  0xbd   : > { %v519_v27 = vsel %vm518_vm2, %v513_v23, %v515_v25  ;;  %v526_v32 = vsel %vm518_vm2, %v515_v25, %v501_v63  ;;  %16509 = vst [vmem:[#allocation12_spill] sm:$0xff] %v12933_v10  ;;  %v12944_v25 = vrot.slane %v12881_v36, %v12728_v13 }
  0xbe   : > { %v568_v38 = vmul.f32 %v12853_v15, %v526_v32  ;;  %11064 = vmatmul.mubr.msk.f32.gmra.mrb[8].mxu1 %vm650_vm1, %v12775_v33  ;;  %v575_v39 = vmul.f32 %v12862_v22, %v519_v27 }
  0xbf   : > { %1112 = vmatprep.mubr.f32.mxu1 %v16349_v0  ;;  %16510 = vst [vmem:[#allocation13_spill] sm:$0xff] %v12944_v25 }
  0xc0   : > { %v509_v48 = vpop.permute.xlu1 %508  ;;  %972 = vmatpush1.msra.mxu0 %v568_v38  ;;  %1202 = vmatprep.subr.mxu1 %v575_v39  ;;  %v511_v33 = vpop.permute.xlu0 %510  ;;  %v12952_v38 = vrot.slane %v12881_v36, %v12750_v24 }
  0xc1   : > { %v522_v41 = vsel %vm518_vm2, %v507_v57, %v509_v48  ;;  %v520_v51 = vsel %vm518_vm2, %v511_v33, %v513_v23  ;;  %v521_v52 = vsel %vm518_vm2, %v509_v48, %v511_v33  ;;  %11065 = vmatmul.mubr.msk.f32.vlgmr.msra.gmra.mrb[0].mxu0 %vm650_vm1, %v480_v42  ;;  %v499_v57 = vld [vmem:[%s16338_s5 + $0x8] sm:$0xff]  ;;  %v12962_v48 = vrot.slane %v12881_v36, %v12754_v26 }
  0xc2   : > { %v572_v53 = vmul.f32 %v12872_v34, %v522_v41  ;;  %v574_v54 = vmul.f32 %v12876_v35, %v520_v51  ;;  %11067 = vmatmul.mubr.msk.f32.vlgmr.msra.gmra.mrb[2].mxu1 %vm650_vm1, %v480_v42  ;;  %1041 = vmatprep.mubr.f32.mxu0 %v16349_v0  ;;  %v573_v55 = vmul.f32 %v12892_v44, %v521_v52  ;;  %v484_v52 = vld [vmem:[%s16334_s1 + $0x20] sm:$0xff] }
  0xc3   : > { %1118 = vmatprep.mubr.f32.mxu1 %v16349_v0  ;;  %4040 = vperm.xlu1 %12297, %v499_v57   ;;  %16511 = vst [vmem:[#allocation14_spill] sm:$0xff] %v12952_v38  ;;  %16512 = vst [vmem:[#allocation15_spill] sm:$0xff] %v12962_v48  ;;  %v12966_v33 = vrot.slane %v12881_v36, %v12760_v29 }
  0xc4   : > { %v1286_v58 = vpop.permute.xlu1 %1285  ;;  %1125 = vmatprep.subr.mxu0 %v573_v55  ;;  %1203 = vmatpush1.msra.mxu1 %v574_v54  ;;  %v1284_v59 = vpop.permute.xlu0 %1283  ;;  %v467_v54 = vld [vmem:[%s16342_s9 + $0x18] sm:$0xff] }
  0xc5   : > { %v1300_v60 = vsel %vm1295_vm3, %v1284_v59, %v1286_v58  ;;  %11066 = vmatmul.mubr.msk.f32.gmra.mrb[6].mxu0 %vm650_vm1, %v481_v56  ;;  %16513 = vst [vmem:[#allocation16_spill] sm:$0xff] %v12966_v33 }
  0xc6   : > { %1126 = vmatpush1.msra.mxu0 %v572_v53  ;;  %11068 = vmatmul.mubr.msk.f32.gmra.mrb[4].mxu1 %vm650_vm1, %v481_v56  ;;  %v1348_v63 = vmul.f32 %v12900_v49, %v1300_v60  ;;  %v12977_v53 = vrot.slane %v12881_v36, %v12764_v30  ;;  %v12991_v60 = vrot.slane %v467_v54, %v12739_v18 }
  0xc7   : > { %1189 = vmatprep.mubr.f32.mxu0 %v16349_v0  ;;  %1266 = vmatprep.mubr.f32.mxu1 %v16349_v0 }
  0xc8   : > { %v1280_v14 = vpop.permute.xlu1 %1279  ;;  %1436 = vmatprep.subr.mxu1 %v1348_v63  ;;  %v1282_v16 = vpop.permute.xlu0 %1281  ;;  %16514 = vst [vmem:[#allocation17_spill] sm:$0xff] %v12977_v53  ;;  %16515 = vst [vmem:[#allocation18_spill] sm:$0xff] %v12991_v60 }
  0xc9   : > { %v1301_v21 = vsel %vm1295_vm3, %v1282_v16, %v1284_v59  ;;  %v1302_v23 = vsel %vm1295_vm3, %v1280_v14, %v1282_v16  ;;  %11069 = vmatmul.mubr.msk.f32.vlgmr.msra.gmra.mrb[2].mxu0 %vm650_vm1, %v480_v42  ;;  %v485_v16 = vld [vmem:[%s16334_s1 + $0x28] sm:$0xff] }
  0xca   : > { %v1347_v27 = vmul.f32 %v12929_v9, %v1301_v21  ;;  %11071 = vmatmul.mubr.msk.f32.vlgmr.msra.gmra.mrb[6].mxu1 %vm650_vm1, %v480_v42  ;;  %1195 = vmatprep.mubr.f32.mxu0 %v16349_v0  ;;  %v1346_v32 = vmul.f32 %v12933_v10, %v1302_v23 }
  0xcb   : > { %1272 = vmatprep.mubr.f32.mxu1 %v16349_v0 }
  0xcc   : > { %v1292_v39 = vpop.permute.xlu1 %1291  ;;  %1359 = vmatprep.subr.mxu0 %v1346_v32  ;;  %1437 = vmatpush1.msra.mxu1 %v1347_v27  ;;  %v1294_v46 = vpop.permute.xlu0 %1293 }
  0xcd   : > { %v1296_v47 = vsel %vm1295_vm3, %v1292_v39, %v1294_v46  ;;  %v1303_v42 = vsel %vm1295_vm3, %v1294_v46, %v1280_v14  ;;  %11070 = vmatmul.mubr.msk.f32.gmra.mrb[4].mxu0 %vm650_vm1, %v481_v56  ;;  %v13012_v46 = vrot.slane %v467_v54, %v12722_v12 }
  0xce   : > { %v1345_v41 = vmul.f32 %v12944_v25, %v1303_v42  ;;  %11072 = vmatmul.mubr.msk.f32.gmra.mrb[8].mxu1 %vm650_vm1, %v481_v56  ;;  %1423 = vmatprep.mubr.f32.mxu0 %v16349_v0  ;;  %v1352_v51 = vmul.f32 %v12952_v38, %v1296_v47 }
  0xcf   : > { %1500 = vmatprep.mubr.f32.mxu1 %v16349_v0  ;;  %16517 = vst [vmem:[#allocation20_spill] sm:$0xff] %v13012_v46 }
  0xd0   : > { %v1288_v55 = vpop.permute.xlu1 %1287  ;;  %1360 = vmatpush1.msra.mxu0 %v1345_v41  ;;  %1590 = vmatprep.subr.mxu1 %v1352_v51  ;;  %v1290_v56 = vpop.permute.xlu0 %1289 }
  0xd1   : > { %v1299_v57 = vsel %vm1295_vm3, %v1286_v58, %v1288_v55  ;;  %v1297_v59 = vsel %vm1295_vm3, %v1290_v56, %v1292_v39  ;;  %v1298_v36 = vsel %vm1295_vm3, %v1288_v55, %v1290_v56  ;;  %11073 = vmatmul.mubr.msk.f32.vlgmr.msra.gmra.mrb[0].mxu0 %vm650_vm1, %v484_v52  ;;  %v13009_v39 = vrot.slane %v467_v54, %v12743_v19 }
  0xd2   : > { %v1349_v63 = vmul.f32 %v12962_v48, %v1299_v57  ;;  %v1351_v14 = vmul.f32 %v12966_v33, %v1297_v59  ;;  %11075 = vmatmul.mubr.msk.f32.vlgmr.msra.gmra.mrb[2].mxu1 %vm650_vm1, %v484_v52  ;;  %1429 = vmatprep.mubr.f32.mxu0 %v16349_v0  ;;  %v1350_v58 = vmul.f32 %v12977_v53, %v1298_v36 }
  0xd3   : > { %1506 = vmatprep.mubr.f32.mxu1 %v16349_v0  ;;  %16516 = vst [vmem:[#allocation19_spill] sm:$0xff] %v13009_v39  ;;  %v13022_v55 = vrot.slane %v467_v54, %v12728_v13  ;;  %v13029_v59 = vrot.slane %v467_v54, %v12750_v24 }
  0xd4   : > { %v1690_v21 = vpop.permute.xlu1 %1689  ;;  %1513 = vmatprep.subr.mxu0 %v1350_v58  ;;  %1591 = vmatpush1.msra.mxu1 %v1351_v14  ;;  %v1688_v23 = vpop.permute.xlu0 %1687 }
  0xd5   : > { %v1704_v27 = vsel %vm1699_vm4, %v1688_v23, %v1690_v21  ;;  %11074 = vmatmul.mubr.msk.f32.gmra.mrb[6].mxu0 %vm650_vm1, %v485_v16  ;;  %16518 = vst [vmem:[#allocation21_spill] sm:$0xff] %v13022_v55  ;;  %16519 = vst [vmem:[#allocation22_spill] sm:$0xff] %v13029_v59 }
  0xd6   : > { %1514 = vmatpush1.msra.mxu0 %v1349_v63  ;;  %11076 = vmatmul.mubr.msk.f32.gmra.mrb[4].mxu1 %vm650_vm1, %v485_v16  ;;  %v1752_v32 = vmul.f32 %v12991_v60, %v1704_v27 }
  0xd7   : > { %1577 = vmatprep.mubr.f32.mxu0 %v16349_v0  ;;  %1654 = vmatprep.mubr.f32.mxu1 %v16349_v0 }
  0xd8   : > { %v1684_v47 = vpop.permute.xlu1 %1683  ;;  %1840 = vmatprep.subr.mxu1 %v1752_v32  ;;  %v1686_v42 = vpop.permute.xlu0 %1685 }
  0xd9   : > { %v1705_v41 = vsel %vm1699_vm4, %v1686_v42, %v1688_v23  ;;  %v1706_v51 = vsel %vm1699_vm4, %v1684_v47, %v1686_v42  ;;  %11077 = vmatmul.mubr.msk.f32.vlgmr.msra.gmra.mrb[2].mxu0 %vm650_vm1, %v484_v52  ;;  %v13041_v23 = vrot.slane %v467_v54, %v12760_v29  ;;  %v13051_v42 = vrot.slane %v467_v54, %v12764_v30 }
  0xda   : > { %v1751_v56 = vmul.f32 %v13009_v39, %v1705_v41  ;;  %11079 = vmatmul.mubr.msk.f32.vlgmr.msra.gmra.mrb[6].mxu1 %vm650_vm1, %v484_v52  ;;  %1583 = vmatprep.mubr.f32.mxu0 %v16349_v0  ;;  %v1750_v57 = vmul.f32 %v13012_v46, %v1706_v51  ;;  %v13038_v52 = vrot.slane %v467_v54, %v12754_v26 }
  0xdb   : > { %1660 = vmatprep.mubr.f32.mxu1 %v16349_v0  ;;  %16521 = vst [vmem:[#allocation24_spill] sm:$0xff] %v13041_v23  ;;  %16522 = vst [vmem:[#allocation25_spill] sm:$0xff] %v13051_v42 }
  0xdc   : > { %v1696_v36 = vpop.permute.xlu1 %1695  ;;  %1763 = vmatprep.subr.mxu0 %v1750_v57  ;;  %1841 = vmatpush1.msra.mxu1 %v1751_v56  ;;  %v1698_v63 = vpop.permute.xlu0 %1697  ;;  %16520 = vst [vmem:[#allocation23_spill] sm:$0xff] %v13038_v52 }
  0xdd   : > { %v1700_v14 = vsel %vm1699_vm4, %v1696_v36, %v1698_v63  ;;  %v1707_v58 = vsel %vm1699_vm4, %v1698_v63, %v1684_v47  ;;  %11078 = vmatmul.mubr.msk.f32.gmra.mrb[4].mxu0 %vm650_vm1, %v485_v16  ;;  %v486_v47 = vld [vmem:[%s16334_s1 + $0x30] sm:$0xff] }
  0xde   : > { %v1749_v27 = vmul.f32 %v13022_v55, %v1707_v58  ;;  %11080 = vmatmul.mubr.msk.f32.gmra.mrb[8].mxu1 %vm650_vm1, %v485_v16  ;;  %1827 = vmatprep.mubr.f32.mxu0 %v16349_v0  ;;  %v1756_v32 = vmul.f32 %v13029_v59, %v1700_v14 }
  0xdf   : > { %1904 = vmatprep.mubr.f32.mxu1 %v16349_v0 }
  0xe0   : > { %v1692_v41 = vpop.permute.xlu1 %1691  ;;  %1764 = vmatpush1.msra.mxu0 %v1749_v27  ;;  %1994 = vmatprep.subr.mxu1 %v1756_v32  ;;  %v1694_v51 = vpop.permute.xlu0 %1693 }
  0xe1   : > { %v1703_v16 = vsel %vm1699_vm4, %v1690_v21, %v1692_v41  ;;  %v1701_v56 = vsel %vm1699_vm4, %v1694_v51, %v1696_v36  ;;  %v1702_v57 = vsel %vm1699_vm4, %v1692_v41, %v1694_v51  ;;  %11081 = vmatmul.mubr.msk.f32.vlgmr.msra.gmra.mrb[0].mxu0 %vm650_vm1, %v486_v47  ;;  %v487_v21 = vld [vmem:[%s16334_s1 + $0x38] sm:$0xff]  ;;  %v468_v41 = vld [vmem:[%s16342_s9 + $0x28] sm:$0xff] }
  0xe2   : > { %v1753_v54 = vmul.f32 %v13038_v52, %v1703_v16  ;;  %v1755_v63 = vmul.f32 %v13041_v23, %v1701_v56  ;;  %11083 = vmatmul.mubr.msk.f32.vlgmr.msra.gmra.mrb[2].mxu1 %vm650_vm1, %v486_v47  ;;  %1833 = vmatprep.mubr.f32.mxu0 %v16349_v0  ;;  %v1754_v14 = vmul.f32 %v13051_v42, %v1702_v57 }
  0xe3   : > { %1910 = vmatprep.mubr.f32.mxu1 %v16349_v0  ;;  %v13098_v16 = vrot.slane %v468_v41, %v12722_v12 }
  0xe4   : > { %1917 = vmatprep.subr.mxu0 %v1754_v14  ;;  %1995 = vmatpush1.msra.mxu1 %v1755_v63  ;;  %v13070_v36 = vpop.permute.xlu1 %2425  ;;  %v2424_v58 = vpop.permute.xlu0 %2423  ;;  %v13119_v63 = vrot.slane %v468_v41, %v12743_v19  ;;  %v13123_v14 = vrot.slane %v468_v41, %v12728_v13 }
  0xe5   : > { %11082 = vmatmul.mubr.msk.f32.gmra.mrb[6].mxu0 %vm650_vm1, %v487_v21  ;;  %2170 = vmatprep.subr.mxu1 %v12610_v6  ;;  %v13090_v6 = vrot.slane %v468_v41, %v12739_v18  ;;  %16524 = vst [vmem:[#allocation27_spill] sm:$0xff] %v13098_v16 }
  0xe6   : > { %1918 = vmatpush1.msra.mxu0 %v1753_v54  ;;  %11084 = vmatmul.mubr.msk.f32.gmra.mrb[4].mxu1 %vm650_vm1, %v487_v21  ;;  %v489_v54 = vld [vmem:[%s16334_s1 + $0x48] sm:$0xff]  ;;  %16525 = vst [vmem:[#allocation28_spill] sm:$0xff] %v13119_v63  ;;  %16526 = vst [vmem:[#allocation29_spill] sm:$0xff] %v13123_v14 }
  0xe7   : > { %1981 = vmatprep.mubr.f32.mxu0 %v16349_v0  ;;  %2058 = vmatprep.mubr.f32.mxu1 %v16349_v0  ;;  %16523 = vst [vmem:[#allocation26_spill] sm:$0xff] %v13090_v6 }
  0xe8   : > { %v2420_v27 = vpop.permute.xlu1 %2419  ;;  %2093 = vmatprep.subr.mxu0 %v12602_v4  ;;  %v2422_v32 = vpop.permute.xlu0 %2421 }
  0xe9   : > { %11085 = vmatmul.mubr.msk.f32.vlgmr.msra.gmra.mrb[2].mxu0 %vm650_vm1, %v486_v47 }
  0xea   : > { %11087 = vmatmul.mubr.msk.f32.vlgmr.msra.gmra.mrb[6].mxu1 %vm650_vm1, %v486_v47  ;;  %1987 = vmatprep.mubr.f32.mxu0 %v16349_v0  ;;  %v2437_v47 = vsel %vm2433_vm5, %v2424_v58, %v13070_v36 }
  0xeb   : > { %2064 = vmatprep.mubr.f32.mxu1 %v16349_v0  ;;  %2094 = vmatpush1.msra.mxu0 %v12594_v2  ;;  %v488_v2 = vld [vmem:[%s16334_s1 + $0x40] sm:$0xff]  ;;  %v2486_v56 = vmul.f32 %v13090_v6, %v2437_v47  ;;  %v13128_v47 = vrot.slane %v468_v41, %v12750_v24 }
  0xec   : > { %2171 = vmatpush1.msra.mxu1 %v12600_v3  ;;  %v2432_v4 = vpop.permute.xlu1 %2431  ;;  %2247 = vmatprep.subr.mxu0 %v12618_v8  ;;  %v2418_v51 = vpop.permute.xlu0 %2417  ;;  %v2439_v3 = vsel %vm2433_vm5, %v2420_v27, %v2422_v32 }
  0xed   : > { %11086 = vmatmul.mubr.msk.f32.gmra.mrb[4].mxu0 %vm650_vm1, %v487_v21  ;;  %2324 = vmatprep.subr.mxu1 %v12592_v1  ;;  %v2484_v57 = vmul.f32 %v13098_v16, %v2439_v3  ;;  %16527 = vst [vmem:[#allocation30_spill] sm:$0xff] %v13128_v47  ;;  %v16529_v16 = vmov 0.0  }
  0xee   : > { %11088 = vmatmul.mubr.msk.f32.gmra.mrb[8].mxu1 %vm650_vm1, %v487_v21  ;;  %2157 = vmatprep.mubr.f32.mxu0 %v16349_v0 }
  0xef   : > { %2234 = vmatprep.mubr.f32.mxu1 %v16349_v0 }
  0xf0   : > { %v2428_v8 = vpop.permute.xlu1 %2427  ;;  %v2430_v1 = vpop.permute.xlu0 %2429 }
  0xf1   : > { %11089 = vmatmul.mubr.msk.f32.vlgmr.msra.gmra.mrb[0].mxu0 %vm650_vm1, %v488_v2  ;;  %v2435_v6 = vsel %vm2433_vm5, %v2428_v8, %v2430_v1 }
  0xf2   : > { %11091 = vmatmul.mubr.msk.f32.vlgmr.msra.gmra.mrb[2].mxu1 %vm650_vm1, %v488_v2  ;;  %2163 = vmatprep.mubr.f32.mxu0 %v16349_v0 }
  0xf3   : > { %2240 = vmatprep.mubr.f32.mxu1 %v16349_v0  ;;  %2325 = vmatpush1.msra.mxu1 %v12608_v5  ;;  %v2440_v5 = vsel %vm2433_vm5, %v2418_v51, %v2420_v27  ;;  %v2441_v0 = vsel %vm2433_vm5, %v2432_v4, %v2418_v51 }
  0xf4   : > { %2248 = vmatpush1.msra.mxu0 %v12616_v7  ;;  %2574 = vmatprep.subr.mxu1 %v2486_v56  ;;  %v13125_v21 = vpop.permute.xlu1 %2829  ;;  %v13130_v3 = vpop.permute.xlu0 %2827  ;;  %v13138_v7 = vrot.slane %v468_v41, %v12764_v30  ;;  %v2438_v56 = vsel %vm2433_vm5, %v2422_v32, %v2424_v58  ;;  %v2483_v27 = vmul.f32 %v13123_v14, %v2440_v5  ;;  %v13155_v32 = vld [vmem:[%s16342_s9 + $0x30] sm:$0xff]  ;;  %v491_v14 = vld [vmem:[%s16334_s1 + $0x58] sm:$0xff] }
  0xf5   : > { %11090 = vmatmul.mubr.msk.f32.gmra.mrb[6].mxu0 %vm650_vm1, %v489_v54  ;;  %2497 = vmatprep.subr.mxu0 %v2484_v57  ;;  %v2490_v51 = vmul.f32 %v13128_v47, %v2441_v0  ;;  %v2485_v59 = vmul.f32 %v13119_v63, %v2438_v56  ;;  %v13161_v0 = vrot.slane %v468_v41, %v12760_v29 }
  0xf6   : > { %16528 = vst [vmem:[#allocation31_spill] sm:$0xff] %v13138_v7  ;;  %11092 = vmatmul.mubr.msk.f32.gmra.mrb[4].mxu1 %vm650_vm1, %v489_v54  ;;  %2311 = vmatprep.mubr.f32.mxu0 %v16529_v16  ;;  %v2488_v58 = vmul.f32 %v13138_v7, %v2435_v6  ;;  %v13165_v5 = vrot.slane %v468_v41, %v12754_v26 }
  0xf7   : > { %2388 = vmatprep.mubr.f32.mxu1 %v16529_v16  ;;  %16530 = vst [vmem:[#allocation32_spill] sm:$0xff] %v13161_v0  ;;  %v2434_v6 = vsel %vm2433_vm5, %v2430_v1, %v2432_v4  ;;  %v2841_v41 = vsel %vm2837_vm6, %v13130_v3, %v13125_v21  ;;  %v13183_v4 = vrot.slane %v13155_v32, %v12722_v12 }
  0xf8   : > { %v2824_v52 = vpop.permute.xlu1 %2823  ;;  %v2826_v57 = vpop.permute.xlu0 %2825  ;;  %16531 = vst [vmem:[#allocation33_spill] sm:$0xff] %v13165_v5  ;;  %v2489_v1 = vmul.f32 %v13161_v0, %v2434_v6  ;;  %v13205_v6 = vrot.slane %v13155_v32, %v12743_v19 }
  0xf9   : > { %11093 = vmatmul.mubr.msk.f32.vlgmr.msra.gmra.mrb[2].mxu0 %vm650_vm1, %v488_v2  ;;  %16533 = vst [vmem:[#allocation35_spill] sm:$0xff] %v13183_v4 }
  0xfa   : > { %11095 = vmatmul.mubr.msk.f32.vlgmr.msra.gmra.mrb[6].mxu1 %vm650_vm1, %v488_v2  ;;  %2317 = vmatprep.mubr.f32.mxu0 %v16529_v16  ;;  %v13171_v2 = vrot.slane %v13155_v32, %v12739_v18  ;;  %16534 = vst [vmem:[#allocation36_spill] sm:$0xff] %v13205_v6 }
  0xfb   : > { %2575 = vmatpush1.msra.mxu1 %v2485_v59  ;;  %2394 = vmatprep.mubr.f32.mxu1 %v16529_v16  ;;  %v2436_v59 = vsel %vm2433_vm5, %v13070_v36, %v2428_v8  ;;  %v490_v36 = vld [vmem:[%s16334_s1 + $0x50] sm:$0xff]  ;;  %v2843_v8 = vsel %vm2837_vm6, %v2824_v52, %v2826_v57 }
  0xfc   : > { %2498 = vmatpush1.msra.mxu0 %v2483_v27  ;;  %2728 = vmatprep.subr.mxu1 %v2490_v51  ;;  %v2836_v56 = vpop.permute.xlu1 %2835  ;;  %16532 = vst [vmem:[#allocation34_spill] sm:$0xff] %v13171_v2  ;;  %v2822_v47 = vpop.permute.xlu0 %2821  ;;  %v2487_v27 = vmul.f32 %v13165_v5, %v2436_v59  ;;  %v13210_v59 = vrot.slane %v13155_v32, %v12728_v13 }
  0xfd   : > { %11094 = vmatmul.mubr.msk.f32.gmra.mrb[4].mxu0 %vm650_vm1, %v489_v54  ;;  %2651 = vmatprep.subr.mxu0 %v2488_v58  ;;  %v2890_v58 = vmul.f32 %v13171_v2, %v2841_v41  ;;  %v13227_v2 = vrot.slane %v13155_v32, %v12764_v30 }
  0xfe   : > { %11096 = vmatmul.mubr.msk.f32.gmra.mrb[8].mxu1 %vm650_vm1, %v489_v54  ;;  %2561 = vmatprep.mubr.f32.mxu0 %v16529_v16  ;;  %v2888_v54 = vmul.f32 %v13183_v4, %v2843_v8  ;;  %16535 = vst [vmem:[#allocation37_spill] sm:$0xff] %v13210_v59  ;;  %v13216_v8 = vrot.slane %v13155_v32, %v12750_v24 }
  0xff   : > { %2638 = vmatprep.mubr.f32.mxu1 %v16529_v16  ;;  %16537 = vst [vmem:[#allocation39_spill] sm:$0xff] %v13227_v2  ;;  %v2842_v4 = vsel %vm2837_vm6, %v2826_v57, %v13130_v3  ;;  %v13245_v57 = vld [vmem:[%s16342_s9 + $0x38] sm:$0xff] }
 0x100   : > { %v2832_v51 = vpop.permute.xlu1 %2831  ;;  %v2834_v7 = vpop.permute.xlu0 %2833  ;;  %16536 = vst [vmem:[#allocation38_spill] sm:$0xff] %v13216_v8  ;;  %v2889_v63 = vmul.f32 %v13205_v6, %v2842_v4 }
 0x101   : > { %11097 = vmatmul.mubr.msk.f32.vlgmr.msra.gmra.mrb[0].mxu0 %vm650_vm1, %v490_v36  ;;  %v2839_v0 = vsel %vm2837_vm6, %v2832_v51, %v2834_v7  ;;  %v2838_v4 = vsel %vm2837_vm6, %v2834_v7, %v2836_v56 }
 0x102   : > { %2652 = vmatpush1.msra.mxu0 %v2487_v27  ;;  %11099 = vmatmul.mubr.msk.f32.vlgmr.msra.gmra.mrb[2].mxu1 %vm650_vm1, %v490_v36  ;;  %v2844_v27 = vsel %vm2837_vm6, %v2822_v47, %v2824_v52  ;;  %v2892_v3 = vmul.f32 %v13227_v2, %v2839_v0  ;;  %v13257_v0 = vrot.slane %v13155_v32, %v12754_v26 }
 0x103   : > { %2729 = vmatpush1.msra.mxu1 %v2489_v1  ;;  %2567 = vmatprep.mubr.f32.mxu0 %v16529_v16  ;;  %v2887_v52 = vmul.f32 %v13210_v59, %v2844_v27  ;;  %v13252_v27 = vrot.slane %v13155_v32, %v12760_v29  ;;  %v13275_v32 = vrot.slane %v13245_v57, %v12722_v12  ;;  %v493_v59 = vld [vmem:[%s16334_s1 + $0x68] sm:$0xff] }
 0x104   : > { %2644 = vmatprep.mubr.f32.mxu1 %v16529_v16  ;;  %2978 = vmatprep.subr.mxu1 %v2890_v58  ;;  %v13212_v41 = vpop.permute.xlu1 %3233  ;;  %v13218_v1 = vpop.permute.xlu0 %3231  ;;  %v2845_v58 = vsel %vm2837_vm6, %v2836_v56, %v2822_v47  ;;  %16539 = vst [vmem:[#allocation41_spill] sm:$0xff] %v13257_v0 }
 0x105   : > { %11098 = vmatmul.mubr.msk.f32.gmra.mrb[6].mxu0 %vm650_vm1, %v491_v14  ;;  %2901 = vmatprep.subr.mxu0 %v2888_v54  ;;  %v2894_v54 = vmul.f32 %v13216_v8, %v2845_v58  ;;  %16538 = vst [vmem:[#allocation40_spill] sm:$0xff] %v13252_v27  ;;  %v2840_v8 = vsel %vm2837_vm6, %v13125_v21, %v2832_v51  ;;  %16541 = vst [vmem:[#allocation43_spill] sm:$0xff] %v13275_v32  ;;  %v492_v21 = vld [vmem:[%s16334_s1 + $0x60] sm:$0xff] }
 0x106   : > { %11100 = vmatmul.mubr.msk.f32.gmra.mrb[4].mxu1 %vm650_vm1, %v491_v14  ;;  %2715 = vmatprep.mubr.f32.mxu0 %v16529_v16  ;;  %v3245_v7 = vsel %vm3241_vm7, %v13218_v1, %v13212_v41  ;;  %v2893_v51 = vmul.f32 %v13252_v27, %v2838_v4  ;;  %v13302_v4 = vrot.slane %v13245_v57, %v12728_v13 }
 0x107   : > { %2792 = vmatprep.mubr.f32.mxu1 %v16529_v16 }
 0x108   : > { %v3228_v47 = vpop.permute.xlu1 %3227  ;;  %v3230_v5 = vpop.permute.xlu0 %3229  ;;  %16543 = vst [vmem:[#allocation45_spill] sm:$0xff] %v13302_v4 }
 0x109   : > { %11101 = vmatmul.mubr.msk.f32.vlgmr.msra.gmra.mrb[2].mxu0 %vm650_vm1, %v490_v36  ;;  %v3247_v56 = vsel %vm3241_vm7, %v3228_v47, %v3230_v5 }
 0x10a   : > { %11103 = vmatmul.mubr.msk.f32.vlgmr.msra.gmra.mrb[6].mxu1 %vm650_vm1, %v490_v36  ;;  %2721 = vmatprep.mubr.f32.mxu0 %v16529_v16  ;;  %v13263_v36 = vrot.slane %v13245_v57, %v12739_v18 }
 0x10b   : > { %2979 = vmatpush1.msra.mxu1 %v2889_v63  ;;  %2798 = vmatprep.mubr.f32.mxu1 %v16529_v16 }
 0x10c   : > { %2902 = vmatpush1.msra.mxu0 %v2887_v52  ;;  %3132 = vmatprep.subr.mxu1 %v2894_v54  ;;  %v3240_v58 = vpop.permute.xlu1 %3239  ;;  %16540 = vst [vmem:[#allocation42_spill] sm:$0xff] %v13263_v36  ;;  %v3226_v63 = vpop.permute.xlu0 %3225  ;;  %v2891_v52 = vmul.f32 %v13257_v0, %v2840_v8  ;;  %v13297_v8 = vrot.slane %v13245_v57, %v12743_v19 }
 0x10d   : > { %11102 = vmatmul.mubr.msk.f32.gmra.mrb[4].mxu0 %vm650_vm1, %v491_v14  ;;  %3055 = vmatprep.subr.mxu0 %v2892_v3  ;;  %v3294_v3 = vmul.f32 %v13263_v36, %v3245_v7  ;;  %v13319_v36 = vrot.slane %v13245_v57, %v12764_v30 }
 0x10e   : > { %11104 = vmatmul.mubr.msk.f32.gmra.mrb[8].mxu1 %vm650_vm1, %v491_v14  ;;  %2965 = vmatprep.mubr.f32.mxu0 %v16529_v16  ;;  %v3292_v14 = vmul.f32 %v13275_v32, %v3247_v56  ;;  %16542 = vst [vmem:[#allocation44_spill] sm:$0xff] %v13297_v8  ;;  %v13308_v56 = vrot.slane %v13245_v57, %v12750_v24 }
 0x10f   : > { %3042 = vmatprep.mubr.f32.mxu1 %v16529_v16  ;;  %16545 = vst [vmem:[#allocation47_spill] sm:$0xff] %v13319_v36  ;;  %v3246_v32 = vsel %vm3241_vm7, %v3230_v5, %v13218_v1  ;;  %v471_v1 = vld [vmem:[%s16342_s9 + $0x40] sm:$0xff] }
 0x110   : > { %v3236_v54 = vpop.permute.xlu1 %3235  ;;  %v3238_v2 = vpop.permute.xlu0 %3237  ;;  %16544 = vst [vmem:[#allocation46_spill] sm:$0xff] %v13308_v56  ;;  %v3293_v0 = vmul.f32 %v13297_v8, %v3246_v32 }
 0x111   : > { %11105 = vmatmul.mubr.msk.f32.vlgmr.msra.gmra.mrb[0].mxu0 %vm650_vm1, %v492_v21  ;;  %v3243_v27 = vsel %vm3241_vm7, %v3236_v54, %v3238_v2  ;;  %v3242_v32 = vsel %vm3241_vm7, %v3238_v2, %v3240_v58  ;;  %v13363_v2 = vrot.slane %v471_v1, %v12722_v12  ;;  %v13384_v12 = vrot.slane %v471_v1, %v12743_v19 }
 0x112   : > { %3056 = vmatpush1.msra.mxu0 %v2891_v52  ;;  %11107 = vmatmul.mubr.msk.f32.vlgmr.msra.gmra.mrb[2].mxu1 %vm650_vm1, %v492_v21  ;;  %v3248_v52 = vsel %vm3241_vm7, %v3226_v63, %v3228_v47  ;;  %v3296_v5 = vmul.f32 %v13319_v36, %v3243_v27  ;;  %v13347_v27 = vrot.slane %v13245_v57, %v12754_v26 }
 0x113   : > { %3133 = vmatpush1.msra.mxu1 %v2893_v51  ;;  %2971 = vmatprep.mubr.f32.mxu0 %v16529_v16  ;;  %v3291_v47 = vmul.f32 %v13302_v4, %v3248_v52  ;;  %v13342_v52 = vrot.slane %v13245_v57, %v12760_v29  ;;  %16549 = vst [vmem:[#allocation51_spill] sm:$0xff] %v13363_v2  ;;  %16550 = vst [vmem:[#allocation52_spill] sm:$0xff] %v13384_v12 }
 0x114   : > { %3048 = vmatprep.mubr.f32.mxu1 %v16529_v16  ;;  %3382 = vmatprep.subr.mxu1 %v3294_v3  ;;  %v13304_v7 = vpop.permute.xlu1 %3637  ;;  %v13310_v51 = vpop.permute.xlu0 %3635  ;;  %v3249_v3 = vsel %vm3241_vm7, %v3240_v58, %v3226_v63  ;;  %16547 = vst [vmem:[#allocation49_spill] sm:$0xff] %v13347_v27  ;;  %v13399_v19 = vrot.slane %v471_v1, %v12764_v30 }
 0x115   : > { %11106 = vmatmul.mubr.msk.f32.gmra.mrb[6].mxu0 %vm650_vm1, %v493_v59  ;;  %3305 = vmatprep.subr.mxu0 %v3292_v14  ;;  %v3298_v63 = vmul.f32 %v13308_v56, %v3249_v3  ;;  %16546 = vst [vmem:[#allocation48_spill] sm:$0xff] %v13342_v52  ;;  %v3649_v57 = vsel %vm3645_vm8, %v13310_v51, %v13304_v7 }
 0x116   : > { %11108 = vmatmul.mubr.msk.f32.gmra.mrb[4].mxu1 %vm650_vm1, %v493_v59  ;;  %3119 = vmatprep.mubr.f32.mxu0 %v16529_v16  ;;  %v3297_v58 = vmul.f32 %v13342_v52, %v3242_v32  ;;  %16553 = vst [vmem:[#allocation55_spill] sm:$0xff] %v13399_v19 }
 0x117   : > { %3196 = vmatprep.mubr.f32.mxu1 %v16529_v16 }
 0x118   : > { %v3634_v14 = vpop.permute.xlu0 %3633  ;;  %v3632_v6 = vpop.permute.xlu1 %3631 }
 0x119   : > { %11109 = vmatmul.mubr.msk.f32.vlgmr.msra.gmra.mrb[2].mxu0 %vm650_vm1, %v492_v21 }
 0x11a   : > { %11111 = vmatmul.mubr.msk.f32.vlgmr.msra.gmra.mrb[6].mxu1 %vm650_vm1, %v492_v21  ;;  %3125 = vmatprep.mubr.f32.mxu0 %v16529_v16  ;;  %v13352_v21 = vrot.slane %v471_v1, %v12739_v18  ;;  %v494_v18 = vld [vmem:[%s16334_s1 + $0x70] sm:$0xff] }
 0x11b   : > { %3383 = vmatpush1.msra.mxu1 %v3293_v0  ;;  %3202 = vmatprep.mubr.f32.mxu1 %v16529_v16  ;;  %v3244_v0 = vsel %vm3241_vm7, %v13212_v41, %v3236_v54  ;;  %v3651_v41 = vsel %vm3645_vm8, %v3632_v6, %v3634_v14 }
 0x11c   : > { %3306 = vmatpush1.msra.mxu0 %v3291_v47  ;;  %3536 = vmatprep.subr.mxu1 %v3298_v63  ;;  %16548 = vst [vmem:[#allocation50_spill] sm:$0xff] %v13352_v21  ;;  %v3630_v3 = vpop.permute.xlu0 %3629  ;;  %v3644_v54 = vpop.permute.xlu1 %3643  ;;  %v3295_v47 = vmul.f32 %v13347_v27, %v3244_v0  ;;  %v3698_v63 = vmul.f32 %v13352_v21, %v3649_v57 }
 0x11d   : > { %11110 = vmatmul.mubr.msk.f32.gmra.mrb[4].mxu0 %vm650_vm1, %v493_v59  ;;  %3459 = vmatprep.subr.mxu0 %v3296_v5  ;;  %v495_v5 = vld [vmem:[%s16334_s1 + $0x78] sm:$0xff]  ;;  %v13388_v0 = vrot.slane %v471_v1, %v12728_v13  ;;  %v13391_v57 = vrot.slane %v471_v1, %v12750_v24 }
 0x11e   : > { %11112 = vmatmul.mubr.msk.f32.gmra.mrb[8].mxu1 %vm650_vm1, %v493_v59  ;;  %3369 = vmatprep.mubr.f32.mxu0 %v16529_v16  ;;  %v3696_v59 = vmul.f32 %v13363_v2, %v3651_v41 }
 0x11f   : > { %3446 = vmatprep.mubr.f32.mxu1 %v16529_v16  ;;  %16551 = vst [vmem:[#allocation53_spill] sm:$0xff] %v13388_v0  ;;  %16552 = vst [vmem:[#allocation54_spill] sm:$0xff] %v13391_v57 }
 0x120   : > { %v3640_v41 = vpop.permute.xlu1 %3639 }
 0x121   : > { %11113 = vmatmul.mubr.msk.f32.vlgmr.msra.gmra.mrb[0].mxu0 %vm650_vm1, %v494_v18 }
 0x122   : > { %3460 = vmatpush1.msra.mxu0 %v3295_v47  ;;  %11115 = vmatmul.mubr.msk.f32.vlgmr.msra.gmra.mrb[2].mxu1 %vm650_vm1, %v494_v18  ;;  %v3653_v47 = vsel %vm3645_vm8, %v3644_v54, %v3630_v3 }
 0x123   : > { %3537 = vmatpush1.msra.mxu1 %v3297_v58  ;;  %3375 = vmatprep.mubr.f32.mxu0 %v16529_v16  ;;  %v3642_v32 = vpop.permute.xlu0 %3641  ;;  %v3652_v58 = vsel %vm3645_vm8, %v3630_v3, %v3632_v6  ;;  %v3702_v3 = vmul.f32 %v13391_v57, %v3653_v47 }
 0x124   : > { %3452 = vmatprep.mubr.f32.mxu1 %v16529_v16  ;;  %3786 = vmatprep.subr.mxu1 %v3698_v63  ;;  %v3650_v63 = vsel %vm3645_vm8, %v3634_v14, %v13310_v51  ;;  %v3647_v24 = vsel %vm3645_vm8, %v3640_v41, %v3642_v32  ;;  %v3695_v6 = vmul.f32 %v13388_v0, %v3652_v58 }
 0x125   : > { %11114 = vmatmul.mubr.msk.f32.gmra.mrb[6].mxu0 %vm650_vm1, %v495_v5  ;;  %3709 = vmatprep.subr.mxu0 %v3696_v59  ;;  %v3697_v30 = vmul.f32 %v13384_v12, %v3650_v63  ;;  %v3700_v59 = vmul.f32 %v13399_v19, %v3647_v24  ;;  %v13418_v51 = vrot.slane %v471_v1, %v12754_v26  ;;  %v496_v26 = vld [vmem:[%s16334_s1 + $0x80] sm:$0xff] }
 0x126   : > { %11116 = vmatmul.mubr.msk.f32.gmra.mrb[4].mxu1 %vm650_vm1, %v495_v5  ;;  %3523 = vmatprep.mubr.f32.mxu0 %v16529_v16  ;;  %v13421_v14 = vrot.slane %v471_v1, %v12760_v29  ;;  %v3648_v58 = vsel %vm3645_vm8, %v13304_v7, %v3640_v41  ;;  %v497_v1 = vld [vmem:[%s16334_s1 + $0x88] sm:$0xff] }
 0x127   : > { %3600 = vmatprep.mubr.f32.mxu1 %v16529_v16  ;;  %16554 = vst [vmem:[#allocation56_spill] sm:$0xff] %v13418_v51  ;;  %v3699_v29 = vmul.f32 %v13418_v51, %v3648_v58 }
 0x128   : > { %16555 = vst [vmem:[#allocation57_spill] sm:$0xff] %v13421_v14 }
 0x129   : > { %11117 = vmatmul.mubr.msk.f32.vlgmr.msra.gmra.mrb[2].mxu0 %vm650_vm1, %v494_v18 }
 0x12a   : > { %11119 = vmatmul.mubr.msk.f32.vlgmr.msra.gmra.mrb[6].mxu1 %vm650_vm1, %v494_v18  ;;  %3529 = vmatprep.mubr.f32.mxu0 %v16529_v16  ;;  %v3646_v18 = vsel %vm3645_vm8, %v3642_v32, %v3644_v54 }
 0x12b   : > { %3787 = vmatpush1.msra.mxu1 %v3697_v30  ;;  %3606 = vmatprep.mubr.f32.mxu1 %v16529_v16  ;;  %v3701_v7 = vmul.f32 %v13421_v14, %v3646_v18 }
 0x12c   : > { %3710 = vmatpush1.msra.mxu0 %v3695_v6  ;;  %3940 = vmatprep.subr.mxu1 %v3702_v3 }
 0x12d   : > { %11118 = vmatmul.mubr.msk.f32.gmra.mrb[4].mxu0 %vm650_vm1, %v495_v5  ;;  %3863 = vmatprep.subr.mxu0 %v3700_v59 }
 0x12e   : > { %11120 = vmatmul.mubr.msk.f32.gmra.mrb[8].mxu1 %vm650_vm1, %v495_v5  ;;  %3773 = vmatprep.mubr.f32.mxu0 %v16529_v16 }
 0x12f   : > { %3850 = vmatprep.mubr.f32.mxu1 %v16529_v16 }
 0x131   : > { %11121 = vmatmul.mubr.msk.f32.vlgmr.msra.gmra.mrb[0].mxu0 %vm650_vm1, %v496_v26 }
 0x132   : > { %3864 = vmatpush1.msra.mxu0 %v3699_v29  ;;  %11123 = vmatmul.mubr.msk.f32.vlgmr.msra.gmra.mrb[2].mxu1 %vm650_vm1, %v496_v26 }
 0x133   : > { %3779 = vmatprep.mubr.f32.mxu0 %v16529_v16  ;;  %3856 = vmatprep.mubr.f32.mxu1 %v16529_v16 }
 0x134   : > { %3941 = vmatpush1.msra.mxu1 %v3701_v7  ;;  %v13456_v32 = vpop.permute.xlu0 %4035 }
 0x135   : > { %11122 = vmatmul.mubr.msk.f32.gmra.mrb[6].mxu0 %vm650_vm1, %v497_v1 }
 0x136   : > { %11124 = vmatmul.mubr.msk.f32.gmra.mrb[4].mxu1 %vm650_vm1, %v497_v1  ;;  %3927 = vmatprep.mubr.f32.mxu0 %v16529_v16 }
 0x137   : > { %4004 = vmatprep.mubr.f32.mxu1 %v16529_v16 }
 0x139   : > { %11125 = vmatmul.mubr.msk.f32.vlgmr.msra.gmra.mrb[2].mxu0 %vm650_vm1, %v496_v26 }
 0x13a   : > { %11127 = vmatmul.mubr.msk.f32.vlgmr.msra.gmra.mrb[6].mxu1 %vm650_vm1, %v496_v26  ;;  %3933 = vmatprep.mubr.f32.mxu0 %v16529_v16 }
 0x13b   : > { %4010 = vmatprep.mubr.f32.mxu1 %v16529_v16 }
 0x13d   : > { %11126 = vmatmul.mubr.msk.f32.gmra.mrb[4].mxu0 %vm650_vm1, %v497_v1 }
 0x13e   : > { %11128 = vmatmul.mubr.msk.f32.gmra.mrb[8].mxu1 %vm650_vm1, %v497_v1  ;;  %4278 = vmatprep.mubr.f32.mxu0 %v16529_v16  ;;  %vm10974_vm1 = vcmask 523264  }
 0x13f   : > { %4355 = vmatprep.mubr.f32.mxu1 %v16529_v16 }
 0x142   : > { %v13463_v30 = vpop.permute.xlu1 %4040 }
 0x181   : > { %v729_v54 = vpop.f32.mrb[0].mxu1 }
 0x182   : > { %v731_v5 = vpop.f32.mrb[1].mxu1 }
 0x204   : > { %v3775_v41 = vpop.f32.mrb[0].mxu0 }
 0x205   : > { %v13459_v47 = vadd.f32 %v13456_v32, %v3775_v41  ;;  %v3777_v63 = vpop.f32.mrb[1].mxu0  ;;  %v3852_v24 = vpop.f32.mrb[2].mxu1 }
 0x206   : > { %v3854_v6 = vpop.f32.mrb[3].mxu1 }
 0x207   : > { %4143 = vrot.lane.b32.xlu1 %v13459_v47, %s12452_s15 }
 0x208   : > { %v3781_v3 = vpop.f32.mrb[6].mxu0 }
 0x209   : > { %v11863_v59 = vadd.f32 %v3781_v3, %v729_v54  ;;  %v3783_v58 = vpop.f32.mrb[7].mxu0  ;;  %v3858_v18 = vpop.f32.mrb[4].mxu1 }
 0x20a   : > { %v11864_v26 = vadd.f32 %v3783_v58, %v731_v5  ;;  %v3860_v29 = vpop.f32.mrb[5].mxu1  ;;  %v13483_v58 = vadd.f32 %v13456_v32, %v3777_v63  ;;  %v13505_v63 = vadd.f32 %v13456_v32, %v3852_v24  ;;  %v13517_v51 = vadd.f32 %v13463_v30, %v3858_v18 }
 0x20b   : > { %v13466_v7 = vadd.f32 %v11863_v59, %v13463_v30  ;;  %4079 = vrot.lane.b32.xlu1 %v13459_v47, %s12453_s16  ;;  %v13549_v18 = vadd.f32 %v13456_v32, %v3854_v6 }
 0x20c   : > { %v3929_v1 = vpop.f32.mrb[2].mxu0  ;;  %16556 = vst [vmem:[#allocation58_spill] sm:$0xff] %v13483_v58  ;;  %v13492_v14 = vadd.f32 %v11864_v26, %v13463_v30  ;;  %16558 = vst [vmem:[#allocation60_spill] sm:$0xff] %v13505_v63 }
 0x20d   : > { %4145 = vrot.lane.b32.xlu0 %v13466_v7, %s12452_s15  ;;  %v3931_v41 = vpop.f32.mrb[3].mxu0  ;;  %v4006_v13 = vpop.f32.mrb[6].mxu1  ;;  %v13512_v26 = vadd.f32 %v13456_v32, %v3929_v1  ;;  %16559 = vst [vmem:[#allocation61_spill] sm:$0xff] %v13517_v51  ;;  %16560 = vst [vmem:[#allocation62_spill] sm:$0xff] %v13549_v18 }
 0x20e   : > { %v13472_v57 = vpop.f32.mrb[7].mxu1  ;;  %16557 = vst [vmem:[#allocation59_spill] sm:$0xff] %v13492_v14  ;;  %v13556_v1 = vadd.f32 %v13456_v32, %v3931_v41 }
 0x20f   : > { %4836 = vrot.lane.b32.xlu1 %v13459_v47, %s12454_s17 }
 0x210   : > { %v3935_v54 = vpop.f32.mrb[4].mxu0 }
 0x211   : > { %4081 = vrot.lane.b32.xlu0 %v13466_v7, %s12453_s16  ;;  %v3937_v5 = vpop.f32.mrb[5].mxu0  ;;  %v4012_v3 = vpop.f32.mrb[8].mxu1  ;;  %v13524_v24 = vadd.f32 %v13463_v30, %v3935_v54  ;;  %v13561_v54 = vadd.f32 %v13463_v30, %v3860_v29  ;;  %v13593_v29 = vadd.f32 %v13456_v32, %v4006_v13  ;;  %v13616_v13 = vadd.f32 %v13456_v32, %v13472_v57 }
 0x212   : > { %v13478_v59 = vpop.f32.mrb[9].mxu1  ;;  %v13568_v6 = vadd.f32 %v13463_v30, %v3937_v5  ;;  %v13602_v41 = vadd.f32 %v13463_v30, %v4012_v3 }
 0x213   : > { %5230 = vrot.lane.b32.xlu1 %v13459_v47, %s12455_s18  ;;  %16563 = vst [vmem:[#allocation65_spill] sm:$0xff] %v13616_v13  ;;  %v13628_v3 = vadd.f32 %v13463_v30, %v13478_v59 }
 0x214   : > { %16561 = vst [vmem:[#allocation63_spill] sm:$0xff] %v13568_v6  ;;  %16562 = vst [vmem:[#allocation64_spill] sm:$0xff] %v13602_v41 }
 0x215   : > { %4838 = vrot.lane.b32.xlu0 %v13466_v7, %s12454_s17 }
 0x217   : > { %4147 = vrot.lane.b32.xlu1 %v13483_v58, %s12452_s15 }
 0x219   : > { %5232 = vrot.lane.b32.xlu0 %v13466_v7, %s12455_s18 }
 0x21b   : > { %4083 = vrot.lane.b32.xlu1 %v13483_v58, %s12453_s16 }
 0x21d   : > { %4149 = vrot.lane.b32.xlu0 %v13492_v14, %s12452_s15 }
 0x21f   : > { %4840 = vrot.lane.b32.xlu1 %v13483_v58, %s12454_s17 }
 0x221   : > { %4085 = vrot.lane.b32.xlu0 %v13492_v14, %s12453_s16 }
 0x223   : > { %5234 = vrot.lane.b32.xlu1 %v13483_v58, %s12455_s18 }
 0x225   : > { %4842 = vrot.lane.b32.xlu0 %v13492_v14, %s12454_s17 }
 0x227   : > { %4151 = vrot.lane.b32.xlu1 %v13505_v63, %s12452_s15 }
 0x229   : > { %5236 = vrot.lane.b32.xlu0 %v13492_v14, %s12455_s18 }
 0x22b   : > { %4159 = vrot.lane.b32.xlu1 %v13512_v26, %s12452_s15 }
 0x22d   : > { %4153 = vrot.lane.b32.xlu0 %v13517_v51, %s12452_s15 }
 0x22f   : > { %4087 = vrot.lane.b32.xlu1 %v13505_v63, %s12453_s16 }
 0x231   : > { %4161 = vrot.lane.b32.xlu0 %v13524_v24, %s12452_s15 }
 0x233   : > { %4095 = vrot.lane.b32.xlu1 %v13512_v26, %s12453_s16 }
 0x235   : > { %4089 = vrot.lane.b32.xlu0 %v13517_v51, %s12453_s16 }
 0x237   : > { %4844 = vrot.lane.b32.xlu1 %v13505_v63, %s12454_s17 }
 0x239   : > { %4097 = vrot.lane.b32.xlu0 %v13524_v24, %s12453_s16 }
 0x23b   : > { %4852 = vrot.lane.b32.xlu1 %v13512_v26, %s12454_s17 }
 0x23d   : > { %4846 = vrot.lane.b32.xlu0 %v13517_v51, %s12454_s17 }
 0x23f   : > { %5238 = vrot.lane.b32.xlu1 %v13505_v63, %s12455_s18 }
 0x241   : > { %4854 = vrot.lane.b32.xlu0 %v13524_v24, %s12454_s17 }
 0x243   : > { %5246 = vrot.lane.b32.xlu1 %v13512_v26, %s12455_s18 }
 0x245   : > { %5240 = vrot.lane.b32.xlu0 %v13517_v51, %s12455_s18 }
 0x247   : > { %4155 = vrot.lane.b32.xlu1 %v13549_v18, %s12452_s15 }
 0x249   : > { %5248 = vrot.lane.b32.xlu0 %v13524_v24, %s12455_s18 }
 0x24b   : > { %4163 = vrot.lane.b32.xlu1 %v13556_v1, %s12452_s15 }
 0x24d   : > { %4157 = vrot.lane.b32.xlu0 %v13561_v54, %s12452_s15 }
 0x24f   : > { %4091 = vrot.lane.b32.xlu1 %v13549_v18, %s12453_s16 }
 0x251   : > { %4165 = vrot.lane.b32.xlu0 %v13568_v6, %s12452_s15 }
 0x253   : > { %4099 = vrot.lane.b32.xlu1 %v13556_v1, %s12453_s16 }
 0x255   : > { %4093 = vrot.lane.b32.xlu0 %v13561_v54, %s12453_s16 }
 0x257   : > { %4848 = vrot.lane.b32.xlu1 %v13549_v18, %s12454_s17 }
 0x259   : > { %4101 = vrot.lane.b32.xlu0 %v13568_v6, %s12453_s16 }
 0x25b   : > { %4856 = vrot.lane.b32.xlu1 %v13556_v1, %s12454_s17 }
 0x25d   : > { %4850 = vrot.lane.b32.xlu0 %v13561_v54, %s12454_s17 }
 0x25f   : > { %5242 = vrot.lane.b32.xlu1 %v13549_v18, %s12455_s18 }
 0x261   : > { %4858 = vrot.lane.b32.xlu0 %v13568_v6, %s12454_s17 }
 0x263   : > { %5250 = vrot.lane.b32.xlu1 %v13556_v1, %s12455_s18 }
 0x265   : > { %5244 = vrot.lane.b32.xlu0 %v13561_v54, %s12455_s18 }
 0x267   : > { %4167 = vrot.lane.b32.xlu1 %v13593_v29, %s12452_s15 }
 0x269   : > { %5252 = vrot.lane.b32.xlu0 %v13568_v6, %s12455_s18 }
 0x26b   : > { %4103 = vrot.lane.b32.xlu1 %v13593_v29, %s12453_s16 }
 0x26d   : > { %4169 = vrot.lane.b32.xlu0 %v13602_v41, %s12452_s15 }
 0x26f   : > { %4860 = vrot.lane.b32.xlu1 %v13593_v29, %s12454_s17 }
 0x271   : > { %4105 = vrot.lane.b32.xlu0 %v13602_v41, %s12453_s16 }
 0x273   : > { %5254 = vrot.lane.b32.xlu1 %v13593_v29, %s12455_s18 }
 0x275   : > { %4862 = vrot.lane.b32.xlu0 %v13602_v41, %s12454_s17 }
 0x277   : > { %4171 = vrot.lane.b32.xlu1 %v13616_v13, %s12452_s15 }
 0x279   : > { %5256 = vrot.lane.b32.xlu0 %v13602_v41, %s12455_s18  ;;  %v13624_v5 = vpop.permute.xlu1 %4143 }
 0x27b   : > { %5958 = vrot.lane.b32.xlu1 %v13483_v58, %s12456_s19 }
 0x27d   : > { %4173 = vrot.lane.b32.xlu0 %v13628_v3, %s12452_s15  ;;  %v13634_v57 = vpop.permute.xlu1 %4079 }
 0x27f   : > { %4107 = vrot.lane.b32.xlu1 %v13616_v13, %s12453_s16  ;;  %v13638_v32 = vpop.permute.xlu0 %4145 }
 0x281   : > { %5960 = vrot.lane.b32.xlu0 %v13492_v14, %s12456_s19  ;;  %v13642_v19 = vpop.permute.xlu1 %4836 }
 0x282   : > { %16564 = vst [vmem:[#allocation66_spill] sm:$0xff] %v13642_v19 }
 0x283   : > { %4864 = vrot.lane.b32.xlu1 %v13616_v13, %s12454_s17  ;;  %v13646_v30 = vpop.permute.xlu0 %4081 }
 0x285   : > { %5964 = vrot.lane.b32.xlu0 %v13517_v51, %s12456_s19  ;;  %v13650_v59 = vpop.permute.xlu1 %5230 }
 0x286   : > { %16565 = vst [vmem:[#allocation67_spill] sm:$0xff] %v13650_v59 }
 0x287   : > { %5258 = vrot.lane.b32.xlu1 %v13616_v13, %s12455_s18  ;;  %v13654_v0 = vpop.permute.xlu0 %4838 }
 0x289   : > { %5968 = vrot.lane.b32.xlu0 %v13561_v54, %s12456_s19  ;;  %v4148_v12 = vpop.permute.xlu1 %4147 }
 0x28a   : > { %v4187_v56 = vsel %vm592_vm0, %v13624_v5, %v4148_v12 }
 0x28b   : > { %5962 = vrot.lane.b32.xlu1 %v13505_v63, %s12456_s19  ;;  %v13660_v21 = vpop.permute.xlu0 %5232  ;;  %v4192_v36 = vmul.f32 %v4187_v56, %v12735_v17 }
 0x28c   : > { %16566 = vst [vmem:[#allocation68_spill] sm:$0xff] %v13660_v21 }
 0x28d   : > { %4109 = vrot.lane.b32.xlu0 %v13628_v3, %s12453_s16  ;;  %v13664_v2 = vpop.permute.xlu1 %4083 }
 0x28f   : > { %5966 = vrot.lane.b32.xlu1 %v13549_v18, %s12456_s19  ;;  %v4150_v52 = vpop.permute.xlu0 %4149 }
 0x290   : > { %v4188_v27 = vsel %vm592_vm0, %v13638_v32, %v4150_v52 }
 0x291   : > { %v4200_v4 = vmul.f32 %v4188_v27, %v12735_v17  ;;  %5972 = vrot.lane.b32.xlu0 %v13524_v24, %s12456_s19  ;;  %v13678_v8 = vpop.permute.xlu1 %4840 }
 0x292   : > { %16567 = vst [vmem:[#allocation69_spill] sm:$0xff] %v13678_v8 }
 0x293   : > { %5970 = vrot.lane.b32.xlu1 %v13512_v26, %s12456_s19  ;;  %v13682_v55 = vpop.permute.xlu0 %4085  ;;  %v11321_v23 = vpack.c.bf16 %v4200_v4, %v4192_v36 }
 0x295   : > { %5956 = vrot.lane.b32.xlu0 %v13466_v7, %s12456_s19  ;;  %v13686_v42 = vpop.permute.xlu1 %5234  ;;  %11322 = vmatprep.subr.bf16.mxu0 %v11321_v23 }
 0x296   : > { %16568 = vst [vmem:[#allocation70_spill] sm:$0xff] %v13686_v42 }
 0x297   : > { %5954 = vrot.lane.b32.xlu1 %v13459_v47, %s12456_s19  ;;  %v13690_v17 = vpop.permute.xlu0 %4842 }
 0x299   : > { %5976 = vrot.lane.b32.xlu0 %v13568_v6, %s12456_s19  ;;  %v4152_v56 = vpop.permute.xlu1 %4151 }
 0x29b   : > { %5974 = vrot.lane.b32.xlu1 %v13556_v1, %s12456_s19  ;;  %v13696_v27 = vpop.permute.xlu0 %5236 }
 0x29c   : > { %16569 = vst [vmem:[#allocation71_spill] sm:$0xff] %v13696_v27 }
 0x29d   : > { %4866 = vrot.lane.b32.xlu0 %v13628_v3, %s12454_s17  ;;  %v13700_v36 = vpop.permute.xlu1 %4159 }
 0x29f   : > { %5978 = vrot.lane.b32.xlu1 %v13593_v29, %s12456_s19  ;;  %v4154_v23 = vpop.permute.xlu0 %4153 }
 0x2a1   : > { %5980 = vrot.lane.b32.xlu0 %v13602_v41, %s12456_s19  ;;  %v13706_v4 = vpop.permute.xlu1 %4087 }
 0x2a3   : > { %5982 = vrot.lane.b32.xlu1 %v13616_v13, %s12456_s19  ;;  %v13710_v39 = vpop.permute.xlu0 %4161 }
 0x2a5   : > { %6354 = vrot.lane.b32.xlu0 %v13492_v14, %s12457_s20  ;;  %v13714_v46 = vpop.permute.xlu1 %4095 }
 0x2a7   : > { %6352 = vrot.lane.b32.xlu1 %v13483_v58, %s12457_s20  ;;  %v13718_v48 = vpop.permute.xlu0 %4089 }
 0x2a9   : > { %6358 = vrot.lane.b32.xlu0 %v13517_v51, %s12457_s20  ;;  %v13722_v59 = vpop.permute.xlu1 %4844 }
 0x2aa   : > { %16570 = vst [vmem:[#allocation72_spill] sm:$0xff] %v13722_v59 }
 0x2ab   : > { %6356 = vrot.lane.b32.xlu1 %v13505_v63, %s12457_s20  ;;  %v13726_v42 = vpop.permute.xlu0 %4097 }
 0x2ad   : > { %5260 = vrot.lane.b32.xlu0 %v13628_v3, %s12455_s18  ;;  %v13730_v60 = vpop.permute.xlu1 %4852 }
 0x2ae   : > { %16571 = vst [vmem:[#allocation73_spill] sm:$0xff] %v13730_v60  ;;  %v4186_v60 = vsel %vm592_vm0, %v4150_v52, %v4154_v23 }
 0x2af   : > { %6360 = vrot.lane.b32.xlu1 %v13549_v18, %s12457_s20  ;;  %v13734_v21 = vpop.permute.xlu0 %4846 }
 0x2b1   : > { %6362 = vrot.lane.b32.xlu0 %v13561_v54, %s12457_s20  ;;  %v13738_v27 = vpop.permute.xlu1 %5238 }
 0x2b2   : > { %16572 = vst [vmem:[#allocation74_spill] sm:$0xff] %v13738_v27 }
 0x2b3   : > { %6364 = vrot.lane.b32.xlu1 %v13512_v26, %s12457_s20  ;;  %v13742_v38 = vpop.permute.xlu0 %4854 }
 0x2b4   : > { %16573 = vst [vmem:[#allocation75_spill] sm:$0xff] %v13742_v38  ;;  %v4185_v38 = vsel %vm592_vm0, %v4148_v12, %v4152_v56 }
 0x2b5   : > { %6366 = vrot.lane.b32.xlu0 %v13524_v24, %s12457_s20  ;;  %v13746_v25 = vpop.permute.xlu1 %5246  ;;  %v4193_v12 = vmul.f32 %v4185_v38, %v12769_v31 }
 0x2b6   : > { %16574 = vst [vmem:[#allocation76_spill] sm:$0xff] %v13746_v25 }
 0x2b7   : > { %6348 = vrot.lane.b32.xlu1 %v13459_v47, %s12457_s20  ;;  %v13750_v33 = vpop.permute.xlu0 %5240 }
 0x2b8   : > { %16575 = vst [vmem:[#allocation77_spill] sm:$0xff] %v13750_v33 }
 0x2b9   : > { %6350 = vrot.lane.b32.xlu0 %v13466_v7, %s12457_s20  ;;  %v13754_v53 = vpop.permute.xlu1 %4155 }
 0x2ba   : > { %v4183_v33 = vsel %vm592_vm0, %v4152_v56, %v13754_v53 }
 0x2bb   : > { %6368 = vrot.lane.b32.xlu1 %v13556_v1, %s12457_s20  ;;  %v13758_v27 = vpop.permute.xlu0 %5248  ;;  %v4194_v10 = vmul.f32 %v4183_v33, %v12758_v28 }
 0x2bc   : > { %16576 = vst [vmem:[#allocation78_spill] sm:$0xff] %v13758_v27  ;;  %v4201_v27 = vmul.f32 %v4186_v60, %v12769_v31 }
 0x2bd   : > { %6370 = vrot.lane.b32.xlu0 %v13568_v6, %s12457_s20  ;;  %v13764_v25 = vpop.permute.xlu1 %4163 }
 0x2be   : > { %v11327_v8 = vpack.c.bf16 %v4201_v27, %v4193_v12 }
 0x2bf   : > { %6372 = vrot.lane.b32.xlu1 %v13593_v29, %s12457_s20  ;;  %v13773_v9 = vpop.permute.xlu0 %4157 }
 0x2c0   : > { %v4184_v52 = vsel %vm592_vm0, %v4154_v23, %v13773_v9 }
 0x2c1   : > { %v4202_v34 = vmul.f32 %v4184_v52, %v12758_v28  ;;  %6374 = vrot.lane.b32.xlu0 %v13602_v41, %s12457_s20  ;;  %v13783_v19 = vpop.permute.xlu1 %4091  ;;  %v13795_v28 = vld [vmem:[%s16335_s2 + $0x10] sm:$0xff] }
 0x2c2   : > { %16577 = vst [vmem:[#allocation79_spill] sm:$0xff] %v13783_v19 }
 0x2c3   : > { %6376 = vrot.lane.b32.xlu1 %v13616_v13, %s12457_s20  ;;  %v4166_v56 = vpop.permute.xlu0 %4165  ;;  %v11325_v60 = vpack.c.bf16 %v4202_v34, %v4194_v10  ;;  %v13811_v10 = vld [vmem:[%s16335_s2 + $0x18] sm:$0xff] }
 0x2c5   : > { %6748 = vrot.lane.b32.xlu0 %v13492_v14, %s12458_s21  ;;  %v13790_v23 = vpop.permute.xlu1 %4099  ;;  %11326 = vmatprep.subr.bf16.mxu1 %v11325_v60 }
 0x2c6   : > { %11328 = vmatpush1.bf16.msra.mxu1 %v11327_v8 }
 0x2c7   : > { %6746 = vrot.lane.b32.xlu1 %v13483_v58, %s12458_s21  ;;  %v13799_v31 = vpop.permute.xlu0 %4093 }
 0x2c8   : > { %16578 = vst [vmem:[#allocation80_spill] sm:$0xff] %v13799_v31 }
 0x2c9   : > { %6752 = vrot.lane.b32.xlu0 %v13517_v51, %s12458_s21  ;;  %v13803_v34 = vpop.permute.xlu1 %4848  ;;  %11131 = vmatmul.mubr.msk.f32.vlgmr.msra.gmra.mrb[10].mxu1 %vm4207_vm9, %v13795_v28 }
 0x2ca   : > { %16579 = vst [vmem:[#allocation81_spill] sm:$0xff] %v13803_v34  ;;  %4361 = vmatprep.mubr.f32.mxu1 %v16529_v16  ;;  %v4120_v34 = vsel %vm518_vm2, %v13718_v48, %v13799_v31 }
 0x2cb   : > { %6750 = vrot.lane.b32.xlu1 %v13505_v63, %s12458_s21  ;;  %v13815_v38 = vpop.permute.xlu0 %4101 }
 0x2cd   : > { %v13817_v33 = vpop.permute.xlu1 %4856  ;;  %6756 = vrot.lane.b32.xlu0 %v13561_v54, %s12458_s21  ;;  %11132 = vmatmul.mubr.msk.f32.gmra.mrb[12].mxu1 %vm4207_vm9, %v13811_v10 }
 0x2ce   : > { %16580 = vst [vmem:[#allocation82_spill] sm:$0xff] %v13817_v33  ;;  %4509 = vmatprep.mubr.f32.mxu1 %v16529_v16 }
 0x2cf   : > { %6754 = vrot.lane.b32.xlu1 %v13549_v18, %s12458_s21  ;;  %v13826_v8 = vpop.permute.xlu0 %4850 }
 0x2d1   : > { %v13828_v27 = vpop.permute.xlu1 %5242  ;;  %5984 = vrot.lane.b32.xlu0 %v13628_v3, %s12456_s19 }
 0x2d2   : > { %16581 = vst [vmem:[#allocation83_spill] sm:$0xff] %v13828_v27 }
 0x2d3   : > { %6758 = vrot.lane.b32.xlu1 %v13512_v26, %s12458_s21  ;;  %v13834_v52 = vpop.permute.xlu0 %4858 }
 0x2d4   : > { %16582 = vst [vmem:[#allocation84_spill] sm:$0xff] %v13834_v52 }
 0x2d5   : > { %v13836_v12 = vpop.permute.xlu1 %5250  ;;  %6760 = vrot.lane.b32.xlu0 %v13524_v24, %s12458_s21 }
 0x2d6   : > { %16583 = vst [vmem:[#allocation85_spill] sm:$0xff] %v13836_v12 }
 0x2d7   : > { %6742 = vrot.lane.b32.xlu1 %v13459_v47, %s12458_s21  ;;  %v13842_v60 = vpop.permute.xlu0 %5244 }
 0x2d8   : > { %16584 = vst [vmem:[#allocation86_spill] sm:$0xff] %v13842_v60 }
 0x2d9   : > { %v4168_v33 = vpop.permute.xlu1 %4167  ;;  %6744 = vrot.lane.b32.xlu0 %v13466_v7, %s12458_s21 }
 0x2db   : > { %6762 = vrot.lane.b32.xlu1 %v13556_v1, %s12458_s21  ;;  %v13848_v27 = vpop.permute.xlu0 %5252 }
 0x2dc   : > { %16585 = vst [vmem:[#allocation87_spill] sm:$0xff] %v13848_v27 }
 0x2dd   : > { %v13850_v52 = vpop.permute.xlu1 %4103  ;;  %6764 = vrot.lane.b32.xlu0 %v13568_v6, %s12458_s21 }
 0x2df   : > { %6766 = vrot.lane.b32.xlu1 %v13593_v29, %s12458_s21  ;;  %v4170_v12 = vpop.permute.xlu0 %4169 }
 0x2e1   : > { %v13856_v49 = vpop.permute.xlu1 %4860  ;;  %6378 = vrot.lane.b32.xlu0 %v13628_v3, %s12457_s20  ;;  %s12462_s20 = smov 17  }
 0x2e2   : > { %16586 = vst [vmem:[#allocation88_spill] sm:$0xff] %v13856_v49 }
 0x2e3   : > { %6770 = vrot.lane.b32.xlu1 %v13616_v13, %s12458_s21  ;;  %v13862_v60 = vpop.permute.xlu0 %4105 }
 0x2e5   : > { %v13864_v27 = vpop.permute.xlu1 %5254  ;;  %6768 = vrot.lane.b32.xlu0 %v13602_v41, %s12458_s21 }
 0x2e6   : > { %16587 = vst [vmem:[#allocation89_spill] sm:$0xff] %v13864_v27  ;;  %v4180_v27 = vsel %vm592_vm0, %v13710_v39, %v4166_v56 }
 0x2e7   : > { %7140 = vrot.lane.b32.xlu1 %v13483_v58, %s12459_s22  ;;  %v13870_v35 = vpop.permute.xlu0 %4862  ;;  %v4123_v58 = vsel %vm518_vm2, %v13634_v57, %v13664_v2  ;;  %v4204_v13 = vmul.f32 %v4180_v27, %v12804_v45 }
 0x2e8   : > { %16588 = vst [vmem:[#allocation90_spill] sm:$0xff] %v13870_v35  ;;  %v4178_v35 = vsel %vm592_vm0, %v4166_v56, %v4170_v12 }
 0x2e9   : > { %v4172_v59 = vpop.permute.xlu1 %4171  ;;  %7142 = vrot.lane.b32.xlu0 %v13492_v14, %s12459_s22  ;;  %v4179_v14 = vsel %vm592_vm0, %v13700_v36, %v13764_v25 }
 0x2ea   : > { %v4189_v56 = vsel %vm592_vm0, %v4172_v59, %v13624_v5 }
 0x2eb   : > { %7144 = vrot.lane.b32.xlu1 %v13505_v63, %s12459_s22  ;;  %v13876_v49 = vpop.permute.xlu0 %5256  ;;  %v4124_v63 = vsel %vm518_vm2, %v13646_v30, %v13682_v55 }
 0x2ec   : > { %16589 = vst [vmem:[#allocation91_spill] sm:$0xff] %v13876_v49  ;;  %v4175_v49 = vsel %vm592_vm0, %v4168_v33, %v4172_v59 }
 0x2ed   : > { %v13887_v41 = vpop.permute.xlu1 %5958  ;;  %7146 = vrot.lane.b32.xlu0 %v13517_v51, %s12459_s22  ;;  %v4119_v51 = vsel %vm518_vm2, %v13706_v4, %v13783_v19  ;;  %v4191_v19 = vmul.f32 %v4189_v56, %v12746_v20  ;;  %v4198_v31 = vmul.f32 %v4175_v49, %v12780_v37  ;;  %v4196_v49 = vmul.f32 %v4179_v14, %v12804_v45 }
 0x2ee   : > { %16590 = vst [vmem:[#allocation92_spill] sm:$0xff] %v13887_v41  ;;  %v4182_v41 = vsel %vm592_vm0, %v13773_v9, %v13710_v39  ;;  %v4177_v9 = vsel %vm592_vm0, %v13764_v25, %v4168_v33  ;;  %v4205_v39 = vmul.f32 %v4178_v35, %v12798_v43  ;;  %v4122_v35 = vsel %vm518_vm2, %v13682_v55, %v13718_v48 }
 0x2ef   : > { %7148 = vrot.lane.b32.xlu1 %v13549_v18, %s12459_s22  ;;  %v4174_v5 = vpop.permute.xlu0 %4173  ;;  %v4181_v25 = vsel %vm592_vm0, %v13754_v53, %v13700_v36  ;;  %v4136_v55 = vmul.f32 %v4124_v63, %v12843_v62  ;;  %v4121_v45 = vsel %vm518_vm2, %v13664_v2, %v13706_v4  ;;  %v4130_v53 = vmul.f32 %v4119_v51, %v12815_v50 }
 0x2f0   : > { %v4176_v59 = vsel %vm592_vm0, %v4170_v12, %v4174_v5  ;;  %v4190_v27 = vsel %vm592_vm0, %v4174_v5, %v13638_v32  ;;  %v4197_v32 = vmul.f32 %v4177_v9, %v12798_v43  ;;  %v11329_v14 = vpack.c.bf16 %v4204_v13, %v4196_v49 }
 0x2f1   : > { %v4199_v18 = vmul.f32 %v4190_v27, %v12746_v20  ;;  %v4206_v6 = vmul.f32 %v4176_v59, %v12780_v37  ;;  %v4108_v22 = vpop.permute.xlu1 %4107  ;;  %6772 = vrot.lane.b32.xlu0 %v13628_v3, %s12458_s21  ;;  %v4138_v20 = vmul.f32 %v4120_v34, %v12815_v50  ;;  %v4203_v37 = vmul.f32 %v4182_v41, %v12787_v40 }
 0x2f2   : > { %v4137_v41 = vmul.f32 %v4122_v35, %v12838_v61  ;;  %v4195_v43 = vmul.f32 %v4181_v25, %v12787_v40  ;;  %v4128_v63 = vmul.f32 %v4123_v58, %v12843_v62  ;;  %v4129_v2 = vmul.f32 %v4121_v45, %v12838_v61  ;;  %v16591_v25 = vld [vmem:[#allocation7_spill] sm:$0xff] }
 0x2f3   : > { %v11323_v33 = vpack.c.bf16 %v4199_v18, %v4191_v19  ;;  %7152 = vrot.lane.b32.xlu1 %v13512_v26, %s12459_s22  ;;  %v13948_v12 = vpop.permute.xlu0 %5960  ;;  %v11333_v48 = vpack.c.bf16 %v4206_v6, %v4198_v31  ;;  %v11335_v19 = vpack.c.bf16 %v4205_v39, %v4197_v32  ;;  %v11341_v6 = vpack.c.bf16 %v4138_v20, %v4130_v53 }
 0x2f4   : > { %v11331_v50 = vpack.c.bf16 %v4203_v37, %v4195_v43  ;;  %v11337_v51 = vpack.c.bf16 %v4136_v55, %v4128_v63  ;;  %v11343_v13 = vpack.c.bf16 %v4137_v41, %v4129_v2  ;;  %v4115_v61 = vsel %vm518_vm2, %v13714_v46, %v13790_v23  ;;  %v16600_v63 = vld [vmem:[#allocation66_spill] sm:$0xff] }
 0x2f5   : > { %v13958_v18 = vpop.permute.xlu1 %4864  ;;  %7150 = vrot.lane.b32.xlu0 %v13561_v54, %s12459_s22  ;;  %11324 = vmatpush1.bf16.msra.mxu0 %v11323_v33  ;;  %v4116_v58 = vsel %vm518_vm2, %v13726_v42, %v13815_v38  ;;  %v4125_v4 = vsel %vm518_vm2, %v4108_v22, %v13634_v57  ;;  %v4881_v34 = vsel %vm1295_vm3, %v13654_v0, %v13690_v17  ;;  %v16595_v33 = vld [vmem:[#allocation72_spill] sm:$0xff]  ;;  %vm9607_vm0 = vcmask 261120  }
 0x2f6   : > { %11334 = vmatprep.subr.bf16.mxu1 %v11333_v48  ;;  %11330 = vmatprep.subr.bf16.mxu0 %v11329_v14  ;;  %v4132_v56 = vmul.f32 %v4115_v61, %v12892_v44  ;;  %v4111_v5 = vsel %vm518_vm2, %v13850_v52, %v4108_v22  ;;  %v4140_v57 = vmul.f32 %v4116_v58, %v12892_v44  ;;  %v14025_v44 = vld [vmem:[%s16335_s2] sm:$0xff]  ;;  %v16602_v61 = vld [vmem:[#allocation8_spill] sm:$0xff] }
 0x2f7   : > { %11336 = vmatpush1.bf16.msra.mxu1 %v11335_v19  ;;  %7136 = vrot.lane.b32.xlu1 %v13459_v47, %s12459_s22  ;;  %v13966_v40 = vpop.permute.xlu0 %5964  ;;  %v4877_v9 = vsel %vm1295_vm3, %v13734_v21, %v13826_v8  ;;  %v4114_v39 = vsel %vm518_vm2, %v13815_v38, %v13862_v60  ;;  %v4113_v59 = vsel %vm518_vm2, %v13790_v23, %v13850_v52  ;;  %v16592_v52 = vld [vmem:[#allocation63_spill] sm:$0xff]  ;;  %v16596_v48 = vld [vmem:[#allocation9_spill] sm:$0xff] }
 0x2f8   : > { %11342 = vmatprep.subr.bf16.mxu1 %v11341_v6  ;;  %11129 = vmatmul.mubr.msk.f32.vlgmr.msra.gmra.mrb[8].mxu0 %vm4207_vm9, %v13795_v28  ;;  %v4127_v27 = vmul.f32 %v4125_v4, %v12853_v15  ;;  %v4134_v49 = vmul.f32 %v4111_v5, %v16591_v25  ;;  %v4141_v55 = vmul.f32 %v4114_v39, %v16596_v48  ;;  %v16598_v14 = vld [vmem:[#allocation65_spill] sm:$0xff] }
 0x2f9   : > { %v13970_v36 = vpop.permute.xlu1 %5258  ;;  %7154 = vrot.lane.b32.xlu0 %v13524_v24, %s12459_s22  ;;  %11332 = vmatpush1.bf16.msra.mxu0 %v11331_v50  ;;  %v16599_v19 = vld [vmem:[#allocation69_spill] sm:$0xff]  ;;  %v4879_v2 = vsel %vm1295_vm3, %v13690_v17, %v13734_v21  ;;  %v16601_v50 = vld [vmem:[#allocation79_spill] sm:$0xff]  ;;  %v11345_v21 = vpack.c.bf16 %v4140_v57, %v4132_v56 }
 0x2fa   : > { %11135 = vmatmul.mubr.msk.f32.vlgmr.msra.gmra.mrb[14].mxu1 %vm4207_vm9, %v13795_v28  ;;  %11338 = vmatprep.subr.bf16.mxu0 %v11337_v51  ;;  %v4880_v6 = vsel %vm1295_vm3, %v16600_v63, %v16599_v19  ;;  %v4117_v51 = vsel %vm518_vm2, %v16601_v50, %v13714_v46  ;;  %v4077_v17 = vld [vmem:[%s16339_s6] sm:$0xff]  ;;  %v16604_v46 = vld [vmem:[#allocation12_spill] sm:$0xff]  ;;  %v4882_v50 = vsel %vm1295_vm3, %v13958_v18, %v16600_v63 }
 0x2fb   : > { %11344 = vmatpush1.bf16.msra.mxu1 %v11343_v13  ;;  %7156 = vrot.lane.b32.xlu1 %v13556_v1, %s12459_s22  ;;  %v13982_v62 = vpop.permute.xlu0 %5968  ;;  %v4133_v13 = vmul.f32 %v4113_v59, %v16596_v48  ;;  %v4893_v39 = vmul.f32 %v4881_v34, %v16604_v46  ;;  %v4131_v56 = vmul.f32 %v4117_v51, %v16602_v61  ;;  %v4078_v48 = vld [vmem:[%s16339_s6 + $0x8] sm:$0xff] }
 0x2fc   : > { %4284 = vmatprep.mubr.f32.mxu0 %v16529_v16  ;;  %4515 = vmatprep.mubr.f32.mxu1 %v16529_v16  ;;  %v4885_v34 = vmul.f32 %v4880_v6, %v16604_v46  ;;  %v16611_v6 = vld [vmem:[#allocation88_spill] sm:$0xff] }
 0x2fd   : > { %11130 = vmatmul.mubr.msk.f32.gmra.mrb[10].mxu0 %vm4207_vm9, %v13811_v10  ;;  %v13995_v31 = vpop.permute.xlu1 %5962  ;;  %7138 = vrot.lane.b32.xlu0 %v13466_v7, %s12459_s22  ;;  %v11351_v59 = vpack.c.bf16 %v4141_v55, %v4133_v13  ;;  %v16608_v55 = vld [vmem:[#allocation90_spill] sm:$0xff]  ;;  %v16612_v13 = vld [vmem:[#allocation17_spill] sm:$0xff] }
 0x2fe   : > { %11136 = vmatmul.mubr.msk.f32.gmra.mrb[16].mxu1 %vm4207_vm9, %v13811_v10  ;;  %4432 = vmatprep.mubr.f32.mxu0 %v16529_v16 }
 0x2ff   : > { %7160 = vrot.lane.b32.xlu1 %v13593_v29, %s12459_s22  ;;  %v4110_v22 = vpop.permute.xlu0 %4109  ;;  %4669 = vmatprep.mubr.f32.mxu1 %v16529_v16 }
 0x300   : > { %v4112_v38 = vsel %vm518_vm2, %v13862_v60, %v4110_v22  ;;  %v4126_v35 = vsel %vm518_vm2, %v4110_v22, %v13646_v30  ;;  %v16593_v60 = vld [vmem:[#allocation80_spill] sm:$0xff]  ;;  %v16594_v30 = vld [vmem:[#allocation81_spill] sm:$0xff]  ;;  %v4878_v22 = vsel %vm1295_vm3, %v16599_v19, %v16595_v33 }
 0x301   : > { %v4135_v20 = vmul.f32 %v4126_v35, %v12853_v15  ;;  %v4142_v37 = vmul.f32 %v4112_v38, %v16591_v25  ;;  %11133 = vmatmul.mubr.msk.f32.vlgmr.msra.gmra.mrb[12].mxu0 %vm4207_vm9, %v13795_v28  ;;  %v14043_v23 = vpop.permute.xlu1 %5966  ;;  %7158 = vrot.lane.b32.xlu0 %v16592_v52, %s12459_s22  ;;  %v4118_v32 = vsel %vm518_vm2, %v16593_v60, %v13726_v42  ;;  %v16597_v28 = vld [vmem:[#allocation10_spill] sm:$0xff] }
 0x302   : > { %v4876_v15 = vsel %vm1295_vm3, %v16595_v33, %v16594_v30  ;;  %11139 = vmatmul.mubr.msk.f32.vlgmr.msra.gmra.mrb[10].mxu1 %vm4207_vm9, %v14025_v44  ;;  %4438 = vmatprep.mubr.f32.mxu0 %v16529_v16  ;;  %v4895_v45 = vmul.f32 %v4877_v9, %v16597_v28  ;;  %v14068_v42 = vld [vmem:[%s16335_s2 + $0x8] sm:$0xff]  ;;  %v4139_v58 = vmul.f32 %v4118_v32, %v16602_v61  ;;  %v16603_v9 = vld [vmem:[#allocation64_spill] sm:$0xff]  ;;  %v16607_v33 = vld [vmem:[#allocation75_spill] sm:$0xff] }
 0x303   : > { %v11339_v53 = vpack.c.bf16 %v4135_v20, %v4127_v27  ;;  %7164 = vrot.lane.b32.xlu1 %v16598_v14, %s12459_s22  ;;  %v14062_v41 = vpop.permute.xlu0 %5972  ;;  %4675 = vmatprep.mubr.f32.mxu1 %v16529_v16  ;;  %v11349_v43 = vpack.c.bf16 %v4142_v37, %v4134_v49  ;;  %v4887_v4 = vmul.f32 %v4876_v15, %v16597_v28  ;;  %v16606_v32 = vld [vmem:[#allocation84_spill] sm:$0xff] }
 0x304   : > { %v11347_v25 = vpack.c.bf16 %v4139_v58, %v4131_v56  ;;  %v11353_v20 = vpack.c.bf16 %v4893_v39, %v4885_v34  ;;  %v4873_v15 = vsel %vm1295_vm3, %v16607_v33, %v16606_v32  ;;  %v4871_v28 = vsel %vm1295_vm3, %v16606_v32, %v16608_v55  ;;  %v16613_v58 = vld [vmem:[#allocation86_spill] sm:$0xff]  ;;  %v16620_v32 = vld [vmem:[#allocation83_spill] sm:$0xff] }
 0x305   : > { %11134 = vmatmul.mubr.msk.f32.gmra.mrb[14].mxu0 %vm4207_vm9, %v13811_v10  ;;  %v14087_v5 = vpop.permute.xlu1 %5970  ;;  %7162 = vrot.lane.b32.xlu0 %v16603_v9, %s12459_s22  ;;  %v16605_v10 = vld [vmem:[#allocation11_spill] sm:$0xff]  ;;  %v11357_v57 = vpack.c.bf16 %v4895_v45, %v4887_v4  ;;  %v4875_v51 = vsel %vm1295_vm3, %v13826_v8, %v16607_v33  ;;  %v4897_v61 = vmul.f32 %v4873_v15, %v16612_v13  ;;  %v16614_v4 = vld [vmem:[#allocation77_spill] sm:$0xff]  ;;  %v16621_v33 = vld [vmem:[#allocation74_spill] sm:$0xff] }
 0x306   : > { %11340 = vmatpush1.bf16.msra.mxu0 %v11339_v53  ;;  %11140 = vmatmul.mubr.msk.f32.gmra.mrb[12].mxu1 %vm4207_vm9, %v14068_v42  ;;  %v4894_v27 = vmul.f32 %v4879_v2, %v16605_v10  ;;  %v4886_v35 = vmul.f32 %v4878_v22, %v16605_v10  ;;  %v16609_v53 = vld [vmem:[#allocation82_spill] sm:$0xff]  ;;  %v4868_v2 = vsel %vm1295_vm3, %v16611_v6, %v13958_v18  ;;  %v16616_v22 = vld [vmem:[#allocation13_spill] sm:$0xff] }
 0x307   : > { %11350 = vmatprep.subr.bf16.mxu1 %v11349_v43  ;;  %11346 = vmatprep.subr.bf16.mxu0 %v11345_v21  ;;  %v14103_v38 = vpop.permute.xlu0 %5956  ;;  %v16610_v43 = vld [vmem:[#allocation73_spill] sm:$0xff]  ;;  %v5271_v21 = vsel %vm1699_vm4, %v16614_v4, %v16613_v58  ;;  %v4870_v63 = vsel %vm1295_vm3, %v16609_v53, %v16611_v6  ;;  %v16617_v10 = vld [vmem:[#allocation14_spill] sm:$0xff]  ;;  %v5270_v15 = vsel %vm1699_vm4, %v16621_v33, %v16620_v32 }
 0x308   : > { %11352 = vmatpush1.bf16.msra.mxu1 %v11351_v59  ;;  %7532 = vperm.xlu1 %12297, %v4077_v17   ;;  %v11359_v37 = vpack.c.bf16 %v4894_v27, %v4886_v35  ;;  %v4872_v19 = vsel %vm1295_vm3, %v16610_v43, %v16609_v53  ;;  %v16615_v17 = vld [vmem:[#allocation16_spill] sm:$0xff]  ;;  %v4884_v59 = vmul.f32 %v4882_v50, %v16616_v22  ;;  %v14181_v35 = vld [vmem:[%s16335_s2 + $0x20] sm:$0xff]  ;;  %v16623_v50 = vld [vmem:[#allocation70_spill] sm:$0xff] }
 0x309   : > { %4592 = vmatprep.mubr.f32.mxu0 %v16529_v16  ;;  %11358 = vmatprep.subr.bf16.mxu1 %v11357_v57  ;;  %v14108_v49 = vpop.permute.xlu1 %5954  ;;  %v4898_v46 = vmul.f32 %v4871_v28, %v16615_v17  ;;  %v4891_v27 = vmul.f32 %v4868_v2, %v16617_v10  ;;  %v4890_v28 = vmul.f32 %v4870_v63, %v16615_v17 }
 0x30a   : > { %11137 = vmatmul.mubr.msk.f32.vlgmr.msra.gmra.mrb[8].mxu0 %vm4207_vm9, %v14025_v44  ;;  %4823 = vmatprep.mubr.f32.mxu1 %v16529_v16 }
 0x30b   : > { %7166 = vrot.lane.b32.xlu0 %v13628_v3, %s12459_s22  ;;  %11348 = vmatpush1.bf16.msra.mxu0 %v11347_v25  ;;  %v14115_v60 = vpop.permute.xlu0 %5976  ;;  %v16618_v25 = vld [vmem:[#allocation71_spill] sm:$0xff] }
 0x30c   : > { %11143 = vmatmul.mubr.msk.f32.vlgmr.msra.gmra.mrb[14].mxu1 %vm4207_vm9, %v14025_v44  ;;  %11354 = vmatprep.subr.bf16.mxu0 %v11353_v20  ;;  %v16619_v20 = vld [vmem:[#allocation68_spill] sm:$0xff] }
 0x30d   : > { %11360 = vmatpush1.bf16.msra.mxu1 %v11359_v37  ;;  %4598 = vmatprep.mubr.f32.mxu0 %v16529_v16  ;;  %v14131_v45 = vpop.permute.xlu1 %5974  ;;  %v4889_v37 = vmul.f32 %v4872_v19, %v16612_v13  ;;  %v16624_v19 = vld [vmem:[#allocation67_spill] sm:$0xff] }
 0x30e   : > { %11138 = vmatmul.mubr.msk.f32.gmra.mrb[10].mxu0 %vm4207_vm9, %v14068_v42  ;;  %4829 = vmatprep.mubr.f32.mxu1 %v16529_v16  ;;  %v5274_v13 = vsel %vm1699_vm4, %v16624_v19, %v16623_v50 }
 0x30f   : > { %7537 = vperm.xlu0 %12296, %v4078_v48   ;;  %4746 = vmatprep.mubr.f32.mxu0 %v16529_v16  ;;  %v4867_v18 = vpop.permute.xlu0 %4866  ;;  %v16622_v48 = vld [vmem:[#allocation18_spill] sm:$0xff] }
 0x310   : > { %11144 = vmatmul.mubr.msk.f32.gmra.mrb[16].mxu1 %vm4207_vm9, %v14068_v42  ;;  %v4869_v8 = vsel %vm1295_vm3, %v16608_v55, %v4867_v18  ;;  %v4883_v39 = vsel %vm1295_vm3, %v4867_v18, %v13654_v0  ;;  %v5275_v0 = vsel %vm1699_vm4, %v16619_v20, %v16618_v25  ;;  %v5289_v55 = vmul.f32 %v5271_v21, %v16622_v48  ;;  %v16625_v18 = vld [vmem:[#allocation15_spill] sm:$0xff] }
 0x311   : > { %v4892_v56 = vmul.f32 %v4883_v39, %v16616_v22  ;;  %v4899_v57 = vmul.f32 %v4869_v8, %v16617_v10  ;;  %5047 = vmatprep.mubr.f32.mxu1 %v16529_v16  ;;  %v14176_v34 = vpop.permute.xlu1 %5978  ;;  %v4874_v21 = vsel %vm1295_vm3, %v16594_v30, %v16610_v43  ;;  %v4896_v63 = vmul.f32 %v4875_v51, %v16625_v18  ;;  %v16626_v30 = vld [vmem:[#allocation20_spill] sm:$0xff] }
 0x312   : > { %11141 = vmatmul.mubr.msk.f32.vlgmr.msra.gmra.mrb[12].mxu0 %vm4207_vm9, %v14025_v44  ;;  %v5273_v44 = vsel %vm1699_vm4, %v16618_v25, %v16614_v4  ;;  %v5281_v17 = vmul.f32 %v5270_v15, %v16622_v48  ;;  %v11367_v8 = vpack.c.bf16 %v4898_v46, %v4890_v28  ;;  %v14221_v4 = vld [vmem:[%s16335_s2 + $0x28] sm:$0xff]  ;;  %v11361_v22 = vpack.c.bf16 %v4897_v61, %v4889_v37  ;;  %v16627_v46 = vld [vmem:[#allocation19_spill] sm:$0xff] }
 0x313   : > { %v11355_v53 = vpack.c.bf16 %v4892_v56, %v4884_v59  ;;  %4752 = vmatprep.mubr.f32.mxu0 %v16529_v16  ;;  %v14197_v6 = vpop.permute.xlu0 %5980  ;;  %v11365_v2 = vpack.c.bf16 %v4899_v57, %v4891_v27  ;;  %v5287_v43 = vmul.f32 %v5275_v0, %v16626_v30  ;;  %v5272_v51 = vsel %vm1699_vm4, %v16623_v50, %v16621_v33  ;;  %v16628_v15 = vld [vmem:[#allocation87_spill] sm:$0xff]  ;;  %v16629_v48 = vld [vmem:[#allocation78_spill] sm:$0xff]  ;;  %v16631_v50 = vld [vmem:[#allocation89_spill] sm:$0xff] }
 0x314   : > { %11147 = vmatmul.mubr.msk.f32.vlgmr.msra.gmra.mrb[10].mxu1 %vm4207_vm9, %v14181_v35  ;;  %v5288_v59 = vmul.f32 %v5273_v44, %v16627_v46  ;;  %v4888_v10 = vmul.f32 %v4874_v21, %v16625_v18  ;;  %v11373_v27 = vpack.c.bf16 %v5289_v55, %v5281_v17  ;;  %v5279_v61 = vmul.f32 %v5274_v13, %v16626_v30  ;;  %v16630_v28 = vld [vmem:[#allocation91_spill] sm:$0xff]  ;;  %v16632_v21 = vld [vmem:[#allocation85_spill] sm:$0xff]  ;;  %v16633_v18 = vld [vmem:[#allocation76_spill] sm:$0xff] }
 0x315   : > { %5053 = vmatprep.mubr.f32.mxu1 %v16529_v16  ;;  %v14216_v39 = vpop.permute.xlu1 %5982  ;;  %11356 = vmatpush1.bf16.msra.mxu0 %v11355_v53  ;;  %v5280_v57 = vmul.f32 %v5272_v51, %v16627_v46  ;;  %v5267_v55 = vsel %vm1699_vm4, %v16629_v48, %v16628_v15  ;;  %v5265_v53 = vsel %vm1699_vm4, %v16628_v15, %v16630_v28  ;;  %v16634_v17 = vld [vmem:[#allocation25_spill] sm:$0xff] }
 0x316   : > { %11142 = vmatmul.mubr.msk.f32.gmra.mrb[14].mxu0 %vm4207_vm9, %v14068_v42  ;;  %11366 = vmatprep.subr.bf16.mxu1 %v11365_v2  ;;  %v11363_v42 = vpack.c.bf16 %v4896_v63, %v4888_v10  ;;  %v11369_v0 = vpack.c.bf16 %v5287_v43, %v5279_v61  ;;  %v5262_v13 = vsel %vm1699_vm4, %v16631_v50, %v13970_v36  ;;  %v16635_v43 = vld [vmem:[#allocation24_spill] sm:$0xff]  ;;  %v16636_v46 = vld [vmem:[#allocation21_spill] sm:$0xff]  ;;  %v16637_v10 = vld [vmem:[#allocation22_spill] sm:$0xff] }
 0x317   : > { %11362 = vmatprep.subr.bf16.mxu0 %v11361_v22  ;;  %11368 = vmatpush1.bf16.msra.mxu1 %v11367_v8  ;;  %v14232_v56 = vpop.permute.xlu0 %6354  ;;  %v11375_v37 = vpack.c.bf16 %v5288_v59, %v5280_v57  ;;  %v5276_v44 = vsel %vm1699_vm4, %v13970_v36, %v16624_v19  ;;  %v5266_v63 = vsel %vm1699_vm4, %v16633_v18, %v16632_v21 }
 0x318   : > { %11148 = vmatmul.mubr.msk.f32.gmra.mrb[12].mxu1 %vm4207_vm9, %v14221_v4  ;;  %4970 = vmatprep.mubr.f32.mxu0 %v16529_v16  ;;  %v5291_v8 = vmul.f32 %v5267_v55, %v16634_v17  ;;  %v5264_v30 = vsel %vm1699_vm4, %v16632_v21, %v16631_v50  ;;  %v5292_v36 = vmul.f32 %v5265_v53, %v16635_v43 }
 0x319   : > { %11374 = vmatprep.subr.bf16.mxu1 %v11373_v27  ;;  %5201 = vmatprep.mubr.f32.mxu1 %v16529_v16  ;;  %v14240_v25 = vpop.permute.xlu1 %6352  ;;  %v5278_v59 = vmul.f32 %v5276_v44, %v16636_v46  ;;  %v5285_v27 = vmul.f32 %v5262_v13, %v16637_v10  ;;  %v5284_v15 = vmul.f32 %v5264_v30, %v16635_v43  ;;  %v4066_v44 = vld [vmem:[%s16335_s2 + $0x38] sm:$0xff]  ;;  %v16641_v30 = vld [vmem:[#allocation59_spill] sm:$0xff] }
 0x31a   : > { %11145 = vmatmul.mubr.msk.f32.vlgmr.msra.gmra.mrb[8].mxu0 %vm4207_vm9, %v14181_v35  ;;  %v5268_v50 = vsel %vm1699_vm4, %v16620_v32, %v16633_v18  ;;  %v16639_v18 = vld [vmem:[#allocation62_spill] sm:$0xff] }
 0x31b   : > { %11364 = vmatpush1.bf16.msra.mxu0 %v11363_v42  ;;  %4976 = vmatprep.mubr.f32.mxu0 %v16529_v16  ;;  %v14245_v33 = vpop.permute.xlu0 %6358 }
 0x31c   : > { %11151 = vmatmul.mubr.msk.f32.vlgmr.msra.gmra.mrb[14].mxu1 %vm4207_vm9, %v14181_v35  ;;  %11370 = vmatprep.subr.bf16.mxu0 %v11369_v0  ;;  %v4065_v0 = vld [vmem:[%s16335_s2 + $0x30] sm:$0xff] }
 0x31d   : > { %11376 = vmatpush1.bf16.msra.mxu1 %v11375_v37  ;;  %5207 = vmatprep.mubr.f32.mxu1 %v16529_v16  ;;  %v14258_v2 = vpop.permute.xlu1 %6356  ;;  %v5283_v37 = vmul.f32 %v5266_v63, %v16634_v17  ;;  %v11389_v63 = vpack.c.bf16 %v13561_v54, %v16639_v18  ;;  %v16643_v54 = vld [vmem:[#allocation61_spill] sm:$0xff] }
 0x31e   : > { %11146 = vmatmul.mubr.msk.f32.gmra.mrb[10].mxu0 %vm4207_vm9, %v14221_v4 }
 0x31f   : > { %5124 = vmatprep.mubr.f32.mxu0 %v16529_v16  ;;  %v5261_v22 = vpop.permute.xlu0 %5260  ;;  %v11377_v21 = vpack.c.bf16 %v5291_v8, %v5283_v37  ;;  %v14370_v37 = vld [vmem:[%s16335_s2 + $0x40] sm:$0xff] }
 0x320   : > { %11152 = vmatmul.mubr.msk.f32.gmra.mrb[16].mxu1 %vm4207_vm9, %v14221_v4  ;;  %v5263_v19 = vsel %vm1699_vm4, %v16630_v28, %v5261_v22  ;;  %v5277_v51 = vsel %vm1699_vm4, %v5261_v22, %v16619_v20  ;;  %v5269_v20 = vsel %vm1699_vm4, %v16613_v58, %v16629_v48  ;;  %v16638_v58 = vld [vmem:[#allocation23_spill] sm:$0xff] }
 0x321   : > { %v5286_v61 = vmul.f32 %v5277_v51, %v16636_v46  ;;  %v5293_v57 = vmul.f32 %v5263_v19, %v16637_v10  ;;  %5441 = vmatprep.mubr.f32.mxu1 %v16529_v16  ;;  %v14294_v42 = vpop.permute.xlu1 %6360  ;;  %v5290_v48 = vmul.f32 %v5269_v20, %v16638_v58  ;;  %v5282_v32 = vmul.f32 %v5268_v50, %v16638_v58 }
 0x322   : > { %11149 = vmatmul.mubr.msk.f32.vlgmr.msra.gmra.mrb[12].mxu0 %vm4207_vm9, %v14181_v35  ;;  %v11383_v35 = vpack.c.bf16 %v5292_v36, %v5284_v15  ;;  %v16642_v36 = vld [vmem:[#allocation60_spill] sm:$0xff]  ;;  %v11397_v46 = vpack.c.bf16 %v13628_v3, %v16598_v14  ;;  %v16644_v14 = vld [vmem:[#allocation26_spill] sm:$0xff] }
 0x323   : > { %v11371_v55 = vpack.c.bf16 %v5286_v61, %v5278_v59  ;;  %5130 = vmatprep.mubr.f32.mxu0 %v16529_v16  ;;  %v14308_v28 = vpop.permute.xlu0 %6362  ;;  %v11381_v53 = vpack.c.bf16 %v5293_v57, %v5285_v27  ;;  %v11379_v22 = vpack.c.bf16 %v5290_v48, %v5282_v32  ;;  %v11391_v19 = vpack.c.bf16 %v16643_v54, %v16642_v36  ;;  %v16647_v48 = vld [vmem:[#allocation28_spill] sm:$0xff] }
 0x324   : > { %11155 = vmatmul.mubr.msk.f32.vlgmr.msra.gmra.mrb[10].mxu1 %vm4207_vm9, %v4065_v0  ;;  %v5992_v59 = vsel %vm2433_vm5, %v14043_v23, %v14087_v5  ;;  %v5993_v27 = vsel %vm2433_vm5, %v13982_v62, %v14062_v41  ;;  %v11387_v57 = vpack.c.bf16 %v13466_v7, %v13459_v47  ;;  %v11399_v7 = vpack.c.bf16 %v16603_v9, %v13593_v29  ;;  %v14401_v9 = vld [vmem:[%s16335_s2 + $0x48] sm:$0xff] }
 0x325   : > { %5447 = vmatprep.mubr.f32.mxu1 %v16529_v16  ;;  %v14317_v13 = vpop.permute.xlu1 %6364  ;;  %11372 = vmatpush1.bf16.msra.mxu0 %v11371_v55  ;;  %v6005_v61 = vmul.f32 %v5992_v59, %v16644_v14  ;;  %v6013_v15 = vmul.f32 %v5993_v27, %v16644_v14  ;;  %v11393_v55 = vpack.c.bf16 %v16592_v52, %v13556_v1 }
 0x326   : > { %11150 = vmatmul.mubr.msk.f32.gmra.mrb[14].mxu0 %vm4207_vm9, %v14221_v4  ;;  %11382 = vmatprep.subr.bf16.mxu1 %v11381_v53  ;;  %v16640_v4 = vld [vmem:[#allocation58_spill] sm:$0xff]  ;;  %v16645_v53 = vld [vmem:[#allocation92_spill] sm:$0xff]  ;;  %v5997_v52 = vsel %vm2433_vm5, %v13948_v12, %v13966_v40  ;;  %v5988_v36 = vsel %vm2433_vm5, %v14131_v45, %v14176_v34  ;;  %v5990_v59 = vsel %vm2433_vm5, %v14087_v5, %v14131_v45 }
 0x327   : > { %11378 = vmatprep.subr.bf16.mxu0 %v11377_v21  ;;  %11384 = vmatpush1.bf16.msra.mxu1 %v11383_v35  ;;  %v14327_v17 = vpop.permute.xlu0 %6366  ;;  %v11385_v43 = vpack.c.bf16 %v16641_v30, %v16640_v4  ;;  %v5996_v47 = vsel %vm2433_vm5, %v16645_v53, %v13995_v31  ;;  %v11405_v1 = vpack.c.bf16 %v6013_v15, %v6005_v61  ;;  %v16648_v30 = vld [vmem:[#allocation29_spill] sm:$0xff]  ;;  %v14481_v15 = vld [vmem:[%s16335_s2 + $0x50] sm:$0xff] }
 0x328   : > { %11156 = vmatmul.mubr.msk.f32.gmra.mrb[12].mxu1 %vm4207_vm9, %v4066_v44  ;;  %5364 = vmatprep.mubr.f32.mxu0 %v16529_v16  ;;  %v5989_v4 = vsel %vm2433_vm5, %v14115_v60, %v14197_v6  ;;  %v5986_v27 = vsel %vm2433_vm5, %v14176_v34, %v14216_v39  ;;  %v6390_v45 = vsel %vm2837_vm6, %v14240_v25, %v14258_v2 }
 0x329   : > { %11390 = vmatprep.subr.bf16.mxu1 %v11389_v63  ;;  %5595 = vmatprep.mubr.f32.mxu1 %v16529_v16  ;;  %v14332_v8 = vpop.permute.xlu1 %6348 }
 0x32a   : > { %11153 = vmatmul.mubr.msk.f32.vlgmr.msra.gmra.mrb[8].mxu0 %vm4207_vm9, %v4065_v0 }
 0x32b   : > { %11380 = vmatpush1.bf16.msra.mxu0 %v11379_v22  ;;  %5370 = vmatprep.mubr.f32.mxu0 %v16529_v16  ;;  %v14340_v51 = vpop.permute.xlu0 %6350 }
 0x32c   : > { %11159 = vmatmul.mubr.msk.f32.vlgmr.msra.gmra.mrb[14].mxu1 %vm4207_vm9, %v4065_v0  ;;  %11386 = vmatprep.subr.bf16.mxu0 %v11385_v43 }
 0x32d   : > { %11392 = vmatpush1.bf16.msra.mxu1 %v11391_v19  ;;  %5601 = vmatprep.mubr.f32.mxu1 %v16529_v16  ;;  %v14350_v10 = vpop.permute.xlu1 %6368  ;;  %v16649_v19 = vld [vmem:[#allocation31_spill] sm:$0xff] }
 0x32e   : > { %11398 = vmatprep.subr.bf16.mxu1 %v11397_v46  ;;  %11154 = vmatmul.mubr.msk.f32.gmra.mrb[10].mxu0 %vm4207_vm9, %v4066_v44  ;;  %v6015_v46 = vmul.f32 %v5989_v4, %v16649_v19  ;;  %v6007_v61 = vmul.f32 %v5988_v36, %v16649_v19 }
 0x32f   : > { %5518 = vmatprep.mubr.f32.mxu0 %v16529_v16  ;;  %v14358_v3 = vpop.permute.xlu0 %6370 }
 0x330   : > { %11160 = vmatmul.mubr.msk.f32.gmra.mrb[16].mxu1 %vm4207_vm9, %v4066_v44 }
 0x331   : > { %5771 = vmatprep.mubr.f32.mxu1 %v16529_v16  ;;  %v14365_v20 = vpop.permute.xlu1 %6372 }
 0x332   : > { %11157 = vmatmul.mubr.msk.f32.vlgmr.msra.gmra.mrb[12].mxu0 %vm4207_vm9, %v4065_v0  ;;  %v5994_v0 = vsel %vm2433_vm5, %v13995_v31, %v14043_v23  ;;  %v5995_v31 = vsel %vm2433_vm5, %v13966_v40, %v13982_v62  ;;  %v16646_v23 = vld [vmem:[#allocation27_spill] sm:$0xff]  ;;  %v11395_v40 = vpack.c.bf16 %v13524_v24, %v13512_v26  ;;  %v5999_v24 = vsel %vm2433_vm5, %v14103_v38, %v13948_v12 }
 0x333   : > { %11388 = vmatpush1.bf16.msra.mxu0 %v11387_v57  ;;  %5524 = vmatprep.mubr.f32.mxu0 %v16529_v16  ;;  %v14383_v50 = vpop.permute.xlu0 %6374  ;;  %v6003_v58 = vmul.f32 %v5996_v47, %v16646_v23  ;;  %v6004_v35 = vmul.f32 %v5994_v0, %v16647_v48  ;;  %v6011_v32 = vmul.f32 %v5997_v52, %v16646_v23  ;;  %v16652_v0 = vld [vmem:[#allocation30_spill] sm:$0xff] }
 0x334   : > { %11163 = vmatmul.mubr.msk.f32.vlgmr.msra.gmra.mrb[10].mxu1 %vm4207_vm9, %v14370_v37  ;;  %11394 = vmatprep.subr.bf16.mxu0 %v11393_v55  ;;  %v6012_v18 = vmul.f32 %v5995_v31, %v16647_v48  ;;  %v6010_v12 = vmul.f32 %v5999_v24, %v16648_v30  ;;  %v6000_v57 = vsel %vm2433_vm5, %v14216_v39, %v14108_v49  ;;  %v16650_v39 = vld [vmem:[#allocation33_spill] sm:$0xff]  ;;  %v16653_v31 = vld [vmem:[#allocation35_spill] sm:$0xff] }
 0x335   : > { %11400 = vmatpush1.bf16.msra.mxu1 %v11399_v7  ;;  %5777 = vmatprep.mubr.f32.mxu1 %v16529_v16  ;;  %v14396_v29 = vpop.permute.xlu1 %6376  ;;  %v11401_v63 = vpack.c.bf16 %v6011_v32, %v6003_v58  ;;  %v6006_v55 = vmul.f32 %v5990_v59, %v16650_v39  ;;  %v11409_v7 = vpack.c.bf16 %v6015_v46, %v6007_v61 }
 0x336   : > { %11406 = vmatprep.subr.bf16.mxu1 %v11405_v1  ;;  %11158 = vmatmul.mubr.msk.f32.gmra.mrb[14].mxu0 %vm4207_vm9, %v4066_v44  ;;  %v5998_v44 = vsel %vm2433_vm5, %v14108_v49, %v16645_v53  ;;  %v11407_v22 = vpack.c.bf16 %v6012_v18, %v6004_v35  ;;  %v5991_v49 = vsel %vm2433_vm5, %v14062_v41, %v14115_v60  ;;  %v16651_v53 = vld [vmem:[#allocation32_spill] sm:$0xff] }
 0x337   : > { %5694 = vmatprep.mubr.f32.mxu0 %v16529_v16  ;;  %v14411_v21 = vpop.permute.xlu0 %6748  ;;  %v6002_v43 = vmul.f32 %v5998_v44, %v16648_v30  ;;  %v6008_v47 = vmul.f32 %v5986_v27, %v16651_v53  ;;  %v6009_v1 = vmul.f32 %v6000_v57, %v16652_v0  ;;  %v6391_v52 = vsel %vm2837_vm6, %v14232_v56, %v14245_v33  ;;  %v16655_v30 = vld [vmem:[#allocation36_spill] sm:$0xff]  ;;  %v16656_v57 = vld [vmem:[#allocation37_spill] sm:$0xff] }
 0x338   : > { %11164 = vmatmul.mubr.msk.f32.gmra.mrb[12].mxu1 %vm4207_vm9, %v14401_v9  ;;  %v6387_v41 = vsel %vm2837_vm6, %v14308_v28, %v14327_v17  ;;  %v6397_v23 = vmul.f32 %v6390_v45, %v16653_v31  ;;  %v6389_v48 = vsel %vm2837_vm6, %v14245_v33, %v14308_v28  ;;  %v6386_v35 = vsel %vm2837_vm6, %v14294_v42, %v14317_v13  ;;  %v16654_v28 = vld [vmem:[#allocation34_spill] sm:$0xff] }
 0x339   : > { %5925 = vmatprep.mubr.f32.mxu1 %v16529_v16  ;;  %v14420_v62 = vpop.permute.xlu1 %6746  ;;  %v11403_v5 = vpack.c.bf16 %v6010_v12, %v6002_v43  ;;  %v6014_v33 = vmul.f32 %v5991_v49, %v16650_v39  ;;  %v6405_v44 = vmul.f32 %v6391_v52, %v16653_v31  ;;  %v6406_v43 = vmul.f32 %v6389_v48, %v16655_v30  ;;  %v16657_v39 = vld [vmem:[#allocation39_spill] sm:$0xff] }
 0x33a   : > { %11161 = vmatmul.mubr.msk.f32.vlgmr.msra.gmra.mrb[8].mxu0 %vm4207_vm9, %v14370_v37  ;;  %v6399_v36 = vmul.f32 %v6386_v35, %v16654_v28  ;;  %v6383_v59 = vsel %vm2837_vm6, %v14358_v3, %v14383_v50  ;;  %v6382_v45 = vsel %vm2837_vm6, %v14350_v10, %v14365_v20  ;;  %v6394_v52 = vsel %vm2837_vm6, %v14396_v29, %v14332_v8 }
 0x33b   : > { %11396 = vmatpush1.bf16.msra.mxu0 %v11395_v40  ;;  %5700 = vmatprep.mubr.f32.mxu0 %v16529_v16  ;;  %v14433_v26 = vpop.permute.xlu0 %6752  ;;  %v6407_v40 = vmul.f32 %v6387_v41, %v16654_v28  ;;  %v11417_v46 = vpack.c.bf16 %v6405_v44, %v6397_v23  ;;  %v16660_v23 = vld [vmem:[#allocation38_spill] sm:$0xff] }
 0x33c   : > { %11167 = vmatmul.mubr.msk.f32.vlgmr.msra.gmra.mrb[14].mxu1 %vm4207_vm9, %v14370_v37  ;;  %11402 = vmatprep.subr.bf16.mxu0 %v11401_v63  ;;  %v6388_v63 = vsel %vm2837_vm6, %v14258_v2, %v14294_v42  ;;  %v6393_v42 = vsel %vm2837_vm6, %v14340_v51, %v14232_v56  ;;  %v6392_v56 = vsel %vm2837_vm6, %v14332_v8, %v14240_v25  ;;  %v14609_v8 = vld [vmem:[%s16335_s2 + $0x60] sm:$0xff]  ;;  %v16662_v44 = vld [vmem:[#allocation42_spill] sm:$0xff] }
 0x33d   : > { %11408 = vmatpush1.bf16.msra.mxu1 %v11407_v22  ;;  %v14446_v54 = vpop.permute.xlu1 %6750  ;;  %5931 = vmatprep.mubr.f32.mxu1 %v16529_v16  ;;  %v6398_v2 = vmul.f32 %v6388_v63, %v16655_v30  ;;  %v11421_v12 = vpack.c.bf16 %v6407_v40, %v6399_v36  ;;  %v6396_v25 = vmul.f32 %v6392_v56, %v16656_v57 }
 0x33e   : > { %11162 = vmatmul.mubr.msk.f32.gmra.mrb[10].mxu0 %vm4207_vm9, %v14401_v9  ;;  %v6785_v35 = vsel %vm3241_vm7, %v14411_v21, %v14433_v26 }
 0x33f   : > { %5848 = vmatprep.mubr.f32.mxu0 %v16529_v16  ;;  %v14462_v14 = vpop.permute.xlu0 %6756  ;;  %v11423_v61 = vpack.c.bf16 %v6406_v43, %v6398_v2 }
 0x340   : > { %11168 = vmatmul.mubr.msk.f32.gmra.mrb[16].mxu1 %vm4207_vm9, %v14401_v9 }
 0x341   : > { %v14475_v34 = vpop.permute.xlu1 %6754  ;;  %6165 = vmatprep.mubr.f32.mxu1 %v16529_v16 }
 0x342   : > { %11165 = vmatmul.mubr.msk.f32.vlgmr.msra.gmra.mrb[12].mxu0 %vm4207_vm9, %v14370_v37  ;;  %v6782_v40 = vsel %vm3241_vm7, %v14446_v54, %v14475_v34 }
 0x343   : > { %11404 = vmatpush1.bf16.msra.mxu0 %v11403_v5  ;;  %5854 = vmatprep.mubr.f32.mxu0 %v16529_v16  ;;  %v5985_v60 = vpop.permute.xlu0 %5984  ;;  %v6404_v5 = vmul.f32 %v6393_v42, %v16656_v57 }
 0x344   : > { %11410 = vmatprep.subr.bf16.mxu0 %v11409_v7  ;;  %v5987_v37 = vsel %vm2433_vm5, %v14197_v6, %v5985_v60  ;;  %v6001_v58 = vsel %vm2433_vm5, %v5985_v60, %v14103_v38  ;;  %11171 = vmatmul.mubr.msk.f32.vlgmr.msra.gmra.mrb[10].mxu1 %vm4207_vm9, %v14481_v15  ;;  %v14526_v38 = vld [vmem:[%s16335_s2 + $0x58] sm:$0xff]  ;;  %v6401_v7 = vmul.f32 %v6382_v45, %v16657_v39 }
 0x345   : > { %v6016_v32 = vmul.f32 %v5987_v37, %v16651_v53  ;;  %v6017_v6 = vmul.f32 %v6001_v58, %v16652_v0  ;;  %v14520_v18 = vpop.permute.xlu1 %6758  ;;  %6171 = vmatprep.mubr.f32.mxu1 %v16529_v16  ;;  %v11419_v0 = vpack.c.bf16 %v6404_v5, %v6396_v25  ;;  %v6784_v60 = vsel %vm3241_vm7, %v14420_v62, %v14446_v54  ;;  %v16664_v5 = vld [vmem:[#allocation45_spill] sm:$0xff]  ;;  %v16665_v25 = vld [vmem:[#allocation47_spill] sm:$0xff] }
 0x346   : > { %11166 = vmatmul.mubr.msk.f32.gmra.mrb[14].mxu0 %vm4207_vm9, %v14401_v9  ;;  %v11411_v9 = vpack.c.bf16 %v6014_v33, %v6006_v55  ;;  %v6409_v55 = vmul.f32 %v6383_v59, %v16657_v39  ;;  %v6403_v37 = vmul.f32 %v6394_v52, %v16660_v23 }
 0x347   : > { %v11415_v22 = vpack.c.bf16 %v6016_v32, %v6008_v47  ;;  %6088 = vmatprep.mubr.f32.mxu0 %v16529_v16  ;;  %v14538_v4 = vpop.permute.xlu0 %6760  ;;  %v11413_v24 = vpack.c.bf16 %v6017_v6, %v6009_v1  ;;  %v6385_v47 = vsel %vm2837_vm6, %v14327_v17, %v14358_v3  ;;  %v6380_v1 = vsel %vm2837_vm6, %v14365_v20, %v14396_v29  ;;  %v16658_v20 = vld [vmem:[#allocation41_spill] sm:$0xff] }
 0x348   : > { %11172 = vmatmul.mubr.msk.f32.gmra.mrb[12].mxu1 %vm4207_vm9, %v14526_v38  ;;  %v6384_v17 = vsel %vm2837_vm6, %v14317_v13, %v14350_v10  ;;  %v11425_v3 = vpack.c.bf16 %v6409_v55, %v6401_v7  ;;  %v6408_v29 = vmul.f32 %v6385_v47, %v16658_v20  ;;  %v6781_v13 = vsel %vm3241_vm7, %v14462_v14, %v14538_v4 }
 0x349   : > { %v14544_v19 = vpop.permute.xlu1 %6742  ;;  %11414 = vmatprep.subr.bf16.mxu1 %v11413_v24  ;;  %6319 = vmatprep.mubr.f32.mxu1 %v16529_v16  ;;  %v6780_v32 = vsel %vm3241_vm7, %v14475_v34, %v14520_v18  ;;  %v6801_v63 = vmul.f32 %v6781_v13, %v16662_v44  ;;  %v6400_v24 = vmul.f32 %v6384_v17, %v16658_v20  ;;  %v16667_v13 = vld [vmem:[#allocation48_spill] sm:$0xff] }
 0x34a   : > { %11169 = vmatmul.mubr.msk.f32.vlgmr.msra.gmra.mrb[8].mxu0 %vm4207_vm9, %v14481_v15  ;;  %11416 = vmatpush1.bf16.msra.mxu1 %v11415_v22  ;;  %v14653_v22 = vld [vmem:[%s16335_s2 + $0x68] sm:$0xff]  ;;  %v6783_v34 = vsel %vm3241_vm7, %v14433_v26, %v14462_v14 }
 0x34b   : > { %11412 = vmatpush1.bf16.msra.mxu0 %v11411_v9  ;;  %6094 = vmatprep.mubr.f32.mxu0 %v16529_v16  ;;  %v14559_v27 = vpop.permute.xlu0 %6744  ;;  %v11427_v9 = vpack.c.bf16 %v6408_v29, %v6400_v24  ;;  %v16666_v29 = vld [vmem:[#allocation49_spill] sm:$0xff] }
 0x34c   : > { %11418 = vmatprep.subr.bf16.mxu0 %v11417_v46  ;;  %11422 = vmatprep.subr.bf16.mxu1 %v11421_v12  ;;  %v16663_v46 = vld [vmem:[#allocation44_spill] sm:$0xff]  ;;  %v6787_v12 = vsel %vm3241_vm7, %v14559_v27, %v14411_v21  ;;  %v6786_v21 = vsel %vm3241_vm7, %v14544_v19, %v14420_v62 }
 0x34d   : > { %v14570_v49 = vpop.permute.xlu1 %6762  ;;  %11175 = vmatmul.mubr.msk.f32.vlgmr.msra.gmra.mrb[14].mxu1 %vm4207_vm9, %v14481_v15  ;;  %v6792_v2 = vmul.f32 %v6782_v40, %v16663_v46  ;;  %v6800_v59 = vmul.f32 %v6783_v34, %v16663_v46  ;;  %v6798_v45 = vmul.f32 %v6787_v12, %v16664_v5  ;;  %v6790_v62 = vmul.f32 %v6786_v21, %v16664_v5 }
 0x34e   : > { %11170 = vmatmul.mubr.msk.f32.gmra.mrb[10].mxu0 %vm4207_vm9, %v14526_v38  ;;  %11424 = vmatpush1.bf16.msra.mxu1 %v11423_v61 }
 0x34f   : > { %6242 = vmatprep.mubr.f32.mxu0 %v16529_v16  ;;  %v14579_v53 = vpop.permute.xlu0 %6764  ;;  %6325 = vmatprep.mubr.f32.mxu1 %v16529_v16  ;;  %v11439_v57 = vpack.c.bf16 %v6800_v59, %v6792_v2  ;;  %v11435_v52 = vpack.c.bf16 %v6798_v45, %v6790_v62 }
 0x351   : > { %v14595_v41 = vpop.permute.xlu1 %6766  ;;  %11176 = vmatmul.mubr.msk.f32.gmra.mrb[16].mxu1 %vm4207_vm9, %v14526_v38 }
 0x352   : > { %11173 = vmatmul.mubr.msk.f32.vlgmr.msra.gmra.mrb[12].mxu0 %vm4207_vm9, %v14481_v15  ;;  %6559 = vmatprep.mubr.f32.mxu1 %v16529_v16  ;;  %v16659_v15 = vld [vmem:[#allocation40_spill] sm:$0xff]  ;;  %v6776_v39 = vsel %vm3241_vm7, %v14570_v49, %v14595_v41 }
 0x353   : > { %11420 = vmatpush1.bf16.msra.mxu0 %v11419_v0  ;;  %6248 = vmatprep.mubr.f32.mxu0 %v16529_v16  ;;  %v6379_v10 = vpop.permute.xlu0 %6378  ;;  %v6402_v31 = vmul.f32 %v6380_v1, %v16659_v15  ;;  %v6779_v0 = vsel %vm3241_vm7, %v14538_v4, %v14579_v53  ;;  %v6795_v1 = vmul.f32 %v6776_v39, %v16665_v25 }
 0x354   : > { %11426 = vmatprep.subr.bf16.mxu0 %v11425_v3  ;;  %v6381_v58 = vsel %vm2837_vm6, %v14383_v50, %v6379_v10  ;;  %v6395_v48 = vsel %vm2837_vm6, %v6379_v10, %v14340_v51  ;;  %v16661_v50 = vld [vmem:[#allocation43_spill] sm:$0xff] }
 0x355   : > { %v6410_v6 = vmul.f32 %v6381_v58, %v16659_v15  ;;  %v6411_v33 = vmul.f32 %v6395_v48, %v16660_v23  ;;  %v6771_v28 = vpop.permute.xlu1 %6770  ;;  %11179 = vmatmul.mubr.msk.f32.vlgmr.msra.gmra.mrb[10].mxu1 %vm4207_vm9, %v14609_v8  ;;  %v6791_v51 = vmul.f32 %v6784_v60, %v16661_v50  ;;  %v6799_v54 = vmul.f32 %v6785_v35, %v16661_v50  ;;  %v16668_v15 = vld [vmem:[#allocation46_spill] sm:$0xff]  ;;  %v16669_v35 = vld [vmem:[#allocation51_spill] sm:$0xff] }
 0x356   : > { %11174 = vmatmul.mubr.msk.f32.gmra.mrb[14].mxu0 %vm4207_vm9, %v14526_v38  ;;  %6565 = vmatprep.mubr.f32.mxu1 %v16529_v16  ;;  %v6793_v38 = vmul.f32 %v6780_v32, %v16662_v44  ;;  %v6774_v17 = vsel %vm3241_vm7, %v14595_v41, %v6771_v28  ;;  %v6788_v20 = vsel %vm3241_vm7, %v6771_v28, %v14544_v19  ;;  %v4074_v28 = vld [vmem:[%s16335_s2 + $0x78] sm:$0xff] }
 0x357   : > { %v11431_v30 = vpack.c.bf16 %v6410_v6, %v6402_v31  ;;  %6482 = vmatprep.mubr.f32.mxu0 %v16529_v16  ;;  %v6769_v43 = vpop.permute.xlu0 %6768  ;;  %v11429_v36 = vpack.c.bf16 %v6411_v33, %v6403_v37  ;;  %v11433_v26 = vpack.c.bf16 %v6799_v54, %v6791_v51  ;;  %v6802_v60 = vmul.f32 %v6779_v0, %v16666_v29  ;;  %v16670_v54 = vld [vmem:[#allocation50_spill] sm:$0xff] }
 0x358   : > { %v11437_v14 = vpack.c.bf16 %v6801_v63, %v6793_v38  ;;  %v6777_v61 = vsel %vm3241_vm7, %v14579_v53, %v6769_v43  ;;  %v6778_v53 = vsel %vm3241_vm7, %v14520_v18, %v14570_v49  ;;  %v6796_v10 = vmul.f32 %v6774_v17, %v16667_v13  ;;  %v16671_v38 = vld [vmem:[#allocation52_spill] sm:$0xff]  ;;  %v16673_v17 = vld [vmem:[#allocation55_spill] sm:$0xff] }
 0x359   : > { %v14664_v42 = vpop.permute.xlu1 %7140  ;;  %11180 = vmatmul.mubr.msk.f32.gmra.mrb[12].mxu1 %vm4207_vm9, %v14653_v22  ;;  %11430 = vmatprep.subr.bf16.mxu1 %v11429_v36  ;;  %v6803_v47 = vmul.f32 %v6777_v61, %v16665_v25  ;;  %v6797_v31 = vmul.f32 %v6788_v20, %v16668_v15  ;;  %v16674_v20 = vld [vmem:[#allocation56_spill] sm:$0xff] }
 0x35a   : > { %11177 = vmatmul.mubr.msk.f32.vlgmr.msra.gmra.mrb[8].mxu0 %vm4207_vm9, %v14609_v8  ;;  %11432 = vmatpush1.bf16.msra.mxu1 %v11431_v30 }
 0x35b   : > { %11428 = vmatpush1.bf16.msra.mxu0 %v11427_v9  ;;  %6488 = vmatprep.mubr.f32.mxu0 %v16529_v16  ;;  %v14679_v56 = vpop.permute.xlu0 %7142  ;;  %v11441_v4 = vpack.c.bf16 %v6803_v47, %v6795_v1 }
 0x35c   : > { %11434 = vmatprep.subr.bf16.mxu0 %v11433_v26  ;;  %11438 = vmatprep.subr.bf16.mxu1 %v11437_v14 }
 0x35d   : > { %6713 = vmatprep.mubr.f32.mxu1 %v16529_v16  ;;  %v7145_v55 = vpop.permute.xlu1 %7144 }
 0x35e   : > { %11178 = vmatmul.mubr.msk.f32.gmra.mrb[10].mxu0 %vm4207_vm9, %v14653_v22  ;;  %11183 = vmatmul.mubr.msk.f32.vlgmr.msra.gmra.mrb[14].mxu1 %vm4207_vm9, %v14609_v8  ;;  %v7178_v23 = vsel %vm3645_vm8, %v14664_v42, %v7145_v55 }
 0x35f   : > { %11440 = vmatpush1.bf16.msra.mxu1 %v11439_v57  ;;  %6636 = vmatprep.mubr.f32.mxu0 %v16529_v16  ;;  %v7147_v7 = vpop.permute.xlu0 %7146  ;;  %v7185_v51 = vmul.f32 %v7178_v23, %v16669_v35  ;;  %v16672_v57 = vld [vmem:[#allocation53_spill] sm:$0xff] }
 0x360   : > { %6719 = vmatprep.mubr.f32.mxu1 %v16529_v16  ;;  %v7179_v41 = vsel %vm3645_vm8, %v14679_v56, %v7147_v7 }
 0x361   : > { %v7149_v3 = vpop.permute.xlu1 %7148  ;;  %v7193_v32 = vmul.f32 %v7179_v41, %v16669_v35 }
 0x362   : > { %11181 = vmatmul.mubr.msk.f32.vlgmr.msra.gmra.mrb[12].mxu0 %vm4207_vm9, %v14609_v8  ;;  %11184 = vmatmul.mubr.msk.f32.gmra.mrb[16].mxu1 %vm4207_vm9, %v14653_v22  ;;  %v4073_v8 = vld [vmem:[%s16335_s2 + $0x70] sm:$0xff] }
 0x363   : > { %11436 = vmatpush1.bf16.msra.mxu0 %v11435_v52  ;;  %6642 = vmatprep.mubr.f32.mxu0 %v16529_v16  ;;  %v6773_v19 = vpop.permute.xlu0 %6772  ;;  %v11449_v24 = vpack.c.bf16 %v7193_v32, %v7185_v51 }
 0x364   : > { %11442 = vmatprep.subr.bf16.mxu0 %v11441_v4  ;;  %v6775_v18 = vsel %vm3241_vm7, %v6769_v43, %v6773_v19  ;;  %v6789_v49 = vsel %vm3241_vm7, %v6773_v19, %v14559_v27  ;;  %6953 = vmatprep.mubr.f32.mxu1 %v16529_v16  ;;  %v6794_v27 = vmul.f32 %v6778_v53, %v16666_v29 }
 0x365   : > { %v6804_v37 = vmul.f32 %v6775_v18, %v16667_v13  ;;  %v6805_v58 = vmul.f32 %v6789_v49, %v16668_v15  ;;  %v14739_v48 = vpop.permute.xlu1 %7152  ;;  %v7176_v43 = vsel %vm3645_vm8, %v7145_v55, %v7149_v3 }
 0x366   : > { %11182 = vmatmul.mubr.msk.f32.gmra.mrb[14].mxu0 %vm4207_vm9, %v14653_v22  ;;  %11187 = vmatmul.mubr.msk.f32.vlgmr.msra.gmra.mrb[10].mxu1 %vm4207_vm9, %v4073_v8  ;;  %v11443_v40 = vpack.c.bf16 %v6802_v60, %v6794_v27  ;;  %v7174_v63 = vsel %vm3645_vm8, %v7149_v3, %v14739_v48  ;;  %v7186_v26 = vmul.f32 %v7176_v43, %v16671_v38 }
 0x367   : > { %v11447_v6 = vpack.c.bf16 %v6804_v37, %v6796_v10  ;;  %6876 = vmatprep.mubr.f32.mxu0 %v16529_v16  ;;  %v7151_v33 = vpop.permute.xlu0 %7150  ;;  %6959 = vmatprep.mubr.f32.mxu1 %v16529_v16  ;;  %v11445_v50 = vpack.c.bf16 %v6805_v58, %v6797_v31  ;;  %v7187_v34 = vmul.f32 %v7174_v63, %v16670_v54  ;;  %v16675_v10 = vld [vmem:[#allocation57_spill] sm:$0xff]  ;;  %v16676_v31 = vld [vmem:[#allocation54_spill] sm:$0xff] }
 0x368   : > { %v7177_v22 = vsel %vm3645_vm8, %v7147_v7, %v7151_v33  ;;  %v4076_v7 = vld [vmem:[%s16335_s2 + $0x88] sm:$0xff] }
 0x369   : > { %v14752_v44 = vpop.permute.xlu1 %7136  ;;  %11446 = vmatprep.subr.bf16.mxu1 %v11445_v50  ;;  %v7194_v9 = vmul.f32 %v7177_v22, %v16671_v38 }
 0x36a   : > { %11185 = vmatmul.mubr.msk.f32.vlgmr.msra.gmra.mrb[8].mxu0 %vm4207_vm9, %v4073_v8  ;;  %11188 = vmatmul.mubr.msk.f32.gmra.mrb[12].mxu1 %vm4207_vm9, %v4074_v28  ;;  %v7180_v12 = vsel %vm3645_vm8, %v14752_v44, %v14664_v42 }
 0x36b   : > { %11444 = vmatpush1.bf16.msra.mxu0 %v11443_v40  ;;  %11448 = vmatpush1.bf16.msra.mxu1 %v11447_v6  ;;  %v7155_v30 = vpop.permute.xlu0 %7154  ;;  %v11455_v21 = vpack.c.bf16 %v7194_v9, %v7186_v26  ;;  %v7184_v5 = vmul.f32 %v7180_v12, %v16672_v57 }
 0x36c   : > { %11450 = vmatprep.subr.bf16.mxu0 %v11449_v24  ;;  %6882 = vmatprep.mubr.f32.mxu0 %v16529_v16  ;;  %v7175_v36 = vsel %vm3645_vm8, %v7151_v33, %v7155_v30 }
 0x36d   : > { %v7195_v46 = vmul.f32 %v7175_v36, %v16670_v54  ;;  %7107 = vmatprep.mubr.f32.mxu1 %v16529_v16  ;;  %v7157_v2 = vpop.permute.xlu1 %7156 }
 0x36e   : > { %11186 = vmatmul.mubr.msk.f32.gmra.mrb[10].mxu0 %vm4207_vm9, %v4074_v28  ;;  %11191 = vmatmul.mubr.msk.f32.vlgmr.msra.gmra.mrb[14].mxu1 %vm4207_vm9, %v4073_v8  ;;  %v7172_v0 = vsel %vm3645_vm8, %v14739_v48, %v7157_v2 }
 0x36f   : > { %7030 = vmatprep.mubr.f32.mxu0 %v16529_v16  ;;  %v7139_v14 = vpop.permute.xlu0 %7138  ;;  %7113 = vmatprep.mubr.f32.mxu1 %v16529_v16  ;;  %v11453_v59 = vpack.c.bf16 %v7195_v46, %v7187_v34  ;;  %v7188_v29 = vmul.f32 %v7172_v0, %v16674_v20 }
 0x370   : > { %v7181_v61 = vsel %vm3645_vm8, %v7139_v14, %v14679_v56  ;;  %v4075_v56 = vld [vmem:[%s16335_s2 + $0x80] sm:$0xff] }
 0x371   : > { %v7192_v42 = vmul.f32 %v7181_v61, %v16672_v57  ;;  %11454 = vmatprep.subr.bf16.mxu1 %v11453_v59  ;;  %v7161_v45 = vpop.permute.xlu1 %7160 }
 0x372   : > { %11189 = vmatmul.mubr.msk.f32.vlgmr.msra.gmra.mrb[12].mxu0 %vm4207_vm9, %v4073_v8  ;;  %11192 = vmatmul.mubr.msk.f32.gmra.mrb[16].mxu1 %vm4207_vm9, %v4074_v28  ;;  %v7170_v25 = vsel %vm3645_vm8, %v7157_v2, %v7161_v45 }
 0x373   : > { %v11451_v39 = vpack.c.bf16 %v7192_v42, %v7184_v5  ;;  %11456 = vmatpush1.bf16.msra.mxu1 %v11455_v21  ;;  %7036 = vmatprep.mubr.f32.mxu0 %v16529_v16  ;;  %v7159_v55 = vpop.permute.xlu0 %7158  ;;  %v7189_v3 = vmul.f32 %v7170_v25, %v16673_v17  ;;  %v7557_v5 = vld [vmem:[#allocation2 + $0x8] sm:$0xff]  ;;  %v7559_v42 = vld [vmem:[#allocation2 + $0x18] sm:$0xff] }
 0x374   : > { %7347 = vmatprep.mubr.f32.mxu1 %v16529_v16  ;;  %v7173_v47 = vsel %vm3645_vm8, %v7155_v30, %v7159_v55  ;;  %v7561_v25 = vld [vmem:[#allocation2 + $0x28] sm:$0xff] }
 0x375   : > { %11452 = vmatpush1.bf16.msra.mxu0 %v11451_v39  ;;  %v7165_v1 = vpop.permute.xlu1 %7164  ;;  %v7196_v4 = vmul.f32 %v7173_v47, %v16674_v20  ;;  %v7563_v47 = vld [vmem:[#allocation2 + $0x38] sm:$0xff] }
 0x376   : > { %11190 = vmatmul.mubr.msk.f32.gmra.mrb[14].mxu0 %vm4207_vm9, %v4074_v28  ;;  %11195 = vmatmul.mubr.msk.f32.vlgmr.msra.gmra.mrb[10].mxu1 %vm4207_vm9, %v4075_v56  ;;  %v7168_v60 = vsel %vm3645_vm8, %v7161_v45, %v7165_v1  ;;  %v7182_v19 = vsel %vm3645_vm8, %v7165_v1, %v14752_v44  ;;  %v7556_v45 = vld [vmem:[#allocation2] sm:$0xff]  ;;  %v11469_v0 = vpack.c.bf16 %v7563_v47, %v7561_v25 }
 0x377   : > { %7270 = vmatprep.mubr.f32.mxu0 %v16529_v16  ;;  %v7163_v62 = vpop.permute.xlu0 %7162  ;;  %7353 = vmatprep.mubr.f32.mxu1 %v16529_v16  ;;  %v11459_v8 = vpack.c.bf16 %v7196_v4, %v7188_v29  ;;  %v7190_v18 = vmul.f32 %v7168_v60, %v16675_v10  ;;  %v7191_v23 = vmul.f32 %v7182_v19, %v16676_v31  ;;  %v7560_v1 = vld [vmem:[#allocation2 + $0x20] sm:$0xff]  ;;  %v7566_v29 = vld [vmem:[#allocation2 + $0x50] sm:$0xff]  ;;  %v7569_v60 = vld [vmem:[#allocation2 + $0x68] sm:$0xff] }
 0x378   : > { %v7171_v52 = vsel %vm3645_vm8, %v7159_v55, %v7163_v62  ;;  %v11465_v55 = vpack.c.bf16 %v7559_v42, %v7557_v5  ;;  %v7584_v42 = vld [vmem:[#allocation2 + $0xe0] sm:$0xff] }
 0x379   : > { %v7197_v53 = vmul.f32 %v7171_v52, %v16673_v17  ;;  %v7562_v52 = vld [vmem:[#allocation2 + $0x30] sm:$0xff]  ;;  %v7565_v17 = vld [vmem:[#allocation2 + $0x48] sm:$0xff] }
 0x37a   : > { %11193 = vmatmul.mubr.msk.f32.vlgmr.msra.gmra.mrb[8].mxu0 %vm4207_vm9, %v4075_v56  ;;  %11196 = vmatmul.mubr.msk.f32.gmra.mrb[12].mxu1 %vm4207_vm9, %v4076_v7  ;;  %v11471_v20 = vpack.c.bf16 %v7562_v52, %v7560_v1  ;;  %v7593_v1 = vld [vmem:[#allocation2 + $0x128] sm:$0xff]  ;;  %v7595_v52 = vld [vmem:[#allocation2 + $0x138] sm:$0xff] }
 0x37b   : > { %7276 = vmatprep.mubr.f32.mxu0 %v16529_v16  ;;  %v11457_v41 = vpack.c.bf16 %v7197_v53, %v7189_v3  ;;  %7501 = vmatprep.mubr.f32.mxu1 %v16529_v16  ;;  %v7567_v3 = vld [vmem:[#allocation2 + $0x58] sm:$0xff]  ;;  %v7564_v53 = vld [vmem:[#allocation2 + $0x40] sm:$0xff] }
 0x37c   : > { %v11473_v4 = vpack.c.bf16 %v7567_v3, %v7565_v17  ;;  %v11475_v19 = vpack.c.bf16 %v7566_v29, %v7564_v53  ;;  %v11501_v3 = vpack.c.bf16 %v7595_v52, %v7593_v1  ;;  %v7597_v53 = vld [vmem:[#allocation2 + $0x148] sm:$0xff]  ;;  %v7599_v29 = vld [vmem:[#allocation2 + $0x158] sm:$0xff] }
 0x37d   : > { %v7167_v13 = vpop.permute.xlu0 %7166  ;;  %11458 = vmatprep.subr.bf16.mxu0 %v11457_v41  ;;  %v7571_v41 = vld [vmem:[#allocation2 + $0x78] sm:$0xff] }
 0x37e   : > { %v7169_v49 = vsel %vm3645_vm8, %v7163_v62, %v7167_v13  ;;  %v7183_v15 = vsel %vm3645_vm8, %v7167_v13, %v7139_v14  ;;  %11194 = vmatmul.mubr.msk.f32.gmra.mrb[10].mxu0 %vm4207_vm9, %v4076_v7  ;;  %v7568_v13 = vld [vmem:[#allocation2 + $0x60] sm:$0xff] }
 0x37f   : > { %v7198_v37 = vmul.f32 %v7169_v49, %v16675_v10  ;;  %v7199_v58 = vmul.f32 %v7183_v15, %v16676_v31  ;;  %11460 = vmatpush1.bf16.msra.mxu0 %v11459_v8  ;;  %7424 = vmatprep.mubr.f32.mxu0 %v16529_v16  ;;  %v11477_v8 = vpack.c.bf16 %v7571_v41, %v7569_v60  ;;  %v7570_v10 = vld [vmem:[#allocation2 + $0x70] sm:$0xff]  ;;  %v7575_v49 = vld [vmem:[#allocation2 + $0x98] sm:$0xff] }
 0x380   : > { %11466 = vmatprep.subr.bf16.mxu0 %v11465_v55  ;;  %v11479_v15 = vpack.c.bf16 %v7570_v10, %v7568_v13  ;;  %v7589_v55 = vld [vmem:[#allocation2 + $0x108] sm:$0xff]  ;;  %v11505_v41 = vpack.c.bf16 %v7599_v29, %v7597_v53  ;;  %v7603_v10 = vld [vmem:[#allocation2 + $0x178] sm:$0xff] }
 0x381   : > { %v11463_v48 = vpack.c.bf16 %v7198_v37, %v7190_v18  ;;  %v11461_v35 = vpack.c.bf16 %v7199_v58, %v7191_v23  ;;  %v7573_v18 = vld [vmem:[#allocation2 + $0x88] sm:$0xff]  ;;  %v7572_v23 = vld [vmem:[#allocation2 + $0x80] sm:$0xff]  ;;  %v7574_v37 = vld [vmem:[#allocation2 + $0x90] sm:$0xff] }
 0x382   : > { %11197 = vmatmul.mubr.msk.f32.vlgmr.msra.gmra.mrb[12].mxu0 %vm4207_vm9, %v4075_v56  ;;  %v11481_v31 = vpack.c.bf16 %v7575_v49, %v7573_v18  ;;  %v7577_v58 = vld [vmem:[#allocation2 + $0xa8] sm:$0xff] }
 0x383   : > { %11462 = vmatprep.subr.bf16.mxu1 %v11461_v35  ;;  %7430 = vmatprep.mubr.f32.mxu0 %v16529_v16  ;;  %v11483_v35 = vpack.c.bf16 %v7574_v37, %v7572_v23  ;;  %v7601_v13 = vld [vmem:[#allocation2 + $0x168] sm:$0xff]  ;;  %v7607_v37 = vld [vmem:[#allocation2 + $0x198] sm:$0xff] }
 0x384   : > { %11464 = vmatpush1.bf16.msra.mxu1 %v11463_v48  ;;  %v7579_v48 = vld [vmem:[#allocation2 + $0xb8] sm:$0xff]  ;;  %v11509_v49 = vpack.c.bf16 %v7603_v10, %v7601_v13  ;;  %v7605_v23 = vld [vmem:[#allocation2 + $0x188] sm:$0xff] }
 0x386   : > { %11198 = vmatmul.mubr.msk.f32.gmra.mrb[14].mxu0 %vm4207_vm9, %v4076_v7 }
 0x387   : > { %11199 = vmatmul.mubr.msk.f32.vlgmr.msra.gmra.mrb[14].mxu1 %vm4207_vm9, %v4075_v56  ;;  %v14837_v6 = vpop.permute.xlu1 %7532  ;;  %v7558_v56 = vld [vmem:[#allocation2 + $0x10] sm:$0xff] }
 0x388   : > { %7507 = vmatprep.mubr.f32.mxu1 %v16529_v16 }
 0x38b   : > { %11200 = vmatmul.mubr.msk.f32.gmra.mrb[16].mxu1 %vm4207_vm9, %v4076_v7  ;;  %v11467_v7 = vpack.c.bf16 %v7558_v56, %v7556_v45  ;;  %v7586_v45 = vld [vmem:[#allocation2 + $0xf0] sm:$0xff]  ;;  %v7591_v56 = vld [vmem:[#allocation2 + $0x118] sm:$0xff] }
 0x38c   : > { %8420 = vmatprep.mubr.f32.mxu1 %v16529_v16  ;;  %v11495_v25 = vpack.c.bf16 %v7586_v45, %v7584_v42  ;;  %v11497_v47 = vpack.c.bf16 %v7591_v56, %v7589_v55  ;;  %v7617_v45 = vld [vmem:[#allocation2 + $0x1e8] sm:$0xff]  ;;  %v7619_v55 = vld [vmem:[#allocation2 + $0x1f8] sm:$0xff] }
 0x38d   : > { %11468 = vmatpush1.bf16.msra.mxu0 %v11467_v7  ;;  %v7588_v7 = vld [vmem:[#allocation2 + $0x100] sm:$0xff]  ;;  %v11525_v56 = vpack.c.bf16 %v7619_v55, %v7617_v45 }
 0x38e   : > { %v14853_v30 = vpop.permute.xlu0 %7537  ;;  %11470 = vmatprep.subr.bf16.mxu0 %v11469_v0  ;;  %v7590_v0 = vld [vmem:[#allocation2 + $0x110] sm:$0xff] }
 0x38f   : > { %v11499_v17 = vpack.c.bf16 %v7590_v0, %v7588_v7 }
 0x391   : > { %11472 = vmatpush1.bf16.msra.mxu0 %v11471_v20  ;;  %v7592_v20 = vld [vmem:[#allocation2 + $0x120] sm:$0xff] }
 0x392   : > { %11474 = vmatprep.subr.bf16.mxu0 %v11473_v4  ;;  %v7594_v4 = vld [vmem:[#allocation2 + $0x130] sm:$0xff] }
 0x393   : > { %v11503_v60 = vpack.c.bf16 %v7594_v4, %v7592_v20 }
 0x395   : > { %11476 = vmatpush1.bf16.msra.mxu0 %v11475_v19  ;;  %v7596_v19 = vld [vmem:[#allocation2 + $0x140] sm:$0xff] }
 0x396   : > { %11478 = vmatprep.subr.bf16.mxu0 %v11477_v8  ;;  %v7598_v8 = vld [vmem:[#allocation2 + $0x150] sm:$0xff] }
 0x397   : > { %v11507_v18 = vpack.c.bf16 %v7598_v8, %v7596_v19 }
 0x399   : > { %11480 = vmatpush1.bf16.msra.mxu0 %v11479_v15  ;;  %v7600_v15 = vld [vmem:[#allocation2 + $0x160] sm:$0xff] }
 0x39a   : > { %11482 = vmatprep.subr.bf16.mxu0 %v11481_v31  ;;  %v7602_v31 = vld [vmem:[#allocation2 + $0x170] sm:$0xff] }
 0x39d   : > { %11484 = vmatpush1.bf16.msra.mxu0 %v11483_v35  ;;  %v7604_v35 = vld [vmem:[#allocation2 + $0x180] sm:$0xff] }
 0x449   : > { %v7349_v32 = vpop.f32.mrb[10].mxu1 }
 0x44a   : > { %v7351_v27 = vpop.f32.mrb[11].mxu1  ;;  %v14846_v63 = vadd.f32 %v14837_v6, %v7349_v32  ;;  %v11485_v32 = vpack.c.bf16 %v7579_v48, %v7577_v58  ;;  %v11511_v58 = vpack.c.bf16 %v7602_v31, %v7600_v15  ;;  %v11513_v48 = vpack.c.bf16 %v7607_v37, %v7605_v23 }
 0x44b   : > { %v14840_v50 = vadd.f32 %v14837_v6, %v7351_v27  ;;  %v7576_v27 = vld [vmem:[#allocation2 + $0xa0] sm:$0xff] }
 0x44c   : > { %11486 = vmatprep.subr.bf16.mxu0 %v11485_v32  ;;  %v7606_v32 = vld [vmem:[#allocation2 + $0x190] sm:$0xff] }
 0x44d   : > { %v7272_v33 = vpop.f32.mrb[8].mxu0  ;;  %v7355_v28 = vpop.f32.mrb[12].mxu1 }
 0x44e   : > { %v14843_v51 = vadd.f32 %v14837_v6, %v7272_v33  ;;  %v7274_v40 = vpop.f32.mrb[9].mxu0  ;;  %v7357_v44 = vpop.f32.mrb[13].mxu1  ;;  %v14865_v9 = vadd.f32 %v14853_v30, %v7355_v28  ;;  %v7578_v33 = vld [vmem:[#allocation2 + $0xb0] sm:$0xff]  ;;  %v7581_v28 = vld [vmem:[#allocation2 + $0xc8] sm:$0xff] }
 0x44f   : > { %v14849_v22 = vadd.f32 %v14837_v6, %v7274_v40  ;;  %v14858_v54 = vadd.f32 %v14853_v30, %v7357_v44  ;;  %v7583_v40 = vld [vmem:[#allocation2 + $0xd8] sm:$0xff]  ;;  %v11487_v44 = vpack.c.bf16 %v7578_v33, %v7576_v27  ;;  %v7609_v27 = vld [vmem:[#allocation2 + $0x1a8] sm:$0xff] }
 0x450   : > { %v12303_v24 = vpack.i.bf16 %v14843_v51, %v14840_v50  ;;  %v7611_v33 = vld [vmem:[#allocation2 + $0x1b8] sm:$0xff] }
 0x451   : > { %v12298_v43 = vpack.i.bf16 %v14846_v63, %v14849_v22  ;;  %v7278_v36 = vpop.f32.mrb[10].mxu0  ;;  %11488 = vmatpush1.bf16.msra.mxu0 %v11487_v44  ;;  %v7608_v44 = vld [vmem:[#allocation2 + $0x1a0] sm:$0xff] }
 0x452   : > { %v14861_v34 = vadd.f32 %v14853_v30, %v7278_v36  ;;  %12304 = vrot.lane.b32.xlu0 %v12303_v24, %s12456_s19  ;;  %v7280_v38 = vpop.f32.mrb[11].mxu0  ;;  %v11489_v24 = vpack.c.bf16 %v7583_v40, %v7581_v28  ;;  %v7582_v36 = vld [vmem:[#allocation2 + $0xd0] sm:$0xff]  ;;  %v11515_v28 = vpack.c.bf16 %v7606_v32, %v7604_v35  ;;  %v11517_v40 = vpack.c.bf16 %v7611_v33, %v7609_v27 }
 0x453   : > { %v14868_v46 = vadd.f32 %v14853_v30, %v7280_v38  ;;  %12299 = vrot.lane.b32.xlu1 %v12298_v43, %s12456_s19  ;;  %v7580_v43 = vld [vmem:[#allocation2 + $0xc0] sm:$0xff]  ;;  %v7585_v38 = vld [vmem:[#allocation2 + $0xe8] sm:$0xff] }
 0x454   : > { %v12308_v2 = vpack.i.bf16 %v14861_v34, %v14858_v54  ;;  %11490 = vmatprep.subr.bf16.mxu0 %v11489_v24  ;;  %v7610_v24 = vld [vmem:[#allocation2 + $0x1b0] sm:$0xff] }
 0x455   : > { %v12313_v12 = vpack.i.bf16 %v14865_v9, %v14868_v46  ;;  %v14875_v26 = vpop.f32.mrb[12].mxu0 }
 0x456   : > { %12309 = vrot.lane.b32.xlu0 %v12308_v2, %s12456_s19  ;;  %v14878_v14 = vpop.f32.mrb[13].mxu0  ;;  %v7587_v2 = vld [vmem:[#allocation2 + $0xf8] sm:$0xff]  ;;  %v14917_v15 = vadd.f32 %v14837_v6, %v14875_v26 }
 0x457   : > { %12314 = vrot.lane.b32.xlu1 %v12313_v12, %s12456_s19  ;;  %v11491_v12 = vpack.c.bf16 %v7582_v36, %v7580_v43  ;;  %v11493_v5 = vpack.c.bf16 %v7587_v2, %v7585_v38  ;;  %v11519_v43 = vpack.c.bf16 %v7610_v24, %v7608_v44  ;;  %v7613_v36 = vld [vmem:[#allocation2 + $0x1c8] sm:$0xff]  ;;  %v7615_v38 = vld [vmem:[#allocation2 + $0x1d8] sm:$0xff]  ;;  %v14921_v31 = vadd.f32 %v14837_v6, %v14878_v14  ;;  %v7622_v44 = vld [vmem:[#allocation2 + $0x210] sm:$0xff] }
 0x458   : > { %v11521_v2 = vpack.c.bf16 %v7615_v38, %v7613_v36  ;;  %v7625_v24 = vld [vmem:[#allocation2 + $0x228] sm:$0xff] }
 0x459   : > { %v14881_v59 = vpop.f32.mrb[14].mxu0  ;;  %11492 = vmatpush1.bf16.msra.mxu0 %v11491_v12  ;;  %v7612_v12 = vld [vmem:[#allocation2 + $0x1c0] sm:$0xff]  ;;  %v12323_v14 = vpack.i.bf16 %v14921_v31, %v14917_v15 }
 0x45a   : > { %v14883_v61 = vpop.f32.mrb[14].mxu1  ;;  %v14885_v21 = vpop.f32.mrb[15].mxu0  ;;  %11494 = vmatprep.subr.bf16.mxu0 %v11493_v5  ;;  %v7614_v5 = vld [vmem:[#allocation2 + $0x1d0] sm:$0xff]  ;;  %v14942_v37 = vadd.f32 %v14853_v30, %v14881_v59 }
 0x45b   : > { %v14887_v57 = vpop.f32.mrb[15].mxu1  ;;  %v11523_v42 = vpack.c.bf16 %v7614_v5, %v7612_v12 }
 0x45c   : > { %v14960_v59 = vadd.f32 %v14837_v6, %v14887_v57  ;;  %v7623_v57 = vld [vmem:[#allocation2 + $0x218] sm:$0xff] }
 0x45d   : > { %11496 = vmatpush1.bf16.msra.mxu0 %v11495_v25  ;;  %v7616_v25 = vld [vmem:[#allocation2 + $0x1e0] sm:$0xff] }
 0x45e   : > { %v14889_v39 = vpop.f32.mrb[16].mxu1  ;;  %11498 = vmatprep.subr.bf16.mxu0 %v11497_v47  ;;  %v7618_v47 = vld [vmem:[#allocation2 + $0x1f0] sm:$0xff] }
 0x45f   : > { %v14891_v62 = vpop.f32.mrb[17].mxu1  ;;  %v11527_v7 = vpack.c.bf16 %v7618_v47, %v7616_v25  ;;  %v14967_v35 = vadd.f32 %v14853_v30, %v14889_v39 }
 0x461   : > { %11500 = vmatpush1.bf16.msra.mxu0 %v11499_v17 }
 0x462   : > { %11502 = vmatprep.subr.bf16.mxu0 %v11501_v3 }
 0x465   : > { %11504 = vmatpush1.bf16.msra.mxu0 %v11503_v60 }
 0x466   : > { %11506 = vmatprep.subr.bf16.mxu0 %v11505_v41 }
 0x469   : > { %11508 = vmatpush1.bf16.msra.mxu0 %v11507_v18 }
 0x46a   : > { %11510 = vmatprep.subr.bf16.mxu0 %v11509_v49 }
 0x46d   : > { %11512 = vmatpush1.bf16.msra.mxu0 %v11511_v58  ;;  %v14946_v58 = vadd.f32 %v14853_v30, %v14885_v21 }
 0x46e   : > { %11514 = vmatprep.subr.bf16.mxu0 %v11513_v48 }
 0x46f   : > { %v12333_v48 = vpack.i.bf16 %v14946_v58, %v14942_v37 }
 0x471   : > { %11516 = vmatpush1.bf16.msra.mxu0 %v11515_v28 }
 0x472   : > { %11518 = vmatprep.subr.bf16.mxu0 %v11517_v40  ;;  %v7620_v40 = vld [vmem:[#allocation2 + $0x200] sm:$0xff] }
 0x473   : > { %v11531_v55 = vpack.c.bf16 %v7622_v44, %v7620_v40  ;;  %v7632_v44 = vld [vmem:[#allocation2 + $0x260] sm:$0xff] }
 0x475   : > { %11520 = vmatpush1.bf16.msra.mxu0 %v11519_v43  ;;  %v7627_v43 = vld [vmem:[#allocation2 + $0x238] sm:$0xff] }
 0x476   : > { %11522 = vmatprep.subr.bf16.mxu0 %v11521_v2 }
 0x479   : > { %11524 = vmatpush1.bf16.msra.mxu0 %v11523_v42 }
 0x47a   : > { %11526 = vmatprep.subr.bf16.mxu0 %v11525_v56 }
 0x47d   : > { %11528 = vmatpush1.bf16.msra.mxu0 %v11527_v7  ;;  %v11533_v7 = vpack.c.bf16 %v7627_v43, %v7625_v24  ;;  %v7634_v24 = vld [vmem:[#allocation2 + $0x270] sm:$0xff] }
 0x4c4   : > { %v14893_v0 = vpop.permute.xlu0 %12304 }
 0x4c5   : > { %v12307_v1 = vunpack.i.h.bf16 %v14893_v0  ;;  %v12306_v52 = vunpack.i.l.bf16 %v14893_v0  ;;  %v12300_v17 = vpop.permute.xlu1 %12299 }
 0x4c6   : > { %v12302_v3 = vunpack.i.h.bf16 %v12300_v17  ;;  %v12301_v20 = vunpack.i.l.bf16 %v12300_v17  ;;  %v7624_v17 = vld [vmem:[#allocation2 + $0x220] sm:$0xff] }
 0x4c8   : > { %v7852_v4 = vsel %vm2433_vm5, %v12302_v3, %v12306_v52  ;;  %v7854_v53 = vsel %vm2433_vm5, %v12301_v20, %v12302_v3  ;;  %v7856_v29 = vsel %vm2433_vm5, %v12307_v1, %v12301_v20  ;;  %v14907_v60 = vpop.permute.xlu0 %12309  ;;  %v7626_v3 = vld [vmem:[#allocation2 + $0x230] sm:$0xff]  ;;  %v7629_v20 = vld [vmem:[#allocation2 + $0x248] sm:$0xff] }
 0x4c9   : > { %v7861_v41 = vmax.f32 %v14849_v22, %v7854_v53  ;;  %v14911_v19 = vmax.f32 %v14846_v63, %v7852_v4  ;;  %v12311_v8 = vunpack.i.l.bf16 %v14907_v60  ;;  %v12315_v13 = vpop.permute.xlu1 %12314  ;;  %v7860_v49 = vmax.f32 %v14843_v51, %v7856_v29  ;;  %v7631_v4 = vld [vmem:[#allocation2 + $0x258] sm:$0xff] }
 0x4ca   : > { %v12317_v10 = vunpack.i.h.bf16 %v12315_v13  ;;  %v12316_v18 = vunpack.i.l.bf16 %v12315_v13  ;;  %v12312_v33 = vunpack.i.h.bf16 %v14907_v60  ;;  %v7644_v60 = vld [vmem:[#allocation2 + $0x2c0] sm:$0xff] }
 0x4cb   : > { %v12318_v22 = vpack.i.bf16 %v14911_v19, %v7861_v41  ;;  %7876 = vrot.lane.b32.xlu0 %v7860_v49, %s12458_s21 }
 0x4cc   : > { %v7853_v63 = vsel %vm2433_vm5, %v12317_v10, %v12311_v8  ;;  %v7855_v23 = vsel %vm2433_vm5, %v12316_v18, %v12317_v10  ;;  %v7857_v2 = vsel %vm2433_vm5, %v12312_v33, %v12316_v18 }
 0x4cd   : > { %v14932_v51 = vmax.f32 %v14868_v46, %v7855_v23  ;;  %v14935_v26 = vmax.f32 %v14865_v9, %v7853_v63  ;;  %12319 = vrot.lane.b32.xlu1 %v12318_v22, %s12458_s21  ;;  %v14954_v9 = vadd.f32 %v14837_v6, %v14883_v61  ;;  %v14971_v61 = vadd.f32 %v14853_v30, %v14891_v62  ;;  %v7621_v6 = vld [vmem:[#allocation2 + $0x208] sm:$0xff] }
 0x4ce   : > { %v11529_v27 = vpack.c.bf16 %v7623_v57, %v7621_v6  ;;  %v15010_v13 = vmax.f32 %v14861_v34, %v7857_v2  ;;  %v11535_v22 = vpack.c.bf16 %v7626_v3, %v7624_v17  ;;  %v11537_v23 = vpack.c.bf16 %v7631_v4, %v7629_v20  ;;  %v7633_v34 = vld [vmem:[#allocation2 + $0x268] sm:$0xff]  ;;  %v7639_v2 = vld [vmem:[#allocation2 + $0x298] sm:$0xff]  ;;  %v7636_v3 = vld [vmem:[#allocation2 + $0x280] sm:$0xff] }
 0x4cf   : > { %v12328_v46 = vpack.i.bf16 %v14935_v26, %v14932_v51  ;;  %v12343_v21 = vpack.i.bf16 %v14960_v59, %v14954_v9  ;;  %v12348_v32 = vpack.i.bf16 %v14971_v61, %v14967_v35  ;;  %v7638_v20 = vld [vmem:[#allocation2 + $0x290] sm:$0xff] }
 0x4d0   : > { %11530 = vmatprep.subr.bf16.mxu0 %v11529_v27 }
 0x4d1   : > { %12329 = vrot.lane.b32.xlu0 %v12328_v46, %s12458_s21  ;;  %12324 = vrot.lane.b32.xlu1 %v12323_v14, %s12456_s19  ;;  %v7628_v14 = vld [vmem:[#allocation2 + $0x240] sm:$0xff]  ;;  %v7630_v46 = vld [vmem:[#allocation2 + $0x250] sm:$0xff] }
 0x4d2   : > { %v11539_v57 = vpack.c.bf16 %v7630_v46, %v7628_v14  ;;  %v7645_v14 = vld [vmem:[#allocation2 + $0x2c8] sm:$0xff]  ;;  %v7647_v46 = vld [vmem:[#allocation2 + $0x2d8] sm:$0xff] }
 0x4d5   : > { %12334 = vrot.lane.b32.xlu0 %v12333_v48, %s12456_s19 }
 0x4d9   : > { %12344 = vrot.lane.b32.xlu0 %v12343_v21, %s12456_s19  ;;  %v7635_v21 = vld [vmem:[#allocation2 + $0x278] sm:$0xff] }
 0x4da   : > { %v11541_v40 = vpack.c.bf16 %v7635_v21, %v7633_v34  ;;  %v7646_v21 = vld [vmem:[#allocation2 + $0x2d0] sm:$0xff] }
 0x4dd   : > { %12349 = vrot.lane.b32.xlu0 %v12348_v32, %s12456_s19 }
 0x53d   : > { %v14978_v28 = vpop.permute.xlu0 %7876 }
 0x53f   : > { %v14980_v39 = vpop.permute.xlu1 %12319 }
 0x540   : > { %v12322_v30 = vunpack.i.h.bf16 %v14980_v39  ;;  %v12321_v62 = vunpack.i.l.bf16 %v14980_v39  ;;  %v7688_v39 = vld [vmem:[#allocation2 + $0x420] sm:$0xff] }
 0x542   : > { %v7920_v36 = vsel %vm3241_vm7, %v14978_v28, %v12321_v62  ;;  %v7918_v38 = vsel %vm3241_vm7, %v12321_v62, %v12322_v30 }
 0x543   : > { %v7924_v12 = vmax.f32 %v7860_v49, %v7920_v36  ;;  %v14995_v5 = vpop.permute.xlu0 %12329  ;;  %v12325_v42 = vpop.permute.xlu1 %12324  ;;  %v7925_v45 = vmax.f32 %v7861_v41, %v7918_v38 }
 0x544   : > { %v12332_v56 = vunpack.i.h.bf16 %v14995_v5  ;;  %v12331_v25 = vunpack.i.l.bf16 %v14995_v5  ;;  %v12326_v47 = vunpack.i.l.bf16 %v12325_v42  ;;  %v12327_v53 = vunpack.i.h.bf16 %v12325_v42 }
 0x545   : > { %8004 = vmatprep.mubr.f32.mxu0 %v7925_v45 }
 0x546   : > { %v7850_v29 = vsel %vm2433_vm5, %v12306_v52, %v12326_v47  ;;  %8005 = vmatmul.mubr.f32.vlgmr.msra.gmra.mrb[16].mxu0 %v7924_v12  ;;  %v7919_v41 = vsel %vm3241_vm7, %v12331_v25, %v12332_v56 }
 0x547   : > { %v15013_v10 = vmax.f32 %v14840_v50, %v7850_v29  ;;  %v12335_v18 = vpop.permute.xlu0 %12334  ;;  %v7933_v49 = vmax.f32 %v14932_v51, %v7919_v41  ;;  %11532 = vmatpush1.bf16.msra.mxu0 %v11531_v55  ;;  %v7848_v50 = vsel %vm2433_vm5, %v12326_v47, %v12327_v53  ;;  %v7641_v29 = vld [vmem:[#allocation2 + $0x2a8] sm:$0xff]  ;;  %v7643_v41 = vld [vmem:[#allocation2 + $0x2b8] sm:$0xff] }
 0x548   : > { %v12337_v52 = vunpack.i.h.bf16 %v12335_v18  ;;  %v12336_v63 = vunpack.i.l.bf16 %v12335_v18  ;;  %11534 = vmatprep.subr.bf16.mxu0 %v11533_v7  ;;  %v15034_v38 = vmax.f32 %v14917_v15, %v7848_v50  ;;  %v7649_v50 = vld [vmem:[#allocation2 + $0x2e8] sm:$0xff] }
 0x549   : > { %8010 = vmatprep.mubr.f32.mxu0 %v7933_v49  ;;  %v12338_v48 = vpack.i.bf16 %v15013_v10, %v15010_v13 }
 0x54a   : > { %v7849_v51 = vsel %vm2433_vm5, %v12336_v63, %v12337_v52  ;;  %v7851_v32 = vsel %vm2433_vm5, %v12311_v8, %v12336_v63  ;;  %v7637_v8 = vld [vmem:[#allocation2 + $0x288] sm:$0xff]  ;;  %v7640_v63 = vld [vmem:[#allocation2 + $0x2a0] sm:$0xff] }
 0x54b   : > { %v12345_v6 = vpop.permute.xlu0 %12344  ;;  %12339 = vrot.lane.b32.xlu1 %v12338_v48, %s12458_s21  ;;  %11536 = vmatpush1.bf16.msra.mxu0 %v11535_v22  ;;  %v15028_v43 = vmax.f32 %v14858_v54, %v7851_v32  ;;  %v15031_v36 = vmax.f32 %v14942_v37, %v7849_v51  ;;  %v11543_v54 = vpack.c.bf16 %v7634_v24, %v7632_v44  ;;  %v7648_v32 = vld [vmem:[#allocation2 + $0x2e0] sm:$0xff]  ;;  %v7654_v44 = vld [vmem:[#allocation2 + $0x310] sm:$0xff]  ;;  %v7657_v24 = vld [vmem:[#allocation2 + $0x328] sm:$0xff] }
 0x54c   : > { %v12347_v27 = vunpack.i.h.bf16 %v12345_v6  ;;  %v12346_v62 = vunpack.i.l.bf16 %v12345_v6  ;;  %11538 = vmatprep.subr.bf16.mxu0 %v11537_v23  ;;  %v11545_v47 = vpack.c.bf16 %v7639_v2, %v7637_v8  ;;  %v7642_v23 = vld [vmem:[#allocation2 + $0x2b0] sm:$0xff]  ;;  %v11555_v51 = vpack.c.bf16 %v7646_v21, %v7644_v60  ;;  %v7659_v8 = vld [vmem:[#allocation2 + $0x338] sm:$0xff]  ;;  %v7677_v21 = vld [vmem:[#allocation2 + $0x3c8] sm:$0xff] }
 0x54d   : > { %v12353_v17 = vpack.i.bf16 %v15031_v36, %v15028_v43  ;;  %v11551_v48 = vpack.c.bf16 %v7642_v23, %v7640_v63  ;;  %v7650_v6 = vld [vmem:[#allocation2 + $0x2f0] sm:$0xff]  ;;  %v7668_v23 = vld [vmem:[#allocation2 + $0x380] sm:$0xff] }
 0x54e   : > { %v7844_v12 = vsel %vm2433_vm5, %v12346_v62, %v12347_v27  ;;  %v7846_v42 = vsel %vm2433_vm5, %v12327_v53, %v12346_v62  ;;  %v7674_v60 = vld [vmem:[#allocation2 + $0x3b0] sm:$0xff] }
 0x54f   : > { %v12350_v45 = vpop.permute.xlu0 %12349  ;;  %7892 = vrot.lane.b32.xlu1 %v15034_v38, %s12458_s21  ;;  %11540 = vmatpush1.bf16.msra.mxu0 %v11539_v57  ;;  %v15043_v15 = vmax.f32 %v14921_v31, %v7846_v42  ;;  %v15046_v7 = vmax.f32 %v14954_v9, %v7844_v12  ;;  %v11547_v9 = vpack.c.bf16 %v7638_v20, %v7636_v3  ;;  %v7655_v57 = vld [vmem:[#allocation2 + $0x318] sm:$0xff]  ;;  %v7656_v42 = vld [vmem:[#allocation2 + $0x320] sm:$0xff]  ;;  %v7662_v3 = vld [vmem:[#allocation2 + $0x350] sm:$0xff] }
 0x550   : > { %v12352_v55 = vunpack.i.h.bf16 %v12350_v45  ;;  %v12351_v37 = vunpack.i.l.bf16 %v12350_v45  ;;  %11542 = vmatprep.subr.bf16.mxu0 %v11541_v40  ;;  %v7652_v40 = vld [vmem:[#allocation2 + $0x300] sm:$0xff]  ;;  %v11565_v12 = vpack.c.bf16 %v7659_v8, %v7657_v24  ;;  %v7658_v45 = vld [vmem:[#allocation2 + $0x330] sm:$0xff]  ;;  %v7665_v20 = vld [vmem:[#allocation2 + $0x368] sm:$0xff] }
 0x551   : > { %v12358_v22 = vpack.i.bf16 %v15046_v7, %v15043_v15  ;;  %v11563_v2 = vpack.c.bf16 %v7654_v44, %v7652_v40  ;;  %v7682_v40 = vld [vmem:[#allocation2 + $0x3f0] sm:$0xff]  ;;  %v7685_v44 = vld [vmem:[#allocation2 + $0x408] sm:$0xff]  ;;  %v7687_v24 = vld [vmem:[#allocation2 + $0x418] sm:$0xff] }
 0x552   : > { %v7845_v4 = vsel %vm2433_vm5, %v12351_v37, %v12352_v55  ;;  %v7847_v53 = vsel %vm2433_vm5, %v12337_v52, %v12351_v37  ;;  %v11549_v52 = vpack.c.bf16 %v7643_v41, %v7641_v29  ;;  %v11567_v37 = vpack.c.bf16 %v7658_v45, %v7656_v42  ;;  %v7664_v41 = vld [vmem:[#allocation2 + $0x360] sm:$0xff] }
 0x553   : > { %v15055_v18 = vmax.f32 %v14946_v58, %v7847_v53  ;;  %v15058_v31 = vmax.f32 %v14967_v35, %v7845_v4  ;;  %12354 = vrot.lane.b32.xlu1 %v12353_v17, %s12458_s21  ;;  %11544 = vmatpush1.bf16.msra.mxu0 %v11543_v54  ;;  %v7858_v58 = vsel %vm2433_vm5, %v12347_v27, %v12307_v1  ;;  %v7661_v54 = vld [vmem:[#allocation2 + $0x348] sm:$0xff]  ;;  %v7660_v17 = vld [vmem:[#allocation2 + $0x340] sm:$0xff]  ;;  %v7667_v4 = vld [vmem:[#allocation2 + $0x378] sm:$0xff] }
 0x554   : > { %11546 = vmatprep.subr.bf16.mxu0 %v11545_v47  ;;  %v7859_v35 = vsel %vm2433_vm5, %v12352_v55, %v12312_v33  ;;  %v15079_v0 = vmax.f32 %v14960_v59, %v7858_v58  ;;  %v11553_v1 = vpack.c.bf16 %v7647_v46, %v7645_v14  ;;  %v7651_v33 = vld [vmem:[#allocation2 + $0x2f8] sm:$0xff]  ;;  %v7653_v59 = vld [vmem:[#allocation2 + $0x308] sm:$0xff]  ;;  %v11559_v27 = vpack.c.bf16 %v7650_v6, %v7648_v32  ;;  %v7670_v58 = vld [vmem:[#allocation2 + $0x390] sm:$0xff] }
 0x555   : > { %v12363_v49 = vpack.i.bf16 %v15058_v31, %v15055_v18  ;;  %v15076_v34 = vmax.f32 %v14971_v61, %v7859_v35  ;;  %v11557_v61 = vpack.c.bf16 %v7651_v33, %v7649_v50  ;;  %v11561_v62 = vpack.c.bf16 %v7655_v57, %v7653_v59  ;;  %v7663_v55 = vld [vmem:[#allocation2 + $0x358] sm:$0xff]  ;;  %v7673_v35 = vld [vmem:[#allocation2 + $0x3a8] sm:$0xff]  ;;  %v7678_v32 = vld [vmem:[#allocation2 + $0x3d0] sm:$0xff] }
 0x556   : > { %v11569_v47 = vpack.c.bf16 %v7663_v55, %v7661_v54  ;;  %v11571_v53 = vpack.c.bf16 %v7662_v3, %v7660_v17  ;;  %v11573_v29 = vpack.c.bf16 %v7667_v4, %v7665_v20  ;;  %v7675_v14 = vld [vmem:[#allocation2 + $0x3b8] sm:$0xff]  ;;  %v11579_v46 = vpack.c.bf16 %v7670_v58, %v7668_v23  ;;  %v7681_v6 = vld [vmem:[#allocation2 + $0x3e8] sm:$0xff]  ;;  %v7686_v17 = vld [vmem:[#allocation2 + $0x410] sm:$0xff] }
 0x557   : > { %12364 = vrot.lane.b32.xlu0 %v12363_v49, %s12458_s21  ;;  %12359 = vrot.lane.b32.xlu1 %v12358_v22, %s12458_s21  ;;  %v7669_v49 = vld [vmem:[#allocation2 + $0x388] sm:$0xff]  ;;  %v7671_v22 = vld [vmem:[#allocation2 + $0x398] sm:$0xff] }
 0x558   : > { %11548 = vmatpush1.bf16.msra.mxu0 %v11547_v9  ;;  %v7666_v9 = vld [vmem:[#allocation2 + $0x370] sm:$0xff]  ;;  %v11577_v63 = vpack.c.bf16 %v7671_v22, %v7669_v49  ;;  %v7679_v50 = vld [vmem:[#allocation2 + $0x3d8] sm:$0xff]  ;;  %v7689_v4 = vld [vmem:[#allocation2 + $0x428] sm:$0xff] }
 0x559   : > { %11550 = vmatprep.subr.bf16.mxu0 %v11549_v52  ;;  %v11575_v52 = vpack.c.bf16 %v7666_v9, %v7664_v41  ;;  %v7683_v59 = vld [vmem:[#allocation2 + $0x3f8] sm:$0xff]  ;;  %v7690_v49 = vld [vmem:[#allocation2 + $0x430] sm:$0xff] }
 0x55b   : > { %7906 = vrot.lane.b32.xlu0 %v15076_v34, %s12458_s21  ;;  %7904 = vrot.lane.b32.xlu1 %v15079_v0, %s12458_s21  ;;  %s12461_s21 = smov 16  }
 0x55c   : > { %11552 = vmatpush1.bf16.msra.mxu0 %v11551_v48  ;;  %v11581_v48 = vpack.c.bf16 %v7675_v14, %v7673_v35 }
 0x55d   : > { %11554 = vmatprep.subr.bf16.mxu0 %v11553_v1  ;;  %v7672_v1 = vld [vmem:[#allocation2 + $0x3a0] sm:$0xff] }
 0x55e   : > { %v11583_v33 = vpack.c.bf16 %v7674_v60, %v7672_v1  ;;  %v7694_v1 = vld [vmem:[#allocation2 + $0x450] sm:$0xff] }
 0x560   : > { %11556 = vmatpush1.bf16.msra.mxu0 %v11555_v51  ;;  %v11585_v51 = vpack.c.bf16 %v7679_v50, %v7677_v21  ;;  %v7697_v50 = vld [vmem:[#allocation2 + $0x468] sm:$0xff] }
 0x561   : > { %11558 = vmatprep.subr.bf16.mxu0 %v11557_v61  ;;  %v7676_v61 = vld [vmem:[#allocation2 + $0x3c0] sm:$0xff] }
 0x562   : > { %v11587_v57 = vpack.c.bf16 %v7678_v32, %v7676_v61  ;;  %v7698_v61 = vld [vmem:[#allocation2 + $0x470] sm:$0xff]  ;;  %v7701_v32 = vld [vmem:[#allocation2 + $0x488] sm:$0xff] }
 0x564   : > { %11560 = vmatpush1.bf16.msra.mxu0 %v11559_v27  ;;  %v11589_v27 = vpack.c.bf16 %v7683_v59, %v7681_v6  ;;  %v7703_v6 = vld [vmem:[#allocation2 + $0x498] sm:$0xff] }
 0x565   : > { %11562 = vmatprep.subr.bf16.mxu0 %v11561_v62  ;;  %v7680_v62 = vld [vmem:[#allocation2 + $0x3e0] sm:$0xff] }
 0x566   : > { %v11591_v8 = vpack.c.bf16 %v7682_v40, %v7680_v62  ;;  %v7702_v62 = vld [vmem:[#allocation2 + $0x490] sm:$0xff]  ;;  %v7705_v40 = vld [vmem:[#allocation2 + $0x4a8] sm:$0xff] }
 0x568   : > { %11564 = vmatpush1.bf16.msra.mxu0 %v11563_v2  ;;  %v11593_v2 = vpack.c.bf16 %v7687_v24, %v7685_v44  ;;  %v7707_v44 = vld [vmem:[#allocation2 + $0x4b8] sm:$0xff] }
 0x569   : > { %11566 = vmatprep.subr.bf16.mxu0 %v11565_v12 }
 0x56c   : > { %11568 = vmatpush1.bf16.msra.mxu0 %v11567_v37 }
 0x56d   : > { %11570 = vmatprep.subr.bf16.mxu0 %v11569_v47  ;;  %v7684_v47 = vld [vmem:[#allocation2 + $0x400] sm:$0xff] }
 0x570   : > { %11572 = vmatpush1.bf16.msra.mxu0 %v11571_v53  ;;  %v7691_v53 = vld [vmem:[#allocation2 + $0x438] sm:$0xff] }
 0x571   : > { %11574 = vmatprep.subr.bf16.mxu0 %v11573_v29  ;;  %v11595_v29 = vpack.c.bf16 %v7686_v17, %v7684_v47  ;;  %v11597_v9 = vpack.c.bf16 %v7691_v53, %v7689_v4  ;;  %v7708_v17 = vld [vmem:[#allocation2 + $0x4c0] sm:$0xff]  ;;  %v7715_v4 = vld [vmem:[#allocation2 + $0x4f8] sm:$0xff] }
 0x574   : > { %11576 = vmatpush1.bf16.msra.mxu0 %v11575_v52  ;;  %v7693_v52 = vld [vmem:[#allocation2 + $0x448] sm:$0xff] }
 0x575   : > { %11578 = vmatprep.subr.bf16.mxu0 %v11577_v63  ;;  %v7695_v63 = vld [vmem:[#allocation2 + $0x458] sm:$0xff] }
 0x578   : > { %11580 = vmatpush1.bf16.msra.mxu0 %v11579_v46  ;;  %v11601_v46 = vpack.c.bf16 %v7695_v63, %v7693_v52  ;;  %v7716_v52 = vld [vmem:[#allocation2 + $0x500] sm:$0xff]  ;;  %v7718_v63 = vld [vmem:[#allocation2 + $0x510] sm:$0xff] }
 0x579   : > { %11582 = vmatprep.subr.bf16.mxu0 %v11581_v48  ;;  %v7692_v48 = vld [vmem:[#allocation2 + $0x440] sm:$0xff] }
 0x57a   : > { %v11603_v5 = vpack.c.bf16 %v7694_v1, %v7692_v48  ;;  %v7725_v48 = vld [vmem:[#allocation2 + $0x548] sm:$0xff]  ;;  %v7727_v1 = vld [vmem:[#allocation2 + $0x558] sm:$0xff] }
 0x57c   : > { %11584 = vmatpush1.bf16.msra.mxu0 %v11583_v33  ;;  %v7699_v33 = vld [vmem:[#allocation2 + $0x478] sm:$0xff] }
 0x57d   : > { %11586 = vmatprep.subr.bf16.mxu0 %v11585_v51  ;;  %v7696_v51 = vld [vmem:[#allocation2 + $0x460] sm:$0xff] }
 0x57e   : > { %v11607_v59 = vpack.c.bf16 %v7698_v61, %v7696_v51 }
 0x580   : > { %11588 = vmatpush1.bf16.msra.mxu0 %v11587_v57  ;;  %v11609_v57 = vpack.c.bf16 %v7703_v6, %v7701_v32  ;;  %v7728_v32 = vld [vmem:[#allocation2 + $0x560] sm:$0xff]  ;;  %v7730_v6 = vld [vmem:[#allocation2 + $0x570] sm:$0xff] }
 0x581   : > { %11590 = vmatprep.subr.bf16.mxu0 %v11589_v27  ;;  %v7700_v27 = vld [vmem:[#allocation2 + $0x480] sm:$0xff] }
 0x582   : > { %v11611_v24 = vpack.c.bf16 %v7702_v62, %v7700_v27  ;;  %v11639_v27 = vpack.c.bf16 %v7730_v6, %v7728_v32  ;;  %v7759_v32 = vld [vmem:[#allocation2 + $0x658] sm:$0xff] }
 0x584   : > { %11592 = vmatpush1.bf16.msra.mxu0 %v11591_v8  ;;  %v11613_v8 = vpack.c.bf16 %v7707_v44, %v7705_v40  ;;  %v7732_v40 = vld [vmem:[#allocation2 + $0x580] sm:$0xff]  ;;  %v7734_v44 = vld [vmem:[#allocation2 + $0x590] sm:$0xff] }
 0x585   : > { %11594 = vmatprep.subr.bf16.mxu0 %v11593_v2  ;;  %v7704_v2 = vld [vmem:[#allocation2 + $0x4a0] sm:$0xff] }
 0x5bd   : > { %v15085_v12 = vpop.permute.xlu1 %12339 }
 0x5be   : > { %v12342_v42 = vunpack.i.h.bf16 %v15085_v12  ;;  %v12341_v45 = vunpack.i.l.bf16 %v15085_v12 }
 0x5c0   : > { %v7921_v54 = vsel %vm3241_vm7, %v12341_v45, %v12331_v25  ;;  %v7916_v3 = vsel %vm3241_vm7, %v12322_v30, %v12342_v42 }
 0x5c1   : > { %v15095_v55 = vpop.permute.xlu1 %7892  ;;  %v7932_v37 = vmax.f32 %v15010_v13, %v7921_v54  ;;  %v7926_v41 = vmax.f32 %v14911_v19, %v7916_v3  ;;  %v11599_v19 = vpack.c.bf16 %v7690_v49, %v7688_v39  ;;  %v7711_v54 = vld [vmem:[#allocation2 + $0x4d8] sm:$0xff]  ;;  %v7710_v3 = vld [vmem:[#allocation2 + $0x4d0] sm:$0xff] }
 0x5c2   : > { %v7914_v20 = vsel %vm3241_vm7, %v12342_v42, %v15095_v55  ;;  %v7709_v42 = vld [vmem:[#allocation2 + $0x4c8] sm:$0xff]  ;;  %v11619_v53 = vpack.c.bf16 %v7710_v3, %v7708_v17  ;;  %v7719_v39 = vld [vmem:[#allocation2 + $0x518] sm:$0xff] }
 0x5c3   : > { %8011 = vmatmul.mubr.f32.gmra.mrb[18].mxu0 %v7932_v37  ;;  %v7927_v25 = vmax.f32 %v15013_v10, %v7914_v20  ;;  %v11617_v47 = vpack.c.bf16 %v7711_v54, %v7709_v42  ;;  %v7713_v20 = vld [vmem:[#allocation2 + $0x4e8] sm:$0xff]  ;;  %v7736_v42 = vld [vmem:[#allocation2 + $0x5a0] sm:$0xff]  ;;  %v7738_v54 = vld [vmem:[#allocation2 + $0x5b0] sm:$0xff] }
 0x5c4   : > { %v11647_v17 = vpack.c.bf16 %v7738_v54, %v7736_v42  ;;  %v7764_v42 = vld [vmem:[#allocation2 + $0x680] sm:$0xff]  ;;  %v7766_v54 = vld [vmem:[#allocation2 + $0x690] sm:$0xff] }
 0x5c5   : > { %v15107_v13 = vpop.permute.xlu1 %12354  ;;  %8081 = vmatprep.mubr.f32.mxu0 %v7927_v25  ;;  %v11621_v25 = vpack.c.bf16 %v7715_v4, %v7713_v20  ;;  %v7740_v20 = vld [vmem:[#allocation2 + $0x5c0] sm:$0xff]  ;;  %v7742_v4 = vld [vmem:[#allocation2 + $0x5d0] sm:$0xff] }
 0x5c6   : > { %v12357_v30 = vunpack.i.h.bf16 %v15107_v13  ;;  %v12356_v22 = vunpack.i.l.bf16 %v15107_v13  ;;  %v7758_v13 = vld [vmem:[#allocation2 + $0x650] sm:$0xff] }
 0x5c7   : > { %8082 = vmatmul.mubr.f32.vlgmr.msra.gmra.mrb[16].mxu0 %v7926_v41  ;;  %v7714_v41 = vld [vmem:[#allocation2 + $0x4f0] sm:$0xff] }
 0x5c8   : > { %11596 = vmatpush1.bf16.msra.mxu0 %v11595_v29  ;;  %v7915_v10 = vsel %vm3241_vm7, %v12356_v22, %v12357_v30  ;;  %v7917_v23 = vsel %vm3241_vm7, %v12332_v56, %v12356_v22  ;;  %v7712_v29 = vld [vmem:[#allocation2 + $0x4e0] sm:$0xff] }
 0x5c9   : > { %v15119_v58 = vpop.permute.xlu1 %12359  ;;  %11598 = vmatprep.subr.bf16.mxu0 %v11597_v9  ;;  %v7935_v35 = vmax.f32 %v15028_v43, %v7915_v10  ;;  %v7934_v14 = vmax.f32 %v14935_v26, %v7917_v23  ;;  %v11605_v43 = vpack.c.bf16 %v7699_v33, %v7697_v50  ;;  %v7717_v9 = vld [vmem:[#allocation2 + $0x508] sm:$0xff]  ;;  %v11623_v49 = vpack.c.bf16 %v7714_v41, %v7712_v29  ;;  %v15132_v29 = vpop.permute.xlu0 %12364 }
 0x5ca   : > { %v12362_v60 = vunpack.i.h.bf16 %v15119_v58  ;;  %v12361_v21 = vunpack.i.l.bf16 %v15119_v58  ;;  %v11625_v22 = vpack.c.bf16 %v7719_v39, %v7717_v9  ;;  %v7721_v10 = vld [vmem:[#allocation2 + $0x528] sm:$0xff]  ;;  %v11627_v23 = vpack.c.bf16 %v7718_v63, %v7716_v52  ;;  %v7744_v39 = vld [vmem:[#allocation2 + $0x5e0] sm:$0xff]  ;;  %v7751_v52 = vld [vmem:[#allocation2 + $0x618] sm:$0xff] }
 0x5cb   : > { %8087 = vmatprep.mubr.f32.mxu0 %v7935_v35  ;;  %v11633_v33 = vpack.c.bf16 %v7727_v1, %v7725_v48  ;;  %v11651_v41 = vpack.c.bf16 %v7742_v4, %v7740_v20  ;;  %v12367_v63 = vunpack.i.h.bf16 %v15132_v29  ;;  %v7753_v48 = vld [vmem:[#allocation2 + $0x628] sm:$0xff]  ;;  %v7755_v1 = vld [vmem:[#allocation2 + $0x638] sm:$0xff]  ;;  %v7770_v20 = vld [vmem:[#allocation2 + $0x6b0] sm:$0xff] }
 0x5cc   : > { %11600 = vmatpush1.bf16.msra.mxu0 %v11599_v19  ;;  %v7910_v56 = vsel %vm3241_vm7, %v12361_v21, %v12362_v60  ;;  %v7723_v19 = vld [vmem:[#allocation2 + $0x538] sm:$0xff]  ;;  %v7773_v4 = vld [vmem:[#allocation2 + $0x6c8] sm:$0xff] }
 0x5cd   : > { %8088 = vmatmul.mubr.f32.gmra.mrb[18].mxu0 %v7934_v14  ;;  %11602 = vmatprep.subr.bf16.mxu0 %v11601_v46  ;;  %v7929_v26 = vmax.f32 %v15043_v15, %v7910_v56  ;;  %v7706_v15 = vld [vmem:[#allocation2 + $0x4b0] sm:$0xff]  ;;  %v11629_v35 = vpack.c.bf16 %v7723_v19, %v7721_v10  ;;  %v7720_v14 = vld [vmem:[#allocation2 + $0x520] sm:$0xff]  ;;  %v12366_v10 = vunpack.i.l.bf16 %v15132_v29 }
 0x5ce   : > { %v11615_v37 = vpack.c.bf16 %v7706_v15, %v7704_v2  ;;  %v7722_v46 = vld [vmem:[#allocation2 + $0x530] sm:$0xff]  ;;  %v11643_v2 = vpack.c.bf16 %v7734_v44, %v7732_v40  ;;  %v7760_v44 = vld [vmem:[#allocation2 + $0x660] sm:$0xff] }
 0x5cf   : > { %8158 = vmatprep.mubr.f32.mxu0 %v7929_v26  ;;  %v11631_v50 = vpack.c.bf16 %v7722_v46, %v7720_v14  ;;  %v7726_v56 = vld [vmem:[#allocation2 + $0x550] sm:$0xff]  ;;  %v7729_v26 = vld [vmem:[#allocation2 + $0x568] sm:$0xff]  ;;  %v7912_v46 = vsel %vm3241_vm7, %v15095_v55, %v12361_v21  ;;  %v7913_v55 = vsel %vm3241_vm7, %v12357_v30, %v12366_v10  ;;  %v8284_v29 = vld [vmem:[%s16340_s7] sm:$0xff] }
 0x5d0   : > { %11604 = vmatpush1.bf16.msra.mxu0 %v11603_v5  ;;  %v7724_v5 = vld [vmem:[#allocation2 + $0x540] sm:$0xff]  ;;  %v7750_v14 = vld [vmem:[#allocation2 + $0x610] sm:$0xff]  ;;  %v7757_v21 = vld [vmem:[#allocation2 + $0x648] sm:$0xff] }
 0x5d1   : > { %11606 = vmatprep.subr.bf16.mxu0 %v11605_v43  ;;  %v7731_v43 = vld [vmem:[#allocation2 + $0x578] sm:$0xff]  ;;  %v11635_v51 = vpack.c.bf16 %v7726_v56, %v7724_v5  ;;  %v7928_v56 = vmax.f32 %v15034_v38, %v7912_v46  ;;  %v7761_v30 = vld [vmem:[#allocation2 + $0x668] sm:$0xff] }
 0x5d2   : > { %v11637_v61 = vpack.c.bf16 %v7731_v43, %v7729_v26  ;;  %v11661_v26 = vpack.c.bf16 %v7755_v1, %v7753_v48  ;;  %v7752_v43 = vld [vmem:[#allocation2 + $0x620] sm:$0xff] }
 0x5d3   : > { %v7780_v1 = vld [vmem:[#allocation2 + $0x700] sm:$0xff] }
 0x5d4   : > { %11608 = vmatpush1.bf16.msra.mxu0 %v11607_v59  ;;  %v7733_v59 = vld [vmem:[#allocation2 + $0x588] sm:$0xff] }
 0x5d5   : > { %11610 = vmatprep.subr.bf16.mxu0 %v11609_v57  ;;  %v7735_v57 = vld [vmem:[#allocation2 + $0x598] sm:$0xff] }
 0x5d6   : > { %v11641_v62 = vpack.c.bf16 %v7735_v57, %v7733_v59  ;;  %v7936_v59 = vmax.f32 %v15031_v36, %v7913_v55  ;;  %v7756_v57 = vld [vmem:[#allocation2 + $0x640] sm:$0xff]  ;;  %v7789_v55 = vld [vmem:[#allocation2 + $0x748] sm:$0xff] }
 0x5d7   : > { %v11667_v40 = vpack.c.bf16 %v7758_v13, %v7756_v57  ;;  %v7795_v57 = vld [vmem:[#allocation2 + $0x778] sm:$0xff] }
 0x5d8   : > { %11612 = vmatpush1.bf16.msra.mxu0 %v11611_v24  ;;  %v7737_v24 = vld [vmem:[#allocation2 + $0x5a8] sm:$0xff] }
 0x5d9   : > { %11614 = vmatprep.subr.bf16.mxu0 %v11613_v8  ;;  %v7739_v8 = vld [vmem:[#allocation2 + $0x5b8] sm:$0xff] }
 0x5da   : > { %v11645_v15 = vpack.c.bf16 %v7739_v8, %v7737_v24  ;;  %v7762_v24 = vld [vmem:[#allocation2 + $0x670] sm:$0xff]  ;;  %v7765_v8 = vld [vmem:[#allocation2 + $0x688] sm:$0xff] }
 0x5db   : > { %v11671_v36 = vpack.c.bf16 %v7762_v24, %v7760_v44 }
 0x5dc   : > { %11616 = vmatpush1.bf16.msra.mxu0 %v11615_v37  ;;  %v7741_v37 = vld [vmem:[#allocation2 + $0x5c8] sm:$0xff] }
 0x5dd   : > { %11618 = vmatprep.subr.bf16.mxu0 %v11617_v47  ;;  %v7743_v47 = vld [vmem:[#allocation2 + $0x5d8] sm:$0xff] }
 0x5de   : > { %v11649_v3 = vpack.c.bf16 %v7743_v47, %v7741_v37  ;;  %v7769_v37 = vld [vmem:[#allocation2 + $0x6a8] sm:$0xff]  ;;  %v11675_v47 = vpack.c.bf16 %v7766_v54, %v7764_v42 }
 0x5e0   : > { %11620 = vmatpush1.bf16.msra.mxu0 %v11619_v53  ;;  %v7745_v53 = vld [vmem:[#allocation2 + $0x5e8] sm:$0xff] }
 0x5e1   : > { %11622 = vmatprep.subr.bf16.mxu0 %v11621_v25  ;;  %v7747_v25 = vld [vmem:[#allocation2 + $0x5f8] sm:$0xff] }
 0x5e2   : > { %v11653_v9 = vpack.c.bf16 %v7747_v25, %v7745_v53  ;;  %v7775_v53 = vld [vmem:[#allocation2 + $0x6d8] sm:$0xff] }
 0x5e4   : > { %11624 = vmatpush1.bf16.msra.mxu0 %v11623_v49  ;;  %v7746_v49 = vld [vmem:[#allocation2 + $0x5f0] sm:$0xff] }
 0x5e5   : > { %11626 = vmatprep.subr.bf16.mxu0 %v11625_v22  ;;  %v7749_v22 = vld [vmem:[#allocation2 + $0x608] sm:$0xff]  ;;  %v11655_v19 = vpack.c.bf16 %v7746_v49, %v7744_v39  ;;  %v7774_v39 = vld [vmem:[#allocation2 + $0x6d0] sm:$0xff] }
 0x5e6   : > { %v7777_v49 = vld [vmem:[#allocation2 + $0x6e8] sm:$0xff] }
 0x5e8   : > { %11628 = vmatpush1.bf16.msra.mxu0 %v11627_v23  ;;  %v11657_v23 = vpack.c.bf16 %v7751_v52, %v7749_v22  ;;  %v7779_v22 = vld [vmem:[#allocation2 + $0x6f8] sm:$0xff] }
 0x5e9   : > { %11630 = vmatprep.subr.bf16.mxu0 %v11629_v35  ;;  %v7748_v35 = vld [vmem:[#allocation2 + $0x600] sm:$0xff] }
 0x5ea   : > { %v11659_v5 = vpack.c.bf16 %v7750_v14, %v7748_v35  ;;  %v7781_v35 = vld [vmem:[#allocation2 + $0x708] sm:$0xff]  ;;  %v7783_v14 = vld [vmem:[#allocation2 + $0x718] sm:$0xff] }
 0x5eb   : > { %v11689_v48 = vpack.c.bf16 %v7783_v14, %v7781_v35 }
 0x5ec   : > { %11632 = vmatpush1.bf16.msra.mxu0 %v11631_v50  ;;  %v7911_v50 = vsel %vm3241_vm7, %v12366_v10, %v12367_v63  ;;  %v11685_v10 = vpack.c.bf16 %v7779_v22, %v7777_v49  ;;  %v7808_v49 = vld [vmem:[#allocation2 + $0x7e0] sm:$0xff]  ;;  %v7810_v22 = vld [vmem:[#allocation2 + $0x7f0] sm:$0xff] }
 0x5ed   : > { %11634 = vmatprep.subr.bf16.mxu0 %v11633_v33  ;;  %v15145_v33 = vpop.permute.xlu1 %7904 }
 0x5ee   : > { %v7922_v6 = vsel %vm3241_vm7, %v15145_v33, %v14978_v28 }
 0x5f0   : > { %11636 = vmatpush1.bf16.msra.mxu0 %v11635_v51  ;;  %v7754_v51 = vld [vmem:[#allocation2 + $0x630] sm:$0xff] }
 0x5f1   : > { %11638 = vmatprep.subr.bf16.mxu0 %v11637_v61  ;;  %v7937_v61 = vmax.f32 %v15055_v18, %v7911_v50  ;;  %v11663_v38 = vpack.c.bf16 %v7754_v51, %v7752_v43  ;;  %v11665_v18 = vpack.c.bf16 %v7759_v32, %v7757_v21  ;;  %v7782_v50 = vld [vmem:[#allocation2 + $0x710] sm:$0xff]  ;;  %v7784_v51 = vld [vmem:[#allocation2 + $0x720] sm:$0xff]  ;;  %v7791_v21 = vld [vmem:[#allocation2 + $0x758] sm:$0xff] }
 0x5f4   : > { %11640 = vmatpush1.bf16.msra.mxu0 %v11639_v27  ;;  %v7931_v27 = vmax.f32 %v15079_v0, %v7922_v6  ;;  %v7771_v0 = vld [vmem:[#allocation2 + $0x6b8] sm:$0xff]  ;;  %v11697_v6 = vpack.c.bf16 %v7791_v21, %v7789_v55 }
 0x5f5   : > { %11642 = vmatprep.subr.bf16.mxu0 %v11641_v62  ;;  %v7763_v62 = vld [vmem:[#allocation2 + $0x678] sm:$0xff] }
 0x5f6   : > { %v11669_v28 = vpack.c.bf16 %v7763_v62, %v7761_v30  ;;  %v7792_v30 = vld [vmem:[#allocation2 + $0x760] sm:$0xff]  ;;  %v7794_v62 = vld [vmem:[#allocation2 + $0x770] sm:$0xff] }
 0x5f7   : > { %v11703_v44 = vpack.c.bf16 %v7794_v62, %v7792_v30  ;;  %v472_v30 = vld [vmem:[%s16343_s10] sm:$0x3] }
 0x5f8   : > { %11644 = vmatpush1.bf16.msra.mxu0 %v11643_v2  ;;  %v7767_v2 = vld [vmem:[#allocation2 + $0x698] sm:$0xff] }
 0x5f9   : > { %11646 = vmatprep.subr.bf16.mxu0 %v11645_v15  ;;  %v11673_v15 = vpack.c.bf16 %v7767_v2, %v7765_v8  ;;  %v7796_v8 = vld [vmem:[#allocation2 + $0x780] sm:$0xff]  ;;  %v7798_v2 = vld [vmem:[#allocation2 + $0x790] sm:$0xff] }
 0x5fa   : > { %v11707_v42 = vpack.c.bf16 %v7798_v2, %v7796_v8 }
 0x5fc   : > { %11648 = vmatpush1.bf16.msra.mxu0 %v11647_v17  ;;  %v11677_v17 = vpack.c.bf16 %v7771_v0, %v7769_v37  ;;  %v7800_v37 = vld [vmem:[#allocation2 + $0x7a0] sm:$0xff]  ;;  %v7802_v0 = vld [vmem:[#allocation2 + $0x7b0] sm:$0xff] }
 0x5fd   : > { %11650 = vmatprep.subr.bf16.mxu0 %v11649_v3  ;;  %v7768_v3 = vld [vmem:[#allocation2 + $0x6a0] sm:$0xff] }
 0x5fe   : > { %v11679_v25 = vpack.c.bf16 %v7770_v20, %v7768_v3  ;;  %v11711_v3 = vpack.c.bf16 %v7802_v0, %v7800_v37 }
 0x600   : > { %11652 = vmatpush1.bf16.msra.mxu0 %v11651_v41  ;;  %v11681_v41 = vpack.c.bf16 %v7775_v53, %v7773_v4  ;;  %v7804_v4 = vld [vmem:[#allocation2 + $0x7c0] sm:$0xff]  ;;  %v7806_v53 = vld [vmem:[#allocation2 + $0x7d0] sm:$0xff] }
 0x601   : > { %11654 = vmatprep.subr.bf16.mxu0 %v11653_v9  ;;  %v7772_v9 = vld [vmem:[#allocation2 + $0x6c0] sm:$0xff] }
 0x602   : > { %v11683_v52 = vpack.c.bf16 %v7774_v39, %v7772_v9  ;;  %v11715_v9 = vpack.c.bf16 %v7806_v53, %v7804_v4  ;;  %v474_v4 = vld [vmem:[%s16343_s10 + $0x4] sm:$0x3]  ;;  %v8253_v53 = vld [vmem:[%s16336_s3 + $0x28] sm:$0xff] }
 0x604   : > { %11656 = vmatpush1.bf16.msra.mxu0 %v11655_v19  ;;  %v7776_v19 = vld [vmem:[#allocation2 + $0x6e0] sm:$0xff] }
 0x605   : > { %11658 = vmatprep.subr.bf16.mxu0 %v11657_v23  ;;  %v7778_v23 = vld [vmem:[#allocation2 + $0x6f0] sm:$0xff] }
 0x606   : > { %v11687_v46 = vpack.c.bf16 %v7778_v23, %v7776_v19  ;;  %v7908_v19 = vsel %vm3241_vm7, %v12362_v60, %v15145_v33  ;;  %v8285_v33 = vld [vmem:[%s16340_s7 + $0x8] sm:$0xff] }
 0x607   : > { %8159 = vmatmul.mubr.f32.vlgmr.msra.gmra.mrb[16].mxu0 %v7928_v56  ;;  %v7787_v56 = vld [vmem:[#allocation2 + $0x738] sm:$0xff]  ;;  %v7930_v35 = vmax.f32 %v15046_v7, %v7908_v19 }
 0x608   : > { %8164 = vmatprep.mubr.f32.mxu0 %v7937_v61  ;;  %11660 = vmatpush1.bf16.msra.mxu0 %v11659_v5  ;;  %v7785_v5 = vld [vmem:[#allocation2 + $0x728] sm:$0xff]  ;;  %v7786_v61 = vld [vmem:[#allocation2 + $0x730] sm:$0xff] }
 0x609   : > { %11662 = vmatprep.subr.bf16.mxu0 %v11661_v26  ;;  %v11691_v26 = vpack.c.bf16 %v7782_v50, %v7780_v1  ;;  %v11693_v43 = vpack.c.bf16 %v7787_v56, %v7785_v5  ;;  %v11695_v32 = vpack.c.bf16 %v7786_v61, %v7784_v51  ;;  %v473_v50 = vld [vmem:[%s16343_s10 + $0x2] sm:$0x3] }
 0x60a   : > { %v16678_v51 = vld [vmem:[#allocation5_spill] sm:$0xff] }
 0x60b   : > { %8165 = vmatmul.mubr.f32.gmra.mrb[18].mxu0 %v7936_v59  ;;  %v7790_v59 = vld [vmem:[#allocation2 + $0x750] sm:$0xff]  ;;  %v15271_v61 = vrot.slane %v473_v50, %v16678_v51  ;;  %v15293_v8 = vrot.slane %v472_v30, %v16678_v51 }
 0x60c   : > { %11664 = vmatpush1.bf16.msra.mxu0 %v11663_v38  ;;  %8235 = vmatprep.mubr.f32.mxu0 %v7931_v27  ;;  %v7788_v38 = vld [vmem:[#allocation2 + $0x740] sm:$0xff] }
 0x60d   : > { %11666 = vmatprep.subr.bf16.mxu0 %v11665_v18  ;;  %v7793_v18 = vld [vmem:[#allocation2 + $0x768] sm:$0xff]  ;;  %v11699_v13 = vpack.c.bf16 %v7790_v59, %v7788_v38 }
 0x60e   : > { %v11701_v27 = vpack.c.bf16 %v7795_v57, %v7793_v18 }
 0x610   : > { %11668 = vmatpush1.bf16.msra.mxu0 %v11667_v40  ;;  %v7797_v40 = vld [vmem:[#allocation2 + $0x788] sm:$0xff] }
 0x611   : > { %11670 = vmatprep.subr.bf16.mxu0 %v11669_v28  ;;  %v7799_v28 = vld [vmem:[#allocation2 + $0x798] sm:$0xff] }
 0x612   : > { %v11705_v24 = vpack.c.bf16 %v7799_v28, %v7797_v40 }
 0x614   : > { %11672 = vmatpush1.bf16.msra.mxu0 %v11671_v36  ;;  %v7801_v36 = vld [vmem:[#allocation2 + $0x7a8] sm:$0xff] }
 0x615   : > { %11674 = vmatprep.subr.bf16.mxu0 %v11673_v15  ;;  %v7803_v15 = vld [vmem:[#allocation2 + $0x7b8] sm:$0xff] }
 0x616   : > { %v11709_v54 = vpack.c.bf16 %v7803_v15, %v7801_v36  ;;  %v8252_v15 = vld [vmem:[%s16336_s3 + $0x20] sm:$0xff] }
 0x618   : > { %11676 = vmatpush1.bf16.msra.mxu0 %v11675_v47  ;;  %v7805_v47 = vld [vmem:[#allocation2 + $0x7c8] sm:$0xff] }
 0x619   : > { %11678 = vmatprep.subr.bf16.mxu0 %v11677_v17  ;;  %v7807_v17 = vld [vmem:[#allocation2 + $0x7d8] sm:$0xff] }
 0x61a   : > { %v11713_v20 = vpack.c.bf16 %v7807_v17, %v7805_v47 }
 0x61c   : > { %11680 = vmatpush1.bf16.msra.mxu0 %v11679_v25  ;;  %v7809_v25 = vld [vmem:[#allocation2 + $0x7e8] sm:$0xff] }
 0x61d   : > { %11682 = vmatprep.subr.bf16.mxu0 %v11681_v41  ;;  %v7811_v41 = vld [vmem:[#allocation2 + $0x7f8] sm:$0xff] }
 0x61e   : > { %v11717_v39 = vpack.c.bf16 %v7811_v41, %v7809_v25 }
 0x620   : > { %11684 = vmatpush1.bf16.msra.mxu0 %v11683_v52  ;;  %v7907_v52 = vpop.permute.xlu0 %7906 }
 0x621   : > { %11686 = vmatprep.subr.bf16.mxu0 %v11685_v10  ;;  %v11719_v10 = vpack.c.bf16 %v7810_v22, %v7808_v49  ;;  %v7923_v23 = vsel %vm3241_vm7, %v7907_v52, %v12341_v45  ;;  %v7909_v14 = vsel %vm3241_vm7, %v12367_v63, %v7907_v52  ;;  %v8286_v63 = vld [vmem:[%s16340_s7 + $0x10] sm:$0xff]  ;;  %v15320_v49 = vrot.slane %v474_v4, %v16678_v51 }
 0x622   : > { %v7938_v58 = vmax.f32 %v15058_v31, %v7909_v14  ;;  %v8254_v52 = vld [vmem:[%s16336_s3 + $0x30] sm:$0xff] }
 0x624   : > { %11688 = vmatpush1.bf16.msra.mxu0 %v11687_v46  ;;  %v7939_v46 = vmax.f32 %v15076_v34, %v7923_v23 }
 0x625   : > { %11690 = vmatprep.subr.bf16.mxu0 %v11689_v48  ;;  %v8287_v48 = vld [vmem:[%s16340_s7 + $0x18] sm:$0xff] }
 0x628   : > { %11692 = vmatpush1.bf16.msra.mxu0 %v11691_v26  ;;  %v16677_v26 = vld [vmem:[#allocation6_spill] sm:$0xff] }
 0x629   : > { %11694 = vmatprep.subr.bf16.mxu0 %v11693_v43  ;;  %v15268_v43 = vrot.slane %v473_v50, %v16677_v26 }
 0x62c   : > { %11696 = vmatpush1.bf16.msra.mxu0 %v11695_v32 }
 0x62d   : > { %11698 = vmatprep.subr.bf16.mxu0 %v11697_v6 }
 0x630   : > { %11700 = vmatpush1.bf16.msra.mxu0 %v11699_v13 }
 0x631   : > { %11702 = vmatprep.subr.bf16.mxu0 %v11701_v27 }
 0x634   : > { %11704 = vmatpush1.bf16.msra.mxu0 %v11703_v44 }
 0x635   : > { %11706 = vmatprep.subr.bf16.mxu0 %v11705_v24  ;;  %v15290_v24 = vrot.slane %v472_v30, %v16677_v26  ;;  %v8250_v30 = vld [vmem:[%s16336_s3 + $0x10] sm:$0xff] }
 0x638   : > { %11708 = vmatpush1.bf16.msra.mxu0 %v11707_v42 }
 0x639   : > { %11710 = vmatprep.subr.bf16.mxu0 %v11709_v54 }
 0x63c   : > { %11712 = vmatpush1.bf16.msra.mxu0 %v11711_v3 }
 0x63d   : > { %11714 = vmatprep.subr.bf16.mxu0 %v11713_v20 }
 0x640   : > { %11716 = vmatpush1.bf16.msra.mxu0 %v11715_v9 }
 0x641   : > { %11718 = vmatprep.subr.bf16.mxu0 %v11717_v39 }
 0x644   : > { %11720 = vmatpush1.bf16.msra.mxu0 %v11719_v10 }
 0x647   : > { %8236 = vmatmul.mubr.f32.vlgmr.msra.gmra.mrb[16].mxu0 %v7930_v35 }
 0x648   : > { %8241 = vmatprep.mubr.f32.mxu0 %v7939_v46 }
 0x64b   : > { %8242 = vmatmul.mubr.f32.gmra.mrb[18].mxu0 %v7938_v58  ;;  %v15337_v58 = vrot.slane %v474_v4, %v16677_v26 }
 0x71a   : > { %v15175_v60 = vpop.f32.mrb[16].mxu0 }
 0x71b   : > { %8316 = vrot.lane.b32.xlu1 %v15175_v60, %s12461_s21  ;;  %v15179_v12 = vpop.f32.mrb[17].mxu0 }
 0x71e   : > { %v15181_v7 = vpop.f32.mrb[18].mxu0 }
 0x71f   : > { %8320 = vrot.lane.b32.xlu1 %v15179_v12, %s12461_s21  ;;  %8318 = vrot.lane.b32.xlu0 %v15181_v7, %s12461_s21  ;;  %v15187_v34 = vpop.f32.mrb[19].mxu0  ;;  %v11739_v31 = vpack.c.bf16 %v15181_v7, %v15175_v60 }
 0x720   : > { %v11737_v45 = vpack.c.bf16 %v15187_v34, %v15179_v12 }
 0x723   : > { %8288 = vrot.lane.b32.xlu1 %v15175_v60, %s12462_s20  ;;  %8322 = vrot.lane.b32.xlu0 %v15187_v34, %s12461_s21 }
 0x727   : > { %8292 = vrot.lane.b32.xlu1 %v15179_v12, %s12462_s20  ;;  %8290 = vrot.lane.b32.xlu0 %v15181_v7, %s12462_s20 }
 0x72b   : > { %8546 = vrot.lane.b32.xlu1 %v15175_v60, %s12463_s24  ;;  %8294 = vrot.lane.b32.xlu0 %v15187_v34, %s12462_s20 }
 0x72f   : > { %8550 = vrot.lane.b32.xlu1 %v15179_v12, %s12463_s24  ;;  %8548 = vrot.lane.b32.xlu0 %v15181_v7, %s12463_s24 }
 0x733   : > { %8683 = vrot.lane.b32.xlu1 %v15175_v60, %s12455_s18  ;;  %8552 = vrot.lane.b32.xlu0 %v15187_v34, %s12463_s24 }
 0x737   : > { %8687 = vrot.lane.b32.xlu1 %v15179_v12, %s12455_s18  ;;  %8685 = vrot.lane.b32.xlu0 %v15181_v7, %s12455_s18 }
 0x73b   : > { %8928 = vrot.lane.b32.xlu1 %v15175_v60, %s12456_s19  ;;  %8689 = vrot.lane.b32.xlu0 %v15187_v34, %s12455_s18 }
 0x73f   : > { %8932 = vrot.lane.b32.xlu1 %v15179_v12, %s12456_s19  ;;  %8930 = vrot.lane.b32.xlu0 %v15181_v7, %s12456_s19 }
 0x743   : > { %9064 = vrot.lane.b32.xlu1 %v15175_v60, %s12464_s27  ;;  %8934 = vrot.lane.b32.xlu0 %v15187_v34, %s12456_s19 }
 0x747   : > { %9068 = vrot.lane.b32.xlu1 %v15179_v12, %s12464_s27  ;;  %9066 = vrot.lane.b32.xlu0 %v15181_v7, %s12464_s27 }
 0x74b   : > { %9201 = vrot.lane.b32.xlu1 %v15175_v60, %s16495_s28  ;;  %9070 = vrot.lane.b32.xlu0 %v15187_v34, %s12464_s27 }
 0x74f   : > { %9205 = vrot.lane.b32.xlu1 %v15179_v12, %s16495_s28  ;;  %9203 = vrot.lane.b32.xlu0 %v15181_v7, %s16495_s28 }
 0x753   : > { %9338 = vrot.lane.b32.xlu1 %v15175_v60, %s12466_s29  ;;  %9207 = vrot.lane.b32.xlu0 %v15187_v34, %s16495_s28  ;;  %v477_v60 = vld [vmem:[%s16343_s10 + $0xc] sm:$0x3] }
 0x757   : > { %9342 = vrot.lane.b32.xlu1 %v15179_v12, %s12466_s29  ;;  %9340 = vrot.lane.b32.xlu0 %v15181_v7, %s12466_s29 }
 0x75b   : > { %9477 = vperm.xlu1 %12297, %v8284_v29   ;;  %9344 = vrot.lane.b32.xlu0 %v15187_v34, %s12466_s29  ;;  %v475_v29 = vld [vmem:[%s16343_s10 + $0x6] sm:$0x3]  ;;  %v8259_v34 = vld [vmem:[%s16336_s3 + $0x58] sm:$0xff] }
 0x75f   : > { %9487 = vperm.xlu1 %12297, %v8286_v63   ;;  %9482 = vperm.xlu0 %12296, %v8285_v33   ;;  %v8255_v63 = vld [vmem:[%s16336_s3 + $0x38] sm:$0xff] }
 0x763   : > { %9492 = vperm.xlu0 %12296, %v8287_v48  }
 0x78d   : > { %v8317_v1 = vpop.permute.xlu1 %8316 }
 0x791   : > { %v8321_v5 = vpop.permute.xlu1 %8320  ;;  %v8319_v56 = vpop.permute.xlu0 %8318 }
 0x792   : > { %v8325_v55 = vsel %vm8324_vm10, %v8317_v1, %v8321_v5  ;;  %v8327_v21 = vsel %vm8324_vm10, %v8321_v5, %v8317_v1 }
 0x793   : > { %v8340_v18 = vmul.f32 %v15268_v43, %v8327_v21  ;;  %v8341_v57 = vmul.f32 %v15271_v61, %v8325_v55 }
 0x795   : > { %v8289_v32 = vpop.permute.xlu1 %8288  ;;  %v8323_v6 = vpop.permute.xlu0 %8322 }
 0x796   : > { %v8326_v38 = vsel %vm8324_vm10, %v8319_v56, %v8323_v6  ;;  %v8328_v59 = vsel %vm8324_vm10, %v8323_v6, %v8319_v56  ;;  %v15350_v56 = vrot.slane %v475_v29, %v16678_v51 }
 0x797   : > { %v8342_v13 = vmul.f32 %v15268_v43, %v8328_v59  ;;  %v8343_v27 = vmul.f32 %v15271_v61, %v8326_v38 }
 0x799   : > { %v11723_v62 = vpack.c.bf16 %v8342_v13, %v8340_v18  ;;  %v8293_v40 = vpop.permute.xlu1 %8292  ;;  %v8291_v28 = vpop.permute.xlu0 %8290  ;;  %v11721_v44 = vpack.c.bf16 %v8343_v27, %v8341_v57  ;;  %v8249_v13 = vld [vmem:[%s16336_s3 + $0x8] sm:$0xff] }
 0x79a   : > { %v8297_v2 = vsel %vm8296_vm11, %v8289_v32, %v8293_v40  ;;  %v8299_v36 = vsel %vm8296_vm11, %v8293_v40, %v8289_v32  ;;  %v8248_v32 = vld [vmem:[%s16336_s3] sm:$0xff]  ;;  %v15378_v40 = vrot.slane %v475_v29, %v16677_v26  ;;  %v15460_v29 = vrot.slane %v477_v60, %v16678_v51 }
 0x79b   : > { %11722 = vmatprep.subr.bf16.mxu1 %v11721_v44  ;;  %v8312_v47 = vmul.f32 %v15290_v24, %v8299_v36  ;;  %v8313_v17 = vmul.f32 %v15293_v8, %v8297_v2 }
 0x79c   : > { %11724 = vmatpush1.bf16.msra.mxu1 %v11723_v62 }
 0x79d   : > { %v8547_v42 = vpop.permute.xlu1 %8546  ;;  %v8295_v54 = vpop.permute.xlu0 %8294 }
 0x79e   : > { %v8298_v37 = vsel %vm8296_vm11, %v8291_v28, %v8295_v54  ;;  %v8300_v0 = vsel %vm8296_vm11, %v8295_v54, %v8291_v28  ;;  %v8251_v28 = vld [vmem:[%s16336_s3 + $0x18] sm:$0xff] }
 0x79f   : > { %v8314_v3 = vmul.f32 %v15290_v24, %v8300_v0  ;;  %v8315_v20 = vmul.f32 %v15293_v8, %v8298_v37  ;;  %11201 = vmatmul.mubr.msk.f32.vlgmr.msra.gmra.mrb[18].mxu1 %vm4207_vm9, %v8252_v15  ;;  %v8256_v15 = vld [vmem:[%s16336_s3 + $0x40] sm:$0xff]  ;;  %v8257_v37 = vld [vmem:[%s16336_s3 + $0x48] sm:$0xff] }
 0x7a0   : > { %8426 = vmatprep.mubr.f32.mxu1 %v16529_v16 }
 0x7a1   : > { %v11727_v25 = vpack.c.bf16 %v8314_v3, %v8312_v47  ;;  %v8551_v41 = vpop.permute.xlu1 %8550  ;;  %v8549_v9 = vpop.permute.xlu0 %8548  ;;  %v11725_v39 = vpack.c.bf16 %v8315_v20, %v8313_v17  ;;  %v8258_v47 = vld [vmem:[%s16336_s3 + $0x50] sm:$0xff]  ;;  %v476_v3 = vld [vmem:[%s16343_s10 + $0xa] sm:$0x3] }
 0x7a2   : > { %v8555_v22 = vsel %vm8554_vm12, %v8547_v42, %v8551_v41  ;;  %v8557_v33 = vsel %vm8554_vm12, %v8551_v41, %v8547_v42 }
 0x7a3   : > { %11202 = vmatmul.mubr.msk.f32.gmra.mrb[20].mxu1 %vm4207_vm9, %v8253_v53  ;;  %11726 = vmatprep.subr.bf16.mxu1 %v11725_v39  ;;  %v8571_v35 = vmul.f32 %v15320_v49, %v8555_v22  ;;  %v8570_v55 = vmul.f32 %v15337_v58, %v8557_v33  ;;  %v8261_v22 = vld [vmem:[%s16336_s3 + $0x68] sm:$0xff] }
 0x7a4   : > { %11728 = vmatpush1.bf16.msra.mxu1 %v11727_v25  ;;  %8432 = vmatprep.mubr.f32.mxu1 %v16529_v16  ;;  %v8260_v25 = vld [vmem:[%s16336_s3 + $0x60] sm:$0xff] }
 0x7a5   : > { %v8684_v10 = vpop.permute.xlu1 %8683  ;;  %v8553_v19 = vpop.permute.xlu0 %8552 }
 0x7a6   : > { %v8556_v23 = vsel %vm8554_vm12, %v8549_v9, %v8553_v19  ;;  %v8558_v14 = vsel %vm8554_vm12, %v8553_v19, %v8549_v9 }
 0x7a7   : > { %v8573_v46 = vmul.f32 %v15320_v49, %v8556_v23  ;;  %11203 = vmatmul.mubr.msk.f32.gmra.mrb[22].mxu1 %vm4207_vm9, %v8254_v52  ;;  %v8572_v5 = vmul.f32 %v15337_v58, %v8558_v14  ;;  %v15449_v23 = vrot.slane %v476_v3, %v16677_v26  ;;  %v8263_v14 = vld [vmem:[%s16336_s3 + $0x78] sm:$0xff] }
 0x7a8   : > { %8438 = vmatprep.mubr.f32.mxu1 %v16529_v16 }
 0x7a9   : > { %v8688_v48 = vpop.permute.xlu1 %8687  ;;  %v8686_v1 = vpop.permute.xlu0 %8685  ;;  %v11729_v50 = vpack.c.bf16 %v8573_v46, %v8571_v35  ;;  %v11731_v38 = vpack.c.bf16 %v8572_v5, %v8570_v55 }
 0x7aa   : > { %v8691_v21 = vsel %vm1699_vm4, %v8684_v10, %v8688_v48  ;;  %v8693_v44 = vsel %vm1699_vm4, %v8688_v48, %v8684_v10  ;;  %v8262_v10 = vld [vmem:[%s16336_s3 + $0x70] sm:$0xff] }
 0x7ab   : > { %11204 = vmatmul.mubr.msk.f32.gmra.mrb[24].mxu1 %vm4207_vm9, %v8255_v63  ;;  %11730 = vmatprep.subr.bf16.mxu1 %v11729_v50  ;;  %v8707_v18 = vmul.f32 %v15350_v56, %v8691_v21  ;;  %v8706_v36 = vmul.f32 %v15378_v40, %v8693_v44  ;;  %v8264_v50 = vld [vmem:[%s16336_s3 + $0x80] sm:$0xff] }
 0x7ac   : > { %8521 = vmatprep.mubr.f32.mxu1 %v16529_v16 }
 0x7ad   : > { %v8690_v6 = vpop.permute.xlu0 %8689  ;;  %v8929_v0 = vpop.permute.xlu1 %8928 }
 0x7ae   : > { %v8692_v59 = vsel %vm1699_vm4, %v8686_v1, %v8690_v6  ;;  %v8694_v62 = vsel %vm1699_vm4, %v8690_v6, %v8686_v1  ;;  %v8265_v6 = vld [vmem:[%s16336_s3 + $0x88] sm:$0xff] }
 0x7af   : > { %v8709_v57 = vmul.f32 %v15350_v56, %v8692_v59  ;;  %11205 = vmatmul.mubr.msk.f32.vlgmr.msra.gmra.mrb[18].mxu1 %vm4207_vm9, %v8248_v32  ;;  %v8708_v2 = vmul.f32 %v15378_v40, %v8694_v62  ;;  %v8266_v59 = vld [vmem:[%s16336_s3 + $0x90] sm:$0xff] }
 0x7b0   : > { %11732 = vmatpush1.bf16.msra.mxu1 %v11731_v38  ;;  %8527 = vmatprep.mubr.f32.mxu1 %v16529_v16 }
 0x7b1   : > { %v11733_v27 = vpack.c.bf16 %v8709_v57, %v8707_v18  ;;  %v11735_v42 = vpack.c.bf16 %v8708_v2, %v8706_v36  ;;  %v8931_v54 = vpop.permute.xlu0 %8930  ;;  %v8933_v20 = vpop.permute.xlu1 %8932  ;;  %v478_v57 = vld [vmem:[%s16343_s10 + $0xe] sm:$0x3] }
 0x7b2   : > { %v8938_v4 = vsel %vm2433_vm5, %v8933_v20, %v8929_v0  ;;  %v8936_v46 = vsel %vm2433_vm5, %v8929_v0, %v8933_v20  ;;  %v15502_v2 = vrot.slane %v478_v57, %v16678_v51  ;;  %v8269_v20 = vld [vmem:[%s16336_s3 + $0xa8] sm:$0xff] }
 0x7b3   : > { %11206 = vmatmul.mubr.msk.f32.gmra.mrb[20].mxu1 %vm4207_vm9, %v8249_v13  ;;  %11734 = vmatprep.subr.bf16.mxu1 %v11733_v27  ;;  %v8951_v1 = vmul.f32 %v15449_v23, %v8936_v46 }
 0x7b4   : > { %8533 = vmatprep.mubr.f32.mxu1 %v16529_v16 }
 0x7b5   : > { %v8935_v17 = vpop.permute.xlu0 %8934  ;;  %v9065_v52 = vpop.permute.xlu1 %9064 }
 0x7b6   : > { %v8939_v12 = vsel %vm2433_vm5, %v8935_v17, %v8931_v54  ;;  %v8937_v7 = vsel %vm2433_vm5, %v8931_v54, %v8935_v17 }
 0x7b7   : > { %11207 = vmatmul.mubr.msk.f32.gmra.mrb[22].mxu1 %vm4207_vm9, %v8250_v30  ;;  %v8953_v63 = vmul.f32 %v15449_v23, %v8937_v7  ;;  %v15491_v30 = vrot.slane %v477_v60, %v16677_v26 }
 0x7b8   : > { %8539 = vmatprep.mubr.f32.mxu1 %v16529_v16 }
 0x7b9   : > { %v9067_v9 = vpop.permute.xlu0 %9066  ;;  %v11743_v55 = vpack.c.bf16 %v8953_v63, %v8951_v1  ;;  %v8273_v63 = vld [vmem:[%s16336_s3 + $0xc8] sm:$0xff] }
 0x7bb   : > { %11208 = vmatmul.mubr.msk.f32.gmra.mrb[24].mxu1 %vm4207_vm9, %v8251_v28  ;;  %v8267_v28 = vld [vmem:[%s16336_s3 + $0x98] sm:$0xff] }
 0x7bc   : > { %8650 = vmatprep.mubr.f32.mxu1 %v16529_v16 }
 0x7bd   : > { %v9071_v19 = vpop.permute.xlu0 %9070 }
 0x7be   : > { %v9076_v35 = vsel %vm9072_vm13, %v9071_v19, %v9067_v9  ;;  %v9074_v13 = vsel %vm9072_vm13, %v9067_v9, %v9071_v19  ;;  %v15533_v9 = vrot.slane %v478_v57, %v16677_v26  ;;  %v8281_v57 = vld [vmem:[%s16336_s3 + $0x108] sm:$0xff] }
 0x7bf   : > { %11209 = vmatmul.mubr.msk.f32.vlgmr.msra.gmra.mrb[18].mxu1 %vm4207_vm9, %v8256_v15  ;;  %v9091_v48 = vmul.f32 %v15460_v29, %v9076_v35  ;;  %v9090_v36 = vmul.f32 %v15491_v30, %v9074_v13  ;;  %v8272_v35 = vld [vmem:[%s16336_s3 + $0xc0] sm:$0xff]  ;;  %v8282_v13 = vld [vmem:[%s16336_s3 + $0x110] sm:$0xff] }
 0x7c0   : > { %11736 = vmatpush1.bf16.msra.mxu1 %v11735_v42  ;;  %8656 = vmatprep.mubr.f32.mxu1 %v16529_v16 }
 0x7c1   : > { %11738 = vmatprep.subr.bf16.mxu1 %v11737_v45  ;;  %v15417_v45 = vrot.slane %v476_v3, %v16678_v51  ;;  %v9204_v21 = vpop.permute.xlu0 %9203 }
 0x7c3   : > { %11210 = vmatmul.mubr.msk.f32.gmra.mrb[20].mxu1 %vm4207_vm9, %v8257_v37  ;;  %v8954_v53 = vmul.f32 %v15417_v45, %v8939_v12  ;;  %v8952_v41 = vmul.f32 %v15417_v45, %v8938_v4  ;;  %v8268_v37 = vld [vmem:[%s16336_s3 + $0xa0] sm:$0xff] }
 0x7c4   : > { %8662 = vmatprep.mubr.f32.mxu1 %v16529_v16 }
 0x7c5   : > { %v11741_v39 = vpack.c.bf16 %v8954_v53, %v8952_v41  ;;  %v9208_v18 = vpop.permute.xlu0 %9207  ;;  %v479_v53 = vld [vmem:[%s16343_s10 + $0x10] sm:$0x3] }
 0x7c6   : > { %v9213_v62 = vsel %vm9209_vm14, %v9208_v18, %v9204_v21  ;;  %v15571_v1 = vrot.slane %v479_v53, %v16677_v26  ;;  %v8276_v26 = vld [vmem:[%s16336_s3 + $0xe0] sm:$0xff] }
 0x7c7   : > { %11211 = vmatmul.mubr.msk.f32.gmra.mrb[22].mxu1 %vm4207_vm9, %v8258_v47  ;;  %v9228_v42 = vmul.f32 %v15502_v2, %v9213_v62 }
 0x7c8   : > { %8668 = vmatprep.mubr.f32.mxu1 %v16529_v16 }
 0x7c9   : > { %v9341_v17 = vpop.permute.xlu0 %9340 }
 0x7cb   : > { %11212 = vmatmul.mubr.msk.f32.gmra.mrb[24].mxu1 %vm4207_vm9, %v8259_v34  ;;  %v8270_v34 = vld [vmem:[%s16336_s3 + $0xb0] sm:$0xff] }
 0x7cc   : > { %8786 = vmatprep.mubr.f32.mxu1 %v16529_v16 }
 0x7cd   : > { %v9345_v4 = vpop.permute.xlu0 %9344 }
 0x7cf   : > { %11213 = vmatmul.mubr.msk.f32.vlgmr.msra.gmra.mrb[18].mxu1 %vm4207_vm9, %v8260_v25  ;;  %v9211_v25 = vsel %vm9209_vm14, %v9204_v21, %v9208_v18  ;;  %v8280_v18 = vld [vmem:[%s16336_s3 + $0x100] sm:$0xff] }
 0x7d0   : > { %11740 = vmatpush1.bf16.msra.mxu1 %v11739_v31  ;;  %8792 = vmatprep.mubr.f32.mxu1 %v16529_v16  ;;  %v9069_v31 = vpop.permute.xlu1 %9068  ;;  %v9227_v19 = vmul.f32 %v15533_v9, %v9211_v25 }
 0x7d1   : > { %11742 = vmatprep.subr.bf16.mxu1 %v11741_v39  ;;  %v9075_v33 = vsel %vm9072_vm13, %v9069_v31, %v9065_v52  ;;  %v9073_v44 = vsel %vm9072_vm13, %v9065_v52, %v9069_v31  ;;  %v9350_v39 = vsel %vm9346_vm15, %v9345_v4, %v9341_v17 }
 0x7d2   : > { %v9089_v5 = vmul.f32 %v15460_v29, %v9075_v33  ;;  %v9088_v54 = vmul.f32 %v15491_v30, %v9073_v44  ;;  %v8274_v33 = vld [vmem:[%s16336_s3 + $0xd0] sm:$0xff] }
 0x7d3   : > { %11214 = vmatmul.mubr.msk.f32.gmra.mrb[20].mxu1 %vm4207_vm9, %v8261_v22  ;;  %v8271_v22 = vld [vmem:[%s16336_s3 + $0xb8] sm:$0xff] }
 0x7d4   : > { %8798 = vmatprep.mubr.f32.mxu1 %v16529_v16  ;;  %v11745_v32 = vpack.c.bf16 %v9091_v48, %v9089_v5  ;;  %v9202_v38 = vpop.permute.xlu1 %9201  ;;  %v11747_v47 = vpack.c.bf16 %v9090_v36, %v9088_v54  ;;  %v9348_v48 = vsel %vm9346_vm15, %v9341_v17, %v9345_v4 }
 0x7d7   : > { %11215 = vmatmul.mubr.msk.f32.gmra.mrb[22].mxu1 %vm4207_vm9, %v8262_v10  ;;  %v15544_v10 = vrot.slane %v479_v53, %v16678_v51 }
 0x7d8   : > { %8804 = vmatprep.mubr.f32.mxu1 %v16529_v16  ;;  %v9206_v27 = vpop.permute.xlu1 %9205 }
 0x7d9   : > { %v9212_v15 = vsel %vm9209_vm14, %v9206_v27, %v9202_v38  ;;  %v9210_v52 = vsel %vm9209_vm14, %v9202_v38, %v9206_v27  ;;  %v9365_v7 = vmul.f32 %v15544_v10, %v9350_v39  ;;  %v8278_v38 = vld [vmem:[%s16336_s3 + $0xf0] sm:$0xff]  ;;  %v8283_v27 = vld [vmem:[%s16336_s3 + $0x118] sm:$0xff] }
 0x7da   : > { %v9226_v0 = vmul.f32 %v15502_v2, %v9212_v15  ;;  %v9225_v31 = vmul.f32 %v15533_v9, %v9210_v52 }
 0x7db   : > { %11216 = vmatmul.mubr.msk.f32.gmra.mrb[24].mxu1 %vm4207_vm9, %v8263_v14 }
 0x7dc   : > { %8895 = vmatprep.mubr.f32.mxu1 %v16529_v16  ;;  %v11749_v3 = vpack.c.bf16 %v9228_v42, %v9226_v0  ;;  %v9339_v12 = vpop.permute.xlu1 %9338  ;;  %v11751_v14 = vpack.c.bf16 %v9227_v19, %v9225_v31 }
 0x7de   : > { %v9483_v15 = vpop.permute.xlu0 %9482 }
 0x7df   : > { %11217 = vmatmul.mubr.msk.f32.vlgmr.msra.gmra.mrb[18].mxu1 %vm4207_vm9, %v8264_v50  ;;  %v8275_v50 = vld [vmem:[%s16336_s3 + $0xd8] sm:$0xff] }
 0x7e0   : > { %11744 = vmatpush1.bf16.msra.mxu1 %v11743_v55  ;;  %8901 = vmatprep.mubr.f32.mxu1 %v16529_v16  ;;  %v9343_v41 = vpop.permute.xlu1 %9342  ;;  %v9364_v55 = vmul.f32 %v15571_v1, %v9348_v48 }
 0x7e1   : > { %11746 = vmatprep.subr.bf16.mxu1 %v11745_v32  ;;  %v9349_v60 = vsel %vm9346_vm15, %v9343_v41, %v9339_v12  ;;  %v9347_v5 = vsel %vm9346_vm15, %v9339_v12, %v9343_v41 }
 0x7e2   : > { %v9363_v51 = vmul.f32 %v15544_v10, %v9349_v60  ;;  %v9362_v21 = vmul.f32 %v15571_v1, %v9347_v5 }
 0x7e3   : > { %11218 = vmatmul.mubr.msk.f32.gmra.mrb[20].mxu1 %vm4207_vm9, %v8265_v6  ;;  %v8277_v6 = vld [vmem:[%s16336_s3 + $0xe8] sm:$0xff] }
 0x7e4   : > { %8907 = vmatprep.mubr.f32.mxu1 %v16529_v16  ;;  %v11753_v46 = vpack.c.bf16 %v9365_v7, %v9363_v51  ;;  %v11755_v32 = vpack.c.bf16 %v9364_v55, %v9362_v21  ;;  %v9478_v62 = vpop.permute.xlu1 %9477 }
 0x7e7   : > { %11219 = vmatmul.mubr.msk.f32.gmra.mrb[22].mxu1 %vm4207_vm9, %v8266_v59  ;;  %v8279_v59 = vld [vmem:[%s16336_s3 + $0xf8] sm:$0xff] }
 0x7e8   : > { %8913 = vmatprep.mubr.f32.mxu1 %v16529_v16 }
 0x7eb   : > { %11220 = vmatmul.mubr.msk.f32.gmra.mrb[24].mxu1 %vm4207_vm9, %v8267_v28 }
 0x7ec   : > { %9031 = vmatprep.mubr.f32.mxu1 %v16529_v16 }
 0x7ef   : > { %11221 = vmatmul.mubr.msk.f32.vlgmr.msra.gmra.mrb[18].mxu1 %vm4207_vm9, %v8268_v37 }
 0x7f0   : > { %11748 = vmatpush1.bf16.msra.mxu1 %v11747_v47  ;;  %9037 = vmatprep.mubr.f32.mxu1 %v16529_v16  ;;  %v9488_v47 = vpop.permute.xlu1 %9487 }
 0x7f1   : > { %11750 = vmatprep.subr.bf16.mxu1 %v11749_v3 }
 0x7f3   : > { %11222 = vmatmul.mubr.msk.f32.gmra.mrb[20].mxu1 %vm4207_vm9, %v8269_v20 }
 0x7f4   : > { %9043 = vmatprep.mubr.f32.mxu1 %v16529_v16 }
 0x7f7   : > { %11223 = vmatmul.mubr.msk.f32.gmra.mrb[22].mxu1 %vm4207_vm9, %v8270_v34  ;;  %v9493_v34 = vpop.permute.xlu0 %9492 }
 0x7f8   : > { %9049 = vmatprep.mubr.f32.mxu1 %v16529_v16 }
 0x7fb   : > { %11224 = vmatmul.mubr.msk.f32.gmra.mrb[24].mxu1 %vm4207_vm9, %v8271_v22 }
 0x7fc   : > { %9168 = vmatprep.mubr.f32.mxu1 %v16529_v16 }
 0x7ff   : > { %11225 = vmatmul.mubr.msk.f32.vlgmr.msra.gmra.mrb[18].mxu1 %vm4207_vm9, %v8272_v35 }
 0x800   : > { %11752 = vmatpush1.bf16.msra.mxu1 %v11751_v14  ;;  %9174 = vmatprep.mubr.f32.mxu1 %v16529_v16 }
 0x801   : > { %11754 = vmatprep.subr.bf16.mxu1 %v11753_v46 }
 0x803   : > { %11226 = vmatmul.mubr.msk.f32.gmra.mrb[20].mxu1 %vm4207_vm9, %v8273_v63 }
 0x804   : > { %9180 = vmatprep.mubr.f32.mxu1 %v16529_v16 }
 0x807   : > { %11227 = vmatmul.mubr.msk.f32.gmra.mrb[22].mxu1 %vm4207_vm9, %v8274_v33 }
 0x808   : > { %9186 = vmatprep.mubr.f32.mxu1 %v16529_v16 }
 0x80b   : > { %11228 = vmatmul.mubr.msk.f32.gmra.mrb[24].mxu1 %vm4207_vm9, %v8275_v50  ;;  %v9539_v50 = vld [vmem:[%s16341_s8] sm:$0xff] }
 0x80c   : > { %9305 = vmatprep.mubr.f32.mxu1 %v16529_v16 }
 0x80f   : > { %11229 = vmatmul.mubr.msk.f32.vlgmr.msra.gmra.mrb[18].mxu1 %vm4207_vm9, %v8276_v26 }
 0x810   : > { %11756 = vmatpush1.bf16.msra.mxu1 %v11755_v32  ;;  %9311 = vmatprep.mubr.f32.mxu1 %v16529_v16 }
 0x813   : > { %11230 = vmatmul.mubr.msk.f32.gmra.mrb[20].mxu1 %vm4207_vm9, %v8277_v6 }
 0x814   : > { %9317 = vmatprep.mubr.f32.mxu1 %v16529_v16 }
 0x817   : > { %11231 = vmatmul.mubr.msk.f32.gmra.mrb[22].mxu1 %vm4207_vm9, %v8278_v38  ;;  %v9541_v38 = vld [vmem:[%s16341_s8 + $0x10] sm:$0xff] }
 0x818   : > { %9323 = vmatprep.mubr.f32.mxu1 %v16529_v16 }
 0x81b   : > { %11232 = vmatmul.mubr.msk.f32.gmra.mrb[24].mxu1 %vm4207_vm9, %v8279_v59 }
 0x81c   : > { %9442 = vmatprep.mubr.f32.mxu1 %v16529_v16 }
 0x81f   : > { %11233 = vmatmul.mubr.msk.f32.vlgmr.msra.gmra.mrb[18].mxu1 %vm4207_vm9, %v8280_v18 }
 0x820   : > { %9448 = vmatprep.mubr.f32.mxu1 %v16529_v16 }
 0x823   : > { %11234 = vmatmul.mubr.msk.f32.gmra.mrb[20].mxu1 %vm4207_vm9, %v8281_v57  ;;  %v9540_v57 = vld [vmem:[%s16341_s8 + $0x8] sm:$0xff] }
 0x824   : > { %9454 = vmatprep.mubr.f32.mxu1 %v16529_v16 }
 0x827   : > { %11235 = vmatmul.mubr.msk.f32.gmra.mrb[22].mxu1 %vm4207_vm9, %v8282_v13 }
 0x828   : > { %9460 = vmatprep.mubr.f32.mxu1 %v16529_v16 }
 0x82b   : > { %11236 = vmatmul.mubr.msk.f32.gmra.mrb[24].mxu1 %vm4207_vm9, %v8283_v27 }
 0x82c   : > { %9684 = vmatprep.mubr.f32.mxu1 %v16529_v16 }
 0x8f2   : > { %v9444_v28 = vpop.f32.mrb[18].mxu1 }
 0x8f3   : > { %v15623_v44 = vadd.f32 %v9478_v62, %v9444_v28  ;;  %v9446_v36 = vpop.f32.mrb[19].mxu1 }
 0x8f4   : > { %v15627_v54 = vadd.f32 %v9478_v62, %v9446_v36 }
 0x8f5   : > { %9575 = vrot.lane.b32.xlu1 %v15623_v44, %s12461_s21 }
 0x8f6   : > { %v9450_v42 = vpop.f32.mrb[20].mxu1 }
 0x8f7   : > { %v15629_v37 = vadd.f32 %v9483_v15, %v9450_v42  ;;  %v9452_v0 = vpop.f32.mrb[21].mxu1 }
 0x8f8   : > { %v15635_v3 = vadd.f32 %v9483_v15, %v9452_v0 }
 0x8f9   : > { %9583 = vrot.lane.b32.xlu1 %v15627_v54, %s12461_s21  ;;  %9577 = vrot.lane.b32.xlu0 %v15629_v37, %s12461_s21 }
 0x8fa   : > { %v9456_v17 = vpop.f32.mrb[22].mxu1 }
 0x8fb   : > { %v15637_v20 = vadd.f32 %v9488_v47, %v9456_v17  ;;  %v9458_v12 = vpop.f32.mrb[23].mxu1  ;;  %v9542_v17 = vld [vmem:[%s16341_s8 + $0x18] sm:$0xff] }
 0x8fc   : > { %v15643_v53 = vadd.f32 %v9488_v47, %v9458_v12 }
 0x8fd   : > { %9585 = vrot.lane.b32.xlu0 %v15635_v3, %s12461_s21  ;;  %9579 = vrot.lane.b32.xlu1 %v15637_v20, %s12461_s21 }
 0x8fe   : > { %v9462_v4 = vpop.f32.mrb[24].mxu1 }
 0x8ff   : > { %v15645_v25 = vadd.f32 %v9493_v34, %v9462_v4  ;;  %v9464_v41 = vpop.f32.mrb[25].mxu1 }
 0x900   : > { %v15651_v39 = vadd.f32 %v9493_v34, %v9464_v41 }
 0x901   : > { %9587 = vrot.lane.b32.xlu1 %v15643_v53, %s12461_s21  ;;  %9581 = vrot.lane.b32.xlu0 %v15645_v25, %s12461_s21 }
 0x905   : > { %9543 = vrot.lane.b32.xlu1 %v15623_v44, %s12462_s20  ;;  %9589 = vrot.lane.b32.xlu0 %v15651_v39, %s12461_s21 }
 0x909   : > { %9551 = vrot.lane.b32.xlu1 %v15627_v54, %s12462_s20  ;;  %9545 = vrot.lane.b32.xlu0 %v15629_v37, %s12462_s20 }
 0x90d   : > { %9547 = vrot.lane.b32.xlu1 %v15637_v20, %s12462_s20  ;;  %9553 = vrot.lane.b32.xlu0 %v15635_v3, %s12462_s20 }
 0x911   : > { %9555 = vrot.lane.b32.xlu1 %v15643_v53, %s12462_s20  ;;  %9549 = vrot.lane.b32.xlu0 %v15645_v25, %s12462_s20 }
 0x915   : > { %9810 = vrot.lane.b32.xlu1 %v15623_v44, %s12463_s24  ;;  %9557 = vrot.lane.b32.xlu0 %v15651_v39, %s12462_s20 }
 0x919   : > { %9818 = vrot.lane.b32.xlu1 %v15627_v54, %s12463_s24  ;;  %9812 = vrot.lane.b32.xlu0 %v15629_v37, %s12463_s24 }
 0x91d   : > { %9814 = vrot.lane.b32.xlu1 %v15637_v20, %s12463_s24  ;;  %9820 = vrot.lane.b32.xlu0 %v15635_v3, %s12463_s24 }
 0x921   : > { %9822 = vrot.lane.b32.xlu1 %v15643_v53, %s12463_s24  ;;  %9816 = vrot.lane.b32.xlu0 %v15645_v25, %s12463_s24 }
 0x925   : > { %9951 = vrot.lane.b32.xlu1 %v15623_v44, %s12455_s18  ;;  %9824 = vrot.lane.b32.xlu0 %v15651_v39, %s12463_s24 }
 0x929   : > { %9959 = vrot.lane.b32.xlu1 %v15627_v54, %s12455_s18  ;;  %9953 = vrot.lane.b32.xlu0 %v15629_v37, %s12455_s18 }
 0x92d   : > { %9955 = vrot.lane.b32.xlu1 %v15637_v20, %s12455_s18  ;;  %9961 = vrot.lane.b32.xlu0 %v15635_v3, %s12455_s18 }
 0x931   : > { %9963 = vrot.lane.b32.xlu1 %v15643_v53, %s12455_s18  ;;  %9957 = vrot.lane.b32.xlu0 %v15645_v25, %s12455_s18 }
 0x935   : > { %10201 = vrot.lane.b32.xlu1 %v15623_v44, %s12456_s19  ;;  %9965 = vrot.lane.b32.xlu0 %v15651_v39, %s12455_s18  ;;  %s16679_s18 = smov 112  }
 0x939   : > { %10209 = vrot.lane.b32.xlu1 %v15627_v54, %s12456_s19  ;;  %10203 = vrot.lane.b32.xlu0 %v15629_v37, %s12456_s19 }
 0x93d   : > { %10205 = vrot.lane.b32.xlu1 %v15637_v20, %s12456_s19  ;;  %10211 = vrot.lane.b32.xlu0 %v15635_v3, %s12456_s19 }
 0x941   : > { %10213 = vrot.lane.b32.xlu1 %v15643_v53, %s12456_s19  ;;  %10207 = vrot.lane.b32.xlu0 %v15645_v25, %s12456_s19 }
 0x945   : > { %10342 = vrot.lane.b32.xlu1 %v15623_v44, %s12464_s27  ;;  %10215 = vrot.lane.b32.xlu0 %v15651_v39, %s12456_s19 }
 0x949   : > { %10350 = vrot.lane.b32.xlu1 %v15627_v54, %s12464_s27  ;;  %10344 = vrot.lane.b32.xlu0 %v15629_v37, %s12464_s27 }
 0x94d   : > { %10346 = vrot.lane.b32.xlu1 %v15637_v20, %s12464_s27  ;;  %10352 = vrot.lane.b32.xlu0 %v15635_v3, %s12464_s27 }
 0x951   : > { %10354 = vrot.lane.b32.xlu1 %v15643_v53, %s12464_s27  ;;  %10348 = vrot.lane.b32.xlu0 %v15645_v25, %s12464_s27 }
 0x955   : > { %10483 = vrot.lane.b32.xlu1 %v15623_v44, %s16679_s18  ;;  %10356 = vrot.lane.b32.xlu0 %v15651_v39, %s12464_s27 }
 0x959   : > { %10491 = vrot.lane.b32.xlu1 %v15627_v54, %s16679_s18  ;;  %10485 = vrot.lane.b32.xlu0 %v15629_v37, %s16679_s18 }
 0x95d   : > { %10487 = vrot.lane.b32.xlu1 %v15637_v20, %s16679_s18  ;;  %10493 = vrot.lane.b32.xlu0 %v15635_v3, %s16679_s18 }
 0x961   : > { %10495 = vrot.lane.b32.xlu1 %v15643_v53, %s16679_s18  ;;  %10489 = vrot.lane.b32.xlu0 %v15645_v25, %s16679_s18 }
 0x965   : > { %10624 = vrot.lane.b32.xlu1 %v15623_v44, %s12466_s29  ;;  %10497 = vrot.lane.b32.xlu0 %v15651_v39, %s16679_s18 }
 0x967   : > { %v9576_v22 = vpop.permute.xlu1 %9575 }
 0x969   : > { %10632 = vrot.lane.b32.xlu1 %v15627_v54, %s12466_s29  ;;  %10626 = vrot.lane.b32.xlu0 %v15629_v37, %s12466_s29 }
 0x96b   : > { %v9584_v52 = vpop.permute.xlu1 %9583  ;;  %v9578_v19 = vpop.permute.xlu0 %9577 }
 0x96c   : > { %v9595_v60 = vsel %vm8324_vm10, %v9584_v52, %v9576_v22  ;;  %v9591_v7 = vsel %vm8324_vm10, %v9576_v22, %v9584_v52 }
 0x96d   : > { %10628 = vrot.lane.b32.xlu1 %v15637_v20, %s12466_s29  ;;  %10634 = vrot.lane.b32.xlu0 %v15635_v3, %s12466_s29  ;;  %v9599_v51 = vmul.f32 %v9595_v60, %v15268_v43  ;;  %v9600_v63 = vmul.f32 %v9591_v7, %v15271_v61 }
 0x96f   : > { %v9586_v31 = vpop.permute.xlu0 %9585  ;;  %v9580_v35 = vpop.permute.xlu1 %9579 }
 0x970   : > { %v9592_v14 = vsel %vm8324_vm10, %v9578_v19, %v9586_v31  ;;  %v9596_v46 = vsel %vm8324_vm10, %v9586_v31, %v9578_v19 }
 0x971   : > { %v9601_v33 = vmul.f32 %v9596_v46, %v15268_v43  ;;  %v9602_v48 = vmul.f32 %v9592_v14, %v15271_v61  ;;  %10636 = vrot.lane.b32.xlu1 %v15643_v53, %s12466_s29  ;;  %10630 = vrot.lane.b32.xlu0 %v15645_v25, %s12466_s29 }
 0x973   : > { %v11759_v5 = vpack.c.bf16 %v9601_v33, %v9599_v51  ;;  %v9588_v55 = vpop.permute.xlu1 %9587  ;;  %v9582_v21 = vpop.permute.xlu0 %9581  ;;  %v11757_v26 = vpack.c.bf16 %v9602_v48, %v9600_v63 }
 0x974   : > { %v9593_v32 = vsel %vm8324_vm10, %v9580_v35, %v9588_v55  ;;  %v9597_v6 = vsel %vm8324_vm10, %v9588_v55, %v9580_v35  ;;  %v9508_v35 = vld [vmem:[%s16337_s4 + $0x28] sm:$0xff] }
 0x975   : > { %11758 = vmatprep.subr.bf16.mxu1 %v11757_v26  ;;  %10767 = vperm.xlu1 %12297, %v9539_v50   ;;  %v9603_v62 = vmul.f32 %v9597_v6, %v15268_v43  ;;  %v9604_v28 = vmul.f32 %v9593_v32, %v15271_v61  ;;  %v9509_v50 = vld [vmem:[%s16337_s4 + $0x30] sm:$0xff] }
 0x976   : > { %10638 = vrot.lane.b32.xlu0 %v15651_v39, %s12466_s29  ;;  %11760 = vmatpush1.bf16.msra.mxu1 %v11759_v5 }
 0x977   : > { %v9544_v59 = vpop.permute.xlu1 %9543  ;;  %v9590_v18 = vpop.permute.xlu0 %9589 }
 0x978   : > { %v9594_v13 = vsel %vm8324_vm10, %v9582_v21, %v9590_v18  ;;  %v9598_v27 = vsel %vm8324_vm10, %v9590_v18, %v9582_v21  ;;  %v9510_v18 = vld [vmem:[%s16337_s4 + $0x38] sm:$0xff] }
 0x979   : > { %v9605_v36 = vmul.f32 %v9598_v27, %v15268_v43  ;;  %v9606_v15 = vmul.f32 %v9594_v13, %v15271_v61  ;;  %10777 = vperm.xlu1 %12297, %v9541_v38   ;;  %v9507_v43 = vld [vmem:[%s16337_s4 + $0x20] sm:$0xff] }
 0x97a   : > { %10772 = vperm.xlu0 %12296, %v9540_v57  }
 0x97b   : > { %v11763_v42 = vpack.c.bf16 %v9605_v36, %v9603_v62  ;;  %v9552_v0 = vpop.permute.xlu1 %9551  ;;  %v9546_v47 = vpop.permute.xlu0 %9545  ;;  %v11761_v12 = vpack.c.bf16 %v9606_v15, %v9604_v28  ;;  %v9503_v28 = vld [vmem:[%s16337_s4] sm:$0xff] }
 0x97c   : > { %v9559_v34 = vsel %vm8296_vm11, %v9544_v59, %v9552_v0  ;;  %v9563_v4 = vsel %vm8296_vm11, %v9552_v0, %v9544_v59 }
 0x97d   : > { %11762 = vmatprep.subr.bf16.mxu1 %v11761_v12  ;;  %v9567_v19 = vmul.f32 %v9563_v4, %v15290_v24  ;;  %v9568_v60 = vmul.f32 %v9559_v34, %v15293_v8  ;;  %v9504_v4 = vld [vmem:[%s16337_s4 + $0x8] sm:$0xff] }
 0x97e   : > { %10782 = vperm.xlu0 %12296, %v9542_v17   ;;  %11764 = vmatpush1.bf16.msra.mxu1 %v11763_v42 }
 0x97f   : > { %v9548_v61 = vpop.permute.xlu1 %9547  ;;  %v9554_v41 = vpop.permute.xlu0 %9553 }
 0x980   : > { %v9560_v22 = vsel %vm8296_vm11, %v9546_v47, %v9554_v41  ;;  %v9564_v52 = vsel %vm8296_vm11, %v9554_v41, %v9546_v47 }
 0x981   : > { %v9569_v7 = vmul.f32 %v9564_v52, %v15290_v24  ;;  %v9570_v31 = vmul.f32 %v9560_v22, %v15293_v8  ;;  %11237 = vmatmul.mubr.msk.f32.vlgmr.msra.gmra.mrb[26].mxu1 %vm9607_vm0, %v9507_v43 }
 0x982   : > { %9690 = vmatprep.mubr.f32.mxu1 %v16529_v16 }
 0x983   : > { %v11767_v51 = vpack.c.bf16 %v9569_v7, %v9567_v19  ;;  %v9556_v14 = vpop.permute.xlu1 %9555  ;;  %v9550_v46 = vpop.permute.xlu0 %9549  ;;  %v11765_v63 = vpack.c.bf16 %v9570_v31, %v9568_v60  ;;  %v9505_v60 = vld [vmem:[%s16337_s4 + $0x10] sm:$0xff] }
 0x984   : > { %v9561_v33 = vsel %vm8296_vm11, %v9548_v61, %v9556_v14  ;;  %v9565_v48 = vsel %vm8296_vm11, %v9556_v14, %v9548_v61 }
 0x985   : > { %11238 = vmatmul.mubr.msk.f32.gmra.mrb[28].mxu1 %vm9607_vm0, %v9508_v35  ;;  %11766 = vmatprep.subr.bf16.mxu1 %v11765_v63  ;;  %v9571_v32 = vmul.f32 %v9565_v48, %v15290_v24  ;;  %v9572_v6 = vmul.f32 %v9561_v33, %v15293_v8  ;;  %v9506_v48 = vld [vmem:[%s16337_s4 + $0x18] sm:$0xff] }
 0x986   : > { %11768 = vmatpush1.bf16.msra.mxu1 %v11767_v51  ;;  %9696 = vmatprep.mubr.f32.mxu1 %v16529_v16 }
 0x987   : > { %v9811_v5 = vpop.permute.xlu1 %9810  ;;  %v9558_v55 = vpop.permute.xlu0 %9557 }
 0x988   : > { %v9562_v21 = vsel %vm8296_vm11, %v9550_v46, %v9558_v55  ;;  %v9566_v26 = vsel %vm8296_vm11, %v9558_v55, %v9550_v46 }
 0x989   : > { %v9573_v38 = vmul.f32 %v9566_v26, %v15290_v24  ;;  %v9574_v59 = vmul.f32 %v9562_v21, %v15293_v8  ;;  %11239 = vmatmul.mubr.msk.f32.gmra.mrb[30].mxu1 %vm9607_vm0, %v9509_v50  ;;  %v9511_v26 = vld [vmem:[%s16337_s4 + $0x40] sm:$0xff] }
 0x98a   : > { %9702 = vmatprep.mubr.f32.mxu1 %v16529_v16 }
 0x98b   : > { %v11771_v57 = vpack.c.bf16 %v9573_v38, %v9571_v32  ;;  %v9819_v13 = vpop.permute.xlu1 %9818  ;;  %v9813_v27 = vpop.permute.xlu0 %9812  ;;  %v11769_v62 = vpack.c.bf16 %v9574_v59, %v9572_v6 }
 0x98c   : > { %v9826_v24 = vsel %vm8554_vm12, %v9811_v5, %v9819_v13  ;;  %v9830_v8 = vsel %vm8554_vm12, %v9819_v13, %v9811_v5 }
 0x98d   : > { %11240 = vmatmul.mubr.msk.f32.gmra.mrb[32].mxu1 %vm9607_vm0, %v9510_v18  ;;  %11770 = vmatprep.subr.bf16.mxu1 %v11769_v62  ;;  %v9834_v47 = vmul.f32 %v9830_v8, %v15337_v58  ;;  %v9835_v17 = vmul.f32 %v9826_v24, %v15320_v49  ;;  %v9512_v62 = vld [vmem:[%s16337_s4 + $0x48] sm:$0xff] }
 0x98e   : > { %11772 = vmatpush1.bf16.msra.mxu1 %v11771_v57  ;;  %9785 = vmatprep.mubr.f32.mxu1 %v16529_v16 }
 0x98f   : > { %v9815_v36 = vpop.permute.xlu1 %9814  ;;  %v9821_v15 = vpop.permute.xlu0 %9820 }
 0x990   : > { %v9827_v42 = vsel %vm8554_vm12, %v9813_v27, %v9821_v15  ;;  %v9831_v0 = vsel %vm8554_vm12, %v9821_v15, %v9813_v27 }
 0x991   : > { %v9836_v12 = vmul.f32 %v9831_v0, %v15337_v58  ;;  %v9837_v34 = vmul.f32 %v9827_v42, %v15320_v49  ;;  %11241 = vmatmul.mubr.msk.f32.vlgmr.msra.gmra.mrb[26].mxu1 %vm9607_vm0, %v9503_v28  ;;  %v9513_v0 = vld [vmem:[%s16337_s4 + $0x50] sm:$0xff] }
 0x992   : > { %9791 = vmatprep.mubr.f32.mxu1 %v16529_v16 }
 0x993   : > { %v11775_v43 = vpack.c.bf16 %v9836_v12, %v9834_v47  ;;  %v9823_v61 = vpop.permute.xlu1 %9822  ;;  %v9817_v41 = vpop.permute.xlu0 %9816  ;;  %v11773_v22 = vpack.c.bf16 %v9837_v34, %v9835_v17 }
 0x994   : > { %v9828_v52 = vsel %vm8554_vm12, %v9815_v36, %v9823_v61  ;;  %v9832_v19 = vsel %vm8554_vm12, %v9823_v61, %v9815_v36 }
 0x995   : > { %11242 = vmatmul.mubr.msk.f32.gmra.mrb[28].mxu1 %vm9607_vm0, %v9504_v4  ;;  %11774 = vmatprep.subr.bf16.mxu1 %v11773_v22  ;;  %v9838_v14 = vmul.f32 %v9832_v19, %v15337_v58  ;;  %v9839_v46 = vmul.f32 %v9828_v52, %v15320_v49  ;;  %v9514_v22 = vld [vmem:[%s16337_s4 + $0x58] sm:$0xff] }
 0x996   : > { %11776 = vmatpush1.bf16.msra.mxu1 %v11775_v43  ;;  %9797 = vmatprep.mubr.f32.mxu1 %v16529_v16 }
 0x997   : > { %v9952_v7 = vpop.permute.xlu1 %9951  ;;  %v9825_v31 = vpop.permute.xlu0 %9824 }
 0x998   : > { %v9829_v35 = vsel %vm8554_vm12, %v9817_v41, %v9825_v31  ;;  %v9833_v51 = vsel %vm8554_vm12, %v9825_v31, %v9817_v41 }
 0x999   : > { %v9840_v63 = vmul.f32 %v9833_v51, %v15337_v58  ;;  %v9841_v33 = vmul.f32 %v9829_v35, %v15320_v49  ;;  %11243 = vmatmul.mubr.msk.f32.gmra.mrb[30].mxu1 %vm9607_vm0, %v9505_v60 }
 0x99a   : > { %9803 = vmatprep.mubr.f32.mxu1 %v16529_v16 }
 0x99b   : > { %v11779_v50 = vpack.c.bf16 %v9840_v63, %v9838_v14  ;;  %v9960_v5 = vpop.permute.xlu1 %9959  ;;  %v9954_v55 = vpop.permute.xlu0 %9953  ;;  %v11777_v21 = vpack.c.bf16 %v9841_v33, %v9839_v46  ;;  %v11791_v46 = vpack.c.bf16 %v15629_v37, %v15623_v44  ;;  %v9516_v63 = vld [vmem:[%s16337_s4 + $0x68] sm:$0xff]  ;;  %v11795_v44 = vpack.c.bf16 %v15645_v25, %v15637_v20  ;;  %v9518_v25 = vld [vmem:[%s16337_s4 + $0x78] sm:$0xff] }
 0x99c   : > { %v9967_v58 = vsel %vm1699_vm4, %v9952_v7, %v9960_v5  ;;  %v9971_v49 = vsel %vm1699_vm4, %v9960_v5, %v9952_v7 }
 0x99d   : > { %11244 = vmatmul.mubr.msk.f32.gmra.mrb[32].mxu1 %vm9607_vm0, %v9506_v48  ;;  %11778 = vmatprep.subr.bf16.mxu1 %v11777_v21  ;;  %v9975_v18 = vmul.f32 %v9971_v49, %v15378_v40  ;;  %v9976_v57 = vmul.f32 %v9967_v58, %v15350_v56 }
 0x99e   : > { %11780 = vmatpush1.bf16.msra.mxu1 %v11779_v50  ;;  %9918 = vmatprep.mubr.f32.mxu1 %v16529_v16 }
 0x99f   : > { %v9956_v32 = vpop.permute.xlu1 %9955  ;;  %v9962_v6 = vpop.permute.xlu0 %9961 }
 0x9a0   : > { %v9968_v38 = vsel %vm1699_vm4, %v9954_v55, %v9962_v6  ;;  %v9972_v59 = vsel %vm1699_vm4, %v9962_v6, %v9954_v55 }
 0x9a1   : > { %v9977_v13 = vmul.f32 %v9972_v59, %v15378_v40  ;;  %v9978_v27 = vmul.f32 %v9968_v38, %v15350_v56  ;;  %11245 = vmatmul.mubr.msk.f32.vlgmr.msra.gmra.mrb[26].mxu1 %vm9607_vm0, %v9511_v26 }
 0x9a2   : > { %9924 = vmatprep.mubr.f32.mxu1 %v16529_v16 }
 0x9a3   : > { %v11783_v24 = vpack.c.bf16 %v9977_v13, %v9975_v18  ;;  %v9964_v8 = vpop.permute.xlu1 %9963  ;;  %v9958_v28 = vpop.permute.xlu0 %9957  ;;  %v11781_v36 = vpack.c.bf16 %v9978_v27, %v9976_v57  ;;  %v9519_v57 = vld [vmem:[%s16337_s4 + $0x80] sm:$0xff] }
 0x9a4   : > { %v9969_v15 = vsel %vm1699_vm4, %v9956_v32, %v9964_v8  ;;  %v9973_v42 = vsel %vm1699_vm4, %v9964_v8, %v9956_v32 }
 0x9a5   : > { %11246 = vmatmul.mubr.msk.f32.gmra.mrb[28].mxu1 %vm9607_vm0, %v9512_v62  ;;  %11782 = vmatprep.subr.bf16.mxu1 %v11781_v36  ;;  %v9979_v4 = vmul.f32 %v9973_v42, %v15378_v40  ;;  %v9980_v43 = vmul.f32 %v9969_v15, %v15350_v56 }
 0x9a6   : > { %11784 = vmatpush1.bf16.msra.mxu1 %v11783_v24  ;;  %9930 = vmatprep.mubr.f32.mxu1 %v16529_v16 }
 0x9a7   : > { %v10202_v47 = vpop.permute.xlu1 %10201  ;;  %v9966_v17 = vpop.permute.xlu0 %9965 }
 0x9a8   : > { %v9970_v12 = vsel %vm1699_vm4, %v9958_v28, %v9966_v17  ;;  %v9974_v34 = vsel %vm1699_vm4, %v9966_v17, %v9958_v28 }
 0x9a9   : > { %v9981_v61 = vmul.f32 %v9974_v34, %v15378_v40  ;;  %v9982_v41 = vmul.f32 %v9970_v12, %v15350_v56  ;;  %11247 = vmatmul.mubr.msk.f32.gmra.mrb[30].mxu1 %vm9607_vm0, %v9513_v0  ;;  %v11789_v40 = vpack.c.bf16 %v15635_v3, %v15627_v54  ;;  %v9515_v56 = vld [vmem:[%s16337_s4 + $0x60] sm:$0xff]  ;;  %v11793_v3 = vpack.c.bf16 %v15651_v39, %v15643_v53  ;;  %v9517_v53 = vld [vmem:[%s16337_s4 + $0x70] sm:$0xff] }
 0x9aa   : > { %9936 = vmatprep.mubr.f32.mxu1 %v16529_v16 }
 0x9ab   : > { %v11787_v52 = vpack.c.bf16 %v9981_v61, %v9979_v4  ;;  %v10210_v19 = vpop.permute.xlu1 %10209  ;;  %v10204_v60 = vpop.permute.xlu0 %10203  ;;  %v11785_v7 = vpack.c.bf16 %v9982_v41, %v9980_v43 }
 0x9ac   : > { %v10221_v51 = vsel %vm2433_vm5, %v10210_v19, %v10202_v47  ;;  %v10217_v21 = vsel %vm2433_vm5, %v10202_v47, %v10210_v19 }
 0x9ad   : > { %11248 = vmatmul.mubr.msk.f32.gmra.mrb[32].mxu1 %vm9607_vm0, %v9514_v22  ;;  %11786 = vmatprep.subr.bf16.mxu1 %v11785_v7  ;;  %v10226_v33 = vmul.f32 %v10221_v51, %v15417_v45  ;;  %v10225_v59 = vmul.f32 %v10217_v21, %v15449_v23 }
 0x9ae   : > { %11788 = vmatpush1.bf16.msra.mxu1 %v11787_v52  ;;  %10059 = vmatprep.mubr.f32.mxu1 %v16529_v16  ;;  %v9522_v52 = vld [vmem:[%s16337_s4 + $0x98] sm:$0xff] }
 0x9af   : > { %v10206_v31 = vpop.permute.xlu1 %10205  ;;  %11790 = vmatprep.subr.bf16.mxu1 %v11789_v40  ;;  %v10212_v35 = vpop.permute.xlu0 %10211 }
 0x9b0   : > { %v10222_v14 = vsel %vm2433_vm5, %v10212_v35, %v10204_v60  ;;  %v10218_v55 = vsel %vm2433_vm5, %v10204_v60, %v10212_v35 }
 0x9b1   : > { %v10228_v54 = vmul.f32 %v10222_v14, %v15417_v45  ;;  %11249 = vmatmul.mubr.msk.f32.vlgmr.msra.gmra.mrb[26].mxu1 %vm9607_vm0, %v9515_v56  ;;  %v10227_v26 = vmul.f32 %v10218_v55, %v15449_v23 }
 0x9b2   : > { %11792 = vmatpush1.bf16.msra.mxu1 %v11791_v46  ;;  %10065 = vmatprep.mubr.f32.mxu1 %v16529_v16  ;;  %v9523_v46 = vld [vmem:[%s16337_s4 + $0xa0] sm:$0xff] }
 0x9b3   : > { %v10214_v48 = vpop.permute.xlu1 %10213  ;;  %v10208_v50 = vpop.permute.xlu0 %10207  ;;  %11794 = vmatprep.subr.bf16.mxu1 %v11793_v3  ;;  %v11797_v37 = vpack.c.bf16 %v10228_v54, %v10226_v33  ;;  %v11799_v8 = vpack.c.bf16 %v10227_v26, %v10225_v59 }
 0x9b4   : > { %v10223_v32 = vsel %vm2433_vm5, %v10214_v48, %v10206_v31  ;;  %v10219_v13 = vsel %vm2433_vm5, %v10206_v31, %v10214_v48 }
 0x9b5   : > { %11250 = vmatmul.mubr.msk.f32.gmra.mrb[28].mxu1 %vm9607_vm0, %v9516_v63  ;;  %v10230_v27 = vmul.f32 %v10223_v32, %v15417_v45  ;;  %v10229_v47 = vmul.f32 %v10219_v13, %v15449_v23 }
 0x9b6   : > { %11796 = vmatpush1.bf16.msra.mxu1 %v11795_v44  ;;  %10071 = vmatprep.mubr.f32.mxu1 %v16529_v16 }
 0x9b7   : > { %v10343_v39 = vpop.permute.xlu1 %10342  ;;  %v10216_v5 = vpop.permute.xlu0 %10215  ;;  %11798 = vmatprep.subr.bf16.mxu1 %v11797_v37 }
 0x9b8   : > { %v10224_v20 = vsel %vm2433_vm5, %v10216_v5, %v10208_v50  ;;  %v10220_v6 = vsel %vm2433_vm5, %v10208_v50, %v10216_v5 }
 0x9b9   : > { %11251 = vmatmul.mubr.msk.f32.gmra.mrb[30].mxu1 %vm9607_vm0, %v9517_v53  ;;  %v10232_v38 = vmul.f32 %v10224_v20, %v15417_v45  ;;  %v10231_v28 = vmul.f32 %v10220_v6, %v15449_v23  ;;  %v9520_v45 = vld [vmem:[%s16337_s4 + $0x88] sm:$0xff]  ;;  %v9521_v23 = vld [vmem:[%s16337_s4 + $0x90] sm:$0xff]  ;;  %v9526_v6 = vld [vmem:[%s16337_s4 + $0xb8] sm:$0xff] }
 0x9ba   : > { %10077 = vmatprep.mubr.f32.mxu1 %v16529_v16 }
 0x9bb   : > { %v10351_v58 = vpop.permute.xlu1 %10350  ;;  %v10345_v49 = vpop.permute.xlu0 %10344  ;;  %v11801_v0 = vpack.c.bf16 %v10232_v38, %v10230_v27  ;;  %v11803_v4 = vpack.c.bf16 %v10231_v28, %v10229_v47  ;;  %v9527_v28 = vld [vmem:[%s16337_s4 + $0xc0] sm:$0xff] }
 0x9bc   : > { %v10362_v18 = vsel %vm9072_vm13, %v10351_v58, %v10343_v39  ;;  %v10358_v19 = vsel %vm9072_vm13, %v10343_v39, %v10351_v58 }
 0x9bd   : > { %11252 = vmatmul.mubr.msk.f32.gmra.mrb[32].mxu1 %vm9607_vm0, %v9518_v25  ;;  %v10367_v15 = vmul.f32 %v10362_v18, %v15460_v29  ;;  %v10366_v51 = vmul.f32 %v10358_v19, %v15491_v30 }
 0x9be   : > { %10168 = vmatprep.mubr.f32.mxu1 %v16529_v16 }
 0x9bf   : > { %v10347_v62 = vpop.permute.xlu1 %10346  ;;  %v10353_v24 = vpop.permute.xlu0 %10352 }
 0x9c0   : > { %v10363_v36 = vsel %vm9072_vm13, %v10353_v24, %v10345_v49  ;;  %v10359_v41 = vsel %vm9072_vm13, %v10345_v49, %v10353_v24 }
 0x9c1   : > { %v10369_v42 = vmul.f32 %v10363_v36, %v15460_v29  ;;  %11253 = vmatmul.mubr.msk.f32.vlgmr.msra.gmra.mrb[26].mxu1 %vm9607_vm0, %v9519_v57  ;;  %v10368_v40 = vmul.f32 %v10359_v41, %v15491_v30 }
 0x9c2   : > { %11800 = vmatpush1.bf16.msra.mxu1 %v11799_v8  ;;  %10174 = vmatprep.mubr.f32.mxu1 %v16529_v16 }
 0x9c3   : > { %11802 = vmatprep.subr.bf16.mxu1 %v11801_v0  ;;  %v10355_v17 = vpop.permute.xlu1 %10354  ;;  %v10349_v12 = vpop.permute.xlu0 %10348  ;;  %v11805_v34 = vpack.c.bf16 %v10369_v42, %v10367_v15  ;;  %v11807_v48 = vpack.c.bf16 %v10368_v40, %v10366_v51 }
 0x9c4   : > { %v10364_v56 = vsel %vm9072_vm13, %v10355_v17, %v10347_v62  ;;  %v10360_v54 = vsel %vm9072_vm13, %v10347_v62, %v10355_v17 }
 0x9c5   : > { %11254 = vmatmul.mubr.msk.f32.gmra.mrb[28].mxu1 %vm9607_vm0, %v9520_v45  ;;  %v10371_v3 = vmul.f32 %v10364_v56, %v15460_v29  ;;  %v10370_v5 = vmul.f32 %v10360_v54, %v15491_v30 }
 0x9c6   : > { %11804 = vmatpush1.bf16.msra.mxu1 %v11803_v4  ;;  %10180 = vmatprep.mubr.f32.mxu1 %v16529_v16 }
 0x9c7   : > { %11806 = vmatprep.subr.bf16.mxu1 %v11805_v34  ;;  %v10484_v43 = vpop.permute.xlu1 %10483  ;;  %v10357_v61 = vpop.permute.xlu0 %10356 }
 0x9c8   : > { %v10365_v22 = vsel %vm9072_vm13, %v10357_v61, %v10349_v12  ;;  %v10361_v31 = vsel %vm9072_vm13, %v10349_v12, %v10357_v61 }
 0x9c9   : > { %11255 = vmatmul.mubr.msk.f32.gmra.mrb[30].mxu1 %vm9607_vm0, %v9521_v23  ;;  %v10373_v35 = vmul.f32 %v10365_v22, %v15460_v29  ;;  %v10372_v50 = vmul.f32 %v10361_v31, %v15491_v30  ;;  %v9524_v29 = vld [vmem:[%s16337_s4 + $0xa8] sm:$0xff]  ;;  %v9525_v30 = vld [vmem:[%s16337_s4 + $0xb0] sm:$0xff] }
 0x9ca   : > { %10186 = vmatprep.mubr.f32.mxu1 %v16529_v16 }
 0x9cb   : > { %v10492_v60 = vpop.permute.xlu1 %10491  ;;  %v10486_v7 = vpop.permute.xlu0 %10485  ;;  %v11809_v39 = vpack.c.bf16 %v10373_v35, %v10371_v3  ;;  %v11811_v21 = vpack.c.bf16 %v10372_v50, %v10370_v5  ;;  %v9537_v5 = vld [vmem:[%s16337_s4 + $0x110] sm:$0xff] }
 0x9cc   : > { %v10503_v14 = vsel %vm9209_vm14, %v10492_v60, %v10484_v43  ;;  %v10499_v38 = vsel %vm9209_vm14, %v10484_v43, %v10492_v60 }
 0x9cd   : > { %11256 = vmatmul.mubr.msk.f32.gmra.mrb[32].mxu1 %vm9607_vm0, %v9522_v52  ;;  %v10508_v37 = vmul.f32 %v10503_v14, %v15502_v2  ;;  %v10507_v24 = vmul.f32 %v10499_v38, %v15533_v9 }
 0x9ce   : > { %10309 = vmatprep.mubr.f32.mxu1 %v16529_v16 }
 0x9cf   : > { %v10488_v63 = vpop.permute.xlu1 %10487  ;;  %v10494_v33 = vpop.permute.xlu0 %10493 }
 0x9d0   : > { %v10504_v44 = vsel %vm9209_vm14, %v10494_v33, %v10486_v7  ;;  %v10500_v26 = vsel %vm9209_vm14, %v10486_v7, %v10494_v33  ;;  %v9530_v7 = vld [vmem:[%s16337_s4 + $0xd8] sm:$0xff] }
 0x9d1   : > { %v10510_v53 = vmul.f32 %v10504_v44, %v15502_v2  ;;  %11257 = vmatmul.mubr.msk.f32.vlgmr.msra.gmra.mrb[26].mxu1 %vm9607_vm0, %v9523_v46  ;;  %v10509_v57 = vmul.f32 %v10500_v26, %v15533_v9  ;;  %v9531_v46 = vld [vmem:[%s16337_s4 + $0xe0] sm:$0xff]  ;;  %v9532_v44 = vld [vmem:[%s16337_s4 + $0xe8] sm:$0xff] }
 0x9d2   : > { %11808 = vmatpush1.bf16.msra.mxu1 %v11807_v48  ;;  %10315 = vmatprep.mubr.f32.mxu1 %v16529_v16 }
 0x9d3   : > { %11810 = vmatprep.subr.bf16.mxu1 %v11809_v39  ;;  %v10496_v55 = vpop.permute.xlu1 %10495  ;;  %v10490_v20 = vpop.permute.xlu0 %10489  ;;  %v11813_v25 = vpack.c.bf16 %v10510_v53, %v10508_v37  ;;  %v11815_v0 = vpack.c.bf16 %v10509_v57, %v10507_v24  ;;  %v9535_v53 = vld [vmem:[%s16337_s4 + $0x100] sm:$0xff]  ;;  %v9536_v39 = vld [vmem:[%s16337_s4 + $0x108] sm:$0xff] }
 0x9d4   : > { %v10505_v13 = vsel %vm9209_vm14, %v10496_v55, %v10488_v63  ;;  %v10501_v36 = vsel %vm9209_vm14, %v10488_v63, %v10496_v55 }
 0x9d5   : > { %11258 = vmatmul.mubr.msk.f32.gmra.mrb[28].mxu1 %vm9607_vm0, %v9524_v29  ;;  %v10512_v15 = vmul.f32 %v10505_v13, %v15502_v2  ;;  %v10511_v4 = vmul.f32 %v10501_v36, %v15533_v9  ;;  %v9538_v29 = vld [vmem:[%s16337_s4 + $0x118] sm:$0xff]  ;;  %v10810_v36 = vld [vmem:[%s16345_s12 + $0x88] sm:$0xff] }
 0x9d6   : > { %11812 = vmatpush1.bf16.msra.mxu1 %v11811_v21  ;;  %10321 = vmatprep.mubr.f32.mxu1 %v16529_v16 }
 0x9d7   : > { %11814 = vmatprep.subr.bf16.mxu1 %v11813_v25  ;;  %v10625_v58 = vpop.permute.xlu1 %10624  ;;  %v10498_v49 = vpop.permute.xlu0 %10497 }
 0x9d8   : > { %v10506_v32 = vsel %vm9209_vm14, %v10498_v49, %v10490_v20  ;;  %v10502_v27 = vsel %vm9209_vm14, %v10490_v20, %v10498_v49 }
 0x9d9   : > { %11259 = vmatmul.mubr.msk.f32.gmra.mrb[30].mxu1 %vm9607_vm0, %v9525_v30  ;;  %v10514_v62 = vmul.f32 %v10506_v32, %v15502_v2  ;;  %v10513_v47 = vmul.f32 %v10502_v27, %v15533_v9  ;;  %v9528_v2 = vld [vmem:[%s16337_s4 + $0xc8] sm:$0xff]  ;;  %v9529_v9 = vld [vmem:[%s16337_s4 + $0xd0] sm:$0xff] }
 0x9da   : > { %10327 = vmatprep.mubr.f32.mxu1 %v16529_v16 }
 0x9db   : > { %v10633_v59 = vpop.permute.xlu1 %10632  ;;  %v10627_v18 = vpop.permute.xlu0 %10626  ;;  %v11817_v34 = vpack.c.bf16 %v10514_v62, %v10512_v15  ;;  %v11819_v41 = vpack.c.bf16 %v10513_v47, %v10511_v4  ;;  %v10793_v15 = vld [vmem:[%s16345_s12] sm:$0xff] }
 0x9dc   : > { %v10644_v8 = vsel %vm9346_vm15, %v10633_v59, %v10625_v58  ;;  %v10640_v40 = vsel %vm9346_vm15, %v10625_v58, %v10633_v59 }
 0x9dd   : > { %11260 = vmatmul.mubr.msk.f32.gmra.mrb[32].mxu1 %vm9607_vm0, %v9526_v6  ;;  %v10649_v17 = vmul.f32 %v10644_v8, %v15544_v10  ;;  %v10648_v14 = vmul.f32 %v10640_v40, %v15571_v1  ;;  %v10816_v40 = vld [vmem:[%s16345_s12 + $0xb8] sm:$0xff] }
 0x9de   : > { %10450 = vmatprep.mubr.f32.mxu1 %v16529_v16 }
 0x9df   : > { %v10635_v42 = vpop.permute.xlu0 %10634  ;;  %v10629_v23 = vpop.permute.xlu1 %10628 }
 0x9e0   : > { %v10645_v45 = vsel %vm9346_vm15, %v10635_v42, %v10627_v18  ;;  %v10641_v52 = vsel %vm9346_vm15, %v10627_v18, %v10635_v42 }
 0x9e1   : > { %v10651_v12 = vmul.f32 %v10645_v45, %v15544_v10  ;;  %11261 = vmatmul.mubr.msk.f32.vlgmr.msra.gmra.mrb[26].mxu1 %vm9607_vm0, %v9527_v28  ;;  %v10650_v56 = vmul.f32 %v10641_v52, %v15571_v1  ;;  %v10809_v28 = vld [vmem:[%s16345_s12 + $0x80] sm:$0xff]  ;;  %v10794_v45 = vld [vmem:[%s16345_s12 + $0x8] sm:$0xff] }
 0x9e2   : > { %11816 = vmatpush1.bf16.msra.mxu1 %v11815_v0  ;;  %10456 = vmatprep.mubr.f32.mxu1 %v16529_v16  ;;  %v11829_v47 = vpack.c.bf16 %v10810_v36, %v10809_v28  ;;  %v11831_v4 = vpack.c.bf16 %v10794_v45, %v10793_v15 }
 0x9e3   : > { %11818 = vmatprep.subr.bf16.mxu1 %v11817_v34  ;;  %v10631_v43 = vpop.permute.xlu0 %10630  ;;  %v11821_v61 = vpack.c.bf16 %v10651_v12, %v10649_v17  ;;  %v10637_v19 = vpop.permute.xlu1 %10636  ;;  %v11823_v63 = vpack.c.bf16 %v10650_v56, %v10648_v14  ;;  %v10811_v17 = vld [vmem:[%s16345_s12 + $0x90] sm:$0xff]  ;;  %v10812_v12 = vld [vmem:[%s16345_s12 + $0x98] sm:$0xff]  ;;  %v10817_v14 = vld [vmem:[%s16345_s12 + $0xc0] sm:$0xff] }
 0x9e4   : > { %v10646_v31 = vsel %vm9346_vm15, %v10637_v19, %v10629_v23  ;;  %v10642_v54 = vsel %vm9346_vm15, %v10629_v23, %v10637_v19  ;;  %v10795_v23 = vld [vmem:[%s16345_s12 + $0x10] sm:$0xff]  ;;  %11830 = vmatprep.subr.bf16.mxu0 %v11829_v47  ;;  %v10797_v19 = vld [vmem:[%s16345_s12 + $0x20] sm:$0xff] }
 0x9e5   : > { %11262 = vmatmul.mubr.msk.f32.gmra.mrb[28].mxu1 %vm9607_vm0, %v9528_v2  ;;  %v10653_v3 = vmul.f32 %v10646_v31, %v15544_v10  ;;  %v10652_v50 = vmul.f32 %v10642_v54, %v15571_v1  ;;  %v11833_v2 = vpack.c.bf16 %v10812_v12, %v10811_v17  ;;  %11832 = vmatpush3.bf16.msra.mxu0 %v11831_v4 }
 0x9e6   : > { %11820 = vmatpush1.bf16.msra.mxu1 %v11819_v41  ;;  %10462 = vmatprep.mubr.f32.mxu1 %v16529_v16  ;;  %v10814_v41 = vld [vmem:[%s16345_s12 + $0xa8] sm:$0xff] }
 0x9e7   : > { %11822 = vmatprep.subr.bf16.mxu1 %v11821_v61  ;;  %v10813_v61 = vld [vmem:[%s16345_s12 + $0xa0] sm:$0xff]  ;;  %11834 = vmatprep.subr.bf16.mxu0 %v11833_v2 }
 0x9e8   : > { %v10639_v22 = vpop.permute.xlu0 %10638  ;;  %v11837_v52 = vpack.c.bf16 %v10814_v41, %v10813_v61 }
 0x9e9   : > { %11263 = vmatmul.mubr.msk.f32.gmra.mrb[30].mxu1 %vm9607_vm0, %v9529_v9  ;;  %v10647_v60 = vsel %vm9346_vm15, %v10639_v22, %v10631_v43  ;;  %v10643_v35 = vsel %vm9346_vm15, %v10631_v43, %v10639_v22  ;;  %v10796_v43 = vld [vmem:[%s16345_s12 + $0x18] sm:$0xff] }
 0x9ea   : > { %10468 = vmatprep.mubr.f32.mxu1 %v16529_v16  ;;  %v10655_v51 = vmul.f32 %v10647_v60, %v15544_v10  ;;  %v10654_v33 = vmul.f32 %v10643_v35, %v15571_v1  ;;  %v9533_v10 = vld [vmem:[%s16337_s4 + $0xf0] sm:$0xff]  ;;  %v9534_v1 = vld [vmem:[%s16337_s4 + $0xf8] sm:$0xff]  ;;  %v11835_v22 = vpack.c.bf16 %v10796_v43, %v10795_v23  ;;  %v10798_v60 = vld [vmem:[%s16345_s12 + $0x28] sm:$0xff] }
 0x9eb   : > { %v11839_v56 = vpack.c.bf16 %v10798_v60, %v10797_v19  ;;  %v10799_v35 = vld [vmem:[%s16345_s12 + $0x30] sm:$0xff] }
 0x9ec   : > { %v11825_v48 = vpack.c.bf16 %v10655_v51, %v10653_v3  ;;  %v11827_v37 = vpack.c.bf16 %v10654_v33, %v10652_v50  ;;  %11836 = vmatpush3.bf16.msra.mxu0 %v11835_v22  ;;  %v10800_v51 = vld [vmem:[%s16345_s12 + $0x38] sm:$0xff]  ;;  %v10802_v33 = vld [vmem:[%s16345_s12 + $0x48] sm:$0xff] }
 0x9ed   : > { %11264 = vmatmul.mubr.msk.f32.gmra.mrb[32].mxu1 %vm9607_vm0, %v9530_v7  ;;  %v10815_v7 = vld [vmem:[%s16345_s12 + $0xb0] sm:$0xff]  ;;  %11838 = vmatprep.subr.bf16.mxu0 %v11837_v52  ;;  %v11843_v54 = vpack.c.bf16 %v10800_v51, %v10799_v35  ;;  %v10820_v50 = vld [vmem:[%s16345_s12 + $0xd8] sm:$0xff] }
 0x9ee   : > { %10591 = vmatprep.mubr.f32.mxu1 %v16529_v16  ;;  %v11841_v31 = vpack.c.bf16 %v10816_v40, %v10815_v7 }
 0x9f0   : > { %11840 = vmatpush3.bf16.msra.mxu0 %v11839_v56 }
 0x9f1   : > { %11265 = vmatmul.mubr.msk.f32.vlgmr.msra.gmra.mrb[26].mxu1 %vm9607_vm0, %v9531_v46  ;;  %v10818_v46 = vld [vmem:[%s16345_s12 + $0xc8] sm:$0xff]  ;;  %11842 = vmatprep.subr.bf16.mxu0 %v11841_v31 }
 0x9f2   : > { %11824 = vmatpush1.bf16.msra.mxu1 %v11823_v63  ;;  %10597 = vmatprep.mubr.f32.mxu1 %v16529_v16  ;;  %v11845_v3 = vpack.c.bf16 %v10818_v46, %v10817_v14  ;;  %v10801_v63 = vld [vmem:[%s16345_s12 + $0x40] sm:$0xff] }
 0x9f3   : > { %11826 = vmatprep.subr.bf16.mxu1 %v11825_v48  ;;  %v10819_v48 = vld [vmem:[%s16345_s12 + $0xd0] sm:$0xff] }
 0x9f4   : > { %v10768_v55 = vpop.permute.xlu1 %10767  ;;  %11844 = vmatpush3.bf16.msra.mxu0 %v11843_v54 }
 0x9f5   : > { %11266 = vmatmul.mubr.msk.f32.gmra.mrb[28].mxu1 %vm9607_vm0, %v9532_v44  ;;  %v11847_v44 = vpack.c.bf16 %v10802_v33, %v10801_v63  ;;  %11846 = vmatprep.subr.bf16.mxu0 %v11845_v3 }
 0x9f6   : > { %11828 = vmatpush1.bf16.msra.mxu1 %v11827_v37  ;;  %10603 = vmatprep.mubr.f32.mxu1 %v16529_v16  ;;  %v11849_v37 = vpack.c.bf16 %v10820_v50, %v10819_v48 }
 0x9f8   : > { %v10778_v38 = vpop.permute.xlu1 %10777  ;;  %11848 = vmatpush3.bf16.msra.mxu0 %v11847_v44 }
 0x9f9   : > { %11267 = vmatmul.mubr.msk.f32.gmra.mrb[30].mxu1 %vm9607_vm0, %v9533_v10  ;;  %v10773_v58 = vpop.permute.xlu0 %10772  ;;  %v10803_v10 = vld [vmem:[%s16345_s12 + $0x50] sm:$0xff]  ;;  %11850 = vmatprep.subr.bf16.mxu0 %v11849_v37 }
 0x9fa   : > { %10609 = vmatprep.mubr.f32.mxu1 %v16529_v16 }
 0x9fd   : > { %11268 = vmatmul.mubr.msk.f32.gmra.mrb[32].mxu1 %vm9607_vm0, %v9534_v1  ;;  %v10783_v62 = vpop.permute.xlu0 %10782  ;;  %v10804_v1 = vld [vmem:[%s16345_s12 + $0x58] sm:$0xff] }
 0x9fe   : > { %10732 = vmatprep.mubr.f32.mxu1 %v16529_v16 }
 0xa01   : > { %11269 = vmatmul.mubr.msk.f32.vlgmr.msra.gmra.mrb[26].mxu1 %vm9607_vm0, %v9535_v53  ;;  %v10821_v53 = vld [vmem:[%s16345_s12 + $0xe0] sm:$0xff] }
 0xa02   : > { %10738 = vmatprep.mubr.f32.mxu1 %v16529_v16 }
 0xa05   : > { %11270 = vmatmul.mubr.msk.f32.gmra.mrb[28].mxu1 %vm9607_vm0, %v9536_v39  ;;  %v10822_v39 = vld [vmem:[%s16345_s12 + $0xe8] sm:$0xff] }
 0xa06   : > { %10744 = vmatprep.mubr.f32.mxu1 %v16529_v16 }
 0xa09   : > { %11271 = vmatmul.mubr.msk.f32.gmra.mrb[30].mxu1 %vm9607_vm0, %v9537_v5  ;;  %v11851_v5 = vpack.c.bf16 %v10804_v1, %v10803_v10 }
 0xa0a   : > { %10750 = vmatprep.mubr.f32.mxu1 %v16529_v16 }
 0xa0b   : > { %11852 = vmatpush3.bf16.msra.mxu0 %v11851_v5 }
 0xa0d   : > { %11272 = vmatmul.mubr.msk.f32.gmra.mrb[32].mxu1 %vm9607_vm0, %v9538_v29  ;;  %v11853_v29 = vpack.c.bf16 %v10822_v39, %v10821_v53 }
 0xa0f   : > { %11854 = vmatprep.subr.bf16.mxu0 %v11853_v29 }
 0xad4   : > { %v10734_v20 = vpop.f32.mrb[26].mxu1 }
 0xad5   : > { %v16158_v25 = vadd.f32 %v10768_v55, %v10734_v20  ;;  %v10736_v21 = vpop.f32.mrb[27].mxu1  ;;  %v10806_v20 = vld [vmem:[%s16345_s12 + $0x68] sm:$0xff] }
 0xad6   : > { %v16160_v30 = vadd.f32 %v10768_v55, %v10736_v21  ;;  %v10805_v55 = vld [vmem:[%s16345_s12 + $0x60] sm:$0xff] }
 0xad7   : > { %v11855_v21 = vpack.c.bf16 %v10806_v20, %v10805_v55 }
 0xad8   : > { %v12368_v49 = vpack.i.bf16 %v16160_v30, %v16158_v25  ;;  %v10740_v26 = vpop.f32.mrb[28].mxu1 }
 0xad9   : > { %v16164_v32 = vadd.f32 %v10773_v58, %v10740_v26  ;;  %v10742_v16 = vpop.f32.mrb[29].mxu1  ;;  %11856 = vmatpush3.bf16.msra.mxu0 %v11855_v21 }
 0xada   : > { %v16166_v6 = vadd.f32 %v10773_v58, %v10742_v16  ;;  %12369 = vrot.lane.b32.xlu1 %v12368_v49, %s12456_s19  ;;  %v10823_v58 = vld [vmem:[%s16345_s12 + $0xf0] sm:$0xff]  ;;  %v10824_v49 = vld [vmem:[%s16345_s12 + $0xf8] sm:$0xff] }
 0xadb   : > { %v11857_v26 = vpack.c.bf16 %v10824_v49, %v10823_v58  ;;  %v10807_v16 = vld [vmem:[%s16345_s12 + $0x70] sm:$0xff] }
 0xadc   : > { %v12373_v59 = vpack.i.bf16 %v16166_v6, %v16164_v32  ;;  %v10746_v18 = vpop.f32.mrb[30].mxu1 }
 0xadd   : > { %v16171_v57 = vadd.f32 %v10778_v38, %v10746_v18  ;;  %v10748_v13 = vpop.f32.mrb[31].mxu1  ;;  %11858 = vmatprep.subr.bf16.mxu0 %v11857_v26 }
 0xade   : > { %v16173_v27 = vadd.f32 %v10778_v38, %v10748_v13  ;;  %12374 = vrot.lane.b32.xlu0 %v12373_v59, %s12456_s19  ;;  %v10808_v38 = vld [vmem:[%s16345_s12 + $0x78] sm:$0xff] }
 0xadf   : > { %v11859_v59 = vpack.c.bf16 %v10808_v38, %v10807_v16 }
 0xae0   : > { %v12378_v24 = vpack.i.bf16 %v16173_v27, %v16171_v57  ;;  %v10752_v8 = vpop.f32.mrb[32].mxu1 }
 0xae1   : > { %v16187_v42 = vadd.f32 %v10783_v62, %v10752_v8  ;;  %v10754_v0 = vpop.f32.mrb[33].mxu1  ;;  %11860 = vmatpush3.bf16.msra.mxu0 %v11859_v59 }
 0xae2   : > { %v16198_v34 = vadd.f32 %v10783_v62, %v10754_v0  ;;  %12379 = vrot.lane.b32.xlu1 %v12378_v24, %s12456_s19 }
 0xae4   : > { %v12383_v9 = vpack.i.bf16 %v16198_v34, %v16187_v42 }
 0xae6   : > { %12384 = vrot.lane.b32.xlu0 %v12383_v9, %s12456_s19 }
 0xb4c   : > { %v12370_v18 = vpop.permute.xlu1 %12369 }
 0xb4d   : > { %v12372_v13 = vunpack.i.h.bf16 %v12370_v18  ;;  %v12371_v62 = vunpack.i.l.bf16 %v12370_v18 }
 0xb4f   : > { %v10841_v24 = vsel %vm2433_vm5, %v12371_v62, %v12372_v13  ;;  %v10845_v8 = vsel %vm2433_vm5, %v12372_v13, %v12371_v62 }
 0xb50   : > { %v10849_v28 = vmax.f32 %v16158_v25, %v10841_v24  ;;  %v10850_v36 = vmax.f32 %v16160_v30, %v10845_v8  ;;  %v12375_v15 = vpop.permute.xlu0 %12374 }
 0xb51   : > { %v12377_v0 = vunpack.i.h.bf16 %v12375_v15  ;;  %v12376_v47 = vunpack.i.l.bf16 %v12375_v15 }
 0xb52   : > { %v12388_v45 = vpack.i.bf16 %v10850_v36, %v10849_v28 }
 0xb53   : > { %v10842_v17 = vsel %vm2433_vm5, %v12376_v47, %v12377_v0  ;;  %v10846_v12 = vsel %vm2433_vm5, %v12377_v0, %v12376_v47 }
 0xb54   : > { %v10851_v4 = vmax.f32 %v16164_v32, %v10842_v17  ;;  %v10852_v2 = vmax.f32 %v16166_v6, %v10846_v12  ;;  %12389 = vrot.lane.b32.xlu1 %v12388_v45, %s16679_s18  ;;  %v12380_v23 = vpop.permute.xlu1 %12379 }
 0xb55   : > { %v12382_v25 = vunpack.i.h.bf16 %v12380_v23  ;;  %v12381_v43 = vunpack.i.l.bf16 %v12380_v23 }
 0xb56   : > { %v12393_v30 = vpack.i.bf16 %v10852_v2, %v10851_v4 }
 0xb57   : > { %v10843_v61 = vsel %vm2433_vm5, %v12381_v43, %v12382_v25  ;;  %v10847_v41 = vsel %vm2433_vm5, %v12382_v25, %v12381_v43 }
 0xb58   : > { %v10853_v9 = vmax.f32 %v16171_v57, %v10843_v61  ;;  %v10854_v22 = vmax.f32 %v16173_v27, %v10847_v41  ;;  %12394 = vrot.lane.b32.xlu0 %v12393_v30, %s16679_s18  ;;  %v12385_v32 = vpop.permute.xlu0 %12384 }
 0xb59   : > { %v12387_v6 = vunpack.i.h.bf16 %v12385_v32  ;;  %v12386_v52 = vunpack.i.l.bf16 %v12385_v32 }
 0xb5a   : > { %v12398_v19 = vpack.i.bf16 %v10854_v22, %v10853_v9 }
 0xb5b   : > { %v10844_v60 = vsel %vm2433_vm5, %v12386_v52, %v12387_v6  ;;  %v10848_v7 = vsel %vm2433_vm5, %v12387_v6, %v12386_v52 }
 0xb5c   : > { %v10855_v40 = vmax.f32 %v16187_v42, %v10844_v60  ;;  %v10856_v56 = vmax.f32 %v16198_v34, %v10848_v7  ;;  %12399 = vrot.lane.b32.xlu1 %v12398_v19, %s16679_s18 }
 0xb5e   : > { %v12403_v57 = vpack.i.bf16 %v10856_v56, %v10855_v40 }
 0xb60   : > { %12404 = vrot.lane.b32.xlu0 %v12403_v57, %s16679_s18  ;;  %s11276_s18 = sshll.u32 %s16681_s26, 5 }
 0xb61   : > { %s455_s21 = scalar_lea.vmem %s16346_s13, %s11276_s18 }
 0xbc6   : > { %v12390_v27 = vpop.permute.xlu1 %12389 }
 0xbc7   : > { %v12392_v31 = vunpack.i.h.bf16 %v12390_v27  ;;  %v12391_v35 = vunpack.i.l.bf16 %v12390_v27 }
 0xbc9   : > { %v10873_v51 = vsel %vm9209_vm14, %v12391_v35, %v12392_v31  ;;  %v10877_v14 = vsel %vm9209_vm14, %v12392_v31, %v12391_v35 }
 0xbca   : > { %v10881_v46 = vmax.f32 %v10849_v28, %v10873_v51  ;;  %v12395_v54 = vpop.permute.xlu0 %12394  ;;  %v10882_v3 = vmax.f32 %v10850_v36, %v10877_v14 }
 0xbcb   : > { %v12397_v42 = vunpack.i.h.bf16 %v12395_v54  ;;  %v12396_v63 = vunpack.i.l.bf16 %v12395_v54 }
 0xbcc   : > { %10953 = vmatprep.mubr.f32.mxu0 %v10882_v3 }
 0xbcd   : > { %10954 = vmatmul.mubr.f32.vlgmr.msra.gmra.mrb[20].mxu0 %v10881_v46  ;;  %v10878_v34 = vsel %vm9209_vm14, %v12397_v42, %v12396_v63  ;;  %v10874_v33 = vsel %vm9209_vm14, %v12396_v63, %v12397_v42 }
 0xbce   : > { %v12400_v48 = vpop.permute.xlu1 %12399  ;;  %v10884_v50 = vmax.f32 %v10852_v2, %v10878_v34  ;;  %v10883_v44 = vmax.f32 %v10851_v4, %v10874_v33 }
 0xbcf   : > { %v12402_v37 = vunpack.i.h.bf16 %v12400_v48  ;;  %v12401_v10 = vunpack.i.l.bf16 %v12400_v48 }
 0xbd0   : > { %10958 = vmatprep.mubr.f32.mxu0 %v10884_v50 }
 0xbd1   : > { %10959 = vmatmul.mubr.f32.gmra.mrb[22].mxu0 %v10883_v44  ;;  %v10879_v1 = vsel %vm9209_vm14, %v12402_v37, %v12401_v10  ;;  %v10875_v53 = vsel %vm9209_vm14, %v12401_v10, %v12402_v37 }
 0xbd2   : > { %v12405_v39 = vpop.permute.xlu0 %12404  ;;  %v10886_v5 = vmax.f32 %v10854_v22, %v10879_v1  ;;  %v10885_v29 = vmax.f32 %v10853_v9, %v10875_v53 }
 0xbd3   : > { %v12407_v55 = vunpack.i.h.bf16 %v12405_v39  ;;  %v12406_v20 = vunpack.i.l.bf16 %v12405_v39 }
 0xbd4   : > { %10963 = vmatprep.mubr.f32.mxu0 %v10886_v5 }
 0xbd5   : > { %10964 = vmatmul.mubr.f32.gmra.mrb[24].mxu0 %v10885_v29  ;;  %v10880_v21 = vsel %vm9209_vm14, %v12407_v55, %v12406_v20  ;;  %v10876_v58 = vsel %vm9209_vm14, %v12406_v20, %v12407_v55 }
 0xbd6   : > { %v10888_v49 = vmax.f32 %v10856_v56, %v10880_v21  ;;  %v10887_v26 = vmax.f32 %v10855_v40, %v10876_v58 }
 0xbd8   : > { %10968 = vmatprep.mubr.f32.mxu0 %v10888_v49 }
 0xbd9   : > { %10969 = vmatmul.mubr.f32.gmra.mrb[26].mxu0 %v10887_v26 }
 0xca0   : > { %v11309_v16 = vpop.f32.mrb[20].mxu0 }
 0xca1   : > { %v11310_v38 = vpop.f32.mrb[21].mxu0 }
 0xca2   : > { %v11311_v59 = vadd.f32 %v11310_v38, %v11309_v16 }
 0xca4   : > { %10975 = vst.msk [vmem:[%s455_s21] sm:$0xff] %vm10974_vm1, %v11311_v59  ;;  %v11312_v18 = vpop.f32.mrb[22].mxu0 }
 0xca5   : > { %v11313_v13 = vpop.f32.mrb[23].mxu0 }
 0xca6   : > { %v11314_v62 = vadd.f32 %v11313_v13, %v11312_v18 }
 0xca8   : > { %10976 = vst.msk [vmem:[%s455_s21 + $0x8] sm:$0xff] %vm10974_vm1, %v11314_v62  ;;  %v11315_v11 = vpop.f32.mrb[24].mxu0 }
 0xca9   : > { %v11316_v24 = vpop.f32.mrb[25].mxu0 }
 0xcaa   : > { %v11317_v8 = vadd.f32 %v11316_v24, %v11315_v11 }
 0xcac   : > { %10977 = vst.msk [vmem:[%s455_s21 + $0x10] sm:$0xff] %vm10974_vm1, %v11317_v8  ;;  %v11318_v28 = vpop.f32.mrb[26].mxu0 }
 0xcad   : > { %v11319_v36 = vpop.f32.mrb[27].mxu0 }
 0xcae   : > { %v11320_v15 = vadd.f32 %v11319_v36, %v11318_v28 }
 0xcb0   : > { %10978 = vst.msk [vmem:[%s455_s21 + $0x18] sm:$0xff] %vm10974_vm1, %v11320_v15 }
 0xcb1 PF: > { %s24_s25 = sadd.s32 1, %s12446_s25  }
 0xcb2   : > { %p21_p3 = scmp.ge.s32.totalorder %s24_s25, 4  }
 0xcb4   :  { %23 = sbr.rel (!%p21_p3) target bundleno = 1 (0x1), region = 107 }
 0xcbb   :  { %11000 = vsyncpa [#allocation3], 1 }
 0xcbc   :  { %11002 = vsyncpa [#allocation3 + $0x1], 1 }

</bundles_post_ra>
